<compile_context>
chip_gen: v7x
topology: tpu7x:2x2x1
jax: 0.10.0
libtpu: 0.0.40
codegen_flags: <defaults>
</compile_context>

<pallas_src>
import math
import jax
import jax.numpy as jnp
from jax import lax
from jax.experimental import pallas as pl
from jax.experimental.pallas import tpu as pltpu

_BF16 = jnp.bfloat16
_LANES = 128
_VMEM_LIMIT = 32 * 1024 * 1024      # safe on v5e / v6e / v7x (64 MiB VMEM per TC)


def _ru(x, m):
    return (x + m - 1) // m * m


def _cdiv(a, b):
    return (a + b - 1) // b


# =============================================================================
# Kernel 1: direct 3x3 / stride-1 / pad-1 convolution with fused input
# BN-affine + ReLU prologue and fused BatchNorm batch statistics.
#
# The padded NHWC activation is flattened to a (rows, 128) slab with row stride
# Wpp (multiple of 8).  Each grid step loads a (TM, 128) main block plus a
# (hb, 128) halo block, applies relu(x * scale + shift) * valid_mask, and
# accumulates the 9 taps as bf16 MXU matmuls: kh shifts are 8-aligned views,
# kw shifts are two sublane-shifted slices.  Output is bf16 in "corner" layout
# (output pixel (h, w) at row h*Wpp + w); packed stats (sum | sumsq) per tile.
# =============================================================================
def _make_conv3x3_kernel(Wpp, TM):
    def kern(x0_ref, x1_ref, m0_ref, m1_ref, s_ref, b_ref, w_ref, o_ref, st_ref):
        xc = jnp.concatenate([x0_ref[...], x1_ref[...]], axis=0).astype(jnp.float32)
        mc = jnp.concatenate([m0_ref[...], m1_ref[...]], axis=0)          # (L, 2)
        # fused previous-layer BN affine + ReLU; mask forces padding rows to 0
        a = jnp.maximum(xc * s_ref[...] + b_ref[...], 0.0) * mc[:, 0:1]
        a = a.astype(jnp.bfloat16)
        acc = jnp.zeros((TM, _LANES), jnp.float32)
        for kw in range(3):                      # kw=0 aligned view; kw=1,2 one shift each
            ak = a[kw:kw + TM + 2 * Wpp, :]
            for kh in range(3):                  # kh*Wpp offsets are 8-aligned views
                acc = acc + jnp.dot(ak[kh * Wpp: kh * Wpp + TM, :],
                                    w_ref[kh * 3 + kw],
                                    preferred_element_type=jnp.float32)
        o_ref[...] = acc.astype(o_ref.dtype)
        mo = m0_ref[:, 1:2]                      # output-row (corner) validity
        ym = acc * mo
        s = jnp.sum(ym, axis=0, keepdims=True)
        q = jnp.sum(ym * acc, axis=0, keepdims=True)
        st_ref[...] = jnp.broadcast_to(jnp.concatenate([s, q], axis=1)[None],
                                       st_ref.shape)
    return kern


def _slab_meta(N, H, W):
    Hp = H + 2
    Wpp = _ru(W + 2, 8)                 # 8-aligned padded row stride
    Mq = N * Hp * Wpp
    hb = _ru(2 * Wpp + 2, 8)            # halo covers the largest tap offset
    nt = max(1, _cdiv(Mq, 256))
    if nt == 1 and Mq >= 2 * hb:
        nt = 2                          # >= 2 "parallel" steps (v7x megacore)
    TM = _ru(_cdiv(Mq, nt), hb)         # tile is a multiple of the halo size
    nt = _cdiv(Mq, TM)
    Mo = nt * TM
    return dict(N=N, H=H, W=W, Hp=Hp, Wpp=Wpp, Mq=Mq,
                hb=hb, TM=TM, nt=nt, Mo=Mo, Mx=Mo + hb)


def _slab_masks(meta):
    """(Mx, 2) f32: col 0 = center-valid (input rows), col 1 = corner-valid (output rows)."""
    g = jnp.arange(meta['Mx'], dtype=jnp.int32)
    within = g % (meta['Hp'] * meta['Wpp'])
    ip = within // meta['Wpp']
    jp = within % meta['Wpp']
    real = g < meta['Mq']
    center = real & (ip >= 1) & (ip <= meta['H']) & (jp >= 1) & (jp <= meta['W'])
    corner = real & (ip < meta['H']) & (jp < meta['W'])
    return jnp.stack([center, corner], axis=1).astype(jnp.float32)


def _dense_to_slab(x_dense, meta):
    """(N, H, W, 128) -> (Mx, 128) bf16 center-layout padded slab."""
    W = meta['W']
    xp = jnp.pad(x_dense.astype(_BF16),
                 ((0, 0), (1, 1), (1, meta['Wpp'] - W - 1), (0, 0)))
    xf = xp.reshape(meta['N'] * meta['Hp'] * meta['Wpp'], _LANES)
    return jnp.pad(xf, ((0, meta['Mx'] - meta['Mq']), (0, 0)))


def _corner_to_dense(y, meta):
    """conv output (Mo, 128) corner layout -> dense (N, H, W, 128)."""
    y4 = y[:meta['Mq']].reshape(meta['N'], meta['Hp'], meta['Wpp'], _LANES)
    return y4[:, :meta['H'], :meta['W'], :]


def conv3x3_s1(slab, masks, scale, shift, w9, meta):
    TM, hb, nt, Wpp = meta['TM'], meta['hb'], meta['nt'], meta['Wpp']
    R = TM // hb
    s2 = scale.reshape(1, _LANES).astype(jnp.float32)
    b2 = shift.reshape(1, _LANES).astype(jnp.float32)
    y, st = pl.pallas_call(
        _make_conv3x3_kernel(Wpp, TM),
        out_shape=(jax.ShapeDtypeStruct((meta['Mo'], _LANES), _BF16),
                   jax.ShapeDtypeStruct((nt, 8, 2 * _LANES), jnp.float32)),
        grid_spec=pltpu.PrefetchScalarGridSpec(
            num_scalar_prefetch=0,
            grid=(nt,),
            in_specs=[pl.BlockSpec((TM, _LANES), lambda i: (i, 0)),
                      pl.BlockSpec((hb, _LANES), lambda i: ((i + 1) * R, 0)),
                      pl.BlockSpec((TM, 2), lambda i: (i, 0)),
                      pl.BlockSpec((hb, 2), lambda i: ((i + 1) * R, 0)),
                      pl.BlockSpec((1, _LANES), lambda i: (0, 0)),
                      pl.BlockSpec((1, _LANES), lambda i: (0, 0)),
                      pl.BlockSpec((9, _LANES, _LANES), lambda i: (0, 0, 0))],
            out_specs=(pl.BlockSpec((TM, _LANES), lambda i: (i, 0)),
                       pl.BlockSpec((1, 8, 2 * _LANES), lambda i: (i, 0, 0)))),
        compiler_params=pltpu.CompilerParams(
            dimension_semantics=("parallel",),
            vmem_limit_bytes=_VMEM_LIMIT),
    )(slab, slab, masks, masks, s2, b2, w9)
    return y, st


def _bn_from_stats(st, gamma_p, beta_p, count, eps=1e-5):
    s = jnp.sum(st[:, 0, :_LANES], axis=0)
    q = jnp.sum(st[:, 0, _LANES:], axis=0)
    mean = s / count
    var = jnp.maximum(q / count - mean * mean, 0.0)     # biased (training-mode BN)
    inv = gamma_p * lax.rsqrt(var + eps)
    shift = beta_p - mean * inv
    return inv, shift


# =============================================================================
# Kernel 2: matmul with fused BN batch statistics (im2col convs).  1-D grid
# over M, full-K resident blocks (K <= 1152), bf16 output.  No bias, so padded
# rows contribute exactly zero to the statistics.
# =============================================================================
def _mm_stats_kernel(a_ref, b_ref, o_ref, st_ref):
    y = jnp.dot(a_ref[...], b_ref[...], preferred_element_type=jnp.float32)
    o_ref[...] = y.astype(o_ref.dtype)
    s = jnp.sum(y, axis=0, keepdims=True)
    q = jnp.sum(y * y, axis=0, keepdims=True)
    st_ref[...] = jnp.broadcast_to(jnp.concatenate([s, q], axis=1)[None], st_ref.shape)


def matmul_stats(a, b_padded):
    M, K = a.shape
    Kp, Np = b_padded.shape
    tm = min(256, _ru(M, 8))
    nt = _cdiv(M, tm)
    if nt == 1 and M >= 16:
        tm = _ru(_cdiv(M, 2), 8)
        nt = _cdiv(M, tm)
    Mp = nt * tm
    a_bf = a.astype(_BF16)
    if (Mp, Kp) != (M, K):
        a_bf = jnp.pad(a_bf, ((0, Mp - M), (0, Kp - K)))
    y, st = pl.pallas_call(
        _mm_stats_kernel,
        out_shape=(jax.ShapeDtypeStruct((Mp, Np), _BF16),
                   jax.ShapeDtypeStruct((nt, 8, 2 * Np), jnp.float32)),
        grid_spec=pltpu.PrefetchScalarGridSpec(
            num_scalar_prefetch=0,
            grid=(nt,),
            in_specs=[pl.BlockSpec((tm, Kp), lambda i: (i, 0)),
                      pl.BlockSpec((Kp, Np), lambda i: (0, 0))],
            out_specs=(pl.BlockSpec((tm, Np), lambda i: (i, 0)),
                       pl.BlockSpec((1, 8, 2 * Np), lambda i: (i, 0, 0)))),
        compiler_params=pltpu.CompilerParams(
            dimension_semantics=("parallel",),
            vmem_limit_bytes=_VMEM_LIMIT),
    )(a_bf, b_padded)
    return (y[:M] if Mp != M else y), st


# =============================================================================
# Kernel 3: matmul + bias (final FC), no stats, f32 output.
# =============================================================================
def _mm_bias_kernel(a_ref, b_ref, bias_ref, o_ref):
    o_ref[...] = jnp.dot(a_ref[...], b_ref[...],
                         preferred_element_type=jnp.float32) + bias_ref[...]


def matmul_bias(a, b_padded, bias):
    M, K = a.shape
    Kp, Np = b_padded.shape
    tm = min(256, _ru(M, 8))
    nt = _cdiv(M, tm)
    Mp = nt * tm
    a_bf = a.astype(_BF16)
    if (Mp, Kp) != (M, K):
        a_bf = jnp.pad(a_bf, ((0, Mp - M), (0, Kp - K)))
    out = pl.pallas_call(
        _mm_bias_kernel,
        out_shape=jax.ShapeDtypeStruct((Mp, Np), jnp.float32),
        grid_spec=pltpu.PrefetchScalarGridSpec(
            num_scalar_prefetch=0,
            grid=(nt,),
            in_specs=[pl.BlockSpec((tm, Kp), lambda i: (i, 0)),
                      pl.BlockSpec((Kp, Np), lambda i: (0, 0)),
                      pl.BlockSpec((1, Np), lambda i: (0, 0))],
            out_specs=pl.BlockSpec((tm, Np), lambda i: (i, 0))),
        compiler_params=pltpu.CompilerParams(
            dimension_semantics=("parallel",),
            vmem_limit_bytes=_VMEM_LIMIT),
    )(a_bf, b_padded, bias)
    return out[:M] if Mp != M else out


# =============================================================================
# Kernel 4: fused BN affine (+ residual with optional second affine) (+ ReLU):
#   out = relu(x*s + b [+ (res*rs + rb)]).  Row-tiled, f32 math, bf16 output.
# =============================================================================
def _make_affine_kernel(relu, with_res, res_affine):
    def kern(*refs):
        if with_res and res_affine:
            x_ref, s_ref, b_ref, r_ref, rs_ref, rb_ref, o_ref = refs
        elif with_res:
            x_ref, s_ref, b_ref, r_ref, o_ref = refs
        else:
            x_ref, s_ref, b_ref, o_ref = refs
        y = x_ref[...].astype(jnp.float32) * s_ref[...] + b_ref[...]
        if with_res:
            r = r_ref[...].astype(jnp.float32)
            if res_affine:
                r = r * rs_ref[...] + rb_ref[...]
            y = y + r
        if relu:
            y = jnp.maximum(y, 0.0)
        o_ref[...] = y.astype(o_ref.dtype)
    return kern


def affine_act(x2d, scale, shift, res=None, res_scale=None, res_shift=None,
               relu=True, out_dtype=_BF16):
    M, C = x2d.shape
    tm = min(512, _ru(M, 8))
    nt = _cdiv(M, tm)
    if nt == 1 and M >= 16:
        tm = _ru(_cdiv(M, 2), 8)        # >= 2 parallel steps (v7x)
        nt = _cdiv(M, tm)
    Mp = nt * tm
    xp = x2d if Mp == M else jnp.pad(x2d, ((0, Mp - M), (0, 0)))
    args = [xp, scale.reshape(1, C).astype(jnp.float32),
            shift.reshape(1, C).astype(jnp.float32)]
    in_specs = [pl.BlockSpec((tm, C), lambda i: (i, 0)),
                pl.BlockSpec((1, C), lambda i: (0, 0)),
                pl.BlockSpec((1, C), lambda i: (0, 0))]
    with_res = res is not None
    res_aff = with_res and (res_scale is not None)
    if with_res:
        rp = res if Mp == M else jnp.pad(res, ((0, Mp - M), (0, 0)))
        args.append(rp)
        in_specs.append(pl.BlockSpec((tm, C), lambda i: (i, 0)))
        if res_aff:
            args += [res_scale.reshape(1, C).astype(jnp.float32),
                     res_shift.reshape(1, C).astype(jnp.float32)]
            in_specs += [pl.BlockSpec((1, C), lambda i: (0, 0)),
                         pl.BlockSpec((1, C), lambda i: (0, 0))]
    out = pl.pallas_call(
        _make_affine_kernel(relu, with_res, res_aff),
        out_shape=jax.ShapeDtypeStruct((Mp, C), out_dtype),
        grid_spec=pltpu.PrefetchScalarGridSpec(
            num_scalar_prefetch=0,
            grid=(nt,),
            in_specs=in_specs,
            out_specs=pl.BlockSpec((tm, C), lambda i: (i, 0))),
        compiler_params=pltpu.CompilerParams(
            dimension_semantics=("parallel",),
            vmem_limit_bytes=_VMEM_LIMIT),
    )(*args)
    return out[:M] if Mp != M else out


# =============================================================================
# Strided convolutions (7x7/s2 stem, 3x3/s2, 1x1/s2 downsample): host-side
# im2col feeding the stats matmul kernel.
# TODO(synk): strided convs keep host-side im2col (direct kernel covers s1 only).
# =============================================================================
def _im2col(x, KH, KW, stride, padding):
    N, H, W, Cin = x.shape
    xp = jnp.pad(x, ((0, 0), (padding, padding), (padding, padding), (0, 0)))
    OH = (H + 2 * padding - KH) // stride + 1
    OW = (W + 2 * padding - KW) // stride + 1
    cols = []
    for kh in range(KH):
        for kw in range(KW):
            cols.append(xp[:, kh:kh + (OH - 1) * stride + 1:stride,
                           kw:kw + (OW - 1) * stride + 1:stride, :])
    patches = jnp.concatenate(cols, axis=-1).reshape(N * OH * OW, KH * KW * Cin)
    return patches, OH, OW


def maxpool_3x3_s2_p1(x):
    # TODO(synk): 3x3/s2 max-pool via lax.reduce_window (no Pallas pooling kernel).
    y = lax.reduce_window(
        x.astype(jnp.float32), -jnp.inf, lax.max,
        window_dimensions=(1, 3, 3, 1),
        window_strides=(1, 2, 2, 1),
        padding=((0, 0), (1, 1), (1, 1), (0, 0)))
    return y.astype(_BF16)


# =============================================================================
# BasicBlock / ResNet forward.
# =============================================================================
def basic_block_fwd(p, x, H, W):
    N = x.shape[0]
    stride = p['stride']
    ones = jnp.ones((_LANES,), jnp.float32)
    zeros = jnp.zeros((_LANES,), jnp.float32)

    if stride == 1:
        meta = _slab_meta(N, H, W)
        masks = _slab_masks(meta)
        slab1 = _dense_to_slab(x, meta)
        y1, st1 = conv3x3_s1(slab1, masks, ones, zeros, p['conv1_w9'], meta)
        s1, b1 = _bn_from_stats(st1, p['bn1_g'], p['bn1_b'], count=float(N * H * W))
        OH, OW = H, W
        slab2 = _dense_to_slab(_corner_to_dense(y1, meta), meta)   # pre-BN, re-padded
    else:
        patches, OH, OW = _im2col(x, 3, 3, stride, 1)
        y1, st1 = matmul_stats(patches, p['conv1_wm'])
        s1, b1 = _bn_from_stats(st1, p['bn1_g'], p['bn1_b'], count=float(N * OH * OW))
        meta = _slab_meta(N, OH, OW)
        masks = _slab_masks(meta)
        slab2 = _dense_to_slab(y1.reshape(N, OH, OW, _LANES), meta)

    # conv2 with BN1 + ReLU fused into the prologue
    y2, st2 = conv3x3_s1(slab2, masks, s1, b1, p['conv2_w9'], meta)
    s2, b2 = _bn_from_stats(st2, p['bn2_g'], p['bn2_b'], count=float(N * OH * OW))
    y2d = _corner_to_dense(y2, meta).reshape(N * OH * OW, _LANES)

    if 'ds_wm' in p:
        dpatch, _, _ = _im2col(x, 1, 1, stride, 0)
        yd, std = matmul_stats(dpatch, p['ds_wm'])
        sd, bd = _bn_from_stats(std, p['ds_g'], p['ds_b'], count=float(N * OH * OW))
        out = affine_act(y2d, s2, b2, res=yd, res_scale=sd, res_shift=bd, relu=True)
    else:
        out = affine_act(y2d, s2, b2, res=x.reshape(N * H * W, _LANES), relu=True)
    return out.reshape(N, OH, OW, _LANES), OH, OW


def resnet_forward(params, x_nchw):
    x = jnp.transpose(x_nchw, (0, 2, 3, 1)).astype(_BF16)        # NCHW -> NHWC (C=3)
    N = x.shape[0]
    # stem: 7x7 / stride-2 conv + BN + ReLU + 3x3/s2 max-pool
    patches, OH, OW = _im2col(x, 7, 7, 2, 3)
    y, st = matmul_stats(patches, params['conv1_wm'])
    s, b = _bn_from_stats(st, params['bn1_g'], params['bn1_b'], count=float(N * OH * OW))
    act = affine_act(y, s, b, relu=True).reshape(N, OH, OW, _LANES)
    act = maxpool_3x3_s2_p1(act)
    H, W = act.shape[1], act.shape[2]

    for stage in params['stages']:
        for blk in stage:
            act, H, W = basic_block_fwd(blk, act, H, W)

    feat = jnp.mean(act.astype(jnp.float32), axis=(1, 2))        # adaptive avgpool (1,1)
    logits = matmul_bias(feat, params['fc_wm'], params['fc_bias'])
    return logits[:, :params['num_classes']]


# =============================================================================
# Deterministic parameter init (BasicBlock, layers=[1,1,1,1], scale_factor=4,
# num_classes=10 -> channels 16/32/64/128), then one-time conversion of all
# weights to 128-lane padded bf16 kernel layouts.
# =============================================================================
def _kaiming_conv(key, cout, cin, kh, kw):
    std = math.sqrt(2.0 / (cout * kh * kw))       # kaiming_normal_ fan_out, relu
    return std * jax.random.normal(key, (cout, cin, kh, kw), jnp.float32)


def init_params(key, scale_factor=4, layers=(1, 1, 1, 1), num_classes=10):
    keys = iter(jax.random.split(key, 256))
    sf = scale_factor
    inplanes = 64 // sf
    params = {
        'conv1_w': _kaiming_conv(next(keys), 64 // sf, 3, 7, 7),
        'bn1_g': jnp.ones((64 // sf,), jnp.float32),
        'bn1_b': jnp.zeros((64 // sf,), jnp.float32),
    }
    stage_planes = [64 // sf, 128 // sf, 256 // sf, 512 // sf]
    stage_strides = [1, 2, 2, 2]
    stages = []
    for planes, stride, nblocks in zip(stage_planes, stage_strides, layers):
        blocks = []
        for bi in range(nblocks):
            bstride = stride if bi == 0 else 1
            blk = {
                'stride': bstride,
                'conv1_w': _kaiming_conv(next(keys), planes, inplanes, 3, 3),
                'bn1_g': jnp.ones((planes,), jnp.float32),
                'bn1_b': jnp.zeros((planes,), jnp.float32),
                'conv2_w': _kaiming_conv(next(keys), planes, planes, 3, 3),
                'bn2_g': jnp.ones((planes,), jnp.float32),
                'bn2_b': jnp.zeros((planes,), jnp.float32),
            }
            if bi == 0 and (bstride != 1 or inplanes != planes):
                blk['ds_w'] = _kaiming_conv(next(keys), planes, inplanes, 1, 1)
                blk['ds_g'] = jnp.ones((planes,), jnp.float32)
                blk['ds_b'] = jnp.zeros((planes,), jnp.float32)
            inplanes = planes
            blocks.append(blk)
        stages.append(blocks)
    params['stages'] = stages

    fc_in = (512 // sf) * 1                                # BasicBlock.expansion = 1
    bound = 1.0 / math.sqrt(fc_in)                         # nn.Linear default init
    params['fc_w'] = jax.random.uniform(next(keys), (num_classes, fc_in),
                                        jnp.float32, -bound, bound)
    params['fc_b'] = jax.random.uniform(next(keys), (num_classes,),
                                        jnp.float32, -bound, bound)
    params['num_classes'] = num_classes
    return params


def _pad_vec(v):
    return jnp.pad(v.astype(jnp.float32), (0, _LANES - v.shape[0]))


def _conv_to_w9(w):
    """(Cout, Cin, 3, 3) -> (9, 128, 128) bf16 for the direct conv kernel (Cin, Cout <= 128)."""
    cout, cin, kh, kw = w.shape
    wt = jnp.transpose(w, (2, 3, 1, 0)).reshape(kh * kw, cin, cout)
    return jnp.pad(wt, ((0, 0), (0, _LANES - cin), (0, _LANES - cout))).astype(_BF16)


def _conv_to_mat(w, cin_pad):
    """(Cout, Cin, KH, KW) -> (Kp, 128) bf16 for the im2col matmul kernel."""
    cout, cin, KH, KW = w.shape
    wt = jnp.transpose(w, (2, 3, 1, 0))
    wt = jnp.pad(wt, ((0, 0), (0, 0), (0, cin_pad - cin), (0, _LANES - cout)))
    wm = wt.reshape(KH * KW * cin_pad, _LANES)
    Kp = _ru(wm.shape[0], 128)
    if Kp != wm.shape[0]:
        wm = jnp.pad(wm, ((0, Kp - wm.shape[0]), (0, 0)))
    return wm.astype(_BF16)


def prepare_params(raw):
    """Pre-convert / pre-pad all weights once (no per-call padding copies)."""
    nc = raw['num_classes']
    fc_in = raw['fc_w'].shape[1]
    fc_wm = jnp.pad(raw['fc_w'].T, ((0, _LANES - fc_in), (0, _LANES - nc))).astype(_BF16)
    fc_bias = jnp.pad(raw['fc_b'], (0, _LANES - nc)).reshape(1, _LANES).astype(jnp.float32)
    p = {
        'conv1_wm': _conv_to_mat(raw['conv1_w'], cin_pad=3),
        'bn1_g': _pad_vec(raw['bn1_g']), 'bn1_b': _pad_vec(raw['bn1_b']),
        'fc_wm': fc_wm, 'fc_bias': fc_bias, 'num_classes': nc,
        'stages': [],
    }
    for stage in raw['stages']:
        blocks = []
        for blk in stage:
            b = {'stride': blk['stride'],
                 'bn1_g': _pad_vec(blk['bn1_g']), 'bn1_b': _pad_vec(blk['bn1_b']),
                 'bn2_g': _pad_vec(blk['bn2_g']), 'bn2_b': _pad_vec(blk['bn2_b']),
                 'conv2_w9': _conv_to_w9(blk['conv2_w'])}
            if blk['stride'] == 1:
                b['conv1_w9'] = _conv_to_w9(blk['conv1_w'])
            else:
                b['conv1_wm'] = _conv_to_mat(blk['conv1_w'], cin_pad=_LANES)
            if 'ds_w' in blk:
                b['ds_wm'] = _conv_to_mat(blk['ds_w'], cin_pad=_LANES)
                b['ds_g'] = _pad_vec(blk['ds_g'])
                b['ds_b'] = _pad_vec(blk['ds_b'])
            blocks.append(b)
        p['stages'].append(blocks)
    return p


if __name__ == "__main__":
    key = jax.random.PRNGKey(0)
    kp, kx = jax.random.split(key)
    raw = init_params(kp, scale_factor=4, layers=(1, 1, 1, 1), num_classes=10)
    params = prepare_params(raw)
    x = jax.random.normal(kx, (2, 3, 32, 32), jnp.float32)    # NCHW input
    fwd = jax.jit(lambda xin: resnet_forward(params, xin))
    out = jax.block_until_ready(fwd(x))
    assert out.shape == (2, 10), out.shape
    assert bool(jnp.all(jnp.isfinite(out)))
    print("KERNEL_OK")
</pallas_src>

<mosaic_0001>
module attributes {stable_mosaic.version = 11 : i64} {
  func.func @_mm_stats_kernel(%arg0: i32, %arg1: memref<256x256xbf16, #tpu.memory_space<vmem>>, %arg2: memref<256x128xbf16, #tpu.memory_space<vmem>>, %arg3: memref<256x128xbf16, #tpu.memory_space<vmem>>, %arg4: memref<1x8x256xf32, #tpu.memory_space<vmem>>) attributes {dimension_semantics = [#tpu.dimension_semantics<parallel>], iteration_bounds = array<i64: 2>, scalar_prefetch = 0 : i64, scratch_operands = 0 : i64, tpu.core_type = #tpu.core_type<tc>, window_params = [{transform_indices = @transform_0, window_bounds = array<i64: 256, 256>}, {pipeline_mode = #tpu.pipeline_mode<synchronous>, transform_indices = @transform_1, window_bounds = array<i64: 256, 128>}, {transform_indices = @transform_2, window_bounds = array<i64: 256, 128>}, {transform_indices = @transform_3, window_bounds = array<i64: 1, 8, 256>}]} {
    %c0 = arith.constant 0 : index
    %c0_0 = arith.constant 0 : index
    %0 = vector.load %arg1[%c0, %c0_0] : memref<256x256xbf16, #tpu.memory_space<vmem>>, vector<256x256xbf16>
    %c0_1 = arith.constant 0 : index
    %c0_2 = arith.constant 0 : index
    %1 = vector.load %arg2[%c0_1, %c0_2] : memref<256x128xbf16, #tpu.memory_space<vmem>>, vector<256x128xbf16>
    %cst = arith.constant dense<0.000000e+00> : vector<256x128xf32>
    %2 = tpu.matmul %0, %1, %cst {dimension_numbers = #tpu.dot_dimension_numbers<[1], [0], [0], [1], [0, 0, 1, 1], [], []>} : vector<256x256xbf16>, vector<256x128xbf16>, vector<256x128xf32> -> vector<256x128xf32>
    %3 = arith.truncf %2 : vector<256x128xf32> to vector<256x128xbf16>
    %c0_3 = arith.constant 0 : index
    %c0_4 = arith.constant 0 : index
    %4 = vector.load %arg3[%c0_3, %c0_4] : memref<256x128xbf16, #tpu.memory_space<vmem>>, vector<256x128xbf16>
    tpu.vector_store %arg3[%c0_3, %c0_4], %3 {strides = array<i32>} : memref<256x128xbf16, #tpu.memory_space<vmem>>, vector<256x128xbf16>,
    %cst_5 = arith.constant dense<0.000000e+00> : vector<128xf32>
    %5 = vector.multi_reduction <add>, %2, %cst_5 [0] : vector<256x128xf32> to vector<128xf32>
    %6 = vector.shape_cast %5 : vector<128xf32> to vector<1x128xf32>
    %7 = arith.mulf %2, %2 : vector<256x128xf32>
    %cst_6 = arith.constant dense<0.000000e+00> : vector<128xf32>
    %8 = vector.multi_reduction <add>, %7, %cst_6 [0] : vector<256x128xf32> to vector<128xf32>
    %9 = vector.shape_cast %8 : vector<128xf32> to vector<1x128xf32>
    %10 = tpu.concatenate %6, %9 in 1 : vector<1x128xf32>, vector<1x128xf32> -> vector<1x256xf32>
    %11 = vector.shape_cast %10 : vector<1x256xf32> to vector<1x1x256xf32>
    %12 = vector.shape_cast %11 : vector<1x1x256xf32> to vector<1x1x256xf32>
    %13 = vector.broadcast %12 : vector<1x1x256xf32> to vector<1x8x256xf32>
    %c0_7 = arith.constant 0 : index
    %c0_8 = arith.constant 0 : index
    %c0_9 = arith.constant 0 : index
    %14 = vector.load %arg4[%c0_7, %c0_8, %c0_9] : memref<1x8x256xf32, #tpu.memory_space<vmem>>, vector<1x8x256xf32>
    tpu.vector_store %arg4[%c0_7, %c0_8, %c0_9], %13 {strides = array<i32>} : memref<1x8x256xf32, #tpu.memory_space<vmem>>, vector<1x8x256xf32>,
    return
  }
  func.func @transform_0(%arg0: i32) -> (i32, i32) {
    %c0_i32 = arith.constant 0 : i32
    %c0_i32_0 = arith.constant 0 : i32
    return %arg0, %c0_i32 : i32, i32
  }
  func.func @transform_1(%arg0: i32) -> (i32, i32) {
    %c0_i32 = arith.constant 0 : i32
    %c0_i32_0 = arith.constant 0 : i32
    %c0_i32_1 = arith.constant 0 : i32
    return %c0_i32, %c0_i32_0 : i32, i32
  }
  func.func @transform_2(%arg0: i32) -> (i32, i32) {
    %c0_i32 = arith.constant 0 : i32
    %c0_i32_0 = arith.constant 0 : i32
    return %arg0, %c0_i32 : i32, i32
  }
  func.func @transform_3(%arg0: i32) -> (i32, i32, i32) {
    %c0_i32 = arith.constant 0 : i32
    %c0_i32_0 = arith.constant 0 : i32
    %c0_i32_1 = arith.constant 0 : i32
    return %arg0, %c0_i32, %c0_i32_0 : i32, i32, i32
  }
}

module attributes {stable_mosaic.version = 11 : i64} {
  func.func @kern(%arg0: i32, %arg1: memref<256x128xbf16, #tpu.memory_space<vmem>>, %arg2: memref<1x128xf32, #tpu.memory_space<vmem>>, %arg3: memref<1x128xf32, #tpu.memory_space<vmem>>, %arg4: memref<256x128xbf16, #tpu.memory_space<vmem>>) attributes {dimension_semantics = [#tpu.dimension_semantics<parallel>], iteration_bounds = array<i64: 2>, scalar_prefetch = 0 : i64, scratch_operands = 0 : i64, tpu.core_type = #tpu.core_type<tc>, window_params = [{transform_indices = @transform_0, window_bounds = array<i64: 256, 128>}, {pipeline_mode = #tpu.pipeline_mode<synchronous>, transform_indices = @transform_1, window_bounds = array<i64: 1, 128>}, {pipeline_mode = #tpu.pipeline_mode<synchronous>, transform_indices = @transform_2, window_bounds = array<i64: 1, 128>}, {transform_indices = @transform_3, window_bounds = array<i64: 256, 128>}]} {
    %c0 = arith.constant 0 : index
    %c0_0 = arith.constant 0 : index
    %0 = vector.load %arg1[%c0, %c0_0] : memref<256x128xbf16, #tpu.memory_space<vmem>>, vector<256x128xbf16>
    %1 = arith.extf %0 : vector<256x128xbf16> to vector<256x128xf32>
    %c0_1 = arith.constant 0 : index
    %c0_2 = arith.constant 0 : index
    %2 = vector.load %arg2[%c0_1, %c0_2] : memref<1x128xf32, #tpu.memory_space<vmem>>, vector<1x128xf32>
    %3 = vector.broadcast %2 : vector<1x128xf32> to vector<256x128xf32>
    %4 = arith.mulf %1, %3 : vector<256x128xf32>
    %c0_3 = arith.constant 0 : index
    %c0_4 = arith.constant 0 : index
    %5 = vector.load %arg3[%c0_3, %c0_4] : memref<1x128xf32, #tpu.memory_space<vmem>>, vector<1x128xf32>
    %6 = vector.broadcast %5 : vector<1x128xf32> to vector<256x128xf32>
    %7 = arith.addf %4, %6 : vector<256x128xf32>
    %cst = arith.constant 0.000000e+00 : f32
    %8 = vector.broadcast %cst : f32 to vector<256x128xf32>
    %9 = arith.maximumf %7, %8 : vector<256x128xf32>
    %10 = arith.truncf %9 : vector<256x128xf32> to vector<256x128xbf16>
    %c0_5 = arith.constant 0 : index
    %c0_6 = arith.constant 0 : index
    %11 = vector.load %arg4[%c0_5, %c0_6] : memref<256x128xbf16, #tpu.memory_space<vmem>>, vector<256x128xbf16>
    tpu.vector_store %arg4[%c0_5, %c0_6], %10 {strides = array<i32>} : memref<256x128xbf16, #tpu.memory_space<vmem>>, vector<256x128xbf16>,
    return
  }
  func.func @transform_0(%arg0: i32) -> (i32, i32) {
    %c0_i32 = arith.constant 0 : i32
    %c0_i32_0 = arith.constant 0 : i32
    return %arg0, %c0_i32 : i32, i32
  }
  func.func @transform_1(%arg0: i32) -> (i32, i32) {
    %c0_i32 = arith.constant 0 : i32
    %c0_i32_0 = arith.constant 0 : i32
    %c0_i32_1 = arith.constant 0 : i32
    return %c0_i32, %c0_i32_0 : i32, i32
  }
  func.func @transform_2(%arg0: i32) -> (i32, i32) {
    %c0_i32 = arith.constant 0 : i32
    %c0_i32_0 = arith.constant 0 : i32
    %c0_i32_1 = arith.constant 0 : i32
    return %c0_i32, %c0_i32_0 : i32, i32
  }
  func.func @transform_3(%arg0: i32) -> (i32, i32) {
    %c0_i32 = arith.constant 0 : i32
    %c0_i32_0 = arith.constant 0 : i32
    return %arg0, %c0_i32 : i32, i32
  }
}

module attributes {stable_mosaic.version = 11 : i64} {
  func.func @kern(%arg0: i32, %arg1: memref<64x128xbf16, #tpu.memory_space<vmem>>, %arg2: memref<1x128xf32, #tpu.memory_space<vmem>>, %arg3: memref<1x128xf32, #tpu.memory_space<vmem>>, %arg4: memref<64x128xbf16, #tpu.memory_space<vmem>>, %arg5: memref<64x128xbf16, #tpu.memory_space<vmem>>) attributes {dimension_semantics = [#tpu.dimension_semantics<parallel>], iteration_bounds = array<i64: 2>, scalar_prefetch = 0 : i64, scratch_operands = 0 : i64, tpu.core_type = #tpu.core_type<tc>, window_params = [{transform_indices = @transform_0, window_bounds = array<i64: 64, 128>}, {pipeline_mode = #tpu.pipeline_mode<synchronous>, transform_indices = @transform_1, window_bounds = array<i64: 1, 128>}, {pipeline_mode = #tpu.pipeline_mode<synchronous>, transform_indices = @transform_2, window_bounds = array<i64: 1, 128>}, {transform_indices = @transform_3, window_bounds = array<i64: 64, 128>}, {transform_indices = @transform_4, window_bounds = array<i64: 64, 128>}]} {
    %c0 = arith.constant 0 : index
    %c0_0 = arith.constant 0 : index
    %0 = vector.load %arg1[%c0, %c0_0] : memref<64x128xbf16, #tpu.memory_space<vmem>>, vector<64x128xbf16>
    %1 = arith.extf %0 : vector<64x128xbf16> to vector<64x128xf32>
    %c0_1 = arith.constant 0 : index
    %c0_2 = arith.constant 0 : index
    %2 = vector.load %arg2[%c0_1, %c0_2] : memref<1x128xf32, #tpu.memory_space<vmem>>, vector<1x128xf32>
    %3 = vector.broadcast %2 : vector<1x128xf32> to vector<64x128xf32>
    %4 = arith.mulf %1, %3 : vector<64x128xf32>
    %c0_3 = arith.constant 0 : index
    %c0_4 = arith.constant 0 : index
    %5 = vector.load %arg3[%c0_3, %c0_4] : memref<1x128xf32, #tpu.memory_space<vmem>>, vector<1x128xf32>
    %6 = vector.broadcast %5 : vector<1x128xf32> to vector<64x128xf32>
    %7 = arith.addf %4, %6 : vector<64x128xf32>
    %c0_5 = arith.constant 0 : index
    %c0_6 = arith.constant 0 : index
    %8 = vector.load %arg4[%c0_5, %c0_6] : memref<64x128xbf16, #tpu.memory_space<vmem>>, vector<64x128xbf16>
    %9 = arith.extf %8 : vector<64x128xbf16> to vector<64x128xf32>
    %10 = arith.addf %7, %9 : vector<64x128xf32>
    %cst = arith.constant 0.000000e+00 : f32
    %11 = vector.broadcast %cst : f32 to vector<64x128xf32>
    %12 = arith.maximumf %10, %11 : vector<64x128xf32>
    %13 = arith.truncf %12 : vector<64x128xf32> to vector<64x128xbf16>
    %c0_7 = arith.constant 0 : index
    %c0_8 = arith.constant 0 : index
    %14 = vector.load %arg5[%c0_7, %c0_8] : memref<64x128xbf16, #tpu.memory_space<vmem>>, vector<64x128xbf16>
    tpu.vector_store %arg5[%c0_7, %c0_8], %13 {strides = array<i32>} : memref<64x128xbf16, #tpu.memory_space<vmem>>, vector<64x128xbf16>,
    return
  }
  func.func @transform_0(%arg0: i32) -> (i32, i32) {
    %c0_i32 = arith.constant 0 : i32
    %c0_i32_0 = arith.constant 0 : i32
    return %arg0, %c0_i32 : i32, i32
  }
  func.func @transform_1(%arg0: i32) -> (i32, i32) {
    %c0_i32 = arith.constant 0 : i32
    %c0_i32_0 = arith.constant 0 : i32
    %c0_i32_1 = arith.constant 0 : i32
    return %c0_i32, %c0_i32_0 : i32, i32
  }
  func.func @transform_2(%arg0: i32) -> (i32, i32) {
    %c0_i32 = arith.constant 0 : i32
    %c0_i32_0 = arith.constant 0 : i32
    %c0_i32_1 = arith.constant 0 : i32
    return %c0_i32, %c0_i32_0 : i32, i32
  }
  func.func @transform_3(%arg0: i32) -> (i32, i32) {
    %c0_i32 = arith.constant 0 : i32
    %c0_i32_0 = arith.constant 0 : i32
    return %arg0, %c0_i32 : i32, i32
  }
  func.func @transform_4(%arg0: i32) -> (i32, i32) {
    %c0_i32 = arith.constant 0 : i32
    %c0_i32_0 = arith.constant 0 : i32
    return %arg0, %c0_i32 : i32, i32
  }
}

module attributes {stable_mosaic.version = 11 : i64} {
  func.func @kern(%arg0: i32, %arg1: memref<160x128xbf16, #tpu.memory_space<vmem>>, %arg2: memref<40x128xbf16, #tpu.memory_space<vmem>>, %arg3: memref<160x2xf32, #tpu.memory_space<vmem>>, %arg4: memref<40x2xf32, #tpu.memory_space<vmem>>, %arg5: memref<1x128xf32, #tpu.memory_space<vmem>>, %arg6: memref<1x128xf32, #tpu.memory_space<vmem>>, %arg7: memref<9x128x128xbf16, #tpu.memory_space<vmem>>, %arg8: memref<160x128xbf16, #tpu.memory_space<vmem>>, %arg9: memref<1x8x256xf32, #tpu.memory_space<vmem>>) attributes {dimension_semantics = [#tpu.dimension_semantics<parallel>], iteration_bounds = array<i64: 2>, scalar_prefetch = 0 : i64, scratch_operands = 0 : i64, tpu.core_type = #tpu.core_type<tc>, window_params = [{transform_indices = @transform_0, window_bounds = array<i64: 160, 128>}, {transform_indices = @transform_1, window_bounds = array<i64: 40, 128>}, {transform_indices = @transform_2, window_bounds = array<i64: 160, 2>}, {transform_indices = @transform_3, window_bounds = array<i64: 40, 2>}, {pipeline_mode = #tpu.pipeline_mode<synchronous>, transform_indices = @transform_4, window_bounds = array<i64: 1, 128>}, {pipeline_mode = #tpu.pipeline_mode<synchronous>, transform_indices = @transform_5, window_bounds = array<i64: 1, 128>}, {pipeline_mode = #tpu.pipeline_mode<synchronous>, transform_indices = @transform_6, window_bounds = array<i64: 9, 128, 128>}, {transform_indices = @transform_7, window_bounds = array<i64: 160, 128>}, {transform_indices = @transform_8, window_bounds = array<i64: 1, 8, 256>}]} {
    %c0 = arith.constant 0 : index
    %c0_0 = arith.constant 0 : index
    %0 = vector.load %arg1[%c0, %c0_0] : memref<160x128xbf16, #tpu.memory_space<vmem>>, vector<160x128xbf16>
    %c0_1 = arith.constant 0 : index
    %c0_2 = arith.constant 0 : index
    %1 = vector.load %arg2[%c0_1, %c0_2] : memref<40x128xbf16, #tpu.memory_space<vmem>>, vector<40x128xbf16>
    %2 = tpu.concatenate %0, %1 in 0 : vector<160x128xbf16>, vector<40x128xbf16> -> vector<200x128xbf16>
    %3 = arith.extf %2 : vector<200x128xbf16> to vector<200x128xf32>
    %c0_3 = arith.constant 0 : index
    %c0_4 = arith.constant 0 : index
    %4 = vector.load %arg3[%c0_3, %c0_4] : memref<160x2xf32, #tpu.memory_space<vmem>>, vector<160x2xf32>
    %c0_5 = arith.constant 0 : index
    %c0_6 = arith.constant 0 : index
    %5 = vector.load %arg4[%c0_5, %c0_6] : memref<40x2xf32, #tpu.memory_space<vmem>>, vector<40x2xf32>
    %6 = tpu.concatenate %4, %5 in 0 : vector<160x2xf32>, vector<40x2xf32> -> vector<200x2xf32>
    %c0_7 = arith.constant 0 : index
    %c0_8 = arith.constant 0 : index
    %7 = vector.load %arg5[%c0_7, %c0_8] : memref<1x128xf32, #tpu.memory_space<vmem>>, vector<1x128xf32>
    %8 = vector.broadcast %7 : vector<1x128xf32> to vector<200x128xf32>
    %9 = arith.mulf %3, %8 : vector<200x128xf32>
    %c0_9 = arith.constant 0 : index
    %c0_10 = arith.constant 0 : index
    %10 = vector.load %arg6[%c0_9, %c0_10] : memref<1x128xf32, #tpu.memory_space<vmem>>, vector<1x128xf32>
    %11 = vector.broadcast %10 : vector<1x128xf32> to vector<200x128xf32>
    %12 = arith.addf %9, %11 : vector<200x128xf32>
    %cst = arith.constant 0.000000e+00 : f32
    %13 = vector.broadcast %cst : f32 to vector<200x128xf32>
    %14 = arith.maximumf %12, %13 : vector<200x128xf32>
    %15 = vector.extract_strided_slice %6 {offsets = [0, 0], sizes = [200, 1], strides = [1, 1]} : vector<200x2xf32> to vector<200x1xf32>
    %16 = vector.broadcast %15 : vector<200x1xf32> to vector<200x128xf32>
    %17 = arith.mulf %14, %16 : vector<200x128xf32>
    %18 = arith.truncf %17 : vector<200x128xf32> to vector<200x128xbf16>
    %cst_11 = arith.constant 0.000000e+00 : f32
    %19 = vector.broadcast %cst_11 : f32 to vector<160x128xf32>
    %20 = vector.extract_strided_slice %18 {offsets = [0, 0], sizes = [192, 128], strides = [1, 1]} : vector<200x128xbf16> to vector<192x128xbf16>
    %21 = vector.extract_strided_slice %20 {offsets = [0, 0], sizes = [160, 128], strides = [1, 1]} : vector<192x128xbf16> to vector<160x128xbf16>
    %c0_12 = arith.constant 0 : index
    %c0_13 = arith.constant 0 : index
    %c0_14 = arith.constant 0 : index
    %22 = vector.load %arg7[%c0_12, %c0_13, %c0_14] : memref<9x128x128xbf16, #tpu.memory_space<vmem>>, vector<1x128x128xbf16>
    %23 = vector.shape_cast %22 : vector<1x128x128xbf16> to vector<128x128xbf16>
    %cst_15 = arith.constant dense<0.000000e+00> : vector<160x128xf32>
    %24 = tpu.matmul %21, %23, %cst_15 {dimension_numbers = #tpu.dot_dimension_numbers<[1], [0], [0], [1], [0, 0, 1, 1], [], []>} : vector<160x128xbf16>, vector<128x128xbf16>, vector<160x128xf32> -> vector<160x128xf32>
    %25 = arith.addf %19, %24 : vector<160x128xf32>
    %26 = vector.extract_strided_slice %20 {offsets = [16, 0], sizes = [160, 128], strides = [1, 1]} : vector<192x128xbf16> to vector<160x128xbf16>
    %c3 = arith.constant 3 : index
    %c0_16 = arith.constant 0 : index
    %c0_17 = arith.constant 0 : index
    %27 = vector.load %arg7[%c3, %c0_16, %c0_17] : memref<9x128x128xbf16, #tpu.memory_space<vmem>>, vector<1x128x128xbf16>
    %28 = vector.shape_cast %27 : vector<1x128x128xbf16> to vector<128x128xbf16>
    %cst_18 = arith.constant dense<0.000000e+00> : vector<160x128xf32>
    %29 = tpu.matmul %26, %28, %cst_18 {dimension_numbers = #tpu.dot_dimension_numbers<[1], [0], [0], [1], [0, 0, 1, 1], [], []>} : vector<160x128xbf16>, vector<128x128xbf16>, vector<160x128xf32> -> vector<160x128xf32>
    %30 = arith.addf %25, %29 : vector<160x128xf32>
    %31 = vector.extract_strided_slice %20 {offsets = [32, 0], sizes = [160, 128], strides = [1, 1]} : vector<192x128xbf16> to vector<160x128xbf16>
    %c6 = arith.constant 6 : index
    %c0_19 = arith.constant 0 : index
    %c0_20 = arith.constant 0 : index
    %32 = vector.load %arg7[%c6, %c0_19, %c0_20] : memref<9x128x128xbf16, #tpu.memory_space<vmem>>, vector<1x128x128xbf16>
    %33 = vector.shape_cast %32 : vector<1x128x128xbf16> to vector<128x128xbf16>
    %cst_21 = arith.constant dense<0.000000e+00> : vector<160x128xf32>
    %34 = tpu.matmul %31, %33, %cst_21 {dimension_numbers = #tpu.dot_dimension_numbers<[1], [0], [0], [1], [0, 0, 1, 1], [], []>} : vector<160x128xbf16>, vector<128x128xbf16>, vector<160x128xf32> -> vector<160x128xf32>
    %35 = arith.addf %30, %34 : vector<160x128xf32>
    %36 = vector.extract_strided_slice %18 {offsets = [1, 0], sizes = [192, 128], strides = [1, 1]} : vector<200x128xbf16> to vector<192x128xbf16>
    %37 = vector.extract_strided_slice %36 {offsets = [0, 0], sizes = [160, 128], strides = [1, 1]} : vector<192x128xbf16> to vector<160x128xbf16>
    %c1 = arith.constant 1 : index
    %c0_22 = arith.constant 0 : index
    %c0_23 = arith.constant 0 : index
    %38 = vector.load %arg7[%c1, %c0_22, %c0_23] : memref<9x128x128xbf16, #tpu.memory_space<vmem>>, vector<1x128x128xbf16>
    %39 = vector.shape_cast %38 : vector<1x128x128xbf16> to vector<128x128xbf16>
    %cst_24 = arith.constant dense<0.000000e+00> : vector<160x128xf32>
    %40 = tpu.matmul %37, %39, %cst_24 {dimension_numbers = #tpu.dot_dimension_numbers<[1], [0], [0], [1], [0, 0, 1, 1], [], []>} : vector<160x128xbf16>, vector<128x128xbf16>, vector<160x128xf32> -> vector<160x128xf32>
    %41 = arith.addf %35, %40 : vector<160x128xf32>
    %42 = vector.extract_strided_slice %36 {offsets = [16, 0], sizes = [160, 128], strides = [1, 1]} : vector<192x128xbf16> to vector<160x128xbf16>
    %c4 = arith.constant 4 : index
    %c0_25 = arith.constant 0 : index
    %c0_26 = arith.constant 0 : index
    %43 = vector.load %arg7[%c4, %c0_25, %c0_26] : memref<9x128x128xbf16, #tpu.memory_space<vmem>>, vector<1x128x128xbf16>
    %44 = vector.shape_cast %43 : vector<1x128x128xbf16> to vector<128x128xbf16>
    %cst_27 = arith.constant dense<0.000000e+00> : vector<160x128xf32>
    %45 = tpu.matmul %42, %44, %cst_27 {dimension_numbers = #tpu.dot_dimension_numbers<[1], [0], [0], [1], [0, 0, 1, 1], [], []>} : vector<160x128xbf16>, vector<128x128xbf16>, vector<160x128xf32> -> vector<160x128xf32>
    %46 = arith.addf %41, %45 : vector<160x128xf32>
    %47 = vector.extract_strided_slice %36 {offsets = [32, 0], sizes = [160, 128], strides = [1, 1]} : vector<192x128xbf16> to vector<160x128xbf16>
    %c7 = arith.constant 7 : index
    %c0_28 = arith.constant 0 : index
    %c0_29 = arith.constant 0 : index
    %48 = vector.load %arg7[%c7, %c0_28, %c0_29] : memref<9x128x128xbf16, #tpu.memory_space<vmem>>, vector<1x128x128xbf16>
    %49 = vector.shape_cast %48 : vector<1x128x128xbf16> to vector<128x128xbf16>
    %cst_30 = arith.constant dense<0.000000e+00> : vector<160x128xf32>
    %50 = tpu.matmul %47, %49, %cst_30 {dimension_numbers = #tpu.dot_dimension_numbers<[1], [0], [0], [1], [0, 0, 1, 1], [], []>} : vector<160x128xbf16>, vector<128x128xbf16>, vector<160x128xf32> -> vector<160x128xf32>
    %51 = arith.addf %46, %50 : vector<160x128xf32>
    %52 = vector.extract_strided_slice %18 {offsets = [2, 0], sizes = [192, 128], strides = [1, 1]} : vector<200x128xbf16> to vector<192x128xbf16>
    %53 = vector.extract_strided_slice %52 {offsets = [0, 0], sizes = [160, 128], strides = [1, 1]} : vector<192x128xbf16> to vector<160x128xbf16>
    %c2 = arith.constant 2 : index
    %c0_31 = arith.constant 0 : index
    %c0_32 = arith.constant 0 : index
    %54 = vector.load %arg7[%c2, %c0_31, %c0_32] : memref<9x128x128xbf16, #tpu.memory_space<vmem>>, vector<1x128x128xbf16>
    %55 = vector.shape_cast %54 : vector<1x128x128xbf16> to vector<128x128xbf16>
    %cst_33 = arith.constant dense<0.000000e+00> : vector<160x128xf32>
    %56 = tpu.matmul %53, %55, %cst_33 {dimension_numbers = #tpu.dot_dimension_numbers<[1], [0], [0], [1], [0, 0, 1, 1], [], []>} : vector<160x128xbf16>, vector<128x128xbf16>, vector<160x128xf32> -> vector<160x128xf32>
    %57 = arith.addf %51, %56 : vector<160x128xf32>
    %58 = vector.extract_strided_slice %52 {offsets = [16, 0], sizes = [160, 128], strides = [1, 1]} : vector<192x128xbf16> to vector<160x128xbf16>
    %c5 = arith.constant 5 : index
    %c0_34 = arith.constant 0 : index
    %c0_35 = arith.constant 0 : index
    %59 = vector.load %arg7[%c5, %c0_34, %c0_35] : memref<9x128x128xbf16, #tpu.memory_space<vmem>>, vector<1x128x128xbf16>
    %60 = vector.shape_cast %59 : vector<1x128x128xbf16> to vector<128x128xbf16>
    %cst_36 = arith.constant dense<0.000000e+00> : vector<160x128xf32>
    %61 = tpu.matmul %58, %60, %cst_36 {dimension_numbers = #tpu.dot_dimension_numbers<[1], [0], [0], [1], [0, 0, 1, 1], [], []>} : vector<160x128xbf16>, vector<128x128xbf16>, vector<160x128xf32> -> vector<160x128xf32>
    %62 = arith.addf %57, %61 : vector<160x128xf32>
    %63 = vector.extract_strided_slice %52 {offsets = [32, 0], sizes = [160, 128], strides = [1, 1]} : vector<192x128xbf16> to vector<160x128xbf16>
    %c8 = arith.constant 8 : index
    %c0_37 = arith.constant 0 : index
    %c0_38 = arith.constant 0 : index
    %64 = vector.load %arg7[%c8, %c0_37, %c0_38] : memref<9x128x128xbf16, #tpu.memory_space<vmem>>, vector<1x128x128xbf16>
    %65 = vector.shape_cast %64 : vector<1x128x128xbf16> to vector<128x128xbf16>
    %cst_39 = arith.constant dense<0.000000e+00> : vector<160x128xf32>
    %66 = tpu.matmul %63, %65, %cst_39 {dimension_numbers = #tpu.dot_dimension_numbers<[1], [0], [0], [1], [0, 0, 1, 1], [], []>} : vector<160x128xbf16>, vector<128x128xbf16>, vector<160x128xf32> -> vector<160x128xf32>
    %67 = arith.addf %62, %66 : vector<160x128xf32>
    %68 = arith.truncf %67 : vector<160x128xf32> to vector<160x128xbf16>
    %c0_40 = arith.constant 0 : index
    %c0_41 = arith.constant 0 : index
    %69 = vector.load %arg8[%c0_40, %c0_41] : memref<160x128xbf16, #tpu.memory_space<vmem>>, vector<160x128xbf16>
    tpu.vector_store %arg8[%c0_40, %c0_41], %68 {strides = array<i32>} : memref<160x128xbf16, #tpu.memory_space<vmem>>, vector<160x128xbf16>,
    %c0_42 = arith.constant 0 : index
    %c1_43 = arith.constant 1 : index
    %70 = vector.load %arg3[%c0_42, %c1_43] : memref<160x2xf32, #tpu.memory_space<vmem>>, vector<160x1xf32>
    %71 = vector.broadcast %70 : vector<160x1xf32> to vector<160x128xf32>
    %72 = arith.mulf %67, %71 : vector<160x128xf32>
    %cst_44 = arith.constant dense<0.000000e+00> : vector<128xf32>
    %73 = vector.multi_reduction <add>, %72, %cst_44 [0] : vector<160x128xf32> to vector<128xf32>
    %74 = vector.shape_cast %73 : vector<128xf32> to vector<1x128xf32>
    %75 = arith.mulf %72, %67 : vector<160x128xf32>
    %cst_45 = arith.constant dense<0.000000e+00> : vector<128xf32>
    %76 = vector.multi_reduction <add>, %75, %cst_45 [0] : vector<160x128xf32> to vector<128xf32>
    %77 = vector.shape_cast %76 : vector<128xf32> to vector<1x128xf32>
    %78 = tpu.concatenate %74, %77 in 1 : vector<1x128xf32>, vector<1x128xf32> -> vector<1x256xf32>
    %79 = vector.shape_cast %78 : vector<1x256xf32> to vector<1x1x256xf32>
    %80 = vector.shape_cast %79 : vector<1x1x256xf32> to vector<1x1x256xf32>
    %81 = vector.broadcast %80 : vector<1x1x256xf32> to vector<1x8x256xf32>
    %c0_46 = arith.constant 0 : index
    %c0_47 = arith.constant 0 : index
    %c0_48 = arith.constant 0 : index
    %82 = vector.load %arg9[%c0_46, %c0_47, %c0_48] : memref<1x8x256xf32, #tpu.memory_space<vmem>>, vector<1x8x256xf32>
    tpu.vector_store %arg9[%c0_46, %c0_47, %c0_48], %81 {strides = array<i32>} : memref<1x8x256xf32, #tpu.memory_space<vmem>>, vector<1x8x256xf32>,
    return
  }
  func.func @transform_0(%arg0: i32) -> (i32, i32) {
    %c0_i32 = arith.constant 0 : i32
    %c0_i32_0 = arith.constant 0 : i32
    return %arg0, %c0_i32 : i32, i32
  }
  func.func @transform_1(%arg0: i32) -> (i32, i32) {
    %c1_i32 = arith.constant 1 : i32
    %0 = arith.addi %arg0, %c1_i32 : i32
    %c4_i32 = arith.constant 4 : i32
    %1 = arith.muli %0, %c4_i32 : i32
    %c0_i32 = arith.constant 0 : i32
    %c0_i32_0 = arith.constant 0 : i32
    return %1, %c0_i32 : i32, i32
  }
  func.func @transform_2(%arg0: i32) -> (i32, i32) {
    %c0_i32 = arith.constant 0 : i32
    %c0_i32_0 = arith.constant 0 : i32
    return %arg0, %c0_i32 : i32, i32
  }
  func.func @transform_3(%arg0: i32) -> (i32, i32) {
    %c1_i32 = arith.constant 1 : i32
    %0 = arith.addi %arg0, %c1_i32 : i32
    %c4_i32 = arith.constant 4 : i32
    %1 = arith.muli %0, %c4_i32 : i32
    %c0_i32 = arith.constant 0 : i32
    %c0_i32_0 = arith.constant 0 : i32
    return %1, %c0_i32 : i32, i32
  }
  func.func @transform_4(%arg0: i32) -> (i32, i32) {
    %c0_i32 = arith.constant 0 : i32
    %c0_i32_0 = arith.constant 0 : i32
    %c0_i32_1 = arith.constant 0 : i32
    return %c0_i32, %c0_i32_0 : i32, i32
  }
  func.func @transform_5(%arg0: i32) -> (i32, i32) {
    %c0_i32 = arith.constant 0 : i32
    %c0_i32_0 = arith.constant 0 : i32
    %c0_i32_1 = arith.constant 0 : i32
    return %c0_i32, %c0_i32_0 : i32, i32
  }
  func.func @transform_6(%arg0: i32) -> (i32, i32, i32) {
    %c0_i32 = arith.constant 0 : i32
    %c0_i32_0 = arith.constant 0 : i32
    %c0_i32_1 = arith.constant 0 : i32
    %c0_i32_2 = arith.constant 0 : i32
    return %c0_i32, %c0_i32_0, %c0_i32_1 : i32, i32, i32
  }
  func.func @transform_7(%arg0: i32) -> (i32, i32) {
    %c0_i32 = arith.constant 0 : i32
    %c0_i32_0 = arith.constant 0 : i32
    return %arg0, %c0_i32 : i32, i32
  }
  func.func @transform_8(%arg0: i32) -> (i32, i32, i32) {
    %c0_i32 = arith.constant 0 : i32
    %c0_i32_0 = arith.constant 0 : i32
    %c0_i32_1 = arith.constant 0 : i32
    return %arg0, %c0_i32, %c0_i32_0 : i32, i32, i32
  }
}

module attributes {stable_mosaic.version = 11 : i64} {
  func.func @_mm_stats_kernel(%arg0: i32, %arg1: memref<16x1152xbf16, #tpu.memory_space<vmem>>, %arg2: memref<1152x128xbf16, #tpu.memory_space<vmem>>, %arg3: memref<16x128xbf16, #tpu.memory_space<vmem>>, %arg4: memref<1x8x256xf32, #tpu.memory_space<vmem>>) attributes {dimension_semantics = [#tpu.dimension_semantics<parallel>], iteration_bounds = array<i64: 2>, scalar_prefetch = 0 : i64, scratch_operands = 0 : i64, tpu.core_type = #tpu.core_type<tc>, window_params = [{transform_indices = @transform_0, window_bounds = array<i64: 16, 1152>}, {pipeline_mode = #tpu.pipeline_mode<synchronous>, transform_indices = @transform_1, window_bounds = array<i64: 1152, 128>}, {transform_indices = @transform_2, window_bounds = array<i64: 16, 128>}, {transform_indices = @transform_3, window_bounds = array<i64: 1, 8, 256>}]} {
    %c0 = arith.constant 0 : index
    %c0_0 = arith.constant 0 : index
    %0 = vector.load %arg1[%c0, %c0_0] : memref<16x1152xbf16, #tpu.memory_space<vmem>>, vector<16x1152xbf16>
    %c0_1 = arith.constant 0 : index
    %c0_2 = arith.constant 0 : index
    %1 = vector.load %arg2[%c0_1, %c0_2] : memref<1152x128xbf16, #tpu.memory_space<vmem>>, vector<1152x128xbf16>
    %cst = arith.constant dense<0.000000e+00> : vector<16x128xf32>
    %2 = tpu.matmul %0, %1, %cst {dimension_numbers = #tpu.dot_dimension_numbers<[1], [0], [0], [1], [0, 0, 1, 1], [], []>} : vector<16x1152xbf16>, vector<1152x128xbf16>, vector<16x128xf32> -> vector<16x128xf32>
    %3 = arith.truncf %2 : vector<16x128xf32> to vector<16x128xbf16>
    %c0_3 = arith.constant 0 : index
    %c0_4 = arith.constant 0 : index
    %4 = vector.load %arg3[%c0_3, %c0_4] : memref<16x128xbf16, #tpu.memory_space<vmem>>, vector<16x128xbf16>
    tpu.vector_store %arg3[%c0_3, %c0_4], %3 {strides = array<i32>} : memref<16x128xbf16, #tpu.memory_space<vmem>>, vector<16x128xbf16>,
    %cst_5 = arith.constant dense<0.000000e+00> : vector<128xf32>
    %5 = vector.multi_reduction <add>, %2, %cst_5 [0] : vector<16x128xf32> to vector<128xf32>
    %6 = vector.shape_cast %5 : vector<128xf32> to vector<1x128xf32>
    %7 = arith.mulf %2, %2 : vector<16x128xf32>
    %cst_6 = arith.constant dense<0.000000e+00> : vector<128xf32>
    %8 = vector.multi_reduction <add>, %7, %cst_6 [0] : vector<16x128xf32> to vector<128xf32>
    %9 = vector.shape_cast %8 : vector<128xf32> to vector<1x128xf32>
    %10 = tpu.concatenate %6, %9 in 1 : vector<1x128xf32>, vector<1x128xf32> -> vector<1x256xf32>
    %11 = vector.shape_cast %10 : vector<1x256xf32> to vector<1x1x256xf32>
    %12 = vector.shape_cast %11 : vector<1x1x256xf32> to vector<1x1x256xf32>
    %13 = vector.broadcast %12 : vector<1x1x256xf32> to vector<1x8x256xf32>
    %c0_7 = arith.constant 0 : index
    %c0_8 = arith.constant 0 : index
    %c0_9 = arith.constant 0 : index
    %14 = vector.load %arg4[%c0_7, %c0_8, %c0_9] : memref<1x8x256xf32, #tpu.memory_space<vmem>>, vector<1x8x256xf32>
    tpu.vector_store %arg4[%c0_7, %c0_8, %c0_9], %13 {strides = array<i32>} : memref<1x8x256xf32, #tpu.memory_space<vmem>>, vector<1x8x256xf32>,
    return
  }
  func.func @transform_0(%arg0: i32) -> (i32, i32) {
    %c0_i32 = arith.constant 0 : i32
    %c0_i32_0 = arith.constant 0 : i32
    return %arg0, %c0_i32 : i32, i32
  }
  func.func @transform_1(%arg0: i32) -> (i32, i32) {
    %c0_i32 = arith.constant 0 : i32
    %c0_i32_0 = arith.constant 0 : i32
    %c0_i32_1 = arith.constant 0 : i32
    return %c0_i32, %c0_i32_0 : i32, i32
  }
  func.func @transform_2(%arg0: i32) -> (i32, i32) {
    %c0_i32 = arith.constant 0 : i32
    %c0_i32_0 = arith.constant 0 : i32
    return %arg0, %c0_i32 : i32, i32
  }
  func.func @transform_3(%arg0: i32) -> (i32, i32, i32) {
    %c0_i32 = arith.constant 0 : i32
    %c0_i32_0 = arith.constant 0 : i32
    %c0_i32_1 = arith.constant 0 : i32
    return %arg0, %c0_i32, %c0_i32_0 : i32, i32, i32
  }
}

module attributes {stable_mosaic.version = 11 : i64} {
  func.func @_mm_stats_kernel(%arg0: i32, %arg1: memref<16x128xbf16, #tpu.memory_space<vmem>>, %arg2: memref<128x128xbf16, #tpu.memory_space<vmem>>, %arg3: memref<16x128xbf16, #tpu.memory_space<vmem>>, %arg4: memref<1x8x256xf32, #tpu.memory_space<vmem>>) attributes {dimension_semantics = [#tpu.dimension_semantics<parallel>], iteration_bounds = array<i64: 2>, scalar_prefetch = 0 : i64, scratch_operands = 0 : i64, tpu.core_type = #tpu.core_type<tc>, window_params = [{transform_indices = @transform_0, window_bounds = array<i64: 16, 128>}, {pipeline_mode = #tpu.pipeline_mode<synchronous>, transform_indices = @transform_1, window_bounds = array<i64: 128, 128>}, {transform_indices = @transform_2, window_bounds = array<i64: 16, 128>}, {transform_indices = @transform_3, window_bounds = array<i64: 1, 8, 256>}]} {
    %c0 = arith.constant 0 : index
    %c0_0 = arith.constant 0 : index
    %0 = vector.load %arg1[%c0, %c0_0] : memref<16x128xbf16, #tpu.memory_space<vmem>>, vector<16x128xbf16>
    %c0_1 = arith.constant 0 : index
    %c0_2 = arith.constant 0 : index
    %1 = vector.load %arg2[%c0_1, %c0_2] : memref<128x128xbf16, #tpu.memory_space<vmem>>, vector<128x128xbf16>
    %cst = arith.constant dense<0.000000e+00> : vector<16x128xf32>
    %2 = tpu.matmul %0, %1, %cst {dimension_numbers = #tpu.dot_dimension_numbers<[1], [0], [0], [1], [0, 0, 1, 1], [], []>} : vector<16x128xbf16>, vector<128x128xbf16>, vector<16x128xf32> -> vector<16x128xf32>
    %3 = arith.truncf %2 : vector<16x128xf32> to vector<16x128xbf16>
    %c0_3 = arith.constant 0 : index
    %c0_4 = arith.constant 0 : index
    %4 = vector.load %arg3[%c0_3, %c0_4] : memref<16x128xbf16, #tpu.memory_space<vmem>>, vector<16x128xbf16>
    tpu.vector_store %arg3[%c0_3, %c0_4], %3 {strides = array<i32>} : memref<16x128xbf16, #tpu.memory_space<vmem>>, vector<16x128xbf16>,
    %cst_5 = arith.constant dense<0.000000e+00> : vector<128xf32>
    %5 = vector.multi_reduction <add>, %2, %cst_5 [0] : vector<16x128xf32> to vector<128xf32>
    %6 = vector.shape_cast %5 : vector<128xf32> to vector<1x128xf32>
    %7 = arith.mulf %2, %2 : vector<16x128xf32>
    %cst_6 = arith.constant dense<0.000000e+00> : vector<128xf32>
    %8 = vector.multi_reduction <add>, %7, %cst_6 [0] : vector<16x128xf32> to vector<128xf32>
    %9 = vector.shape_cast %8 : vector<128xf32> to vector<1x128xf32>
    %10 = tpu.concatenate %6, %9 in 1 : vector<1x128xf32>, vector<1x128xf32> -> vector<1x256xf32>
    %11 = vector.shape_cast %10 : vector<1x256xf32> to vector<1x1x256xf32>
    %12 = vector.shape_cast %11 : vector<1x1x256xf32> to vector<1x1x256xf32>
    %13 = vector.broadcast %12 : vector<1x1x256xf32> to vector<1x8x256xf32>
    %c0_7 = arith.constant 0 : index
    %c0_8 = arith.constant 0 : index
    %c0_9 = arith.constant 0 : index
    %14 = vector.load %arg4[%c0_7, %c0_8, %c0_9] : memref<1x8x256xf32, #tpu.memory_space<vmem>>, vector<1x8x256xf32>
    tpu.vector_store %arg4[%c0_7, %c0_8, %c0_9], %13 {strides = array<i32>} : memref<1x8x256xf32, #tpu.memory_space<vmem>>, vector<1x8x256xf32>,
    return
  }
  func.func @transform_0(%arg0: i32) -> (i32, i32) {
    %c0_i32 = arith.constant 0 : i32
    %c0_i32_0 = arith.constant 0 : i32
    return %arg0, %c0_i32 : i32, i32
  }
  func.func @transform_1(%arg0: i32) -> (i32, i32) {
    %c0_i32 = arith.constant 0 : i32
    %c0_i32_0 = arith.constant 0 : i32
    %c0_i32_1 = arith.constant 0 : i32
    return %c0_i32, %c0_i32_0 : i32, i32
  }
  func.func @transform_2(%arg0: i32) -> (i32, i32) {
    %c0_i32 = arith.constant 0 : i32
    %c0_i32_0 = arith.constant 0 : i32
    return %arg0, %c0_i32 : i32, i32
  }
  func.func @transform_3(%arg0: i32) -> (i32, i32, i32) {
    %c0_i32 = arith.constant 0 : i32
    %c0_i32_0 = arith.constant 0 : i32
    %c0_i32_1 = arith.constant 0 : i32
    return %arg0, %c0_i32, %c0_i32_0 : i32, i32, i32
  }
}

module attributes {stable_mosaic.version = 11 : i64} {
  func.func @kern(%arg0: i32, %arg1: memref<48x128xbf16, #tpu.memory_space<vmem>>, %arg2: memref<24x128xbf16, #tpu.memory_space<vmem>>, %arg3: memref<48x2xf32, #tpu.memory_space<vmem>>, %arg4: memref<24x2xf32, #tpu.memory_space<vmem>>, %arg5: memref<1x128xf32, #tpu.memory_space<vmem>>, %arg6: memref<1x128xf32, #tpu.memory_space<vmem>>, %arg7: memref<9x128x128xbf16, #tpu.memory_space<vmem>>, %arg8: memref<48x128xbf16, #tpu.memory_space<vmem>>, %arg9: memref<1x8x256xf32, #tpu.memory_space<vmem>>) attributes {dimension_semantics = [#tpu.dimension_semantics<parallel>], iteration_bounds = array<i64: 2>, scalar_prefetch = 0 : i64, scratch_operands = 0 : i64, tpu.core_type = #tpu.core_type<tc>, window_params = [{transform_indices = @transform_0, window_bounds = array<i64: 48, 128>}, {transform_indices = @transform_1, window_bounds = array<i64: 24, 128>}, {transform_indices = @transform_2, window_bounds = array<i64: 48, 2>}, {transform_indices = @transform_3, window_bounds = array<i64: 24, 2>}, {pipeline_mode = #tpu.pipeline_mode<synchronous>, transform_indices = @transform_4, window_bounds = array<i64: 1, 128>}, {pipeline_mode = #tpu.pipeline_mode<synchronous>, transform_indices = @transform_5, window_bounds = array<i64: 1, 128>}, {pipeline_mode = #tpu.pipeline_mode<synchronous>, transform_indices = @transform_6, window_bounds = array<i64: 9, 128, 128>}, {transform_indices = @transform_7, window_bounds = array<i64: 48, 128>}, {transform_indices = @transform_8, window_bounds = array<i64: 1, 8, 256>}]} {
    %c0 = arith.constant 0 : index
    %c0_0 = arith.constant 0 : index
    %0 = vector.load %arg1[%c0, %c0_0] : memref<48x128xbf16, #tpu.memory_space<vmem>>, vector<48x128xbf16>
    %c0_1 = arith.constant 0 : index
    %c0_2 = arith.constant 0 : index
    %1 = vector.load %arg2[%c0_1, %c0_2] : memref<24x128xbf16, #tpu.memory_space<vmem>>, vector<24x128xbf16>
    %2 = tpu.concatenate %0, %1 in 0 : vector<48x128xbf16>, vector<24x128xbf16> -> vector<72x128xbf16>
    %3 = arith.extf %2 : vector<72x128xbf16> to vector<72x128xf32>
    %c0_3 = arith.constant 0 : index
    %c0_4 = arith.constant 0 : index
    %4 = vector.load %arg3[%c0_3, %c0_4] : memref<48x2xf32, #tpu.memory_space<vmem>>, vector<48x2xf32>
    %c0_5 = arith.constant 0 : index
    %c0_6 = arith.constant 0 : index
    %5 = vector.load %arg4[%c0_5, %c0_6] : memref<24x2xf32, #tpu.memory_space<vmem>>, vector<24x2xf32>
    %6 = tpu.concatenate %4, %5 in 0 : vector<48x2xf32>, vector<24x2xf32> -> vector<72x2xf32>
    %c0_7 = arith.constant 0 : index
    %c0_8 = arith.constant 0 : index
    %7 = vector.load %arg5[%c0_7, %c0_8] : memref<1x128xf32, #tpu.memory_space<vmem>>, vector<1x128xf32>
    %8 = vector.broadcast %7 : vector<1x128xf32> to vector<72x128xf32>
    %9 = arith.mulf %3, %8 : vector<72x128xf32>
    %c0_9 = arith.constant 0 : index
    %c0_10 = arith.constant 0 : index
    %10 = vector.load %arg6[%c0_9, %c0_10] : memref<1x128xf32, #tpu.memory_space<vmem>>, vector<1x128xf32>
    %11 = vector.broadcast %10 : vector<1x128xf32> to vector<72x128xf32>
    %12 = arith.addf %9, %11 : vector<72x128xf32>
    %cst = arith.constant 0.000000e+00 : f32
    %13 = vector.broadcast %cst : f32 to vector<72x128xf32>
    %14 = arith.maximumf %12, %13 : vector<72x128xf32>
    %15 = vector.extract_strided_slice %6 {offsets = [0, 0], sizes = [72, 1], strides = [1, 1]} : vector<72x2xf32> to vector<72x1xf32>
    %16 = vector.broadcast %15 : vector<72x1xf32> to vector<72x128xf32>
    %17 = arith.mulf %14, %16 : vector<72x128xf32>
    %18 = arith.truncf %17 : vector<72x128xf32> to vector<72x128xbf16>
    %cst_11 = arith.constant 0.000000e+00 : f32
    %19 = vector.broadcast %cst_11 : f32 to vector<48x128xf32>
    %20 = vector.extract_strided_slice %18 {offsets = [0, 0], sizes = [64, 128], strides = [1, 1]} : vector<72x128xbf16> to vector<64x128xbf16>
    %21 = vector.extract_strided_slice %20 {offsets = [0, 0], sizes = [48, 128], strides = [1, 1]} : vector<64x128xbf16> to vector<48x128xbf16>
    %c0_12 = arith.constant 0 : index
    %c0_13 = arith.constant 0 : index
    %c0_14 = arith.constant 0 : index
    %22 = vector.load %arg7[%c0_12, %c0_13, %c0_14] : memref<9x128x128xbf16, #tpu.memory_space<vmem>>, vector<1x128x128xbf16>
    %23 = vector.shape_cast %22 : vector<1x128x128xbf16> to vector<128x128xbf16>
    %cst_15 = arith.constant dense<0.000000e+00> : vector<48x128xf32>
    %24 = tpu.matmul %21, %23, %cst_15 {dimension_numbers = #tpu.dot_dimension_numbers<[1], [0], [0], [1], [0, 0, 1, 1], [], []>} : vector<48x128xbf16>, vector<128x128xbf16>, vector<48x128xf32> -> vector<48x128xf32>
    %25 = arith.addf %19, %24 : vector<48x128xf32>
    %26 = vector.extract_strided_slice %20 {offsets = [8, 0], sizes = [48, 128], strides = [1, 1]} : vector<64x128xbf16> to vector<48x128xbf16>
    %c3 = arith.constant 3 : index
    %c0_16 = arith.constant 0 : index
    %c0_17 = arith.constant 0 : index
    %27 = vector.load %arg7[%c3, %c0_16, %c0_17] : memref<9x128x128xbf16, #tpu.memory_space<vmem>>, vector<1x128x128xbf16>
    %28 = vector.shape_cast %27 : vector<1x128x128xbf16> to vector<128x128xbf16>
    %cst_18 = arith.constant dense<0.000000e+00> : vector<48x128xf32>
    %29 = tpu.matmul %26, %28, %cst_18 {dimension_numbers = #tpu.dot_dimension_numbers<[1], [0], [0], [1], [0, 0, 1, 1], [], []>} : vector<48x128xbf16>, vector<128x128xbf16>, vector<48x128xf32> -> vector<48x128xf32>
    %30 = arith.addf %25, %29 : vector<48x128xf32>
    %31 = vector.extract_strided_slice %20 {offsets = [16, 0], sizes = [48, 128], strides = [1, 1]} : vector<64x128xbf16> to vector<48x128xbf16>
    %c6 = arith.constant 6 : index
    %c0_19 = arith.constant 0 : index
    %c0_20 = arith.constant 0 : index
    %32 = vector.load %arg7[%c6, %c0_19, %c0_20] : memref<9x128x128xbf16, #tpu.memory_space<vmem>>, vector<1x128x128xbf16>
    %33 = vector.shape_cast %32 : vector<1x128x128xbf16> to vector<128x128xbf16>
    %cst_21 = arith.constant dense<0.000000e+00> : vector<48x128xf32>
    %34 = tpu.matmul %31, %33, %cst_21 {dimension_numbers = #tpu.dot_dimension_numbers<[1], [0], [0], [1], [0, 0, 1, 1], [], []>} : vector<48x128xbf16>, vector<128x128xbf16>, vector<48x128xf32> -> vector<48x128xf32>
    %35 = arith.addf %30, %34 : vector<48x128xf32>
    %36 = vector.extract_strided_slice %18 {offsets = [1, 0], sizes = [64, 128], strides = [1, 1]} : vector<72x128xbf16> to vector<64x128xbf16>
    %37 = vector.extract_strided_slice %36 {offsets = [0, 0], sizes = [48, 128], strides = [1, 1]} : vector<64x128xbf16> to vector<48x128xbf16>
    %c1 = arith.constant 1 : index
    %c0_22 = arith.constant 0 : index
    %c0_23 = arith.constant 0 : index
    %38 = vector.load %arg7[%c1, %c0_22, %c0_23] : memref<9x128x128xbf16, #tpu.memory_space<vmem>>, vector<1x128x128xbf16>
    %39 = vector.shape_cast %38 : vector<1x128x128xbf16> to vector<128x128xbf16>
    %cst_24 = arith.constant dense<0.000000e+00> : vector<48x128xf32>
    %40 = tpu.matmul %37, %39, %cst_24 {dimension_numbers = #tpu.dot_dimension_numbers<[1], [0], [0], [1], [0, 0, 1, 1], [], []>} : vector<48x128xbf16>, vector<128x128xbf16>, vector<48x128xf32> -> vector<48x128xf32>
    %41 = arith.addf %35, %40 : vector<48x128xf32>
    %42 = vector.extract_strided_slice %36 {offsets = [8, 0], sizes = [48, 128], strides = [1, 1]} : vector<64x128xbf16> to vector<48x128xbf16>
    %c4 = arith.constant 4 : index
    %c0_25 = arith.constant 0 : index
    %c0_26 = arith.constant 0 : index
    %43 = vector.load %arg7[%c4, %c0_25, %c0_26] : memref<9x128x128xbf16, #tpu.memory_space<vmem>>, vector<1x128x128xbf16>
    %44 = vector.shape_cast %43 : vector<1x128x128xbf16> to vector<128x128xbf16>
    %cst_27 = arith.constant dense<0.000000e+00> : vector<48x128xf32>
    %45 = tpu.matmul %42, %44, %cst_27 {dimension_numbers = #tpu.dot_dimension_numbers<[1], [0], [0], [1], [0, 0, 1, 1], [], []>} : vector<48x128xbf16>, vector<128x128xbf16>, vector<48x128xf32> -> vector<48x128xf32>
    %46 = arith.addf %41, %45 : vector<48x128xf32>
    %47 = vector.extract_strided_slice %36 {offsets = [16, 0], sizes = [48, 128], strides = [1, 1]} : vector<64x128xbf16> to vector<48x128xbf16>
    %c7 = arith.constant 7 : index
    %c0_28 = arith.constant 0 : index
    %c0_29 = arith.constant 0 : index
    %48 = vector.load %arg7[%c7, %c0_28, %c0_29] : memref<9x128x128xbf16, #tpu.memory_space<vmem>>, vector<1x128x128xbf16>
    %49 = vector.shape_cast %48 : vector<1x128x128xbf16> to vector<128x128xbf16>
    %cst_30 = arith.constant dense<0.000000e+00> : vector<48x128xf32>
    %50 = tpu.matmul %47, %49, %cst_30 {dimension_numbers = #tpu.dot_dimension_numbers<[1], [0], [0], [1], [0, 0, 1, 1], [], []>} : vector<48x128xbf16>, vector<128x128xbf16>, vector<48x128xf32> -> vector<48x128xf32>
    %51 = arith.addf %46, %50 : vector<48x128xf32>
    %52 = vector.extract_strided_slice %18 {offsets = [2, 0], sizes = [64, 128], strides = [1, 1]} : vector<72x128xbf16> to vector<64x128xbf16>
    %53 = vector.extract_strided_slice %52 {offsets = [0, 0], sizes = [48, 128], strides = [1, 1]} : vector<64x128xbf16> to vector<48x128xbf16>
    %c2 = arith.constant 2 : index
    %c0_31 = arith.constant 0 : index
    %c0_32 = arith.constant 0 : index
    %54 = vector.load %arg7[%c2, %c0_31, %c0_32] : memref<9x128x128xbf16, #tpu.memory_space<vmem>>, vector<1x128x128xbf16>
    %55 = vector.shape_cast %54 : vector<1x128x128xbf16> to vector<128x128xbf16>
    %cst_33 = arith.constant dense<0.000000e+00> : vector<48x128xf32>
    %56 = tpu.matmul %53, %55, %cst_33 {dimension_numbers = #tpu.dot_dimension_numbers<[1], [0], [0], [1], [0, 0, 1, 1], [], []>} : vector<48x128xbf16>, vector<128x128xbf16>, vector<48x128xf32> -> vector<48x128xf32>
    %57 = arith.addf %51, %56 : vector<48x128xf32>
    %58 = vector.extract_strided_slice %52 {offsets = [8, 0], sizes = [48, 128], strides = [1, 1]} : vector<64x128xbf16> to vector<48x128xbf16>
    %c5 = arith.constant 5 : index
    %c0_34 = arith.constant 0 : index
    %c0_35 = arith.constant 0 : index
    %59 = vector.load %arg7[%c5, %c0_34, %c0_35] : memref<9x128x128xbf16, #tpu.memory_space<vmem>>, vector<1x128x128xbf16>
    %60 = vector.shape_cast %59 : vector<1x128x128xbf16> to vector<128x128xbf16>
    %cst_36 = arith.constant dense<0.000000e+00> : vector<48x128xf32>
    %61 = tpu.matmul %58, %60, %cst_36 {dimension_numbers = #tpu.dot_dimension_numbers<[1], [0], [0], [1], [0, 0, 1, 1], [], []>} : vector<48x128xbf16>, vector<128x128xbf16>, vector<48x128xf32> -> vector<48x128xf32>
    %62 = arith.addf %57, %61 : vector<48x128xf32>
    %63 = vector.extract_strided_slice %52 {offsets = [16, 0], sizes = [48, 128], strides = [1, 1]} : vector<64x128xbf16> to vector<48x128xbf16>
    %c8 = arith.constant 8 : index
    %c0_37 = arith.constant 0 : index
    %c0_38 = arith.constant 0 : index
    %64 = vector.load %arg7[%c8, %c0_37, %c0_38] : memref<9x128x128xbf16, #tpu.memory_space<vmem>>, vector<1x128x128xbf16>
    %65 = vector.shape_cast %64 : vector<1x128x128xbf16> to vector<128x128xbf16>
    %cst_39 = arith.constant dense<0.000000e+00> : vector<48x128xf32>
    %66 = tpu.matmul %63, %65, %cst_39 {dimension_numbers = #tpu.dot_dimension_numbers<[1], [0], [0], [1], [0, 0, 1, 1], [], []>} : vector<48x128xbf16>, vector<128x128xbf16>, vector<48x128xf32> -> vector<48x128xf32>
    %67 = arith.addf %62, %66 : vector<48x128xf32>
    %68 = arith.truncf %67 : vector<48x128xf32> to vector<48x128xbf16>
    %c0_40 = arith.constant 0 : index
    %c0_41 = arith.constant 0 : index
    %69 = vector.load %arg8[%c0_40, %c0_41] : memref<48x128xbf16, #tpu.memory_space<vmem>>, vector<48x128xbf16>
    tpu.vector_store %arg8[%c0_40, %c0_41], %68 {strides = array<i32>} : memref<48x128xbf16, #tpu.memory_space<vmem>>, vector<48x128xbf16>,
    %c0_42 = arith.constant 0 : index
    %c1_43 = arith.constant 1 : index
    %70 = vector.load %arg3[%c0_42, %c1_43] : memref<48x2xf32, #tpu.memory_space<vmem>>, vector<48x1xf32>
    %71 = vector.broadcast %70 : vector<48x1xf32> to vector<48x128xf32>
    %72 = arith.mulf %67, %71 : vector<48x128xf32>
    %cst_44 = arith.constant dense<0.000000e+00> : vector<128xf32>
    %73 = vector.multi_reduction <add>, %72, %cst_44 [0] : vector<48x128xf32> to vector<128xf32>
    %74 = vector.shape_cast %73 : vector<128xf32> to vector<1x128xf32>
    %75 = arith.mulf %72, %67 : vector<48x128xf32>
    %cst_45 = arith.constant dense<0.000000e+00> : vector<128xf32>
    %76 = vector.multi_reduction <add>, %75, %cst_45 [0] : vector<48x128xf32> to vector<128xf32>
    %77 = vector.shape_cast %76 : vector<128xf32> to vector<1x128xf32>
    %78 = tpu.concatenate %74, %77 in 1 : vector<1x128xf32>, vector<1x128xf32> -> vector<1x256xf32>
    %79 = vector.shape_cast %78 : vector<1x256xf32> to vector<1x1x256xf32>
    %80 = vector.shape_cast %79 : vector<1x1x256xf32> to vector<1x1x256xf32>
    %81 = vector.broadcast %80 : vector<1x1x256xf32> to vector<1x8x256xf32>
    %c0_46 = arith.constant 0 : index
    %c0_47 = arith.constant 0 : index
    %c0_48 = arith.constant 0 : index
    %82 = vector.load %arg9[%c0_46, %c0_47, %c0_48] : memref<1x8x256xf32, #tpu.memory_space<vmem>>, vector<1x8x256xf32>
    tpu.vector_store %arg9[%c0_46, %c0_47, %c0_48], %81 {strides = array<i32>} : memref<1x8x256xf32, #tpu.memory_space<vmem>>, vector<1x8x256xf32>,
    return
  }
  func.func @transform_0(%arg0: i32) -> (i32, i32) {
    %c0_i32 = arith.constant 0 : i32
    %c0_i32_0 = arith.constant 0 : i32
    return %arg0, %c0_i32 : i32, i32
  }
  func.func @transform_1(%arg0: i32) -> (i32, i32) {
    %c1_i32 = arith.constant 1 : i32
    %0 = arith.addi %arg0, %c1_i32 : i32
    %c2_i32 = arith.constant 2 : i32
    %1 = arith.muli %0, %c2_i32 : i32
    %c0_i32 = arith.constant 0 : i32
    %c0_i32_0 = arith.constant 0 : i32
    return %1, %c0_i32 : i32, i32
  }
  func.func @transform_2(%arg0: i32) -> (i32, i32) {
    %c0_i32 = arith.constant 0 : i32
    %c0_i32_0 = arith.constant 0 : i32
    return %arg0, %c0_i32 : i32, i32
  }
  func.func @transform_3(%arg0: i32) -> (i32, i32) {
    %c1_i32 = arith.constant 1 : i32
    %0 = arith.addi %arg0, %c1_i32 : i32
    %c2_i32 = arith.constant 2 : i32
    %1 = arith.muli %0, %c2_i32 : i32
    %c0_i32 = arith.constant 0 : i32
    %c0_i32_0 = arith.constant 0 : i32
    return %1, %c0_i32 : i32, i32
  }
  func.func @transform_4(%arg0: i32) -> (i32, i32) {
    %c0_i32 = arith.constant 0 : i32
    %c0_i32_0 = arith.constant 0 : i32
    %c0_i32_1 = arith.constant 0 : i32
    return %c0_i32, %c0_i32_0 : i32, i32
  }
  func.func @transform_5(%arg0: i32) -> (i32, i32) {
    %c0_i32 = arith.constant 0 : i32
    %c0_i32_0 = arith.constant 0 : i32
    %c0_i32_1 = arith.constant 0 : i32
    return %c0_i32, %c0_i32_0 : i32, i32
  }
  func.func @transform_6(%arg0: i32) -> (i32, i32, i32) {
    %c0_i32 = arith.constant 0 : i32
    %c0_i32_0 = arith.constant 0 : i32
    %c0_i32_1 = arith.constant 0 : i32
    %c0_i32_2 = arith.constant 0 : i32
    return %c0_i32, %c0_i32_0, %c0_i32_1 : i32, i32, i32
  }
  func.func @transform_7(%arg0: i32) -> (i32, i32) {
    %c0_i32 = arith.constant 0 : i32
    %c0_i32_0 = arith.constant 0 : i32
    return %arg0, %c0_i32 : i32, i32
  }
  func.func @transform_8(%arg0: i32) -> (i32, i32, i32) {
    %c0_i32 = arith.constant 0 : i32
    %c0_i32_0 = arith.constant 0 : i32
    %c0_i32_1 = arith.constant 0 : i32
    return %arg0, %c0_i32, %c0_i32_0 : i32, i32, i32
  }
}

module attributes {stable_mosaic.version = 11 : i64} {
  func.func @kern(%arg0: i32, %arg1: memref<16x128xbf16, #tpu.memory_space<vmem>>, %arg2: memref<1x128xf32, #tpu.memory_space<vmem>>, %arg3: memref<1x128xf32, #tpu.memory_space<vmem>>, %arg4: memref<16x128xbf16, #tpu.memory_space<vmem>>, %arg5: memref<1x128xf32, #tpu.memory_space<vmem>>, %arg6: memref<1x128xf32, #tpu.memory_space<vmem>>, %arg7: memref<16x128xbf16, #tpu.memory_space<vmem>>) attributes {dimension_semantics = [#tpu.dimension_semantics<parallel>], iteration_bounds = array<i64: 2>, scalar_prefetch = 0 : i64, scratch_operands = 0 : i64, tpu.core_type = #tpu.core_type<tc>, window_params = [{transform_indices = @transform_0, window_bounds = array<i64: 16, 128>}, {pipeline_mode = #tpu.pipeline_mode<synchronous>, transform_indices = @transform_1, window_bounds = array<i64: 1, 128>}, {pipeline_mode = #tpu.pipeline_mode<synchronous>, transform_indices = @transform_2, window_bounds = array<i64: 1, 128>}, {transform_indices = @transform_3, window_bounds = array<i64: 16, 128>}, {pipeline_mode = #tpu.pipeline_mode<synchronous>, transform_indices = @transform_4, window_bounds = array<i64: 1, 128>}, {pipeline_mode = #tpu.pipeline_mode<synchronous>, transform_indices = @transform_5, window_bounds = array<i64: 1, 128>}, {transform_indices = @transform_6, window_bounds = array<i64: 16, 128>}]} {
    %c0 = arith.constant 0 : index
    %c0_0 = arith.constant 0 : index
    %0 = vector.load %arg1[%c0, %c0_0] : memref<16x128xbf16, #tpu.memory_space<vmem>>, vector<16x128xbf16>
    %1 = arith.extf %0 : vector<16x128xbf16> to vector<16x128xf32>
    %c0_1 = arith.constant 0 : index
    %c0_2 = arith.constant 0 : index
    %2 = vector.load %arg2[%c0_1, %c0_2] : memref<1x128xf32, #tpu.memory_space<vmem>>, vector<1x128xf32>
    %3 = vector.broadcast %2 : vector<1x128xf32> to vector<16x128xf32>
    %4 = arith.mulf %1, %3 : vector<16x128xf32>
    %c0_3 = arith.constant 0 : index
    %c0_4 = arith.constant 0 : index
    %5 = vector.load %arg3[%c0_3, %c0_4] : memref<1x128xf32, #tpu.memory_space<vmem>>, vector<1x128xf32>
    %6 = vector.broadcast %5 : vector<1x128xf32> to vector<16x128xf32>
    %7 = arith.addf %4, %6 : vector<16x128xf32>
    %c0_5 = arith.constant 0 : index
    %c0_6 = arith.constant 0 : index
    %8 = vector.load %arg4[%c0_5, %c0_6] : memref<16x128xbf16, #tpu.memory_space<vmem>>, vector<16x128xbf16>
    %9 = arith.extf %8 : vector<16x128xbf16> to vector<16x128xf32>
    %c0_7 = arith.constant 0 : index
    %c0_8 = arith.constant 0 : index
    %10 = vector.load %arg5[%c0_7, %c0_8] : memref<1x128xf32, #tpu.memory_space<vmem>>, vector<1x128xf32>
    %11 = vector.broadcast %10 : vector<1x128xf32> to vector<16x128xf32>
    %12 = arith.mulf %9, %11 : vector<16x128xf32>
    %c0_9 = arith.constant 0 : index
    %c0_10 = arith.constant 0 : index
    %13 = vector.load %arg6[%c0_9, %c0_10] : memref<1x128xf32, #tpu.memory_space<vmem>>, vector<1x128xf32>
    %14 = vector.broadcast %13 : vector<1x128xf32> to vector<16x128xf32>
    %15 = arith.addf %12, %14 : vector<16x128xf32>
    %16 = arith.addf %7, %15 : vector<16x128xf32>
    %cst = arith.constant 0.000000e+00 : f32
    %17 = vector.broadcast %cst : f32 to vector<16x128xf32>
    %18 = arith.maximumf %16, %17 : vector<16x128xf32>
    %19 = arith.truncf %18 : vector<16x128xf32> to vector<16x128xbf16>
    %c0_11 = arith.constant 0 : index
    %c0_12 = arith.constant 0 : index
    %20 = vector.load %arg7[%c0_11, %c0_12] : memref<16x128xbf16, #tpu.memory_space<vmem>>, vector<16x128xbf16>
    tpu.vector_store %arg7[%c0_11, %c0_12], %19 {strides = array<i32>} : memref<16x128xbf16, #tpu.memory_space<vmem>>, vector<16x128xbf16>,
    return
  }
  func.func @transform_0(%arg0: i32) -> (i32, i32) {
    %c0_i32 = arith.constant 0 : i32
    %c0_i32_0 = arith.constant 0 : i32
    return %arg0, %c0_i32 : i32, i32
  }
  func.func @transform_1(%arg0: i32) -> (i32, i32) {
    %c0_i32 = arith.constant 0 : i32
    %c0_i32_0 = arith.constant 0 : i32
    %c0_i32_1 = arith.constant 0 : i32
    return %c0_i32, %c0_i32_0 : i32, i32
  }
  func.func @transform_2(%arg0: i32) -> (i32, i32) {
    %c0_i32 = arith.constant 0 : i32
    %c0_i32_0 = arith.constant 0 : i32
    %c0_i32_1 = arith.constant 0 : i32
    return %c0_i32, %c0_i32_0 : i32, i32
  }
  func.func @transform_3(%arg0: i32) -> (i32, i32) {
    %c0_i32 = arith.constant 0 : i32
    %c0_i32_0 = arith.constant 0 : i32
    return %arg0, %c0_i32 : i32, i32
  }
  func.func @transform_4(%arg0: i32) -> (i32, i32) {
    %c0_i32 = arith.constant 0 : i32
    %c0_i32_0 = arith.constant 0 : i32
    %c0_i32_1 = arith.constant 0 : i32
    return %c0_i32, %c0_i32_0 : i32, i32
  }
  func.func @transform_5(%arg0: i32) -> (i32, i32) {
    %c0_i32 = arith.constant 0 : i32
    %c0_i32_0 = arith.constant 0 : i32
    %c0_i32_1 = arith.constant 0 : i32
    return %c0_i32, %c0_i32_0 : i32, i32
  }
  func.func @transform_6(%arg0: i32) -> (i32, i32) {
    %c0_i32 = arith.constant 0 : i32
    %c0_i32_0 = arith.constant 0 : i32
    return %arg0, %c0_i32 : i32, i32
  }
}

module attributes {stable_mosaic.version = 11 : i64} {
  func.func @_mm_stats_kernel(%arg0: i32, %arg1: memref<8x1152xbf16, #tpu.memory_space<vmem>>, %arg2: memref<1152x128xbf16, #tpu.memory_space<vmem>>, %arg3: memref<8x128xbf16, #tpu.memory_space<vmem>>, %arg4: memref<1x8x256xf32, #tpu.memory_space<vmem>>) attributes {dimension_semantics = [#tpu.dimension_semantics<parallel>], iteration_bounds = array<i64: 1>, scalar_prefetch = 0 : i64, scratch_operands = 0 : i64, tpu.core_type = #tpu.core_type<tc>, window_params = [{transform_indices = @transform_0, window_bounds = array<i64: 8, 1152>}, {pipeline_mode = #tpu.pipeline_mode<synchronous>, transform_indices = @transform_1, window_bounds = array<i64: 1152, 128>}, {transform_indices = @transform_2, window_bounds = array<i64: 8, 128>}, {transform_indices = @transform_3, window_bounds = array<i64: 1, 8, 256>}]} {
    %c0 = arith.constant 0 : index
    %c0_0 = arith.constant 0 : index
    %0 = vector.load %arg1[%c0, %c0_0] : memref<8x1152xbf16, #tpu.memory_space<vmem>>, vector<8x1152xbf16>
    %c0_1 = arith.constant 0 : index
    %c0_2 = arith.constant 0 : index
    %1 = vector.load %arg2[%c0_1, %c0_2] : memref<1152x128xbf16, #tpu.memory_space<vmem>>, vector<1152x128xbf16>
    %cst = arith.constant dense<0.000000e+00> : vector<8x128xf32>
    %2 = tpu.matmul %0, %1, %cst {dimension_numbers = #tpu.dot_dimension_numbers<[1], [0], [0], [1], [0, 0, 1, 1], [], []>} : vector<8x1152xbf16>, vector<1152x128xbf16>, vector<8x128xf32> -> vector<8x128xf32>
    %3 = arith.truncf %2 : vector<8x128xf32> to vector<8x128xbf16>
    %c0_3 = arith.constant 0 : index
    %c0_4 = arith.constant 0 : index
    %4 = vector.load %arg3[%c0_3, %c0_4] : memref<8x128xbf16, #tpu.memory_space<vmem>>, vector<8x128xbf16>
    tpu.vector_store %arg3[%c0_3, %c0_4], %3 {strides = array<i32>} : memref<8x128xbf16, #tpu.memory_space<vmem>>, vector<8x128xbf16>,
    %cst_5 = arith.constant dense<0.000000e+00> : vector<128xf32>
    %5 = vector.multi_reduction <add>, %2, %cst_5 [0] : vector<8x128xf32> to vector<128xf32>
    %6 = vector.shape_cast %5 : vector<128xf32> to vector<1x128xf32>
    %7 = arith.mulf %2, %2 : vector<8x128xf32>
    %cst_6 = arith.constant dense<0.000000e+00> : vector<128xf32>
    %8 = vector.multi_reduction <add>, %7, %cst_6 [0] : vector<8x128xf32> to vector<128xf32>
    %9 = vector.shape_cast %8 : vector<128xf32> to vector<1x128xf32>
    %10 = tpu.concatenate %6, %9 in 1 : vector<1x128xf32>, vector<1x128xf32> -> vector<1x256xf32>
    %11 = vector.shape_cast %10 : vector<1x256xf32> to vector<1x1x256xf32>
    %12 = vector.shape_cast %11 : vector<1x1x256xf32> to vector<1x1x256xf32>
    %13 = vector.broadcast %12 : vector<1x1x256xf32> to vector<1x8x256xf32>
    %c0_7 = arith.constant 0 : index
    %c0_8 = arith.constant 0 : index
    %c0_9 = arith.constant 0 : index
    %14 = vector.load %arg4[%c0_7, %c0_8, %c0_9] : memref<1x8x256xf32, #tpu.memory_space<vmem>>, vector<1x8x256xf32>
    tpu.vector_store %arg4[%c0_7, %c0_8, %c0_9], %13 {strides = array<i32>} : memref<1x8x256xf32, #tpu.memory_space<vmem>>, vector<1x8x256xf32>,
    return
  }
  func.func @transform_0(%arg0: i32) -> (i32, i32) {
    %c0_i32 = arith.constant 0 : i32
    %c0_i32_0 = arith.constant 0 : i32
    return %arg0, %c0_i32 : i32, i32
  }
  func.func @transform_1(%arg0: i32) -> (i32, i32) {
    %c0_i32 = arith.constant 0 : i32
    %c0_i32_0 = arith.constant 0 : i32
    %c0_i32_1 = arith.constant 0 : i32
    return %c0_i32, %c0_i32_0 : i32, i32
  }
  func.func @transform_2(%arg0: i32) -> (i32, i32) {
    %c0_i32 = arith.constant 0 : i32
    %c0_i32_0 = arith.constant 0 : i32
    return %arg0, %c0_i32 : i32, i32
  }
  func.func @transform_3(%arg0: i32) -> (i32, i32, i32) {
    %c0_i32 = arith.constant 0 : i32
    %c0_i32_0 = arith.constant 0 : i32
    %c0_i32_1 = arith.constant 0 : i32
    return %arg0, %c0_i32, %c0_i32_0 : i32, i32, i32
  }
}

module attributes {stable_mosaic.version = 11 : i64} {
  func.func @_mm_stats_kernel(%arg0: i32, %arg1: memref<8x128xbf16, #tpu.memory_space<vmem>>, %arg2: memref<128x128xbf16, #tpu.memory_space<vmem>>, %arg3: memref<8x128xbf16, #tpu.memory_space<vmem>>, %arg4: memref<1x8x256xf32, #tpu.memory_space<vmem>>) attributes {dimension_semantics = [#tpu.dimension_semantics<parallel>], iteration_bounds = array<i64: 1>, scalar_prefetch = 0 : i64, scratch_operands = 0 : i64, tpu.core_type = #tpu.core_type<tc>, window_params = [{transform_indices = @transform_0, window_bounds = array<i64: 8, 128>}, {pipeline_mode = #tpu.pipeline_mode<synchronous>, transform_indices = @transform_1, window_bounds = array<i64: 128, 128>}, {transform_indices = @transform_2, window_bounds = array<i64: 8, 128>}, {transform_indices = @transform_3, window_bounds = array<i64: 1, 8, 256>}]} {
    %c0 = arith.constant 0 : index
    %c0_0 = arith.constant 0 : index
    %0 = vector.load %arg1[%c0, %c0_0] : memref<8x128xbf16, #tpu.memory_space<vmem>>, vector<8x128xbf16>
    %c0_1 = arith.constant 0 : index
    %c0_2 = arith.constant 0 : index
    %1 = vector.load %arg2[%c0_1, %c0_2] : memref<128x128xbf16, #tpu.memory_space<vmem>>, vector<128x128xbf16>
    %cst = arith.constant dense<0.000000e+00> : vector<8x128xf32>
    %2 = tpu.matmul %0, %1, %cst {dimension_numbers = #tpu.dot_dimension_numbers<[1], [0], [0], [1], [0, 0, 1, 1], [], []>} : vector<8x128xbf16>, vector<128x128xbf16>, vector<8x128xf32> -> vector<8x128xf32>
    %3 = arith.truncf %2 : vector<8x128xf32> to vector<8x128xbf16>
    %c0_3 = arith.constant 0 : index
    %c0_4 = arith.constant 0 : index
    %4 = vector.load %arg3[%c0_3, %c0_4] : memref<8x128xbf16, #tpu.memory_space<vmem>>, vector<8x128xbf16>
    tpu.vector_store %arg3[%c0_3, %c0_4], %3 {strides = array<i32>} : memref<8x128xbf16, #tpu.memory_space<vmem>>, vector<8x128xbf16>,
    %cst_5 = arith.constant dense<0.000000e+00> : vector<128xf32>
    %5 = vector.multi_reduction <add>, %2, %cst_5 [0] : vector<8x128xf32> to vector<128xf32>
    %6 = vector.shape_cast %5 : vector<128xf32> to vector<1x128xf32>
    %7 = arith.mulf %2, %2 : vector<8x128xf32>
    %cst_6 = arith.constant dense<0.000000e+00> : vector<128xf32>
    %8 = vector.multi_reduction <add>, %7, %cst_6 [0] : vector<8x128xf32> to vector<128xf32>
    %9 = vector.shape_cast %8 : vector<128xf32> to vector<1x128xf32>
    %10 = tpu.concatenate %6, %9 in 1 : vector<1x128xf32>, vector<1x128xf32> -> vector<1x256xf32>
    %11 = vector.shape_cast %10 : vector<1x256xf32> to vector<1x1x256xf32>
    %12 = vector.shape_cast %11 : vector<1x1x256xf32> to vector<1x1x256xf32>
    %13 = vector.broadcast %12 : vector<1x1x256xf32> to vector<1x8x256xf32>
    %c0_7 = arith.constant 0 : index
    %c0_8 = arith.constant 0 : index
    %c0_9 = arith.constant 0 : index
    %14 = vector.load %arg4[%c0_7, %c0_8, %c0_9] : memref<1x8x256xf32, #tpu.memory_space<vmem>>, vector<1x8x256xf32>
    tpu.vector_store %arg4[%c0_7, %c0_8, %c0_9], %13 {strides = array<i32>} : memref<1x8x256xf32, #tpu.memory_space<vmem>>, vector<1x8x256xf32>,
    return
  }
  func.func @transform_0(%arg0: i32) -> (i32, i32) {
    %c0_i32 = arith.constant 0 : i32
    %c0_i32_0 = arith.constant 0 : i32
    return %arg0, %c0_i32 : i32, i32
  }
  func.func @transform_1(%arg0: i32) -> (i32, i32) {
    %c0_i32 = arith.constant 0 : i32
    %c0_i32_0 = arith.constant 0 : i32
    %c0_i32_1 = arith.constant 0 : i32
    return %c0_i32, %c0_i32_0 : i32, i32
  }
  func.func @transform_2(%arg0: i32) -> (i32, i32) {
    %c0_i32 = arith.constant 0 : i32
    %c0_i32_0 = arith.constant 0 : i32
    return %arg0, %c0_i32 : i32, i32
  }
  func.func @transform_3(%arg0: i32) -> (i32, i32, i32) {
    %c0_i32 = arith.constant 0 : i32
    %c0_i32_0 = arith.constant 0 : i32
    %c0_i32_1 = arith.constant 0 : i32
    return %arg0, %c0_i32, %c0_i32_0 : i32, i32, i32
  }
}

module attributes {stable_mosaic.version = 11 : i64} {
  func.func @kern(%arg0: i32, %arg1: memref<8x128xbf16, #tpu.memory_space<vmem>>, %arg2: memref<1x128xf32, #tpu.memory_space<vmem>>, %arg3: memref<1x128xf32, #tpu.memory_space<vmem>>, %arg4: memref<8x128xbf16, #tpu.memory_space<vmem>>, %arg5: memref<1x128xf32, #tpu.memory_space<vmem>>, %arg6: memref<1x128xf32, #tpu.memory_space<vmem>>, %arg7: memref<8x128xbf16, #tpu.memory_space<vmem>>) attributes {dimension_semantics = [#tpu.dimension_semantics<parallel>], iteration_bounds = array<i64: 1>, scalar_prefetch = 0 : i64, scratch_operands = 0 : i64, tpu.core_type = #tpu.core_type<tc>, window_params = [{transform_indices = @transform_0, window_bounds = array<i64: 8, 128>}, {pipeline_mode = #tpu.pipeline_mode<synchronous>, transform_indices = @transform_1, window_bounds = array<i64: 1, 128>}, {pipeline_mode = #tpu.pipeline_mode<synchronous>, transform_indices = @transform_2, window_bounds = array<i64: 1, 128>}, {transform_indices = @transform_3, window_bounds = array<i64: 8, 128>}, {pipeline_mode = #tpu.pipeline_mode<synchronous>, transform_indices = @transform_4, window_bounds = array<i64: 1, 128>}, {pipeline_mode = #tpu.pipeline_mode<synchronous>, transform_indices = @transform_5, window_bounds = array<i64: 1, 128>}, {transform_indices = @transform_6, window_bounds = array<i64: 8, 128>}]} {
    %c0 = arith.constant 0 : index
    %c0_0 = arith.constant 0 : index
    %0 = vector.load %arg1[%c0, %c0_0] : memref<8x128xbf16, #tpu.memory_space<vmem>>, vector<8x128xbf16>
    %1 = arith.extf %0 : vector<8x128xbf16> to vector<8x128xf32>
    %c0_1 = arith.constant 0 : index
    %c0_2 = arith.constant 0 : index
    %2 = vector.load %arg2[%c0_1, %c0_2] : memref<1x128xf32, #tpu.memory_space<vmem>>, vector<1x128xf32>
    %3 = vector.broadcast %2 : vector<1x128xf32> to vector<8x128xf32>
    %4 = arith.mulf %1, %3 : vector<8x128xf32>
    %c0_3 = arith.constant 0 : index
    %c0_4 = arith.constant 0 : index
    %5 = vector.load %arg3[%c0_3, %c0_4] : memref<1x128xf32, #tpu.memory_space<vmem>>, vector<1x128xf32>
    %6 = vector.broadcast %5 : vector<1x128xf32> to vector<8x128xf32>
    %7 = arith.addf %4, %6 : vector<8x128xf32>
    %c0_5 = arith.constant 0 : index
    %c0_6 = arith.constant 0 : index
    %8 = vector.load %arg4[%c0_5, %c0_6] : memref<8x128xbf16, #tpu.memory_space<vmem>>, vector<8x128xbf16>
    %9 = arith.extf %8 : vector<8x128xbf16> to vector<8x128xf32>
    %c0_7 = arith.constant 0 : index
    %c0_8 = arith.constant 0 : index
    %10 = vector.load %arg5[%c0_7, %c0_8] : memref<1x128xf32, #tpu.memory_space<vmem>>, vector<1x128xf32>
    %11 = vector.broadcast %10 : vector<1x128xf32> to vector<8x128xf32>
    %12 = arith.mulf %9, %11 : vector<8x128xf32>
    %c0_9 = arith.constant 0 : index
    %c0_10 = arith.constant 0 : index
    %13 = vector.load %arg6[%c0_9, %c0_10] : memref<1x128xf32, #tpu.memory_space<vmem>>, vector<1x128xf32>
    %14 = vector.broadcast %13 : vector<1x128xf32> to vector<8x128xf32>
    %15 = arith.addf %12, %14 : vector<8x128xf32>
    %16 = arith.addf %7, %15 : vector<8x128xf32>
    %cst = arith.constant 0.000000e+00 : f32
    %17 = vector.broadcast %cst : f32 to vector<8x128xf32>
    %18 = arith.maximumf %16, %17 : vector<8x128xf32>
    %19 = arith.truncf %18 : vector<8x128xf32> to vector<8x128xbf16>
    %c0_11 = arith.constant 0 : index
    %c0_12 = arith.constant 0 : index
    %20 = vector.load %arg7[%c0_11, %c0_12] : memref<8x128xbf16, #tpu.memory_space<vmem>>, vector<8x128xbf16>
    tpu.vector_store %arg7[%c0_11, %c0_12], %19 {strides = array<i32>} : memref<8x128xbf16, #tpu.memory_space<vmem>>, vector<8x128xbf16>,
    return
  }
  func.func @transform_0(%arg0: i32) -> (i32, i32) {
    %c0_i32 = arith.constant 0 : i32
    %c0_i32_0 = arith.constant 0 : i32
    return %arg0, %c0_i32 : i32, i32
  }
  func.func @transform_1(%arg0: i32) -> (i32, i32) {
    %c0_i32 = arith.constant 0 : i32
    %c0_i32_0 = arith.constant 0 : i32
    %c0_i32_1 = arith.constant 0 : i32
    return %c0_i32, %c0_i32_0 : i32, i32
  }
  func.func @transform_2(%arg0: i32) -> (i32, i32) {
    %c0_i32 = arith.constant 0 : i32
    %c0_i32_0 = arith.constant 0 : i32
    %c0_i32_1 = arith.constant 0 : i32
    return %c0_i32, %c0_i32_0 : i32, i32
  }
  func.func @transform_3(%arg0: i32) -> (i32, i32) {
    %c0_i32 = arith.constant 0 : i32
    %c0_i32_0 = arith.constant 0 : i32
    return %arg0, %c0_i32 : i32, i32
  }
  func.func @transform_4(%arg0: i32) -> (i32, i32) {
    %c0_i32 = arith.constant 0 : i32
    %c0_i32_0 = arith.constant 0 : i32
    %c0_i32_1 = arith.constant 0 : i32
    return %c0_i32, %c0_i32_0 : i32, i32
  }
  func.func @transform_5(%arg0: i32) -> (i32, i32) {
    %c0_i32 = arith.constant 0 : i32
    %c0_i32_0 = arith.constant 0 : i32
    %c0_i32_1 = arith.constant 0 : i32
    return %c0_i32, %c0_i32_0 : i32, i32
  }
  func.func @transform_6(%arg0: i32) -> (i32, i32) {
    %c0_i32 = arith.constant 0 : i32
    %c0_i32_0 = arith.constant 0 : i32
    return %arg0, %c0_i32 : i32, i32
  }
}

module attributes {stable_mosaic.version = 11 : i64} {
  func.func @_mm_bias_kernel(%arg0: i32, %arg1: memref<8x128xbf16, #tpu.memory_space<vmem>>, %arg2: memref<128x128xbf16, #tpu.memory_space<vmem>>, %arg3: memref<1x128xf32, #tpu.memory_space<vmem>>, %arg4: memref<8x128xf32, #tpu.memory_space<vmem>>) attributes {dimension_semantics = [#tpu.dimension_semantics<parallel>], iteration_bounds = array<i64: 1>, scalar_prefetch = 0 : i64, scratch_operands = 0 : i64, tpu.core_type = #tpu.core_type<tc>, window_params = [{transform_indices = @transform_0, window_bounds = array<i64: 8, 128>}, {pipeline_mode = #tpu.pipeline_mode<synchronous>, transform_indices = @transform_1, window_bounds = array<i64: 128, 128>}, {pipeline_mode = #tpu.pipeline_mode<synchronous>, transform_indices = @transform_2, window_bounds = array<i64: 1, 128>}, {transform_indices = @transform_3, window_bounds = array<i64: 8, 128>}]} {
    %c0 = arith.constant 0 : index
    %c0_0 = arith.constant 0 : index
    %0 = vector.load %arg1[%c0, %c0_0] : memref<8x128xbf16, #tpu.memory_space<vmem>>, vector<8x128xbf16>
    %c0_1 = arith.constant 0 : index
    %c0_2 = arith.constant 0 : index
    %1 = vector.load %arg2[%c0_1, %c0_2] : memref<128x128xbf16, #tpu.memory_space<vmem>>, vector<128x128xbf16>
    %cst = arith.constant dense<0.000000e+00> : vector<8x128xf32>
    %2 = tpu.matmul %0, %1, %cst {dimension_numbers = #tpu.dot_dimension_numbers<[1], [0], [0], [1], [0, 0, 1, 1], [], []>} : vector<8x128xbf16>, vector<128x128xbf16>, vector<8x128xf32> -> vector<8x128xf32>
    %c0_3 = arith.constant 0 : index
    %c0_4 = arith.constant 0 : index
    %3 = vector.load %arg3[%c0_3, %c0_4] : memref<1x128xf32, #tpu.memory_space<vmem>>, vector<1x128xf32>
    %4 = vector.broadcast %3 : vector<1x128xf32> to vector<8x128xf32>
    %5 = arith.addf %2, %4 : vector<8x128xf32>
    %c0_5 = arith.constant 0 : index
    %c0_6 = arith.constant 0 : index
    %6 = vector.load %arg4[%c0_5, %c0_6] : memref<8x128xf32, #tpu.memory_space<vmem>>, vector<8x128xf32>
    tpu.vector_store %arg4[%c0_5, %c0_6], %5 {strides = array<i32>} : memref<8x128xf32, #tpu.memory_space<vmem>>, vector<8x128xf32>,
    return
  }
  func.func @transform_0(%arg0: i32) -> (i32, i32) {
    %c0_i32 = arith.constant 0 : i32
    %c0_i32_0 = arith.constant 0 : i32
    return %arg0, %c0_i32 : i32, i32
  }
  func.func @transform_1(%arg0: i32) -> (i32, i32) {
    %c0_i32 = arith.constant 0 : i32
    %c0_i32_0 = arith.constant 0 : i32
    %c0_i32_1 = arith.constant 0 : i32
    return %c0_i32, %c0_i32_0 : i32, i32
  }
  func.func @transform_2(%arg0: i32) -> (i32, i32) {
    %c0_i32 = arith.constant 0 : i32
    %c0_i32_0 = arith.constant 0 : i32
    %c0_i32_1 = arith.constant 0 : i32
    return %c0_i32, %c0_i32_0 : i32, i32
  }
  func.func @transform_3(%arg0: i32) -> (i32, i32) {
    %c0_i32 = arith.constant 0 : i32
    %c0_i32_0 = arith.constant 0 : i32
    return %arg0, %c0_i32 : i32, i32
  }
}

module attributes {stable_mosaic.version = 11 : i64} {
  func.func @kern(%arg0: i32, %arg1: memref<24x128xbf16, #tpu.memory_space<vmem>>, %arg2: memref<24x128xbf16, #tpu.memory_space<vmem>>, %arg3: memref<24x2xf32, #tpu.memory_space<vmem>>, %arg4: memref<24x2xf32, #tpu.memory_space<vmem>>, %arg5: memref<1x128xf32, #tpu.memory_space<vmem>>, %arg6: memref<1x128xf32, #tpu.memory_space<vmem>>, %arg7: memref<9x128x128xbf16, #tpu.memory_space<vmem>>, %arg8: memref<24x128xbf16, #tpu.memory_space<vmem>>, %arg9: memref<1x8x256xf32, #tpu.memory_space<vmem>>) attributes {dimension_semantics = [#tpu.dimension_semantics<parallel>], iteration_bounds = array<i64: 2>, scalar_prefetch = 0 : i64, scratch_operands = 0 : i64, tpu.core_type = #tpu.core_type<tc>, window_params = [{transform_indices = @transform_0, window_bounds = array<i64: 24, 128>}, {transform_indices = @transform_1, window_bounds = array<i64: 24, 128>}, {transform_indices = @transform_2, window_bounds = array<i64: 24, 2>}, {transform_indices = @transform_3, window_bounds = array<i64: 24, 2>}, {pipeline_mode = #tpu.pipeline_mode<synchronous>, transform_indices = @transform_4, window_bounds = array<i64: 1, 128>}, {pipeline_mode = #tpu.pipeline_mode<synchronous>, transform_indices = @transform_5, window_bounds = array<i64: 1, 128>}, {pipeline_mode = #tpu.pipeline_mode<synchronous>, transform_indices = @transform_6, window_bounds = array<i64: 9, 128, 128>}, {transform_indices = @transform_7, window_bounds = array<i64: 24, 128>}, {transform_indices = @transform_8, window_bounds = array<i64: 1, 8, 256>}]} {
    %c0 = arith.constant 0 : index
    %c0_0 = arith.constant 0 : index
    %0 = vector.load %arg1[%c0, %c0_0] : memref<24x128xbf16, #tpu.memory_space<vmem>>, vector<24x128xbf16>
    %c0_1 = arith.constant 0 : index
    %c0_2 = arith.constant 0 : index
    %1 = vector.load %arg2[%c0_1, %c0_2] : memref<24x128xbf16, #tpu.memory_space<vmem>>, vector<24x128xbf16>
    %2 = tpu.concatenate %0, %1 in 0 : vector<24x128xbf16>, vector<24x128xbf16> -> vector<48x128xbf16>
    %3 = arith.extf %2 : vector<48x128xbf16> to vector<48x128xf32>
    %c0_3 = arith.constant 0 : index
    %c0_4 = arith.constant 0 : index
    %4 = vector.load %arg3[%c0_3, %c0_4] : memref<24x2xf32, #tpu.memory_space<vmem>>, vector<24x2xf32>
    %c0_5 = arith.constant 0 : index
    %c0_6 = arith.constant 0 : index
    %5 = vector.load %arg4[%c0_5, %c0_6] : memref<24x2xf32, #tpu.memory_space<vmem>>, vector<24x2xf32>
    %6 = tpu.concatenate %4, %5 in 0 : vector<24x2xf32>, vector<24x2xf32> -> vector<48x2xf32>
    %c0_7 = arith.constant 0 : index
    %c0_8 = arith.constant 0 : index
    %7 = vector.load %arg5[%c0_7, %c0_8] : memref<1x128xf32, #tpu.memory_space<vmem>>, vector<1x128xf32>
    %8 = vector.broadcast %7 : vector<1x128xf32> to vector<48x128xf32>
    %9 = arith.mulf %3, %8 : vector<48x128xf32>
    %c0_9 = arith.constant 0 : index
    %c0_10 = arith.constant 0 : index
    %10 = vector.load %arg6[%c0_9, %c0_10] : memref<1x128xf32, #tpu.memory_space<vmem>>, vector<1x128xf32>
    %11 = vector.broadcast %10 : vector<1x128xf32> to vector<48x128xf32>
    %12 = arith.addf %9, %11 : vector<48x128xf32>
    %cst = arith.constant 0.000000e+00 : f32
    %13 = vector.broadcast %cst : f32 to vector<48x128xf32>
    %14 = arith.maximumf %12, %13 : vector<48x128xf32>
    %15 = vector.extract_strided_slice %6 {offsets = [0, 0], sizes = [48, 1], strides = [1, 1]} : vector<48x2xf32> to vector<48x1xf32>
    %16 = vector.broadcast %15 : vector<48x1xf32> to vector<48x128xf32>
    %17 = arith.mulf %14, %16 : vector<48x128xf32>
    %18 = arith.truncf %17 : vector<48x128xf32> to vector<48x128xbf16>
    %cst_11 = arith.constant 0.000000e+00 : f32
    %19 = vector.broadcast %cst_11 : f32 to vector<24x128xf32>
    %20 = vector.extract_strided_slice %18 {offsets = [0, 0], sizes = [40, 128], strides = [1, 1]} : vector<48x128xbf16> to vector<40x128xbf16>
    %21 = vector.extract_strided_slice %20 {offsets = [0, 0], sizes = [24, 128], strides = [1, 1]} : vector<40x128xbf16> to vector<24x128xbf16>
    %c0_12 = arith.constant 0 : index
    %c0_13 = arith.constant 0 : index
    %c0_14 = arith.constant 0 : index
    %22 = vector.load %arg7[%c0_12, %c0_13, %c0_14] : memref<9x128x128xbf16, #tpu.memory_space<vmem>>, vector<1x128x128xbf16>
    %23 = vector.shape_cast %22 : vector<1x128x128xbf16> to vector<128x128xbf16>
    %cst_15 = arith.constant dense<0.000000e+00> : vector<24x128xf32>
    %24 = tpu.matmul %21, %23, %cst_15 {dimension_numbers = #tpu.dot_dimension_numbers<[1], [0], [0], [1], [0, 0, 1, 1], [], []>} : vector<24x128xbf16>, vector<128x128xbf16>, vector<24x128xf32> -> vector<24x128xf32>
    %25 = arith.addf %19, %24 : vector<24x128xf32>
    %26 = vector.extract_strided_slice %20 {offsets = [8, 0], sizes = [24, 128], strides = [1, 1]} : vector<40x128xbf16> to vector<24x128xbf16>
    %c3 = arith.constant 3 : index
    %c0_16 = arith.constant 0 : index
    %c0_17 = arith.constant 0 : index
    %27 = vector.load %arg7[%c3, %c0_16, %c0_17] : memref<9x128x128xbf16, #tpu.memory_space<vmem>>, vector<1x128x128xbf16>
    %28 = vector.shape_cast %27 : vector<1x128x128xbf16> to vector<128x128xbf16>
    %cst_18 = arith.constant dense<0.000000e+00> : vector<24x128xf32>
    %29 = tpu.matmul %26, %28, %cst_18 {dimension_numbers = #tpu.dot_dimension_numbers<[1], [0], [0], [1], [0, 0, 1, 1], [], []>} : vector<24x128xbf16>, vector<128x128xbf16>, vector<24x128xf32> -> vector<24x128xf32>
    %30 = arith.addf %25, %29 : vector<24x128xf32>
    %31 = vector.extract_strided_slice %20 {offsets = [16, 0], sizes = [24, 128], strides = [1, 1]} : vector<40x128xbf16> to vector<24x128xbf16>
    %c6 = arith.constant 6 : index
    %c0_19 = arith.constant 0 : index
    %c0_20 = arith.constant 0 : index
    %32 = vector.load %arg7[%c6, %c0_19, %c0_20] : memref<9x128x128xbf16, #tpu.memory_space<vmem>>, vector<1x128x128xbf16>
    %33 = vector.shape_cast %32 : vector<1x128x128xbf16> to vector<128x128xbf16>
    %cst_21 = arith.constant dense<0.000000e+00> : vector<24x128xf32>
    %34 = tpu.matmul %31, %33, %cst_21 {dimension_numbers = #tpu.dot_dimension_numbers<[1], [0], [0], [1], [0, 0, 1, 1], [], []>} : vector<24x128xbf16>, vector<128x128xbf16>, vector<24x128xf32> -> vector<24x128xf32>
    %35 = arith.addf %30, %34 : vector<24x128xf32>
    %36 = vector.extract_strided_slice %18 {offsets = [1, 0], sizes = [40, 128], strides = [1, 1]} : vector<48x128xbf16> to vector<40x128xbf16>
    %37 = vector.extract_strided_slice %36 {offsets = [0, 0], sizes = [24, 128], strides = [1, 1]} : vector<40x128xbf16> to vector<24x128xbf16>
    %c1 = arith.constant 1 : index
    %c0_22 = arith.constant 0 : index
    %c0_23 = arith.constant 0 : index
    %38 = vector.load %arg7[%c1, %c0_22, %c0_23] : memref<9x128x128xbf16, #tpu.memory_space<vmem>>, vector<1x128x128xbf16>
    %39 = vector.shape_cast %38 : vector<1x128x128xbf16> to vector<128x128xbf16>
    %cst_24 = arith.constant dense<0.000000e+00> : vector<24x128xf32>
    %40 = tpu.matmul %37, %39, %cst_24 {dimension_numbers = #tpu.dot_dimension_numbers<[1], [0], [0], [1], [0, 0, 1, 1], [], []>} : vector<24x128xbf16>, vector<128x128xbf16>, vector<24x128xf32> -> vector<24x128xf32>
    %41 = arith.addf %35, %40 : vector<24x128xf32>
    %42 = vector.extract_strided_slice %36 {offsets = [8, 0], sizes = [24, 128], strides = [1, 1]} : vector<40x128xbf16> to vector<24x128xbf16>
    %c4 = arith.constant 4 : index
    %c0_25 = arith.constant 0 : index
    %c0_26 = arith.constant 0 : index
    %43 = vector.load %arg7[%c4, %c0_25, %c0_26] : memref<9x128x128xbf16, #tpu.memory_space<vmem>>, vector<1x128x128xbf16>
    %44 = vector.shape_cast %43 : vector<1x128x128xbf16> to vector<128x128xbf16>
    %cst_27 = arith.constant dense<0.000000e+00> : vector<24x128xf32>
    %45 = tpu.matmul %42, %44, %cst_27 {dimension_numbers = #tpu.dot_dimension_numbers<[1], [0], [0], [1], [0, 0, 1, 1], [], []>} : vector<24x128xbf16>, vector<128x128xbf16>, vector<24x128xf32> -> vector<24x128xf32>
    %46 = arith.addf %41, %45 : vector<24x128xf32>
    %47 = vector.extract_strided_slice %36 {offsets = [16, 0], sizes = [24, 128], strides = [1, 1]} : vector<40x128xbf16> to vector<24x128xbf16>
    %c7 = arith.constant 7 : index
    %c0_28 = arith.constant 0 : index
    %c0_29 = arith.constant 0 : index
    %48 = vector.load %arg7[%c7, %c0_28, %c0_29] : memref<9x128x128xbf16, #tpu.memory_space<vmem>>, vector<1x128x128xbf16>
    %49 = vector.shape_cast %48 : vector<1x128x128xbf16> to vector<128x128xbf16>
    %cst_30 = arith.constant dense<0.000000e+00> : vector<24x128xf32>
    %50 = tpu.matmul %47, %49, %cst_30 {dimension_numbers = #tpu.dot_dimension_numbers<[1], [0], [0], [1], [0, 0, 1, 1], [], []>} : vector<24x128xbf16>, vector<128x128xbf16>, vector<24x128xf32> -> vector<24x128xf32>
    %51 = arith.addf %46, %50 : vector<24x128xf32>
    %52 = vector.extract_strided_slice %18 {offsets = [2, 0], sizes = [40, 128], strides = [1, 1]} : vector<48x128xbf16> to vector<40x128xbf16>
    %53 = vector.extract_strided_slice %52 {offsets = [0, 0], sizes = [24, 128], strides = [1, 1]} : vector<40x128xbf16> to vector<24x128xbf16>
    %c2 = arith.constant 2 : index
    %c0_31 = arith.constant 0 : index
    %c0_32 = arith.constant 0 : index
    %54 = vector.load %arg7[%c2, %c0_31, %c0_32] : memref<9x128x128xbf16, #tpu.memory_space<vmem>>, vector<1x128x128xbf16>
    %55 = vector.shape_cast %54 : vector<1x128x128xbf16> to vector<128x128xbf16>
    %cst_33 = arith.constant dense<0.000000e+00> : vector<24x128xf32>
    %56 = tpu.matmul %53, %55, %cst_33 {dimension_numbers = #tpu.dot_dimension_numbers<[1], [0], [0], [1], [0, 0, 1, 1], [], []>} : vector<24x128xbf16>, vector<128x128xbf16>, vector<24x128xf32> -> vector<24x128xf32>
    %57 = arith.addf %51, %56 : vector<24x128xf32>
    %58 = vector.extract_strided_slice %52 {offsets = [8, 0], sizes = [24, 128], strides = [1, 1]} : vector<40x128xbf16> to vector<24x128xbf16>
    %c5 = arith.constant 5 : index
    %c0_34 = arith.constant 0 : index
    %c0_35 = arith.constant 0 : index
    %59 = vector.load %arg7[%c5, %c0_34, %c0_35] : memref<9x128x128xbf16, #tpu.memory_space<vmem>>, vector<1x128x128xbf16>
    %60 = vector.shape_cast %59 : vector<1x128x128xbf16> to vector<128x128xbf16>
    %cst_36 = arith.constant dense<0.000000e+00> : vector<24x128xf32>
    %61 = tpu.matmul %58, %60, %cst_36 {dimension_numbers = #tpu.dot_dimension_numbers<[1], [0], [0], [1], [0, 0, 1, 1], [], []>} : vector<24x128xbf16>, vector<128x128xbf16>, vector<24x128xf32> -> vector<24x128xf32>
    %62 = arith.addf %57, %61 : vector<24x128xf32>
    %63 = vector.extract_strided_slice %52 {offsets = [16, 0], sizes = [24, 128], strides = [1, 1]} : vector<40x128xbf16> to vector<24x128xbf16>
    %c8 = arith.constant 8 : index
    %c0_37 = arith.constant 0 : index
    %c0_38 = arith.constant 0 : index
    %64 = vector.load %arg7[%c8, %c0_37, %c0_38] : memref<9x128x128xbf16, #tpu.memory_space<vmem>>, vector<1x128x128xbf16>
    %65 = vector.shape_cast %64 : vector<1x128x128xbf16> to vector<128x128xbf16>
    %cst_39 = arith.constant dense<0.000000e+00> : vector<24x128xf32>
    %66 = tpu.matmul %63, %65, %cst_39 {dimension_numbers = #tpu.dot_dimension_numbers<[1], [0], [0], [1], [0, 0, 1, 1], [], []>} : vector<24x128xbf16>, vector<128x128xbf16>, vector<24x128xf32> -> vector<24x128xf32>
    %67 = arith.addf %62, %66 : vector<24x128xf32>
    %68 = arith.truncf %67 : vector<24x128xf32> to vector<24x128xbf16>
    %c0_40 = arith.constant 0 : index
    %c0_41 = arith.constant 0 : index
    %69 = vector.load %arg8[%c0_40, %c0_41] : memref<24x128xbf16, #tpu.memory_space<vmem>>, vector<24x128xbf16>
    tpu.vector_store %arg8[%c0_40, %c0_41], %68 {strides = array<i32>} : memref<24x128xbf16, #tpu.memory_space<vmem>>, vector<24x128xbf16>,
    %c0_42 = arith.constant 0 : index
    %c1_43 = arith.constant 1 : index
    %70 = vector.load %arg3[%c0_42, %c1_43] : memref<24x2xf32, #tpu.memory_space<vmem>>, vector<24x1xf32>
    %71 = vector.broadcast %70 : vector<24x1xf32> to vector<24x128xf32>
    %72 = arith.mulf %67, %71 : vector<24x128xf32>
    %cst_44 = arith.constant dense<0.000000e+00> : vector<128xf32>
    %73 = vector.multi_reduction <add>, %72, %cst_44 [0] : vector<24x128xf32> to vector<128xf32>
    %74 = vector.shape_cast %73 : vector<128xf32> to vector<1x128xf32>
    %75 = arith.mulf %72, %67 : vector<24x128xf32>
    %cst_45 = arith.constant dense<0.000000e+00> : vector<128xf32>
    %76 = vector.multi_reduction <add>, %75, %cst_45 [0] : vector<24x128xf32> to vector<128xf32>
    %77 = vector.shape_cast %76 : vector<128xf32> to vector<1x128xf32>
    %78 = tpu.concatenate %74, %77 in 1 : vector<1x128xf32>, vector<1x128xf32> -> vector<1x256xf32>
    %79 = vector.shape_cast %78 : vector<1x256xf32> to vector<1x1x256xf32>
    %80 = vector.shape_cast %79 : vector<1x1x256xf32> to vector<1x1x256xf32>
    %81 = vector.broadcast %80 : vector<1x1x256xf32> to vector<1x8x256xf32>
    %c0_46 = arith.constant 0 : index
    %c0_47 = arith.constant 0 : index
    %c0_48 = arith.constant 0 : index
    %82 = vector.load %arg9[%c0_46, %c0_47, %c0_48] : memref<1x8x256xf32, #tpu.memory_space<vmem>>, vector<1x8x256xf32>
    tpu.vector_store %arg9[%c0_46, %c0_47, %c0_48], %81 {strides = array<i32>} : memref<1x8x256xf32, #tpu.memory_space<vmem>>, vector<1x8x256xf32>,
    return
  }
  func.func @transform_0(%arg0: i32) -> (i32, i32) {
    %c0_i32 = arith.constant 0 : i32
    %c0_i32_0 = arith.constant 0 : i32
    return %arg0, %c0_i32 : i32, i32
  }
  func.func @transform_1(%arg0: i32) -> (i32, i32) {
    %c1_i32 = arith.constant 1 : i32
    %0 = arith.addi %arg0, %c1_i32 : i32
    %c1_i32_0 = arith.constant 1 : i32
    %1 = arith.muli %0, %c1_i32_0 : i32
    %c0_i32 = arith.constant 0 : i32
    %c0_i32_1 = arith.constant 0 : i32
    return %1, %c0_i32 : i32, i32
  }
  func.func @transform_2(%arg0: i32) -> (i32, i32) {
    %c0_i32 = arith.constant 0 : i32
    %c0_i32_0 = arith.constant 0 : i32
    return %arg0, %c0_i32 : i32, i32
  }
  func.func @transform_3(%arg0: i32) -> (i32, i32) {
    %c1_i32 = arith.constant 1 : i32
    %0 = arith.addi %arg0, %c1_i32 : i32
    %c1_i32_0 = arith.constant 1 : i32
    %1 = arith.muli %0, %c1_i32_0 : i32
    %c0_i32 = arith.constant 0 : i32
    %c0_i32_1 = arith.constant 0 : i32
    return %1, %c0_i32 : i32, i32
  }
  func.func @transform_4(%arg0: i32) -> (i32, i32) {
    %c0_i32 = arith.constant 0 : i32
    %c0_i32_0 = arith.constant 0 : i32
    %c0_i32_1 = arith.constant 0 : i32
    return %c0_i32, %c0_i32_0 : i32, i32
  }
  func.func @transform_5(%arg0: i32) -> (i32, i32) {
    %c0_i32 = arith.constant 0 : i32
    %c0_i32_0 = arith.constant 0 : i32
    %c0_i32_1 = arith.constant 0 : i32
    return %c0_i32, %c0_i32_0 : i32, i32
  }
  func.func @transform_6(%arg0: i32) -> (i32, i32, i32) {
    %c0_i32 = arith.constant 0 : i32
    %c0_i32_0 = arith.constant 0 : i32
    %c0_i32_1 = arith.constant 0 : i32
    %c0_i32_2 = arith.constant 0 : i32
    return %c0_i32, %c0_i32_0, %c0_i32_1 : i32, i32, i32
  }
  func.func @transform_7(%arg0: i32) -> (i32, i32) {
    %c0_i32 = arith.constant 0 : i32
    %c0_i32_0 = arith.constant 0 : i32
    return %arg0, %c0_i32 : i32, i32
  }
  func.func @transform_8(%arg0: i32) -> (i32, i32, i32) {
    %c0_i32 = arith.constant 0 : i32
    %c0_i32_0 = arith.constant 0 : i32
    %c0_i32_1 = arith.constant 0 : i32
    return %arg0, %c0_i32, %c0_i32_0 : i32, i32, i32
  }
}

</mosaic_0001>

<bundles_post_ra>
// kernel: _lambda_.19
= control target key start
LH: loop header
LB: loop body
LE: loop exit
PB: predicated region body
PF: predicated region fallthrough
CT: control target
= control target key end

     0   :  { %s851_s12 = smov 0   ;;  %s985_s0 = inlined_call_operand.vmem [shape: bf16[512,128], index: 0, kind: input, shape index: {}]   ;;  %s986_s1 = inlined_call_operand.vmem [shape: f32[1,128], index: 1, kind: input, shape index: {}]   ;;  %s987_s2 = inlined_call_operand.vmem [shape: f32[1,128], index: 2, kind: input, shape index: {}]   ;;  %s988_s3 = inlined_call_operand.vmem [shape: bf16[512,128], index: 3, kind: output, shape index: {}]  }
   0x1 LB: > { %s564_s13 = sadd.s32 4294967295, %s829_s12   ;;  %p568_p0 = scmp.ge.s32.totalorder %s829_s12, 1  ;;  %s829_s12 = sphi %s851_s12, %s13_s12  }
   0x2   : > { %p138_p1 = scmp.lt.s32.totalorder %s829_s12, 3 }
   0x4   : > { %p139_p2 = pnand %p568_p0, %p138_p1 }
   0x5   : > { %s569_s14 = sshll.u32 (!%p139_p2), %s564_s13, 5  ;;  %v872_v0 = vld [vmem:[%s986_s1] ss:$0 sm:$0xff] (!%p139_p2) }
   0x6   : > { %142 = sbr.rel (%p139_p2) target bundleno = 59 (0x3b), region = 32  ;;  %p163_p3 = scmp.lt.s32.totalorder (!%p139_p2), %s569_s14, 63  ;;  %v881_v9 = vld [vmem:[%s987_s2] ss:$0 sm:$0xff] (!%p139_p2) }
   0xd   : > { %s990_s14 = smov (!%p163_p3, %s569_s14), 63 }
   0xe   : > { %s570_s15 = sshll.u32 %s990_s14, 2 }
   0xf   : > { %s867_s18 = scalar_lea.vmem %s985_s0, %s570_s15  ;;  %s906_s25 = scalar_lea.vmem %s988_s3, %s570_s15 }
  0x10   : > { %v642_v1 = vld [vmem:[%s867_s18] sm:$0xff]   ;;  %v785_v2 = vld [vmem:[%s867_s18 + $0x8] sm:$0xff]   ;;  %v786_v3 = vld [vmem:[%s867_s18 + $0x10] sm:$0xff]  }
  0x11   : > { %v643_v4 = vunpack.c.l.bf16 %v642_v1  ;;  %v644_v5 = vunpack.c.h.bf16 %v642_v1  ;;  %v647_v6 = vunpack.c.l.bf16 %v785_v2  ;;  %v648_v7 = vunpack.c.h.bf16 %v785_v2  ;;  %v787_v8 = vld [vmem:[%s867_s18 + $0x18] sm:$0xff]   ;;  %v788_v30 = vld [vmem:[%s867_s18 + $0x20] sm:$0xff]   ;;  %v789_v35 = vld [vmem:[%s867_s18 + $0x28] sm:$0xff]  }
  0x12   : > { %v651_v10 = vunpack.c.l.bf16 %v786_v3  ;;  %v652_v11 = vunpack.c.h.bf16 %v786_v3  ;;  %v655_v12 = vunpack.c.l.bf16 %v787_v8  ;;  %v656_v13 = vunpack.c.h.bf16 %v787_v8  ;;  %v790_v40 = vld [vmem:[%s867_s18 + $0x30] sm:$0xff]   ;;  %v791_v45 = vld [vmem:[%s867_s18 + $0x38] sm:$0xff]   ;;  %v792_v3 = vld [vmem:[%s867_s18 + $0x40] sm:$0xff]  }
  0x13   : > { %v245_v14 = vmul.f32 %v643_v4, %v872_v0  ;;  %v246_v15 = vmul.f32 %v644_v5, %v872_v0  ;;  %v247_v16 = vmul.f32 %v647_v6, %v872_v0  ;;  %v248_v17 = vmul.f32 %v648_v7, %v872_v0 }
  0x14   : > { %v249_v18 = vmul.f32 %v651_v10, %v872_v0  ;;  %v250_v19 = vmul.f32 %v652_v11, %v872_v0  ;;  %v251_v20 = vmul.f32 %v655_v12, %v872_v0  ;;  %v252_v21 = vmul.f32 %v656_v13, %v872_v0  ;;  %v793_v13 = vld [vmem:[%s867_s18 + $0x48] sm:$0xff]  }
  0x15   : > { %v284_v22 = vadd.f32 %v881_v9, %v245_v14  ;;  %v285_v23 = vadd.f32 %v881_v9, %v246_v15  ;;  %v286_v24 = vadd.f32 %v881_v9, %v247_v16  ;;  %v287_v25 = vadd.f32 %v881_v9, %v248_v17 }
  0x16   : > { %v288_v26 = vadd.f32 %v881_v9, %v249_v18  ;;  %v289_v27 = vadd.f32 %v881_v9, %v250_v19  ;;  %v290_v28 = vadd.f32 %v881_v9, %v251_v20  ;;  %v291_v29 = vadd.f32 %v881_v9, %v252_v21  ;;  %v794_v18 = vld [vmem:[%s867_s18 + $0x50] sm:$0xff]  }
  0x17   : > { %v316_v31 = vmax.f32 %v284_v22, 0.0  ;;  %v317_v32 = vmax.f32 %v285_v23, 0.0  ;;  %v318_v33 = vmax.f32 %v286_v24, 0.0  ;;  %v319_v34 = vmax.f32 %v287_v25, 0.0  ;;  %v795_v23 = vld [vmem:[%s867_s18 + $0x58] sm:$0xff]  }
  0x18   : > { %v320_v36 = vmax.f32 %v288_v26, 0.0  ;;  %v321_v37 = vmax.f32 %v289_v27, 0.0  ;;  %v322_v38 = vmax.f32 %v290_v28, 0.0  ;;  %v323_v39 = vmax.f32 %v291_v29, 0.0 }
  0x19   : > { %v708_v41 = vpack.c.bf16 %v317_v32, %v316_v31  ;;  %v713_v42 = vpack.c.bf16 %v319_v34, %v318_v33  ;;  %v659_v43 = vunpack.c.l.bf16 %v788_v30  ;;  %v660_v44 = vunpack.c.h.bf16 %v788_v30 }
  0x1a   : > { %v718_v46 = vpack.c.bf16 %v321_v37, %v320_v36  ;;  %v723_v47 = vpack.c.bf16 %v323_v39, %v322_v38  ;;  %v663_v48 = vunpack.c.l.bf16 %v789_v35  ;;  %v664_v49 = vunpack.c.h.bf16 %v789_v35 }
  0x1b   : > { %709 = vst [vmem:[%s906_s25] sm:$0xff] %v708_v41   ;;  %800 = vst [vmem:[%s906_s25 + $0x8] sm:$0xff] %v713_v42   ;;  %v253_v50 = vmul.f32 %v659_v43, %v872_v0  ;;  %v254_v51 = vmul.f32 %v660_v44, %v872_v0  ;;  %v667_v52 = vunpack.c.l.bf16 %v790_v40  ;;  %v668_v53 = vunpack.c.h.bf16 %v790_v40  ;;  %v796_v40 = vld [vmem:[%s867_s18 + $0x60] sm:$0xff]  }
  0x1c   : > { %801 = vst [vmem:[%s906_s25 + $0x10] sm:$0xff] %v718_v46   ;;  %802 = vst [vmem:[%s906_s25 + $0x18] sm:$0xff] %v723_v47   ;;  %v255_v54 = vmul.f32 %v663_v48, %v872_v0  ;;  %v256_v55 = vmul.f32 %v664_v49, %v872_v0  ;;  %v671_v56 = vunpack.c.l.bf16 %v791_v45  ;;  %v672_v57 = vunpack.c.h.bf16 %v791_v45 }
  0x1d   : > { %v292_v58 = vadd.f32 %v881_v9, %v253_v50  ;;  %v293_v59 = vadd.f32 %v881_v9, %v254_v51  ;;  %v257_v60 = vmul.f32 %v667_v52, %v872_v0  ;;  %v258_v61 = vmul.f32 %v668_v53, %v872_v0  ;;  %v797_v53 = vld [vmem:[%s867_s18 + $0x68] sm:$0xff]  }
  0x1e   : > { %v294_v62 = vadd.f32 %v881_v9, %v255_v54  ;;  %v295_v63 = vadd.f32 %v881_v9, %v256_v55  ;;  %v259_v1 = vmul.f32 %v671_v56, %v872_v0  ;;  %v260_v2 = vmul.f32 %v672_v57, %v872_v0 }
  0x1f   : > { %v324_v4 = vmax.f32 %v292_v58, 0.0  ;;  %v325_v5 = vmax.f32 %v293_v59, 0.0  ;;  %v296_v6 = vadd.f32 %v881_v9, %v257_v60  ;;  %v297_v7 = vadd.f32 %v881_v9, %v258_v61  ;;  %v798_v58 = vld [vmem:[%s867_s18 + $0x70] sm:$0xff]  }
  0x20   : > { %v326_v8 = vmax.f32 %v294_v62, 0.0  ;;  %v327_v10 = vmax.f32 %v295_v63, 0.0  ;;  %v298_v11 = vadd.f32 %v881_v9, %v259_v1  ;;  %v299_v12 = vadd.f32 %v881_v9, %v260_v2  ;;  %v799_v63 = vld [vmem:[%s867_s18 + $0x78] sm:$0xff]  }
  0x21   : > { %v728_v14 = vpack.c.bf16 %v325_v5, %v324_v4  ;;  %v328_v15 = vmax.f32 %v296_v6, 0.0  ;;  %v329_v16 = vmax.f32 %v297_v7, 0.0  ;;  %v675_v17 = vunpack.c.l.bf16 %v792_v3 }
  0x22   : > { %v733_v19 = vpack.c.bf16 %v327_v10, %v326_v8  ;;  %v330_v20 = vmax.f32 %v298_v11, 0.0  ;;  %v331_v21 = vmax.f32 %v299_v12, 0.0  ;;  %v676_v22 = vunpack.c.h.bf16 %v792_v3 }
  0x23   : > { %803 = vst [vmem:[%s906_s25 + $0x20] sm:$0xff] %v728_v14   ;;  %v738_v24 = vpack.c.bf16 %v329_v16, %v328_v15  ;;  %v261_v25 = vmul.f32 %v675_v17, %v872_v0  ;;  %v679_v26 = vunpack.c.l.bf16 %v793_v13  ;;  %v680_v27 = vunpack.c.h.bf16 %v793_v13 }
  0x24   : > { %804 = vst [vmem:[%s906_s25 + $0x28] sm:$0xff] %v733_v19   ;;  %v743_v28 = vpack.c.bf16 %v331_v21, %v330_v20  ;;  %v262_v29 = vmul.f32 %v676_v22, %v872_v0  ;;  %v683_v30 = vunpack.c.l.bf16 %v794_v18  ;;  %v684_v31 = vunpack.c.h.bf16 %v794_v18 }
  0x25   : > { %805 = vst [vmem:[%s906_s25 + $0x30] sm:$0xff] %v738_v24   ;;  %v300_v32 = vadd.f32 %v881_v9, %v261_v25  ;;  %v263_v33 = vmul.f32 %v679_v26, %v872_v0  ;;  %v264_v34 = vmul.f32 %v680_v27, %v872_v0  ;;  %v687_v35 = vunpack.c.l.bf16 %v795_v23 }
  0x26   : > { %806 = vst [vmem:[%s906_s25 + $0x38] sm:$0xff] %v743_v28   ;;  %v301_v36 = vadd.f32 %v881_v9, %v262_v29  ;;  %v265_v37 = vmul.f32 %v683_v30, %v872_v0  ;;  %v266_v38 = vmul.f32 %v684_v31, %v872_v0  ;;  %v688_v39 = vunpack.c.h.bf16 %v795_v23 }
  0x27   : > { %v332_v41 = vmax.f32 %v300_v32, 0.0  ;;  %v302_v42 = vadd.f32 %v881_v9, %v263_v33  ;;  %v303_v43 = vadd.f32 %v881_v9, %v264_v34  ;;  %v267_v44 = vmul.f32 %v687_v35, %v872_v0 }
  0x28   : > { %v333_v45 = vmax.f32 %v301_v36, 0.0  ;;  %v304_v46 = vadd.f32 %v881_v9, %v265_v37  ;;  %v305_v47 = vadd.f32 %v881_v9, %v266_v38  ;;  %v268_v48 = vmul.f32 %v688_v39, %v872_v0 }
  0x29   : > { %v334_v49 = vmax.f32 %v302_v42, 0.0  ;;  %v335_v50 = vmax.f32 %v303_v43, 0.0  ;;  %v306_v51 = vadd.f32 %v881_v9, %v267_v44  ;;  %v691_v52 = vunpack.c.l.bf16 %v796_v40 }
  0x2a   : > { %v748_v54 = vpack.c.bf16 %v333_v45, %v332_v41  ;;  %v336_v55 = vmax.f32 %v304_v46, 0.0  ;;  %v337_v56 = vmax.f32 %v305_v47, 0.0  ;;  %v307_v57 = vadd.f32 %v881_v9, %v268_v48 }
  0x2b   : > { %v753_v59 = vpack.c.bf16 %v335_v50, %v334_v49  ;;  %v338_v60 = vmax.f32 %v306_v51, 0.0  ;;  %v692_v61 = vunpack.c.h.bf16 %v796_v40  ;;  %v269_v62 = vmul.f32 %v691_v52, %v872_v0 }
  0x2c   : > { %807 = vst [vmem:[%s906_s25 + $0x40] sm:$0xff] %v748_v54   ;;  %v758_v1 = vpack.c.bf16 %v337_v56, %v336_v55  ;;  %v339_v2 = vmax.f32 %v307_v57, 0.0  ;;  %v695_v3 = vunpack.c.l.bf16 %v797_v53  ;;  %v696_v4 = vunpack.c.h.bf16 %v797_v53 }
  0x2d   : > { %808 = vst [vmem:[%s906_s25 + $0x48] sm:$0xff] %v753_v59   ;;  %v270_v5 = vmul.f32 %v692_v61, %v872_v0  ;;  %v308_v6 = vadd.f32 %v881_v9, %v269_v62  ;;  %v699_v7 = vunpack.c.l.bf16 %v798_v58  ;;  %v700_v8 = vunpack.c.h.bf16 %v798_v58 }
  0x2e   : > { %809 = vst [vmem:[%s906_s25 + $0x50] sm:$0xff] %v758_v1   ;;  %v763_v10 = vpack.c.bf16 %v339_v2, %v338_v60  ;;  %v271_v11 = vmul.f32 %v695_v3, %v872_v0  ;;  %v272_v12 = vmul.f32 %v696_v4, %v872_v0  ;;  %v703_v13 = vunpack.c.l.bf16 %v799_v63 }
  0x2f   : > { %v309_v14 = vadd.f32 %v881_v9, %v270_v5  ;;  %v340_v15 = vmax.f32 %v308_v6, 0.0  ;;  %v273_v16 = vmul.f32 %v699_v7, %v872_v0  ;;  %v274_v17 = vmul.f32 %v700_v8, %v872_v0 }
  0x30   : > { %810 = vst [vmem:[%s906_s25 + $0x58] sm:$0xff] %v763_v10   ;;  %v310_v18 = vadd.f32 %v881_v9, %v271_v11  ;;  %v311_v19 = vadd.f32 %v881_v9, %v272_v12  ;;  %v704_v20 = vunpack.c.h.bf16 %v799_v63  ;;  %v275_v21 = vmul.f32 %v703_v13, %v872_v0 }
  0x31   : > { %v341_v22 = vmax.f32 %v309_v14, 0.0  ;;  %v312_v23 = vadd.f32 %v881_v9, %v273_v16  ;;  %v313_v24 = vadd.f32 %v881_v9, %v274_v17 }
  0x32   : > { %v342_v25 = vmax.f32 %v310_v18, 0.0  ;;  %v343_v26 = vmax.f32 %v311_v19, 0.0  ;;  %v276_v27 = vmul.f32 %v704_v20, %v872_v0  ;;  %v314_v28 = vadd.f32 %v881_v9, %v275_v21 }
  0x33   : > { %v768_v29 = vpack.c.bf16 %v341_v22, %v340_v15  ;;  %v344_v30 = vmax.f32 %v312_v23, 0.0  ;;  %v345_v31 = vmax.f32 %v313_v24, 0.0 }
  0x34   : > { %v773_v32 = vpack.c.bf16 %v343_v26, %v342_v25  ;;  %v315_v33 = vadd.f32 %v881_v9, %v276_v27  ;;  %v346_v34 = vmax.f32 %v314_v28, 0.0 }
  0x35   : > { %811 = vst [vmem:[%s906_s25 + $0x60] sm:$0xff] %v768_v29   ;;  %v778_v35 = vpack.c.bf16 %v345_v31, %v344_v30 }
  0x36   : > { %812 = vst [vmem:[%s906_s25 + $0x68] sm:$0xff] %v773_v32   ;;  %v347_v36 = vmax.f32 %v315_v33, 0.0 }
  0x37   : > { %813 = vst [vmem:[%s906_s25 + $0x70] sm:$0xff] %v778_v35  }
  0x38   : > { %v783_v37 = vpack.c.bf16 %v347_v36, %v346_v34 }
  0x3a   : > { %814 = vst [vmem:[%s906_s25 + $0x78] sm:$0xff] %v783_v37  }
  0x3b PF: > { %s13_s12 = sadd.s32 1, %s829_s12  }
  0x3c   : > { %p10_p4 = scmp.ge.s32.totalorder %s13_s12, 4  }
  0x3e   :  { %12 = sbr.rel (!%p10_p4) target bundleno = 1 (0x1), region = 62 }

// kernel: _lambda_.18
= control target key start
LH: loop header
LB: loop body
LE: loop exit
PB: predicated region body
PF: predicated region fallthrough
CT: control target
= control target key end

     0   :  { %s1488_s12 = smov 0   ;;  %s1701_s0 = inlined_call_operand.vmem [shape: bf16[512,256], index: 0, kind: input, shape index: {}]   ;;  %s1702_s1 = inlined_call_operand.vmem [shape: bf16[256,128], index: 1, kind: input, shape index: {}]   ;;  %s1703_s2 = inlined_call_operand.vmem [shape: bf16[512,128], index: 2, kind: output, shape index: {0}]   ;;  %s1704_s3 = inlined_call_operand.vmem [shape: f32[2,8,256], index: 3, kind: output, shape index: {1}]  }
   0x1 LB: > { %s1494_s13 = sadd.s32 4294967295, %s1466_s12   ;;  %p1041_p0 = scmp.ge.s32.totalorder %s1466_s12, 1  ;;  %s1466_s12 = sphi %s1488_s12, %s14_s12  }
   0x2   : > { %p142_p1 = scmp.lt.s32.totalorder %s1466_s12, 3 }
   0x4   : > { %p143_p2 = pnand %p1041_p0, %p142_p1 }
   0x5   : > { %v1396_v0 = vld [vmem:[%s1702_s1 + $0x40] sm:$0xff] (!%p143_p2)   ;;  %s1042_s16 = sshll.u32 (!%p143_p2), %s1494_s13, 5  ;;  %v1398_v2 = vld [vmem:[%s1702_s1 + $0x48] sm:$0xff] (!%p143_p2)   ;;  %v1400_v4 = vld [vmem:[%s1702_s1 + $0x50] sm:$0xff] (!%p143_p2)   ;;  %p185_p4 = scmp.lt.s32.totalorder (!%p143_p2), %s1494_s13, 1 }
   0x6   : > { %146 = sbr.rel (%p143_p2) target bundleno = 362 (0x16a), region = 28  ;;  %v1397_v1 = vld [vmem:[%s1702_s1] sm:$0xff] (!%p143_p2)   ;;  %1260 = vmatprep.subr.bf16.mxu0 (!%p143_p2), %v1396_v0  ;;  %1372 = vmatprep.subr.bf16.mxu1 (!%p143_p2), %v1396_v0  ;;  %v1399_v3 = vld [vmem:[%s1702_s1 + $0x8] sm:$0xff] (!%p143_p2)   ;;  %p173_p3 = scmp.lt.s32.totalorder (!%p143_p2), %s1042_s16, 63  ;;  %v1401_v5 = vld [vmem:[%s1702_s1 + $0x10] sm:$0xff] (!%p143_p2)  }
   0x7   : > { %1261 = vmatpush3.bf16.msra.mxu0 (!%p143_p2), %v1397_v1  ;;  %1380 = vmatpush3.bf16.msra.mxu1 (!%p143_p2), %v1397_v1  ;;  %v1402_v6 = vld [vmem:[%s1702_s1 + $0x58] sm:$0xff] (!%p143_p2)   ;;  %v1404_v8 = vld [vmem:[%s1702_s1 + $0x60] sm:$0xff] (!%p143_p2)   ;;  %v1406_v10 = vld [vmem:[%s1702_s1 + $0x68] sm:$0xff] (!%p143_p2)  }
   0x8   : > { %1262 = vmatprep.subr.bf16.mxu0 (!%p143_p2), %v1398_v2  ;;  %1373 = vmatprep.subr.bf16.mxu1 (!%p143_p2), %v1398_v2  ;;  %v1403_v7 = vld [vmem:[%s1702_s1 + $0x18] sm:$0xff] (!%p143_p2)   ;;  %v1405_v9 = vld [vmem:[%s1702_s1 + $0x20] sm:$0xff] (!%p143_p2)   ;;  %v1407_v12 = vld [vmem:[%s1702_s1 + $0x28] sm:$0xff] (!%p143_p2)  }
   0x9   : > { %v1408_v13 = vld [vmem:[%s1702_s1 + $0x70] sm:$0xff] (!%p143_p2)   ;;  %v1410_v16 = vld [vmem:[%s1702_s1 + $0x78] sm:$0xff] (!%p143_p2)  }
   0xa   : > { %v1409_v15 = vld [vmem:[%s1702_s1 + $0x30] sm:$0xff] (!%p143_p2)   ;;  %v1411_v17 = vld [vmem:[%s1702_s1 + $0x38] sm:$0xff] (!%p143_p2)  }
   0xb   : > { %1263 = vmatpush3.bf16.msra.mxu0 (!%p143_p2), %v1399_v3  ;;  %1381 = vmatpush3.bf16.msra.mxu1 (!%p143_p2), %v1399_v3 }
   0xc   : > { %1264 = vmatprep.subr.bf16.mxu0 (!%p143_p2), %v1400_v4  ;;  %1374 = vmatprep.subr.bf16.mxu1 (!%p143_p2), %v1400_v4 }
   0xd   : > { %s1706_s16 = smov (!%p173_p3, %s1042_s16), 63  ;;  %s1708_s13 = smov (!%p185_p4, %s1494_s13), 1 }
   0xe   : > { %s1131_s4 = sshll.u32 %s1706_s16, 3  ;;  %s1046_s27 = sshll.u32 %s1706_s16, 2 }
   0xf   : > { %1265 = vmatpush3.bf16.msra.mxu0 %v1401_v5  ;;  %1382 = vmatpush3.bf16.msra.mxu1 %v1401_v5  ;;  %s1532_s9 = scalar_lea.vmem %s1701_s0, %s1131_s4  ;;  %s1593_s30 = scalar_lea.vmem %s1703_s2, %s1046_s27 }
  0x10   : > { %1266 = vmatprep.subr.bf16.mxu0 %v1402_v6  ;;  %1375 = vmatprep.subr.bf16.mxu1 %v1402_v6  ;;  %v1414_v11 = vld [vmem:[%s1532_s9 + $0x4] ss:$8 sps:$4 sm:$0xff]   ;;  %v1412_v18 = vld [vmem:[%s1532_s9] ss:$8 sps:$4 sm:$0xff]   ;;  %v1415_v19 = vld [vmem:[%s1532_s9 + $0x14] ss:$8 sps:$4 sm:$0xff]  }
  0x11   : > { %543 = vmatprep.mubr.bf16.mxu0 %v1414_v11  ;;  %v1426_v14 = vld [vmem:[%s1532_s9 + $0x84] ss:$8 sps:$4 sm:$0xff]   ;;  %v1424_v20 = vld [vmem:[%s1532_s9 + $0x80] ss:$8 sps:$4 sm:$0xff]   ;;  %v1430_v21 = vld [vmem:[%s1532_s9 + $0x94] ss:$8 sps:$4 sm:$0xff]  }
  0x12   : > { %607 = vmatprep.mubr.bf16.mxu1 %v1426_v14  ;;  %v1417_v22 = vld [vmem:[%s1532_s9 + $0x10] ss:$8 sps:$4 sm:$0xff]   ;;  %v1418_v23 = vld [vmem:[%s1532_s9 + $0x24] ss:$8 sps:$4 sm:$0xff]   ;;  %v1420_v26 = vld [vmem:[%s1532_s9 + $0x20] ss:$8 sps:$4 sm:$0xff]  }
  0x13   : > { %1267 = vmatpush3.bf16.msra.mxu0 %v1403_v7  ;;  %1383 = vmatpush3.bf16.msra.mxu1 %v1403_v7  ;;  %v1432_v24 = vld [vmem:[%s1532_s9 + $0x90] ss:$8 sps:$4 sm:$0xff]   ;;  %v1436_v25 = vld [vmem:[%s1532_s9 + $0xa4] ss:$8 sps:$4 sm:$0xff]   ;;  %v1421_v27 = vld [vmem:[%s1532_s9 + $0x34] ss:$8 sps:$4 sm:$0xff]  }
  0x14   : > { %1268 = vmatprep.subr.bf16.mxu0 %v1404_v8  ;;  %1376 = vmatprep.subr.bf16.mxu1 %v1404_v8  ;;  %v1438_v28 = vld [vmem:[%s1532_s9 + $0xa0] ss:$8 sps:$4 sm:$0xff]   ;;  %v1442_v29 = vld [vmem:[%s1532_s9 + $0xb4] ss:$8 sps:$4 sm:$0xff]   ;;  %v1423_v30 = vld [vmem:[%s1532_s9 + $0x30] ss:$8 sps:$4 sm:$0xff]  }
  0x15   : > { %v1427_v31 = vld [vmem:[%s1532_s9 + $0x44] ss:$8 sps:$4 sm:$0xff]   ;;  %v1444_v32 = vld [vmem:[%s1532_s9 + $0xb0] ss:$8 sps:$4 sm:$0xff]   ;;  %v1429_v34 = vld [vmem:[%s1532_s9 + $0x40] ss:$8 sps:$4 sm:$0xff]  }
  0x16   : > { %v1448_v33 = vld [vmem:[%s1532_s9 + $0xc4] ss:$8 sps:$4 sm:$0xff]   ;;  %v1433_v35 = vld [vmem:[%s1532_s9 + $0x54] ss:$8 sps:$4 sm:$0xff]   ;;  %v1450_v36 = vld [vmem:[%s1532_s9 + $0xc0] ss:$8 sps:$4 sm:$0xff]  }
  0x17   : > { %1269 = vmatpush3.bf16.msra.mxu0 %v1405_v9  ;;  %1384 = vmatpush3.bf16.msra.mxu1 %v1405_v9  ;;  %v1451_v37 = vld [vmem:[%s1532_s9 + $0xd4] ss:$8 sps:$4 sm:$0xff]   ;;  %v1435_v38 = vld [vmem:[%s1532_s9 + $0x50] ss:$8 sps:$4 sm:$0xff]   ;;  %v1439_v39 = vld [vmem:[%s1532_s9 + $0x64] ss:$8 sps:$4 sm:$0xff]  }
  0x18   : > { %1270 = vmatprep.subr.bf16.mxu0 %v1406_v10  ;;  %1377 = vmatprep.subr.bf16.mxu1 %v1406_v10  ;;  %v1453_v40 = vld [vmem:[%s1532_s9 + $0xd0] ss:$8 sps:$4 sm:$0xff]   ;;  %v1454_v41 = vld [vmem:[%s1532_s9 + $0xe4] ss:$8 sps:$4 sm:$0xff]   ;;  %v1441_v42 = vld [vmem:[%s1532_s9 + $0x60] ss:$8 sps:$4 sm:$0xff]  }
  0x19   : > { %v1445_v43 = vld [vmem:[%s1532_s9 + $0x74] ss:$8 sps:$4 sm:$0xff]   ;;  %v1456_v44 = vld [vmem:[%s1532_s9 + $0xe0] ss:$8 sps:$4 sm:$0xff]   ;;  %v1447_v46 = vld [vmem:[%s1532_s9 + $0x70] ss:$8 sps:$4 sm:$0xff]  }
  0x1a   : > { %v1457_v45 = vld [vmem:[%s1532_s9 + $0xf4] ss:$8 sps:$4 sm:$0xff]   ;;  %v1459_v47 = vld [vmem:[%s1532_s9 + $0xf0] ss:$8 sps:$4 sm:$0xff]   ;;  %s1132_s16 = sshll.u32 %s1708_s13, 4 }
  0x1b   : > { %1271 = vmatpush3.bf16.msra.mxu0 %v1407_v12  ;;  %1385 = vmatpush3.bf16.msra.mxu1 %v1407_v12  ;;  %s189_s6 = scalar_lea.vmem %s1704_s3, %s1132_s16 }
  0x1c   : > { %1272 = vmatprep.subr.bf16.mxu0 %v1408_v13  ;;  %1378 = vmatprep.subr.bf16.mxu1 %v1408_v13 }
  0x1f   : > { %1273 = vmatpush3.bf16.msra.mxu0 %v1409_v15  ;;  %1386 = vmatpush3.bf16.msra.mxu1 %v1409_v15 }
  0x20   : > { %1274 = vmatprep.subr.bf16.mxu0 %v1410_v16  ;;  %1379 = vmatprep.subr.bf16.mxu1 %v1410_v16 }
  0x23   : > { %1275 = vmatpush3.bf16.msra.mxu0 %v1411_v17  ;;  %1387 = vmatpush3.bf16.msra.mxu1 %v1411_v17 }
  0x26   : > { %544 = vmatmul.mubr.bf16.vlgmr.msra.gmra.mrb[0].mxu0 %v1412_v18  ;;  %608 = vmatmul.mubr.bf16.vlgmr.msra.gmra.mrb[0].mxu1 %v1424_v20 }
  0x27   : > { %551 = vmatprep.mubr.bf16.mxu0 %v1415_v19  ;;  %615 = vmatprep.mubr.bf16.mxu1 %v1430_v21 }
  0x2e   : > { %552 = vmatmul.mubr.bf16.gmra.mrb[4].mxu0 %v1417_v22  ;;  %616 = vmatmul.mubr.bf16.gmra.mrb[4].mxu1 %v1432_v24 }
  0x2f   : > { %559 = vmatprep.mubr.bf16.mxu0 %v1418_v23  ;;  %623 = vmatprep.mubr.bf16.mxu1 %v1436_v25 }
  0x36   : > { %560 = vmatmul.mubr.bf16.gmra.mrb[8].mxu0 %v1420_v26  ;;  %624 = vmatmul.mubr.bf16.gmra.mrb[8].mxu1 %v1438_v28 }
  0x37   : > { %567 = vmatprep.mubr.bf16.mxu0 %v1421_v27  ;;  %631 = vmatprep.mubr.bf16.mxu1 %v1442_v29 }
  0x3e   : > { %568 = vmatmul.mubr.bf16.gmra.mrb[12].mxu0 %v1423_v30  ;;  %632 = vmatmul.mubr.bf16.gmra.mrb[12].mxu1 %v1444_v32 }
  0x3f   : > { %575 = vmatprep.mubr.bf16.mxu0 %v1427_v31  ;;  %639 = vmatprep.mubr.bf16.mxu1 %v1448_v33 }
  0x46   : > { %576 = vmatmul.mubr.bf16.gmra.mrb[16].mxu0 %v1429_v34  ;;  %640 = vmatmul.mubr.bf16.gmra.mrb[16].mxu1 %v1450_v36 }
  0x47   : > { %583 = vmatprep.mubr.bf16.mxu0 %v1433_v35  ;;  %647 = vmatprep.mubr.bf16.mxu1 %v1451_v37 }
  0x4e   : > { %584 = vmatmul.mubr.bf16.gmra.mrb[20].mxu0 %v1435_v38  ;;  %648 = vmatmul.mubr.bf16.gmra.mrb[20].mxu1 %v1453_v40 }
  0x4f   : > { %591 = vmatprep.mubr.bf16.mxu0 %v1439_v39  ;;  %655 = vmatprep.mubr.bf16.mxu1 %v1454_v41 }
  0x56   : > { %592 = vmatmul.mubr.bf16.gmra.mrb[24].mxu0 %v1441_v42  ;;  %656 = vmatmul.mubr.bf16.gmra.mrb[24].mxu1 %v1456_v44 }
  0x57   : > { %599 = vmatprep.mubr.bf16.mxu0 %v1445_v43  ;;  %663 = vmatprep.mubr.bf16.mxu1 %v1457_v45 }
  0x5e   : > { %600 = vmatmul.mubr.bf16.gmra.mrb[28].mxu0 %v1447_v46  ;;  %664 = vmatmul.mubr.bf16.gmra.mrb[28].mxu1 %v1459_v47 }
  0xf9   : > { %v1276_v48 = vpop.f32.mrb[0].mxu0  ;;  %v1324_v50 = vpop.f32.mrb[0].mxu1 }
  0xfa   : > { %v1277_v49 = vpop.f32.mrb[1].mxu0  ;;  %v1325_v53 = vpop.f32.mrb[1].mxu1 }
  0xfb   : > { %v1278_v51 = vadd.f32 %v1277_v49, %v1276_v48  ;;  %v1279_v52 = vpop.f32.mrb[2].mxu0  ;;  %v1588_v55 = vadd.f32 %v1325_v53, %v1324_v50  ;;  %v1327_v56 = vpop.f32.mrb[2].mxu1 }
  0xfc   : > { %v1280_v54 = vpop.f32.mrb[3].mxu0  ;;  %v1328_v58 = vpop.f32.mrb[3].mxu1 }
  0xfd   : > { %v1281_v57 = vadd.f32 %v1280_v54, %v1279_v52  ;;  %v1595_v59 = vadd.f32 %v1328_v58, %v1327_v56  ;;  %v869_v60 = vmul.f32 %v1278_v51, %v1278_v51 }
  0xff   : > { %v1168_v61 = vpack.c.bf16 %v1281_v57, %v1278_v51  ;;  %v832_v62 = vadd.f32 %v1281_v57, %v1278_v51  ;;  %v870_v63 = vmul.f32 %v1281_v57, %v1281_v57  ;;  %v1208_v0 = vpack.c.bf16 %v1595_v59, %v1588_v55 }
 0x101   : > { %1169 = vst [vmem:[%s1593_s30] sm:$0xff] %v1168_v61   ;;  %v901_v1 = vadd.f32 %v870_v63, %v869_v60  ;;  %v1282_v2 = vpop.f32.mrb[4].mxu0  ;;  %1252 = vst [vmem:[%s1593_s30 + $0x40] sm:$0xff] %v1208_v0   ;;  %v1330_v4 = vpop.f32.mrb[4].mxu1 }
 0x102   : > { %v1283_v3 = vpop.f32.mrb[5].mxu0  ;;  %v1331_v7 = vpop.f32.mrb[5].mxu1 }
 0x103   : > { %v1284_v5 = vadd.f32 %v1283_v3, %v1282_v2  ;;  %v1285_v6 = vpop.f32.mrb[6].mxu0  ;;  %v1601_v9 = vadd.f32 %v1331_v7, %v1330_v4  ;;  %v1333_v10 = vpop.f32.mrb[6].mxu1 }
 0x104   : > { %v1286_v8 = vpop.f32.mrb[7].mxu0  ;;  %v1334_v14 = vpop.f32.mrb[7].mxu1 }
 0x105   : > { %v833_v11 = vadd.f32 %v1284_v5, %v832_v62  ;;  %v871_v12 = vmul.f32 %v1284_v5, %v1284_v5  ;;  %v1287_v13 = vadd.f32 %v1286_v8, %v1285_v6  ;;  %v1603_v15 = vadd.f32 %v1334_v14, %v1333_v10 }
 0x107   : > { %v902_v16 = vadd.f32 %v901_v1, %v871_v12  ;;  %v1173_v17 = vpack.c.bf16 %v1287_v13, %v1284_v5  ;;  %v834_v18 = vadd.f32 %v1287_v13, %v833_v11  ;;  %v872_v19 = vmul.f32 %v1287_v13, %v1287_v13 }
 0x108   : > { %v1213_v20 = vpack.c.bf16 %v1603_v15, %v1601_v9 }
 0x109   : > { %1245 = vst [vmem:[%s1593_s30 + $0x8] sm:$0xff] %v1173_v17   ;;  %v903_v21 = vadd.f32 %v902_v16, %v872_v19  ;;  %v1288_v22 = vpop.f32.mrb[8].mxu0  ;;  %v1336_v24 = vpop.f32.mrb[8].mxu1 }
 0x10a   : > { %v1289_v23 = vpop.f32.mrb[9].mxu0  ;;  %1253 = vst [vmem:[%s1593_s30 + $0x48] sm:$0xff] %v1213_v20   ;;  %v1337_v27 = vpop.f32.mrb[9].mxu1 }
 0x10b   : > { %v1290_v25 = vadd.f32 %v1289_v23, %v1288_v22  ;;  %v1291_v26 = vpop.f32.mrb[10].mxu0  ;;  %v1609_v29 = vadd.f32 %v1337_v27, %v1336_v24  ;;  %v1339_v30 = vpop.f32.mrb[10].mxu1 }
 0x10c   : > { %v1292_v28 = vpop.f32.mrb[11].mxu0  ;;  %v1340_v34 = vpop.f32.mrb[11].mxu1 }
 0x10d   : > { %v835_v31 = vadd.f32 %v1290_v25, %v834_v18  ;;  %v873_v32 = vmul.f32 %v1290_v25, %v1290_v25  ;;  %v1293_v33 = vadd.f32 %v1292_v28, %v1291_v26  ;;  %v1611_v35 = vadd.f32 %v1340_v34, %v1339_v30 }
 0x10f   : > { %v904_v36 = vadd.f32 %v903_v21, %v873_v32  ;;  %v1178_v37 = vpack.c.bf16 %v1293_v33, %v1290_v25  ;;  %v836_v38 = vadd.f32 %v1293_v33, %v835_v31  ;;  %v874_v39 = vmul.f32 %v1293_v33, %v1293_v33 }
 0x110   : > { %v1218_v40 = vpack.c.bf16 %v1611_v35, %v1609_v29 }
 0x111   : > { %1246 = vst [vmem:[%s1593_s30 + $0x10] sm:$0xff] %v1178_v37   ;;  %v905_v41 = vadd.f32 %v904_v36, %v874_v39  ;;  %v1294_v42 = vpop.f32.mrb[12].mxu0  ;;  %v1342_v44 = vpop.f32.mrb[12].mxu1 }
 0x112   : > { %v1295_v43 = vpop.f32.mrb[13].mxu0  ;;  %1254 = vst [vmem:[%s1593_s30 + $0x50] sm:$0xff] %v1218_v40   ;;  %v1343_v47 = vpop.f32.mrb[13].mxu1 }
 0x113   : > { %v1296_v45 = vadd.f32 %v1295_v43, %v1294_v42  ;;  %v1297_v46 = vpop.f32.mrb[14].mxu0  ;;  %v1617_v49 = vadd.f32 %v1343_v47, %v1342_v44  ;;  %v1345_v50 = vpop.f32.mrb[14].mxu1 }
 0x114   : > { %v1298_v48 = vpop.f32.mrb[15].mxu0  ;;  %v1346_v54 = vpop.f32.mrb[15].mxu1 }
 0x115   : > { %v837_v51 = vadd.f32 %v1296_v45, %v836_v38  ;;  %v875_v52 = vmul.f32 %v1296_v45, %v1296_v45  ;;  %v1299_v53 = vadd.f32 %v1298_v48, %v1297_v46  ;;  %v1619_v56 = vadd.f32 %v1346_v54, %v1345_v50 }
 0x117   : > { %v906_v57 = vadd.f32 %v905_v41, %v875_v52  ;;  %v1183_v58 = vpack.c.bf16 %v1299_v53, %v1296_v45  ;;  %v838_v60 = vadd.f32 %v1299_v53, %v837_v51  ;;  %v876_v61 = vmul.f32 %v1299_v53, %v1299_v53 }
 0x118   : > { %v1223_v62 = vpack.c.bf16 %v1619_v56, %v1617_v49 }
 0x119   : > { %1247 = vst [vmem:[%s1593_s30 + $0x18] sm:$0xff] %v1183_v58   ;;  %v907_v63 = vadd.f32 %v906_v57, %v876_v61  ;;  %v1300_v0 = vpop.f32.mrb[16].mxu0  ;;  %v1348_v2 = vpop.f32.mrb[16].mxu1 }
 0x11a   : > { %v1301_v1 = vpop.f32.mrb[17].mxu0  ;;  %1255 = vst [vmem:[%s1593_s30 + $0x58] sm:$0xff] %v1223_v62   ;;  %v1349_v5 = vpop.f32.mrb[17].mxu1 }
 0x11b   : > { %v1302_v3 = vadd.f32 %v1301_v1, %v1300_v0  ;;  %v1303_v4 = vpop.f32.mrb[18].mxu0  ;;  %v1625_v7 = vadd.f32 %v1349_v5, %v1348_v2  ;;  %v1351_v8 = vpop.f32.mrb[18].mxu1 }
 0x11c   : > { %v1304_v6 = vpop.f32.mrb[19].mxu0  ;;  %v1352_v13 = vpop.f32.mrb[19].mxu1 }
 0x11d   : > { %v839_v10 = vadd.f32 %v1302_v3, %v838_v60  ;;  %v877_v11 = vmul.f32 %v1302_v3, %v1302_v3  ;;  %v1305_v12 = vadd.f32 %v1304_v6, %v1303_v4  ;;  %v1627_v14 = vadd.f32 %v1352_v13, %v1351_v8 }
 0x11f   : > { %v908_v16 = vadd.f32 %v907_v63, %v877_v11  ;;  %v1188_v17 = vpack.c.bf16 %v1305_v12, %v1302_v3  ;;  %v840_v18 = vadd.f32 %v1305_v12, %v839_v10  ;;  %v878_v19 = vmul.f32 %v1305_v12, %v1305_v12 }
 0x120   : > { %v1228_v20 = vpack.c.bf16 %v1627_v14, %v1625_v7 }
 0x121   : > { %1248 = vst [vmem:[%s1593_s30 + $0x20] sm:$0xff] %v1188_v17   ;;  %v909_v21 = vadd.f32 %v908_v16, %v878_v19  ;;  %v1306_v22 = vpop.f32.mrb[20].mxu0  ;;  %v1354_v24 = vpop.f32.mrb[20].mxu1 }
 0x122   : > { %v1307_v23 = vpop.f32.mrb[21].mxu0  ;;  %1256 = vst [vmem:[%s1593_s30 + $0x60] sm:$0xff] %v1228_v20   ;;  %v1355_v27 = vpop.f32.mrb[21].mxu1 }
 0x123   : > { %v1308_v25 = vadd.f32 %v1307_v23, %v1306_v22  ;;  %v1309_v26 = vpop.f32.mrb[22].mxu0  ;;  %v1633_v30 = vadd.f32 %v1355_v27, %v1354_v24  ;;  %v1357_v31 = vpop.f32.mrb[22].mxu1  ;;  %v885_v27 = vmul.f32 %v1588_v55, %v1588_v55 }
 0x124   : > { %v1310_v28 = vpop.f32.mrb[23].mxu0  ;;  %v1358_v36 = vpop.f32.mrb[23].mxu1 }
 0x125   : > { %v841_v32 = vadd.f32 %v1308_v25, %v840_v18  ;;  %v879_v33 = vmul.f32 %v1308_v25, %v1308_v25  ;;  %v1311_v34 = vadd.f32 %v1310_v28, %v1309_v26  ;;  %v1635_v37 = vadd.f32 %v1358_v36, %v1357_v31 }
 0x126   : > { %v887_v36 = vmul.f32 %v1601_v9, %v1601_v9 }
 0x127   : > { %v910_v38 = vadd.f32 %v909_v21, %v879_v33  ;;  %v1193_v39 = vpack.c.bf16 %v1311_v34, %v1308_v25  ;;  %v842_v40 = vadd.f32 %v1311_v34, %v841_v32  ;;  %v880_v41 = vmul.f32 %v1311_v34, %v1311_v34 }
 0x128   : > { %v1233_v42 = vpack.c.bf16 %v1635_v37, %v1633_v30  ;;  %v886_v32 = vmul.f32 %v1595_v59, %v1595_v59 }
 0x129   : > { %1249 = vst [vmem:[%s1593_s30 + $0x28] sm:$0xff] %v1193_v39   ;;  %v911_v43 = vadd.f32 %v910_v38, %v880_v41  ;;  %v1312_v44 = vpop.f32.mrb[24].mxu0  ;;  %v1360_v46 = vpop.f32.mrb[24].mxu1 }
 0x12a   : > { %v1313_v45 = vpop.f32.mrb[25].mxu0  ;;  %1257 = vst [vmem:[%s1593_s30 + $0x68] sm:$0xff] %v1233_v42   ;;  %v1361_v50 = vpop.f32.mrb[25].mxu1  ;;  %v889_v42 = vmul.f32 %v1609_v29, %v1609_v29 }
 0x12b   : > { %v1314_v47 = vadd.f32 %v1313_v45, %v1312_v44  ;;  %v1315_v48 = vpop.f32.mrb[26].mxu0  ;;  %v1641_v52 = vadd.f32 %v1361_v50, %v1360_v46  ;;  %v1363_v53 = vpop.f32.mrb[26].mxu1 }
 0x12c   : > { %v1316_v51 = vpop.f32.mrb[27].mxu0  ;;  %v1364_v60 = vpop.f32.mrb[27].mxu1 }
 0x12d   : > { %v843_v54 = vadd.f32 %v1314_v47, %v842_v40  ;;  %v881_v57 = vmul.f32 %v1314_v47, %v1314_v47  ;;  %v1317_v58 = vadd.f32 %v1316_v51, %v1315_v48  ;;  %v1643_v61 = vadd.f32 %v1364_v60, %v1363_v53 }
 0x12e   : > { %v888_v40 = vmul.f32 %v1603_v15, %v1603_v15  ;;  %v893_v53 = vmul.f32 %v1625_v7, %v1625_v7 }
 0x12f   : > { %v912_v62 = vadd.f32 %v911_v43, %v881_v57  ;;  %v1198_v63 = vpack.c.bf16 %v1317_v58, %v1314_v47  ;;  %v844_v0 = vadd.f32 %v1317_v58, %v843_v54  ;;  %v882_v1 = vmul.f32 %v1317_v58, %v1317_v58 }
 0x130   : > { %v1238_v2 = vpack.c.bf16 %v1643_v61, %v1641_v52  ;;  %v894_v58 = vmul.f32 %v1627_v14, %v1627_v14 }
 0x131   : > { %1250 = vst [vmem:[%s1593_s30 + $0x30] sm:$0xff] %v1198_v63   ;;  %v913_v3 = vadd.f32 %v912_v62, %v882_v1  ;;  %v1318_v4 = vpop.f32.mrb[28].mxu0  ;;  %v1366_v6 = vpop.f32.mrb[28].mxu1  ;;  %v895_v62 = vmul.f32 %v1633_v30, %v1633_v30 }
 0x132   : > { %v1319_v5 = vpop.f32.mrb[29].mxu0  ;;  %1258 = vst [vmem:[%s1593_s30 + $0x70] sm:$0xff] %v1238_v2   ;;  %v1367_v11 = vpop.f32.mrb[29].mxu1  ;;  %v897_v2 = vmul.f32 %v1641_v52, %v1641_v52 }
 0x133   : > { %v1320_v8 = vadd.f32 %v1319_v5, %v1318_v4  ;;  %v1321_v10 = vpop.f32.mrb[30].mxu0  ;;  %v1368_v13 = vadd.f32 %v1367_v11, %v1366_v6  ;;  %v1369_v16 = vpop.f32.mrb[30].mxu1 }
 0x134   : > { %v1322_v12 = vpop.f32.mrb[31].mxu0  ;;  %v1370_v20 = vpop.f32.mrb[31].mxu1 }
 0x135   : > { %v845_v17 = vadd.f32 %v1320_v8, %v844_v0  ;;  %v883_v18 = vmul.f32 %v1320_v8, %v1320_v8  ;;  %v1323_v19 = vadd.f32 %v1322_v12, %v1321_v10  ;;  %v1371_v21 = vadd.f32 %v1370_v20, %v1369_v16 }
 0x136   : > { %v899_v4 = vmul.f32 %v1368_v13, %v1368_v13  ;;  %v938_v16 = vlaneseq }
 0x137   : > { %v914_v22 = vadd.f32 %v913_v3, %v883_v18  ;;  %v1203_v23 = vpack.c.bf16 %v1323_v19, %v1320_v8  ;;  %v846_v24 = vadd.f32 %v1323_v19, %v845_v17  ;;  %v884_v25 = vmul.f32 %v1323_v19, %v1323_v19 }
 0x138   : > { %v1243_v26 = vpack.c.bf16 %v1371_v21, %v1368_v13  ;;  %v900_v11 = vmul.f32 %v1371_v21, %v1371_v21  ;;  %v939_v20 = vshrl.u32 %v938_v16, 7 }
 0x139   : > { %1251 = vst [vmem:[%s1593_s30 + $0x38] sm:$0xff] %v1203_v23   ;;  %v847_v28 = vadd.f32 %v1588_v55, %v846_v24  ;;  %v915_v31 = vadd.f32 %v914_v22, %v884_v25 }
 0x13a   : > { %1259 = vst [vmem:[%s1593_s30 + $0x78] sm:$0xff] %v1243_v26   ;;  %v940_v25 = vsub.s32 0, %v939_v20 }
 0x13b   : > { %v848_v33 = vadd.f32 %v1595_v59, %v847_v28  ;;  %v916_v34 = vadd.f32 %v915_v31, %v885_v27  ;;  %v890_v59 = vmul.f32 %v1611_v35, %v1611_v35 }
 0x13d   : > { %v849_v38 = vadd.f32 %v1601_v9, %v848_v33  ;;  %v917_v39 = vadd.f32 %v916_v34, %v886_v32  ;;  %v891_v9 = vmul.f32 %v1617_v49, %v1617_v49 }
 0x13f   : > { %v850_v41 = vadd.f32 %v1603_v15, %v849_v38  ;;  %v918_v55 = vadd.f32 %v917_v39, %v887_v36  ;;  %v892_v15 = vmul.f32 %v1619_v56, %v1619_v56 }
 0x141   : > { %v919_v43 = vadd.f32 %v918_v55, %v888_v40  ;;  %v851_v44 = vadd.f32 %v1609_v29, %v850_v41 }
 0x143   : > { %v852_v45 = vadd.f32 %v1611_v35, %v851_v44  ;;  %v920_v46 = vadd.f32 %v919_v43, %v889_v42 }
 0x145   : > { %v853_v47 = vadd.f32 %v1617_v49, %v852_v45  ;;  %v921_v48 = vadd.f32 %v920_v46, %v890_v59 }
 0x147   : > { %v854_v50 = vadd.f32 %v1619_v56, %v853_v47  ;;  %v922_v51 = vadd.f32 %v921_v48, %v891_v9 }
 0x149   : > { %v855_v29 = vadd.f32 %v1625_v7, %v854_v50  ;;  %v923_v54 = vadd.f32 %v922_v51, %v892_v15  ;;  %v896_v7 = vmul.f32 %v1635_v37, %v1635_v37 }
 0x14b   : > { %v924_v35 = vadd.f32 %v923_v54, %v893_v53  ;;  %v856_v57 = vadd.f32 %v1627_v14, %v855_v29 }
 0x14d   : > { %v925_v49 = vadd.f32 %v924_v35, %v894_v58  ;;  %v857_v60 = vadd.f32 %v1633_v30, %v856_v57  ;;  %v898_v30 = vmul.f32 %v1643_v61, %v1643_v61 }
 0x14f   : > { %v926_v56 = vadd.f32 %v925_v49, %v895_v62  ;;  %v858_v63 = vadd.f32 %v1635_v37, %v857_v60 }
 0x151   : > { %v927_v0 = vadd.f32 %v926_v56, %v896_v7  ;;  %v859_v1 = vadd.f32 %v1641_v52, %v858_v63 }
 0x153   : > { %v928_v14 = vadd.f32 %v927_v0, %v897_v2  ;;  %v860_v3 = vadd.f32 %v1643_v61, %v859_v1 }
 0x155   : > { %v929_v5 = vadd.f32 %v928_v14, %v898_v30  ;;  %v861_v6 = vadd.f32 %v1368_v13, %v860_v3 }
 0x157   : > { %v930_v8 = vadd.f32 %v929_v5, %v899_v4  ;;  %v862_v10 = vadd.f32 %v1371_v21, %v861_v6 }
 0x159   : > { %v863_v37 = vrot.slane %v862_v10, 4  ;;  %v931_v12 = vadd.f32 %v930_v8, %v900_v11 }
 0x15b   : > { %v864_v17 = vadd.f32 %v863_v37, %v862_v10  ;;  %v932_v18 = vrot.slane %v931_v12, 4 }
 0x15d   : > { %v865_v52 = vrot.slane %v864_v17, 2  ;;  %v933_v19 = vadd.f32 %v932_v18, %v931_v12 }
 0x15f   : > { %v866_v22 = vadd.f32 %v865_v52, %v864_v17  ;;  %v934_v23 = vrot.slane %v933_v19, 2 }
 0x161   : > { %v867_v61 = vrot.slane %v866_v22, 1  ;;  %v935_v24 = vadd.f32 %v934_v23, %v933_v19 }
 0x163   : > { %v868_v13 = vadd.f32 %v867_v61, %v866_v22  ;;  %v936_v26 = vrot.slane %v935_v24, 1 }
 0x165   : > { %v937_v21 = vadd.f32 %v936_v26, %v935_v24  ;;  %v941_v27 = vrot.slane %v868_v13, %v940_v25 }
 0x167   : > { %v945_v28 = vrot.slane %v937_v21, %v940_v25  ;;  %946 = vst [vmem:[%s189_s6] sm:$0xff] %v941_v27 }
 0x169   : > { %947 = vst [vmem:[%s189_s6 + $0x8] sm:$0xff] %v945_v28 }
 0x16a PF: > { %s14_s12 = sadd.s32 1, %s1466_s12  }
 0x16b   : > { %p11_p5 = scmp.ge.s32.totalorder %s14_s12, 4  }
 0x16d   :  { %13 = sbr.rel (!%p11_p5) target bundleno = 1 (0x1), region = 70 }

// kernel: _lambda_.22
= control target key start
LH: loop header
LB: loop body
LE: loop exit
PB: predicated region body
PF: predicated region fallthrough
CT: control target
= control target key end

     0   :  { %s542_s15 = smov 0   ;;  %s579_s0 = inlined_call_operand.vmem [shape: bf16[128,128], index: 0, kind: input, shape index: {}]   ;;  %s580_s1 = inlined_call_operand.vmem [shape: f32[1,128], index: 1, kind: input, shape index: {}]   ;;  %s581_s2 = inlined_call_operand.vmem [shape: f32[1,128], index: 2, kind: input, shape index: {}]   ;;  %s582_s3 = inlined_call_operand.vmem [shape: bf16[128,128], index: 3, kind: input, shape index: {}]   ;;  %s583_s4 = inlined_call_operand.vmem [shape: bf16[128,128], index: 4, kind: output, shape index: {}]  }
   0x1 LB: > { %s409_s16 = sadd.s32 4294967295, %s515_s15   ;;  %p413_p0 = scmp.ge.s32.totalorder %s515_s15, 1  ;;  %s515_s15 = sphi %s542_s15, %s14_s15  }
   0x2   : > { %p174_p1 = scmp.lt.s32.totalorder %s515_s15, 3 }
   0x4   : > { %p175_p2 = pnand %p413_p0, %p174_p1 }
   0x5   : > { %s414_s17 = sshll.u32 (!%p175_p2), %s409_s16, 3  ;;  %v420_v0 = vld [vmem:[%s580_s1] ss:$0 sm:$0xff] (!%p175_p2) }
   0x6   : > { %178 = sbr.rel (%p175_p2) target bundleno = 37 (0x25), region = 36  ;;  %p206_p3 = scmp.lt.s32.totalorder (!%p175_p2), %s414_s17, 15  ;;  %v421_v11 = vld [vmem:[%s581_s2] ss:$0 sm:$0xff] (!%p175_p2) }
   0xd   : > { %s585_s17 = smov (!%p206_p3, %s414_s17), 15 }
   0xe   : > { %s550_s18 = sshll.u32 %s585_s17, 2 }
   0xf   : > { %s209_s21 = scalar_lea.vmem %s579_s0, %s550_s18  ;;  %s560_s24 = scalar_lea.vmem %s582_s3, %s550_s18 }
  0x10   : > { %v441_v1 = vld [vmem:[%s209_s21] sm:$0xff]   ;;  %v492_v3 = vld [vmem:[%s209_s21 + $0x8] sm:$0xff]   ;;  %v493_v9 = vld [vmem:[%s209_s21 + $0x10] sm:$0xff]   ;;  %s221_s5 = scalar_lea.vmem %s583_s4, %s550_s18 }
  0x11   : > { %v457_v2 = vld [vmem:[%s560_s24] sm:$0xff]   ;;  %v442_v4 = vunpack.c.l.bf16 %v441_v1  ;;  %v443_v5 = vunpack.c.h.bf16 %v441_v1  ;;  %v495_v8 = vld [vmem:[%s560_s24 + $0x8] sm:$0xff]   ;;  %v496_v10 = vld [vmem:[%s560_s24 + $0x10] sm:$0xff]   ;;  %v446_v12 = vunpack.c.l.bf16 %v492_v3  ;;  %v447_v13 = vunpack.c.h.bf16 %v492_v3 }
  0x12   : > { %v458_v6 = vunpack.c.l.bf16 %v457_v2  ;;  %v459_v7 = vunpack.c.h.bf16 %v457_v2  ;;  %v462_v14 = vunpack.c.l.bf16 %v495_v8  ;;  %v463_v15 = vunpack.c.h.bf16 %v495_v8  ;;  %v494_v20 = vld [vmem:[%s209_s21 + $0x18] sm:$0xff]  }
  0x13   : > { %v246_v16 = vmul.f32 %v442_v4, %v420_v0  ;;  %v247_v17 = vmul.f32 %v443_v5, %v420_v0  ;;  %v450_v18 = vunpack.c.l.bf16 %v493_v9  ;;  %v451_v19 = vunpack.c.h.bf16 %v493_v9  ;;  %v497_v41 = vld [vmem:[%s560_s24 + $0x18] sm:$0xff]  }
  0x14   : > { %v248_v21 = vmul.f32 %v446_v12, %v420_v0  ;;  %v249_v22 = vmul.f32 %v447_v13, %v420_v0  ;;  %v466_v23 = vunpack.c.l.bf16 %v496_v10  ;;  %v467_v24 = vunpack.c.h.bf16 %v496_v10 }
  0x15   : > { %v261_v25 = vadd.f32 %v421_v11, %v246_v16  ;;  %v262_v26 = vadd.f32 %v421_v11, %v247_v17  ;;  %v250_v27 = vmul.f32 %v450_v18, %v420_v0  ;;  %v251_v28 = vmul.f32 %v451_v19, %v420_v0 }
  0x16   : > { %v263_v29 = vadd.f32 %v421_v11, %v248_v21  ;;  %v264_v30 = vadd.f32 %v421_v11, %v249_v22  ;;  %v454_v31 = vunpack.c.l.bf16 %v494_v20  ;;  %v455_v32 = vunpack.c.h.bf16 %v494_v20 }
  0x17   : > { %v285_v33 = vadd.f32 %v458_v6, %v261_v25  ;;  %v286_v34 = vadd.f32 %v459_v7, %v262_v26  ;;  %v265_v35 = vadd.f32 %v421_v11, %v250_v27  ;;  %v266_v36 = vadd.f32 %v421_v11, %v251_v28 }
  0x18   : > { %v287_v37 = vadd.f32 %v462_v14, %v263_v29  ;;  %v288_v38 = vadd.f32 %v463_v15, %v264_v30  ;;  %v252_v39 = vmul.f32 %v454_v31, %v420_v0  ;;  %v253_v40 = vmul.f32 %v455_v32, %v420_v0 }
  0x19   : > { %v293_v42 = vmax.f32 %v285_v33, 0.0  ;;  %v294_v43 = vmax.f32 %v286_v34, 0.0  ;;  %v289_v44 = vadd.f32 %v466_v23, %v265_v35  ;;  %v290_v45 = vadd.f32 %v467_v24, %v266_v36 }
  0x1a   : > { %v295_v46 = vmax.f32 %v287_v37, 0.0  ;;  %v296_v47 = vmax.f32 %v288_v38, 0.0  ;;  %v267_v48 = vadd.f32 %v421_v11, %v252_v39  ;;  %v268_v49 = vadd.f32 %v421_v11, %v253_v40 }
  0x1b   : > { %v475_v50 = vpack.c.bf16 %v294_v43, %v293_v42  ;;  %v297_v51 = vmax.f32 %v289_v44, 0.0  ;;  %v298_v52 = vmax.f32 %v290_v45, 0.0  ;;  %v470_v53 = vunpack.c.l.bf16 %v497_v41 }
  0x1c   : > { %v480_v54 = vpack.c.bf16 %v296_v47, %v295_v46  ;;  %v471_v55 = vunpack.c.h.bf16 %v497_v41 }
  0x1d   : > { %476 = vst [vmem:[%s221_s5] sm:$0xff] %v475_v50   ;;  %v485_v56 = vpack.c.bf16 %v298_v52, %v297_v51  ;;  %v291_v57 = vadd.f32 %v470_v53, %v267_v48 }
  0x1e   : > { %498 = vst [vmem:[%s221_s5 + $0x8] sm:$0xff] %v480_v54   ;;  %v292_v58 = vadd.f32 %v471_v55, %v268_v49 }
  0x1f   : > { %499 = vst [vmem:[%s221_s5 + $0x10] sm:$0xff] %v485_v56   ;;  %v299_v59 = vmax.f32 %v291_v57, 0.0 }
  0x20   : > { %v300_v60 = vmax.f32 %v292_v58, 0.0 }
  0x22   : > { %v490_v61 = vpack.c.bf16 %v300_v60, %v299_v59 }
  0x24   : > { %500 = vst [vmem:[%s221_s5 + $0x18] sm:$0xff] %v490_v61  }
  0x25 PF: > { %s14_s15 = sadd.s32 1, %s515_s15  }
  0x26   : > { %p11_p4 = scmp.ge.s32.totalorder %s14_s15, 4  }
  0x28   :  { %13 = sbr.rel (!%p11_p4) target bundleno = 1 (0x1), region = 69 }

// kernel: _lambda_.23
= control target key start
LH: loop header
LB: loop body
LE: loop exit
PB: predicated region body
PF: predicated region fallthrough
CT: control target
= control target key end

     0   :  { %s1500_s12 = smov 0   ;;  %s1756_s0 = inlined_call_operand.vmem [shape: bf16[32,1152], index: 0, kind: input, shape index: {}]   ;;  %s1757_s1 = inlined_call_operand.vmem [shape: bf16[1152,128], index: 1, kind: input, shape index: {}]   ;;  %s1758_s2 = inlined_call_operand.vmem [shape: bf16[32,128], index: 2, kind: output, shape index: {0}]   ;;  %s1759_s3 = inlined_call_operand.vmem [shape: f32[2,8,256], index: 3, kind: output, shape index: {1}]  }
   0x1 LB: > { %s1506_s13 = sadd.s32 4294967295, %s1476_s12   ;;  %p1157_p0 = scmp.ge.s32.totalorder %s1476_s12, 1  ;;  %s1476_s12 = sphi %s1500_s12, %s14_s12  }
   0x2   : > { %p142_p1 = scmp.lt.s32.totalorder %s1476_s12, 3 }
   0x4   : > { %p143_p2 = pnand %p1157_p0, %p142_p1 }
   0x5   : > { %v1385_v0 = vld [vmem:[%s1757_s1 + $0x40] sm:$0xff] (!%p143_p2)   ;;  %v1389_v4 = vld [vmem:[%s1757_s1 + $0x48] sm:$0xff] (!%p143_p2)   ;;  %v1393_v8 = vld [vmem:[%s1757_s1 + $0x50] sm:$0xff] (!%p143_p2)   ;;  %s1158_s19 = sshll.u32 (!%p143_p2), %s1506_s13, 1  ;;  %vm1479_vm0 = vmmov (!%p143_p2), 0   ;;  %p185_p4 = scmp.lt.s32.totalorder (!%p143_p2), %s1506_s13, 1 }
   0x6   : > { %146 = sbr.rel (%p143_p2) target bundleno = 338 (0x152), region = 28  ;;  %v1386_v1 = vld [vmem:[%s1757_s1 + $0xc0] sm:$0xff] (!%p143_p2)   ;;  %1257 = vmatprep.subr.bf16.mxu0 (!%p143_p2), %v1385_v0  ;;  %v1390_v5 = vld [vmem:[%s1757_s1 + $0xc8] sm:$0xff] (!%p143_p2)   ;;  %v1394_v9 = vld [vmem:[%s1757_s1 + $0xd0] sm:$0xff] (!%p143_p2)   ;;  %p173_p3 = scmp.lt.s32.totalorder (!%p143_p2), %s1158_s19, 3 }
   0x7   : > { %v1387_v2 = vld [vmem:[%s1757_s1] sm:$0xff] (!%p143_p2)   ;;  %1279 = vmatprep.subr.bf16.mxu1 (!%p143_p2), %v1386_v1  ;;  %v1391_v6 = vld [vmem:[%s1757_s1 + $0x8] sm:$0xff] (!%p143_p2)   ;;  %v1395_v10 = vld [vmem:[%s1757_s1 + $0x10] sm:$0xff] (!%p143_p2)  }
   0x8   : > { %v1388_v3 = vld [vmem:[%s1757_s1 + $0x80] sm:$0xff] (!%p143_p2)   ;;  %1258 = vmatpush3.bf16.msra.mxu0 (!%p143_p2), %v1387_v2  ;;  %v1392_v7 = vld [vmem:[%s1757_s1 + $0x88] sm:$0xff] (!%p143_p2)   ;;  %v1396_v11 = vld [vmem:[%s1757_s1 + $0x90] sm:$0xff] (!%p143_p2)  }
   0x9   : > { %1280 = vmatpush3.bf16.msra.mxu1 (!%p143_p2), %v1388_v3  ;;  %1259 = vmatprep.subr.bf16.mxu0 (!%p143_p2), %v1389_v4  ;;  %v1397_v12 = vld [vmem:[%s1757_s1 + $0x58] sm:$0xff] (!%p143_p2)   ;;  %v1401_v16 = vld [vmem:[%s1757_s1 + $0x60] sm:$0xff] (!%p143_p2)   ;;  %v1405_v20 = vld [vmem:[%s1757_s1 + $0x68] sm:$0xff] (!%p143_p2)  }
   0xa   : > { %1281 = vmatprep.subr.bf16.mxu1 (!%p143_p2), %v1390_v5  ;;  %v1398_v13 = vld [vmem:[%s1757_s1 + $0xd8] sm:$0xff] (!%p143_p2)   ;;  %v1402_v17 = vld [vmem:[%s1757_s1 + $0xe0] sm:$0xff] (!%p143_p2)   ;;  %v1406_v21 = vld [vmem:[%s1757_s1 + $0xe8] sm:$0xff] (!%p143_p2)  }
   0xb   : > { %v1399_v14 = vld [vmem:[%s1757_s1 + $0x18] sm:$0xff] (!%p143_p2)   ;;  %v1403_v18 = vld [vmem:[%s1757_s1 + $0x20] sm:$0xff] (!%p143_p2)   ;;  %v1407_v22 = vld [vmem:[%s1757_s1 + $0x28] sm:$0xff] (!%p143_p2)  }
   0xc   : > { %1260 = vmatpush3.bf16.msra.mxu0 (!%p143_p2), %v1391_v6  ;;  %v1400_v15 = vld [vmem:[%s1757_s1 + $0x98] sm:$0xff] (!%p143_p2)   ;;  %v1404_v19 = vld [vmem:[%s1757_s1 + $0xa0] sm:$0xff] (!%p143_p2)   ;;  %v1408_v23 = vld [vmem:[%s1757_s1 + $0xa8] sm:$0xff] (!%p143_p2)   ;;  %v1478_v6 = vmov (!%p143_p2), 0.0  }
   0xd   : > { %1282 = vmatpush3.bf16.msra.mxu1 %v1392_v7  ;;  %1261 = vmatprep.subr.bf16.mxu0 %v1393_v8  ;;  %s1761_s19 = smov (!%p173_p3, %s1158_s19), 3  ;;  %v1409_v24 = vld [vmem:[%s1757_s1 + $0x70] sm:$0xff]   ;;  %v1413_v28 = vld [vmem:[%s1757_s1 + $0x78] sm:$0xff]   ;;  %v1423_v36 = vld [vmem:[%s1757_s1 + $0x140] sm:$0xff]   ;;  %s1763_s13 = smov (!%p185_p4, %s1506_s13), 1 }
   0xe   : > { %1283 = vmatprep.subr.bf16.mxu1 %v1394_v9  ;;  %v1410_v25 = vld [vmem:[%s1757_s1 + $0xf0] sm:$0xff]   ;;  %s1374_s17 = smul.u32 36, %s1761_s19  ;;  %v1414_v29 = vld [vmem:[%s1757_s1 + $0xf8] sm:$0xff]   ;;  %v1424_v37 = vld [vmem:[%s1757_s1 + $0x100] sm:$0xff]  }
   0xf   : > { %v1411_v26 = vld [vmem:[%s1757_s1 + $0x30] sm:$0xff]   ;;  %v1415_v30 = vld [vmem:[%s1757_s1 + $0x38] sm:$0xff]   ;;  %v1425_v38 = vld [vmem:[%s1757_s1 + $0x1c0] sm:$0xff]  }
  0x10   : > { %1262 = vmatpush3.bf16.msra.mxu0 %v1395_v10  ;;  %v1412_v27 = vld [vmem:[%s1757_s1 + $0xb0] sm:$0xff]   ;;  %s1607_s29 = scalar_lea.vmem %s1756_s0, %s1374_s17  ;;  %v1416_v31 = vld [vmem:[%s1757_s1 + $0xb8] sm:$0xff]   ;;  %v1426_v39 = vld [vmem:[%s1757_s1 + $0x180] sm:$0xff]  }
  0x11   : > { %1284 = vmatpush3.bf16.msra.mxu1 %v1396_v11  ;;  %1263 = vmatprep.subr.bf16.mxu0 %v1397_v12  ;;  %v1417_v32 = vld [vmem:[%s1607_s29] ss:$36 sps:$4 sm:$0xff]   ;;  %v1420_v34 = vld [vmem:[%s1607_s29 + $0x8] ss:$36 sps:$4 sm:$0xff]   ;;  %v1431_v44 = vld [vmem:[%s1757_s1 + $0x150] sm:$0xff]  }
  0x12   : > { %1285 = vmatprep.subr.bf16.mxu1 %v1398_v13  ;;  %v1419_v33 = vld [vmem:[%s1607_s29 + $0x4] ss:$36 sps:$4 sm:$0xff]   ;;  %v1422_v35 = vld [vmem:[%s1607_s29 + $0xc] ss:$36 sps:$4 sm:$0xff]   ;;  %v1435_v48 = vld [vmem:[%s1757_s1 + $0x158] sm:$0xff]  }
  0x13   : > { %855 = vmatprep.mubr.bf16.mxu0 %v1419_v33  ;;  %896 = vmatprep.mubr.bf16.mxu1 %v1422_v35  ;;  %v1427_v40 = vld [vmem:[%s1757_s1 + $0x148] sm:$0xff]   ;;  %v1432_v45 = vld [vmem:[%s1757_s1 + $0x110] sm:$0xff]   ;;  %v1436_v49 = vld [vmem:[%s1757_s1 + $0x118] sm:$0xff]  }
  0x14   : > { %1264 = vmatpush3.bf16.msra.mxu0 %v1399_v14  ;;  %v1428_v41 = vld [vmem:[%s1757_s1 + $0x108] sm:$0xff]   ;;  %v1433_v46 = vld [vmem:[%s1757_s1 + $0x1d0] sm:$0xff]   ;;  %v1437_v50 = vld [vmem:[%s1757_s1 + $0x1d8] sm:$0xff]  }
  0x15   : > { %1286 = vmatpush3.bf16.msra.mxu1 %v1400_v15  ;;  %1265 = vmatprep.subr.bf16.mxu0 %v1401_v16  ;;  %v1429_v42 = vld [vmem:[%s1757_s1 + $0x1c8] sm:$0xff]   ;;  %v1434_v47 = vld [vmem:[%s1757_s1 + $0x190] sm:$0xff]   ;;  %v1438_v51 = vld [vmem:[%s1757_s1 + $0x198] sm:$0xff]  }
  0x16   : > { %1287 = vmatprep.subr.bf16.mxu1 %v1402_v17  ;;  %v1430_v43 = vld [vmem:[%s1757_s1 + $0x188] sm:$0xff]   ;;  %v1439_v52 = vld [vmem:[%s1757_s1 + $0x160] sm:$0xff]   ;;  %v1447_v60 = vld [vmem:[%s1757_s1 + $0x170] sm:$0xff]  }
  0x17   : > { %v1440_v53 = vld [vmem:[%s1757_s1 + $0x120] sm:$0xff]   ;;  %v1443_v56 = vld [vmem:[%s1757_s1 + $0x168] sm:$0xff]   ;;  %v1448_v61 = vld [vmem:[%s1757_s1 + $0x130] sm:$0xff]  }
  0x18   : > { %1266 = vmatpush3.bf16.msra.mxu0 %v1403_v18  ;;  %v1441_v54 = vld [vmem:[%s1757_s1 + $0x1e0] sm:$0xff]   ;;  %v1444_v57 = vld [vmem:[%s1757_s1 + $0x128] sm:$0xff]   ;;  %v1449_v62 = vld [vmem:[%s1757_s1 + $0x1f0] sm:$0xff]  }
  0x19   : > { %1288 = vmatpush3.bf16.msra.mxu1 %v1404_v19  ;;  %1267 = vmatprep.subr.bf16.mxu0 %v1405_v20  ;;  %v1442_v55 = vld [vmem:[%s1757_s1 + $0x1a0] sm:$0xff]   ;;  %v1445_v58 = vld [vmem:[%s1757_s1 + $0x1e8] sm:$0xff]   ;;  %v1450_v63 = vld [vmem:[%s1757_s1 + $0x1b0] sm:$0xff]  }
  0x1a   : > { %1289 = vmatprep.subr.bf16.mxu1 %v1406_v21  ;;  %v1446_v59 = vld [vmem:[%s1757_s1 + $0x1a8] sm:$0xff]   ;;  %v1451_v0 = vld [vmem:[%s1757_s1 + $0x178] sm:$0xff]   ;;  %v1454_v3 = vld [vmem:[%s1607_s29 + $0x10] ss:$36 sps:$4 sm:$0xff]  }
  0x1b   : > { %v1452_v1 = vld [vmem:[%s1757_s1 + $0x138] sm:$0xff]   ;;  %v1461_v9 = vld [vmem:[%s1757_s1 + $0x200] sm:$0xff]   ;;  %v1462_v10 = vld [vmem:[%s1757_s1 + $0x208] sm:$0xff]  }
  0x1c   : > { %1268 = vmatpush3.bf16.msra.mxu0 %v1407_v22  ;;  %v1453_v2 = vld [vmem:[%s1757_s1 + $0x1f8] sm:$0xff]   ;;  %v1463_v11 = vld [vmem:[%s1757_s1 + $0x210] sm:$0xff]   ;;  %v1465_v13 = vld [vmem:[%s1757_s1 + $0x220] sm:$0xff]  }
  0x1d   : > { %1290 = vmatpush3.bf16.msra.mxu1 %v1408_v23  ;;  %1269 = vmatprep.subr.bf16.mxu0 %v1409_v24  ;;  %v1456_v4 = vld [vmem:[%s1607_s29 + $0x14] ss:$36 sps:$4 sm:$0xff]   ;;  %v1460_v8 = vld [vmem:[%s1607_s29 + $0x1c] ss:$36 sps:$4 sm:$0xff]   ;;  %v1466_v14 = vld [vmem:[%s1757_s1 + $0x228] sm:$0xff]  }
  0x1e   : > { %1291 = vmatprep.subr.bf16.mxu1 %v1410_v25  ;;  %v1457_v5 = vld [vmem:[%s1757_s1 + $0x1b8] sm:$0xff]   ;;  %v1467_v15 = vld [vmem:[%s1757_s1 + $0x230] sm:$0xff]   ;;  %v1469_v17 = vld [vmem:[%s1607_s29 + $0x20] ss:$36 sps:$4 sm:$0xff]  }
  0x1f   : > { %v1458_v7 = vld [vmem:[%s1607_s29 + $0x18] ss:$36 sps:$4 sm:$0xff]   ;;  %s1161_s29 = sshll.u32 %s1761_s19, 2  ;;  %s1249_s19 = sshll.u32 %s1763_s13, 4 }
  0x20   : > { %1270 = vmatpush3.bf16.msra.mxu0 %v1411_v26  ;;  %v1464_v12 = vld [vmem:[%s1757_s1 + $0x218] sm:$0xff]   ;;  %s183_s23 = scalar_lea.vmem %s1758_s2, %s1161_s29  ;;  %s189_s26 = scalar_lea.vmem %s1759_s3, %s1249_s19 }
  0x21   : > { %1292 = vmatpush3.bf16.msra.mxu1 %v1412_v27  ;;  %1271 = vmatprep.subr.bf16.mxu0 %v1413_v28  ;;  %v1468_v16 = vld [vmem:[%s1757_s1 + $0x238] sm:$0xff]  }
  0x22   : > { %1293 = vmatprep.subr.bf16.mxu1 %v1414_v29 }
  0x24   : > { %1272 = vmatpush3.bf16.msra.mxu0 %v1415_v30 }
  0x25   : > { %1294 = vmatpush3.bf16.msra.mxu1 %v1416_v31  ;;  %1301 = vmatprep.subr.bf16.mxu0 %v1423_v36 }
  0x26   : > { %1323 = vmatprep.subr.bf16.mxu1 %v1425_v38 }
  0x27   : > { %856 = vmatmul.mubr.bf16.vlgmr.msra.gmra.mrb[0].mxu0 %v1417_v32 }
  0x28   : > { %897 = vmatmul.mubr.bf16.vlgmr.msra.gmra.mrb[0].mxu1 %v1420_v34  ;;  %1302 = vmatpush3.bf16.msra.mxu0 %v1424_v37 }
  0x29   : > { %1324 = vmatpush3.bf16.msra.mxu1 %v1426_v39  ;;  %1303 = vmatprep.subr.bf16.mxu0 %v1427_v40 }
  0x2a   : > { %1325 = vmatprep.subr.bf16.mxu1 %v1429_v42  ;;  %937 = vmatprep.mubr.bf16.mxu0 %v1456_v4 }
  0x2b   : > { %978 = vmatprep.mubr.bf16.mxu1 %v1460_v8 }
  0x2c   : > { %1304 = vmatpush3.bf16.msra.mxu0 %v1428_v41 }
  0x2d   : > { %1326 = vmatpush3.bf16.msra.mxu1 %v1430_v43  ;;  %1305 = vmatprep.subr.bf16.mxu0 %v1431_v44 }
  0x2e   : > { %1327 = vmatprep.subr.bf16.mxu1 %v1433_v46 }
  0x30   : > { %1306 = vmatpush3.bf16.msra.mxu0 %v1432_v45 }
  0x31   : > { %1328 = vmatpush3.bf16.msra.mxu1 %v1434_v47  ;;  %1307 = vmatprep.subr.bf16.mxu0 %v1435_v48 }
  0x32   : > { %1329 = vmatprep.subr.bf16.mxu1 %v1437_v50 }
  0x34   : > { %1308 = vmatpush3.bf16.msra.mxu0 %v1436_v49 }
  0x35   : > { %1330 = vmatpush3.bf16.msra.mxu1 %v1438_v51  ;;  %1309 = vmatprep.subr.bf16.mxu0 %v1439_v52 }
  0x36   : > { %1331 = vmatprep.subr.bf16.mxu1 %v1441_v54 }
  0x38   : > { %1310 = vmatpush3.bf16.msra.mxu0 %v1440_v53 }
  0x39   : > { %1332 = vmatpush3.bf16.msra.mxu1 %v1442_v55  ;;  %1311 = vmatprep.subr.bf16.mxu0 %v1443_v56 }
  0x3a   : > { %1333 = vmatprep.subr.bf16.mxu1 %v1445_v58 }
  0x3c   : > { %1312 = vmatpush3.bf16.msra.mxu0 %v1444_v57 }
  0x3d   : > { %1334 = vmatpush3.bf16.msra.mxu1 %v1446_v59  ;;  %1313 = vmatprep.subr.bf16.mxu0 %v1447_v60  ;;  %v1054_v60 = vlaneseq }
  0x3e   : > { %1335 = vmatprep.subr.bf16.mxu1 %v1449_v62 }
  0x40   : > { %1314 = vmatpush3.bf16.msra.mxu0 %v1448_v61 }
  0x41   : > { %1336 = vmatpush3.bf16.msra.mxu1 %v1450_v63  ;;  %1315 = vmatprep.subr.bf16.mxu0 %v1451_v0 }
  0x42   : > { %1337 = vmatprep.subr.bf16.mxu1 %v1453_v2 }
  0x44   : > { %1316 = vmatpush3.bf16.msra.mxu0 %v1452_v1  ;;  %v1055_v1 = vshrl.u32 %v1054_v60, 7 }
  0x45   : > { %1354 = vmatprep.subr.bf16.mxu0 %v1478_v6  ;;  %1338 = vmatpush3.bf16.msra.mxu1 %v1457_v5 }
  0x47   : > { %938 = vmatmul.mubr.bf16.vlgmr.msra.gmra.mrb[4].mxu0 %v1454_v3 }
  0x48   : > { %1370 = vmatprep.mubr.msk.bf16.mxu0 %vm1479_vm0, %v1478_v6  ;;  %1355 = vmatpush3.bf16.msra.mxu0 %v1461_v9 }
  0x49   : > { %979 = vmatmul.mubr.bf16.vlgmr.msra.gmra.mrb[4].mxu1 %v1458_v7  ;;  %1356 = vmatprep.subr.bf16.mxu0 %v1478_v6 }
  0x4c   : > { %1357 = vmatpush3.bf16.msra.mxu0 %v1462_v10 }
  0x4d   : > { %1358 = vmatprep.subr.bf16.mxu0 %v1478_v6 }
  0x50   : > { %1359 = vmatpush3.bf16.msra.mxu0 %v1463_v11 }
  0x51   : > { %1360 = vmatprep.subr.bf16.mxu0 %v1478_v6 }
  0x54   : > { %1361 = vmatpush3.bf16.msra.mxu0 %v1464_v12 }
  0x55   : > { %1362 = vmatprep.subr.bf16.mxu0 %v1478_v6 }
  0x58   : > { %1363 = vmatpush3.bf16.msra.mxu0 %v1465_v13 }
  0x59   : > { %1364 = vmatprep.subr.bf16.mxu0 %v1478_v6 }
  0x5c   : > { %1365 = vmatpush3.bf16.msra.mxu0 %v1466_v14 }
  0x5d   : > { %1366 = vmatprep.subr.bf16.mxu0 %v1478_v6 }
  0x60   : > { %1367 = vmatpush3.bf16.msra.mxu0 %v1467_v15 }
  0x61   : > { %1368 = vmatprep.subr.bf16.mxu0 %v1478_v6  ;;  %v1056_v6 = vsub.s32 0, %v1055_v1 }
  0x64   : > { %1369 = vmatpush3.bf16.msra.mxu0 %v1468_v16 }
  0x67   : > { %1371 = vmatmul.mubr.bf16.vlgmr.msra.gmra.mrb[8].mxu0 %v1469_v17 }
  0xfa   : > { %v1273_v18 = vpop.f32.mrb[0].mxu0 }
  0xfb   : > { %v1295_v19 = vpop.f32.mrb[0].mxu1  ;;  %v1274_v20 = vpop.f32.mrb[1].mxu0 }
  0xfc   : > { %v1275_v21 = vadd.f32 %v1274_v20, %v1273_v18  ;;  %v1296_v22 = vpop.f32.mrb[1].mxu1  ;;  %v1276_v23 = vpop.f32.mrb[2].mxu0 }
  0xfd   : > { %v1297_v24 = vadd.f32 %v1296_v22, %v1295_v19  ;;  %v1298_v25 = vpop.f32.mrb[2].mxu1  ;;  %v1277_v26 = vpop.f32.mrb[3].mxu0 }
  0xfe   : > { %v1278_v27 = vadd.f32 %v1277_v26, %v1276_v23  ;;  %v1299_v28 = vpop.f32.mrb[3].mxu1 }
  0xff   : > { %v899_v29 = vadd.f32 %v1297_v24, %v1275_v21  ;;  %v1300_v30 = vadd.f32 %v1299_v28, %v1298_v25 }
 0x101   : > { %v902_v31 = vadd.f32 %v1300_v30, %v1278_v27 }
 0x11a   : > { %v1317_v32 = vpop.f32.mrb[4].mxu0 }
 0x11b   : > { %v1318_v33 = vpop.f32.mrb[5].mxu0 }
 0x11c   : > { %v1319_v34 = vadd.f32 %v1318_v33, %v1317_v32  ;;  %v1320_v35 = vpop.f32.mrb[6].mxu0  ;;  %v1339_v36 = vpop.f32.mrb[4].mxu1 }
 0x11d   : > { %v1321_v37 = vpop.f32.mrb[7].mxu0  ;;  %v1340_v40 = vpop.f32.mrb[5].mxu1 }
 0x11e   : > { %v940_v38 = vadd.f32 %v1319_v34, %v899_v29  ;;  %v1322_v39 = vadd.f32 %v1321_v37, %v1320_v35  ;;  %v1341_v41 = vadd.f32 %v1340_v40, %v1339_v36  ;;  %v1342_v42 = vpop.f32.mrb[6].mxu1 }
 0x11f   : > { %v1343_v44 = vpop.f32.mrb[7].mxu1 }
 0x120   : > { %v943_v43 = vadd.f32 %v1322_v39, %v902_v31  ;;  %v1344_v45 = vadd.f32 %v1343_v44, %v1342_v42  ;;  %v981_v46 = vadd.f32 %v1341_v41, %v940_v38 }
 0x122   : > { %v984_v47 = vadd.f32 %v1344_v45, %v943_v43 }
 0x13a   : > { %v1021_v48 = vpop.f32.mrb[8].mxu0 }
 0x13b   : > { %v1022_v49 = vadd.f32 %v1021_v48, %v981_v46  ;;  %v1372_v50 = vpop.f32.mrb[9].mxu0 }
 0x13c   : > { %v1024_v51 = vpop.f32.mrb[10].mxu0 }
 0x13d   : > { %v1025_v52 = vadd.f32 %v1024_v51, %v984_v47  ;;  %v1373_v53 = vpop.f32.mrb[11].mxu0  ;;  %v1045_v54 = vmul.f32 %v1022_v49, %v1022_v49 }
 0x13f   : > { %v1255_v55 = vpack.c.bf16 %v1025_v52, %v1022_v49  ;;  %v1038_v56 = vadd.f32 %v1025_v52, %v1022_v49  ;;  %v1046_v57 = vmul.f32 %v1025_v52, %v1025_v52 }
 0x141   : > { %1256 = vst [vmem:[%s183_s23] sm:$0xff] %v1255_v55   ;;  %v1039_v58 = vrot.slane %v1038_v56, 4  ;;  %v1047_v59 = vadd.f32 %v1046_v57, %v1045_v54 }
 0x143   : > { %v1040_v61 = vadd.f32 %v1039_v58, %v1038_v56  ;;  %v1048_v62 = vrot.slane %v1047_v59, 4 }
 0x145   : > { %v1041_v63 = vrot.slane %v1040_v61, 2  ;;  %v1049_v0 = vadd.f32 %v1048_v62, %v1047_v59 }
 0x147   : > { %v1042_v2 = vadd.f32 %v1041_v63, %v1040_v61  ;;  %v1050_v3 = vrot.slane %v1049_v0, 2 }
 0x149   : > { %v1043_v4 = vrot.slane %v1042_v2, 1  ;;  %v1051_v5 = vadd.f32 %v1050_v3, %v1049_v0 }
 0x14b   : > { %v1044_v7 = vadd.f32 %v1043_v4, %v1042_v2  ;;  %v1052_v8 = vrot.slane %v1051_v5, 1 }
 0x14d   : > { %v1053_v9 = vadd.f32 %v1052_v8, %v1051_v5  ;;  %v1057_v10 = vrot.slane %v1044_v7, %v1056_v6 }
 0x14f   : > { %v1061_v11 = vrot.slane %v1053_v9, %v1056_v6  ;;  %1062 = vst [vmem:[%s189_s26] sm:$0xff] %v1057_v10 }
 0x151   : > { %1063 = vst [vmem:[%s189_s26 + $0x8] sm:$0xff] %v1061_v11 }
 0x152 PF: > { %s14_s12 = sadd.s32 1, %s1476_s12  }
 0x153   : > { %p11_p5 = scmp.ge.s32.totalorder %s14_s12, 4  }
 0x155   :  { %13 = sbr.rel (!%p11_p5) target bundleno = 1 (0x1), region = 70 }

// kernel: _lambda_.25
= control target key start
LH: loop header
LB: loop body
LE: loop exit
PB: predicated region body
PF: predicated region fallthrough
CT: control target
= control target key end

     0   :  { %s536_s12 = smov 0   ;;  %s585_s0 = inlined_call_operand.vmem [shape: bf16[32,128], index: 0, kind: input, shape index: {}]   ;;  %s586_s1 = inlined_call_operand.vmem [shape: bf16[128,128], index: 1, kind: input, shape index: {}]   ;;  %s587_s2 = inlined_call_operand.vmem [shape: bf16[32,128], index: 2, kind: output, shape index: {0}]   ;;  %s588_s3 = inlined_call_operand.vmem [shape: f32[2,8,256], index: 3, kind: output, shape index: {1}]  }
   0x1 LB: > { %s542_s13 = sadd.s32 4294967295, %s512_s12   ;;  %p430_p0 = scmp.ge.s32.totalorder %s512_s12, 1  ;;  %s512_s12 = sphi %s536_s12, %s14_s12  }
   0x2   : > { %p141_p1 = scmp.lt.s32.totalorder %s512_s12, 3 }
   0x4   : > { %p142_p2 = pnand %p430_p0, %p141_p1 }
   0x5   : > { %v497_v0 = vld [vmem:[%s586_s1] sm:$0xff] (!%p142_p2)   ;;  %v514_v1 = vmov (!%p142_p2), 0.0   ;;  %v498_v2 = vld [vmem:[%s586_s1 + $0x8] sm:$0xff] (!%p142_p2)   ;;  %vm515_vm0 = vmmov (!%p142_p2), 0   ;;  %s431_s18 = sshll.u32 (!%p142_p2), %s542_s13, 1  ;;  %v499_v3 = vld [vmem:[%s586_s1 + $0x10] sm:$0xff] (!%p142_p2)   ;;  %v327_v20 = vlaneseq (!%p142_p2) }
   0x6   : > { %145 = sbr.rel (%p142_p2) target bundleno = 271 (0x10f), region = 28  ;;  %467 = vmatprep.subr.bf16.mxu0 (!%p142_p2), %v514_v1  ;;  %483 = vmatprep.mubr.msk.bf16.mxu0 (!%p142_p2), %vm515_vm0, %v514_v1  ;;  %p171_p3 = scmp.lt.s32.totalorder (!%p142_p2), %s431_s18, 3  ;;  %v500_v4 = vld [vmem:[%s586_s1 + $0x18] sm:$0xff] (!%p142_p2)   ;;  %v501_v5 = vld [vmem:[%s586_s1 + $0x20] sm:$0xff] (!%p142_p2)   ;;  %v502_v6 = vld [vmem:[%s586_s1 + $0x28] sm:$0xff] (!%p142_p2)  }
   0x7   : > { %468 = vmatpush3.bf16.msra.mxu0 (!%p142_p2), %v497_v0  ;;  %v503_v7 = vld [vmem:[%s586_s1 + $0x30] sm:$0xff] (!%p142_p2)   ;;  %v504_v8 = vld [vmem:[%s586_s1 + $0x38] sm:$0xff] (!%p142_p2)   ;;  %p182_p4 = scmp.lt.s32.totalorder (!%p142_p2), %s542_s13, 1  ;;  %v328_v25 = vshrl.u32 (!%p142_p2), %v327_v20, 7 }
   0x8   : > { %469 = vmatprep.subr.bf16.mxu0 (!%p142_p2), %v514_v1 }
   0x9   : > { %v329_v30 = vsub.s32 (!%p142_p2), 0, %v328_v25 }
   0xb   : > { %470 = vmatpush3.bf16.msra.mxu0 (!%p142_p2), %v498_v2 }
   0xc   : > { %471 = vmatprep.subr.bf16.mxu0 (!%p142_p2), %v514_v1 }
   0xd   : > { %s590_s18 = smov (!%p171_p3, %s431_s18), 3  ;;  %s592_s13 = smov (!%p182_p4, %s542_s13), 1 }
   0xe   : > { %s432_s21 = sshll.u32 %s590_s18, 2  ;;  %s450_s11 = sshll.u32 %s592_s13, 4 }
   0xf   : > { %s174_s24 = scalar_lea.vmem %s585_s0, %s432_s21  ;;  %472 = vmatpush3.bf16.msra.mxu0 %v499_v3  ;;  %s180_s10 = scalar_lea.vmem %s587_s2, %s432_s21 }
  0x10   : > { %473 = vmatprep.subr.bf16.mxu0 %v514_v1  ;;  %v505_v9 = vld [vmem:[%s174_s24] sm:$0xff]   ;;  %s186_s16 = scalar_lea.vmem %s588_s3, %s450_s11 }
  0x13   : > { %474 = vmatpush3.bf16.msra.mxu0 %v500_v4 }
  0x14   : > { %475 = vmatprep.subr.bf16.mxu0 %v514_v1 }
  0x17   : > { %476 = vmatpush3.bf16.msra.mxu0 %v501_v5 }
  0x18   : > { %477 = vmatprep.subr.bf16.mxu0 %v514_v1 }
  0x1b   : > { %478 = vmatpush3.bf16.msra.mxu0 %v502_v6 }
  0x1c   : > { %479 = vmatprep.subr.bf16.mxu0 %v514_v1 }
  0x1f   : > { %480 = vmatpush3.bf16.msra.mxu0 %v503_v7 }
  0x20   : > { %481 = vmatprep.subr.bf16.mxu0 %v514_v1 }
  0x23   : > { %482 = vmatpush3.bf16.msra.mxu0 %v504_v8 }
  0x26   : > { %484 = vmatmul.mubr.bf16.vlgmr.msra.gmra.mrb[0].mxu0 %v505_v9 }
  0xf9   : > { %v294_v10 = vpop.f32.mrb[0].mxu0 }
  0xfa   : > { %v485_v11 = vpop.f32.mrb[1].mxu0  ;;  %v318_v13 = vmul.f32 %v294_v10, %v294_v10 }
  0xfb   : > { %v297_v12 = vpop.f32.mrb[2].mxu0 }
  0xfc   : > { %v456_v14 = vpack.c.bf16 %v297_v12, %v294_v10  ;;  %v311_v15 = vadd.f32 %v297_v12, %v294_v10  ;;  %v319_v16 = vmul.f32 %v297_v12, %v297_v12  ;;  %v486_v17 = vpop.f32.mrb[3].mxu0 }
  0xfe   : > { %457 = vst [vmem:[%s180_s10] sm:$0xff] %v456_v14   ;;  %v312_v18 = vrot.slane %v311_v15, 4  ;;  %v320_v19 = vadd.f32 %v319_v16, %v318_v13 }
 0x100   : > { %v313_v21 = vadd.f32 %v312_v18, %v311_v15  ;;  %v321_v22 = vrot.slane %v320_v19, 4 }
 0x102   : > { %v314_v23 = vrot.slane %v313_v21, 2  ;;  %v322_v24 = vadd.f32 %v321_v22, %v320_v19 }
 0x104   : > { %v315_v26 = vadd.f32 %v314_v23, %v313_v21  ;;  %v323_v27 = vrot.slane %v322_v24, 2 }
 0x106   : > { %v316_v28 = vrot.slane %v315_v26, 1  ;;  %v324_v29 = vadd.f32 %v323_v27, %v322_v24 }
 0x108   : > { %v317_v31 = vadd.f32 %v316_v28, %v315_v26  ;;  %v325_v32 = vrot.slane %v324_v29, 1 }
 0x10a   : > { %v326_v33 = vadd.f32 %v325_v32, %v324_v29  ;;  %v330_v34 = vrot.slane %v317_v31, %v329_v30 }
 0x10c   : > { %v334_v35 = vrot.slane %v326_v33, %v329_v30  ;;  %335 = vst [vmem:[%s186_s16] sm:$0xff] %v330_v34 }
 0x10e   : > { %336 = vst [vmem:[%s186_s16 + $0x8] sm:$0xff] %v334_v35 }
 0x10f PF: > { %s14_s12 = sadd.s32 1, %s512_s12  }
 0x110   : > { %p11_p5 = scmp.ge.s32.totalorder %s14_s12, 4  }
 0x112   :  { %13 = sbr.rel (!%p11_p5) target bundleno = 1 (0x1), region = 70 }

// kernel: _lambda_.20
= control target key start
LH: loop header
LB: loop body
LE: loop exit
PB: predicated region body
PF: predicated region fallthrough
CT: control target
= control target key end

     0   :  { %s4375_s27 = smov 0   ;;  %s5114_s0 = inlined_call_operand.vmem [shape: bf16[360,128], index: 0, kind: input, shape index: {}, may-alias: {0,1}]   ;;  %s5115_s1 = inlined_call_operand.vmem [shape: bf16[360,128], index: 1, kind: input, shape index: {}, may-alias: {0,1}]   ;;  %s5116_s2 = inlined_call_operand.vmem [shape: f32[360,2], index: 2, kind: input, shape index: {}, may-alias: {2,3}]   ;;  %s5117_s3 = inlined_call_operand.vmem [shape: f32[360,2], index: 3, kind: input, shape index: {}, may-alias: {2,3}]   ;;  %s5118_s4 = inlined_call_operand.vmem [shape: f32[1,128], index: 4, kind: input, shape index: {}]   ;;  %s5119_s5 = inlined_call_operand.vmem [shape: f32[1,128], index: 5, kind: input, shape index: {}]   ;;  %s5120_s6 = inlined_call_operand.vmem [shape: bf16[9,128,128], index: 6, kind: input, shape index: {}]   ;;  %s5121_s7 = inlined_call_operand.vmem [shape: bf16[320,128], index: 7, kind: output, shape index: {0}]   ;;  %s5122_s8 = inlined_call_operand.vmem [shape: f32[2,8,256], index: 8, kind: output, shape index: {1}]  }
   0x1 LB: > { %s4381_s28 = sadd.s32 4294967295, %s4326_s27   ;;  %p3218_p0 = scmp.ge.s32.totalorder %s4326_s27, 1  ;;  %s4326_s27 = sphi %s4375_s27, %s19_s27  }
   0x2   : > { %p331_p1 = scmp.lt.s32.totalorder %s4326_s27, 3 }
   0x4   : > { %p332_p2 = pnand %p3218_p0, %p331_p1 }
   0x5   : > { %s4386_s29 = smul.u32 (!%p332_p2), 20, %s4381_s28  ;;  %v4235_v0 = vld [vmem:[%s5120_s6 + $0xc0] sm:$0xff] (!%p332_p2)   ;;  %v4328_v1 = vmov (!%p332_p2), 0   ;;  %v4236_v2 = vld [vmem:[%s5120_s6 + $0xc8] sm:$0xff] (!%p332_p2)   ;;  %v4238_v4 = vld [vmem:[%s5120_s6 + $0xd0] sm:$0xff] (!%p332_p2)   ;;  %vm2148_vm1 = vcmask (!%p332_p2), 1046528  }
   0x6   : > { %335 = sbr.rel (%p332_p2) target bundleno = 598 (0x256), region = 48  ;;  %4232 = vset.pattern.permute.xlu1 (!%p332_p2), %v4328_v1  ;;  %4231 = vset.pattern.permute.xlu0 (!%p332_p2), %v4328_v1  ;;  %v4237_v3 = vld [vmem:[%s5120_s6 + $0x100] sm:$0xff] (!%p332_p2)   ;;  %v4239_v5 = vld [vmem:[%s5120_s6 + $0x108] sm:$0xff] (!%p332_p2)   ;;  %v4241_v6 = vld [vmem:[%s5120_s6 + $0x110] sm:$0xff] (!%p332_p2)   ;;  %vm1430_vm0 = vsmask.f32 (!%p332_p2), 7424 }
   0x7   : > { %p402_p3 = scmp.lt.s32.totalorder (!%p332_p2), %s4386_s29, 44  ;;  %3721 = vmatprep.subr.bf16.mxu1 (!%p332_p2), %v4235_v0  ;;  %3865 = vmatprep.subr.bf16.mxu0 (!%p332_p2), %v4237_v3  ;;  %v4240_v9 = vld [vmem:[%s5120_s6 + $0xd8] sm:$0xff] (!%p332_p2)   ;;  %v4242_v12 = vld [vmem:[%s5120_s6 + $0xe0] sm:$0xff] (!%p332_p2)   ;;  %v4244_v18 = vld [vmem:[%s5120_s6 + $0xe8] sm:$0xff] (!%p332_p2)   ;;  %p446_p5 = scmp.lt.s32.totalorder (!%p332_p2), %s4386_s29, 39 }
   0x8   : > { %3722 = vmatpush3.bf16.msra.mxu1 (!%p332_p2), %v4235_v0  ;;  %3866 = vmatpush3.bf16.msra.mxu0 (!%p332_p2), %v4237_v3  ;;  %v4243_v16 = vld [vmem:[%s5120_s6 + $0x118] sm:$0xff] (!%p332_p2)   ;;  %v4247_v21 = vld [vmem:[%s5120_s6 + $0x120] sm:$0xff] (!%p332_p2)   ;;  %v4248_v22 = vld [vmem:[%s5120_s6 + $0xf0] sm:$0xff] (!%p332_p2)   ;;  %p451_p6 = scmp.lt.s32.totalorder (!%p332_p2), %s4381_s28, 1 }
   0x9   : > { %3723 = vmatprep.subr.bf16.mxu1 (!%p332_p2), %v4236_v2  ;;  %3867 = vmatprep.subr.bf16.mxu0 (!%p332_p2), %v4239_v5  ;;  %v4249_v24 = vld [vmem:[%s5120_s6 + $0x128] sm:$0xff] (!%p332_p2)   ;;  %v4250_v25 = vld [vmem:[%s5120_s6 + $0xf8] sm:$0xff] (!%p332_p2)   ;;  %v4252_v27 = vld [vmem:[%s5120_s6 + $0x130] sm:$0xff] (!%p332_p2)  }
   0xa   : > { %v4254_v30 = vld [vmem:[%s5120_s6 + $0x138] sm:$0xff] (!%p332_p2)   ;;  %v4470_v31 = vld [vmem:[%s5120_s6] sm:$0xff] (!%p332_p2)  }
   0xb   : > { %v4477_v34 = vld [vmem:[%s5120_s6 + $0x1c0] sm:$0xff] (!%p332_p2)  }
   0xc   : > { %3724 = vmatpush3.bf16.msra.mxu1 (!%p332_p2), %v4236_v2  ;;  %3868 = vmatpush3.bf16.msra.mxu0 (!%p332_p2), %v4239_v5  ;;  %v4497_v45 = vld [vmem:[%s5118_s4] ss:$0 sm:$0xff] (!%p332_p2) }
   0xd   : > { %s4402_s16 = scalar_select %p402_p3, %s4386_s29, 44  ;;  %3725 = vmatprep.subr.bf16.mxu1 %v4238_v4  ;;  %3869 = vmatprep.subr.bf16.mxu0 %v4241_v6  ;;  %v4502_v47 = vld [vmem:[%s5119_s5] ss:$0 sm:$0xff] }
   0xe   : > { %s5126_s29 = smov (!%p446_p5, %s4386_s29), 39 }
   0xf   : > { %s3223_s19 = sshll.u32 %s4402_s16, 3  ;;  %s3219_s10 = sshll.u32 %s4402_s16, 2 }
  0x10   : > { %s4411_s22 = scalar_lea.vmem %s5116_s2, %s3223_s19  ;;  %3726 = vmatpush3.bf16.msra.mxu1 %v4238_v4  ;;  %3870 = vmatpush3.bf16.msra.mxu0 %v4241_v6  ;;  %s4440_s18 = scalar_lea.vmem %s5114_s0, %s3219_s10 }
  0x11   : > { %v587_v7 = vld [vmem:[%s4411_s22 + $0x20] sm:$0xff]  ;;  %v585_v8 = vld [vmem:[%s4411_s22 + $0x10] sm:$0xff]  ;;  %v588_v10 = vld [vmem:[%s4411_s22 + $0x28] sm:$0xff]  ;;  %3727 = vmatprep.subr.bf16.mxu1 %v4240_v9  ;;  %s411_s16 = sadd.s32 1, %s4381_s28  ;;  %3871 = vmatprep.subr.bf16.mxu0 %v4243_v16  ;;  %s3227_s12 = sshll.u32 %s5126_s29, 2 }
  0x12   : > { %719 = vperm.xlu1 %4232, %v587_v7   ;;  %709 = vperm.xlu0 %4231, %v585_v8   ;;  %v586_v11 = vld [vmem:[%s4411_s22 + $0x18] sm:$0xff]  ;;  %v589_v14 = vld [vmem:[%s4411_s22 + $0x30] sm:$0xff]  ;;  %v592_v15 = vld [vmem:[%s4411_s22 + $0x48] sm:$0xff]  ;;  %s3221_s19 = smul.u32 20, %s411_s16  ;;  %s5045_s15 = scalar_lea.vmem %s5121_s7, %s3227_s12 }
  0x13   : > { %v590_v13 = vld [vmem:[%s4411_s22 + $0x38] sm:$0xff]  ;;  %v591_v17 = vld [vmem:[%s4411_s22 + $0x40] sm:$0xff]  ;;  %v593_v20 = vld [vmem:[%s4411_s22 + $0x50] sm:$0xff]  ;;  %s5128_s28 = smov (!%p451_p6, %s4381_s28), 1 }
  0x14   : > { %3728 = vmatpush3.bf16.msra.mxu1 %v4240_v9  ;;  %v594_v19 = vld [vmem:[%s4411_s22 + $0x58] sm:$0xff]  ;;  %3872 = vmatpush3.bf16.msra.mxu0 %v4243_v16  ;;  %v596_v23 = vld [vmem:[%s4411_s22 + $0x68] sm:$0xff]  ;;  %v595_v26 = vld [vmem:[%s4411_s22 + $0x60] sm:$0xff]  ;;  %p414_p4 = scmp.lt.s32.totalorder %s3221_s19, 44  ;;  %s3479_s29 = sshll.u32 %s5128_s28, 4 }
  0x15   : > { %3729 = vmatprep.subr.bf16.mxu1 %v4242_v12  ;;  %3873 = vmatprep.subr.bf16.mxu0 %v4247_v21  ;;  %v598_v28 = vld [vmem:[%s4411_s22 + $0x78] sm:$0xff]  ;;  %v597_v29 = vld [vmem:[%s4411_s22 + $0x70] sm:$0xff]  ;;  %v600_v32 = vld [vmem:[%s4411_s22 + $0x88] sm:$0xff]  ;;  %s455_s20 = scalar_lea.vmem %s5122_s8, %s3479_s29 }
  0x16   : > { %724 = vperm.xlu1 %4232, %v588_v10   ;;  %714 = vperm.xlu0 %4231, %v586_v11   ;;  %s5124_s19 = smov (!%p414_p4, %s3221_s19), 44  ;;  %v599_v33 = vld [vmem:[%s4411_s22 + $0x80] sm:$0xff]  ;;  %v602_v35 = vld [vmem:[%s4411_s22 + $0x98] sm:$0xff]  ;;  %v601_v36 = vld [vmem:[%s4411_s22 + $0x90] sm:$0xff] }
  0x17   : > { %s3226_s17 = sshll.u32 %s5124_s19, 3  ;;  %s3222_s25 = sshll.u32 %s5124_s19, 2  ;;  %v584_v41 = vld [vmem:[%s4411_s22 + $0x8] sm:$0xff]  ;;  %v583_v42 = vld [vmem:[%s4411_s22] sm:$0xff]  ;;  %v4245_v50 = vld [vmem:[%s4440_s18 + $0x10] sm:$0xff]  }
  0x18   : > { %3730 = vmatpush3.bf16.msra.mxu1 %v4242_v12  ;;  %3874 = vmatpush3.bf16.msra.mxu0 %v4247_v21  ;;  %s441_s24 = scalar_lea.vmem %s5117_s3, %s3226_s17  ;;  %s4489_s9 = scalar_lea.vmem %s5115_s1, %s3222_s25  ;;  %v4246_v51 = vld [vmem:[%s4440_s18 + $0x8] sm:$0xff]   ;;  %v4251_v52 = vld [vmem:[%s4440_s18 + $0x18] sm:$0xff]   ;;  %v562_v53 = vunpack.c.l.bf16 %v4245_v50  ;;  %v563_v55 = vunpack.c.h.bf16 %v4245_v50  ;;  %v4253_v59 = vld [vmem:[%s4440_s18 + $0x20] sm:$0xff]  }
  0x19   : > { %3731 = vmatprep.subr.bf16.mxu1 %v4244_v18  ;;  %3875 = vmatprep.subr.bf16.mxu0 %v4249_v24  ;;  %v604_v37 = vld [vmem:[%s441_s24 + $0x8] sm:$0xff]  ;;  %v603_v38 = vld [vmem:[%s441_s24] sm:$0xff]  ;;  %v606_v39 = vld [vmem:[%s441_s24 + $0x18] sm:$0xff]  ;;  %v560_v54 = vunpack.c.l.bf16 %v4246_v51  ;;  %v561_v56 = vunpack.c.h.bf16 %v4246_v51  ;;  %v565_v57 = vunpack.c.h.bf16 %v4251_v52  ;;  %v564_v58 = vunpack.c.l.bf16 %v4251_v52 }
  0x1a   : > { %734 = vperm.xlu1 %4232, %v590_v13   ;;  %729 = vperm.xlu0 %4231, %v589_v14   ;;  %v605_v40 = vld [vmem:[%s441_s24 + $0x10] sm:$0xff]  ;;  %v607_v43 = vld [vmem:[%s441_s24 + $0x20] sm:$0xff]  ;;  %v4255_v60 = vld [vmem:[%s4440_s18 + $0x28] sm:$0xff]   ;;  %v619_v61 = vmul.f32 %v4497_v45, %v562_v53  ;;  %v620_v63 = vmul.f32 %v4497_v45, %v563_v55  ;;  %v567_v3 = vunpack.c.h.bf16 %v4253_v59  ;;  %v566_v4 = vunpack.c.l.bf16 %v4253_v59 }
  0x1b   : > { %v4278_v44 = vld [vmem:[%s4489_s9 + $0x10] ss:$0 sps:$4 sm:$0xff]   ;;  %v617_v62 = vmul.f32 %v4497_v45, %v560_v54  ;;  %v618_v0 = vmul.f32 %v4497_v45, %v561_v56  ;;  %v622_v1 = vmul.f32 %v4497_v45, %v565_v57  ;;  %v621_v2 = vmul.f32 %v4497_v45, %v564_v58  ;;  %v4259_v56 = vld [vmem:[%s5120_s6 + $0x8] sm:$0xff]  }
  0x1c   : > { %3732 = vmatpush3.bf16.msra.mxu1 %v4244_v18  ;;  %3876 = vmatpush3.bf16.msra.mxu0 %v4249_v24  ;;  %v582_v46 = vunpack.c.l.bf16 %v4278_v44  ;;  %v569_v5 = vunpack.c.h.bf16 %v4255_v60  ;;  %v568_v6 = vunpack.c.l.bf16 %v4255_v60  ;;  %v651_v7 = vadd.f32 %v4502_v47, %v619_v61  ;;  %v4258_v12 = vld [vmem:[%s4440_s18 + $0x30] sm:$0xff]   ;;  %v4264_v44 = vld [vmem:[%s4440_s18 + $0x40] sm:$0xff]  }
  0x1d   : > { %3733 = vmatprep.subr.bf16.mxu1 %v4248_v22  ;;  %3877 = vmatprep.subr.bf16.mxu0 %v4252_v27  ;;  %v649_v8 = vadd.f32 %v4502_v47, %v617_v62  ;;  %v652_v9 = vadd.f32 %v4502_v47, %v620_v63  ;;  %v650_v10 = vadd.f32 %v4502_v47, %v618_v0 }
  0x1e   : > { %744 = vperm.xlu1 %4232, %v592_v15   ;;  %739 = vperm.xlu0 %4231, %v591_v17   ;;  %v639_v48 = vmul.f32 %v4497_v45, %v582_v46  ;;  %v654_v11 = vadd.f32 %v4502_v47, %v622_v1  ;;  %v653_v13 = vadd.f32 %v4502_v47, %v621_v2  ;;  %v676_v21 = vmax.f32 %v651_v7, 0.0 }
  0x1f   : > { %v624_v14 = vmul.f32 %v4497_v45, %v567_v3  ;;  %v623_v15 = vmul.f32 %v4497_v45, %v566_v4  ;;  %v626_v18 = vmul.f32 %v4497_v45, %v569_v5  ;;  %v675_v24 = vmax.f32 %v650_v10, 0.0  ;;  %v4266_v3 = vld [vmem:[%s4440_s18 + $0x48] sm:$0xff]  }
  0x20   : > { %3734 = vmatpush3.bf16.msra.mxu1 %v4248_v22  ;;  %3878 = vmatpush3.bf16.msra.mxu0 %v4252_v27  ;;  %v4506_v49 = vadd.f32 %v4502_v47, %v639_v48  ;;  %v674_v22 = vmax.f32 %v649_v8, 0.0  ;;  %v678_v27 = vmax.f32 %v653_v13, 0.0  ;;  %v575_v1 = vunpack.c.h.bf16 %v4264_v44 }
  0x21   : > { %3735 = vmatprep.subr.bf16.mxu1 %v4250_v25  ;;  %3879 = vmatprep.subr.bf16.mxu0 %v4254_v30  ;;  %v574_v2 = vunpack.c.l.bf16 %v4264_v44 }
  0x22   : > { %754 = vperm.xlu1 %4232, %v594_v19   ;;  %749 = vperm.xlu0 %4231, %v593_v20   ;;  %v625_v19 = vmul.f32 %v4497_v45, %v568_v6  ;;  %v4261_v20 = vld [vmem:[%s4440_s18 + $0x38] sm:$0xff]  }
  0x24   : > { %3736 = vmatpush3.bf16.msra.mxu1 %v4250_v25  ;;  %3880 = vmatpush3.bf16.msra.mxu0 %v4254_v30  ;;  %v679_v25 = vmax.f32 %v654_v11, 0.0  ;;  %v570_v30 = vunpack.c.l.bf16 %v4258_v12 }
  0x25   : > { %3757 = vmatprep.subr.bf16.mxu1 %v4470_v31  ;;  %3901 = vmatprep.subr.bf16.mxu0 %v4477_v34 }
  0x26   : > { %764 = vperm.xlu1 %4232, %v596_v23   ;;  %759 = vperm.xlu0 %4231, %v595_v26   ;;  %v677_v23 = vmax.f32 %v652_v9, 0.0  ;;  %v571_v26 = vunpack.c.h.bf16 %v4258_v12  ;;  %v627_v51 = vmul.f32 %v4497_v45, %v570_v30 }
  0x28   : > { %v659_v7 = vadd.f32 %v4502_v47, %v627_v51 }
  0x2a   : > { %774 = vperm.xlu1 %4232, %v598_v28   ;;  %769 = vperm.xlu0 %4231, %v597_v29   ;;  %v656_v28 = vadd.f32 %v4502_v47, %v624_v14  ;;  %v655_v29 = vadd.f32 %v4502_v47, %v623_v15  ;;  %v4262_v14 = vld [vmem:[%s5120_s6 + $0x10] sm:$0xff]   ;;  %v684_v30 = vmax.f32 %v659_v7, 0.0 }
  0x2c   : > { %v681_v50 = vmax.f32 %v656_v28, 0.0  ;;  %v680_v54 = vmax.f32 %v655_v29, 0.0 }
  0x2e   : > { %784 = vperm.xlu1 %4232, %v600_v32   ;;  %779 = vperm.xlu0 %4231, %v599_v33  }
  0x32   : > { %794 = vperm.xlu1 %4232, %v602_v35   ;;  %789 = vperm.xlu0 %4231, %v601_v36   ;;  %v4534_v35 = vadd.f32 %v4502_v47, %v626_v18  ;;  %v4537_v36 = vadd.f32 %v4502_v47, %v625_v19  ;;  %v632_v18 = vmul.f32 %v4497_v45, %v575_v1 }
  0x33   : > { %v631_v19 = vmul.f32 %v4497_v45, %v574_v2 }
  0x34   : > { %v683_v55 = vmax.f32 %v4534_v35, 0.0  ;;  %v682_v61 = vmax.f32 %v4537_v36, 0.0  ;;  %v4265_v35 = vld [vmem:[%s5120_s6 + $0x18] sm:$0xff]   ;;  %v4599_v36 = vld [vmem:[%s4489_s9 + $0x8] sm:$0xff]  }
  0x35   : > { %v4617_v51 = vadd.f32 %v4502_v47, %v631_v19 }
  0x36   : > { %804 = vperm.xlu1 %4232, %v604_v37   ;;  %799 = vperm.xlu0 %4231, %v603_v38   ;;  %v573_v37 = vunpack.c.h.bf16 %v4261_v20  ;;  %v572_v38 = vunpack.c.l.bf16 %v4261_v20  ;;  %v577_v20 = vunpack.c.h.bf16 %v4266_v3 }
  0x38   : > { %v630_v57 = vmul.f32 %v4497_v45, %v573_v37  ;;  %v629_v58 = vmul.f32 %v4497_v45, %v572_v38  ;;  %v634_v44 = vmul.f32 %v4497_v45, %v577_v20  ;;  %v4271_v20 = vld [vmem:[%s5120_s6 + $0x28] sm:$0xff]  }
  0x3a   : > { %814 = vperm.xlu1 %4232, %v606_v39   ;;  %809 = vperm.xlu0 %4231, %v605_v40   ;;  %v4570_v12 = vadd.f32 %v4502_v47, %v630_v57  ;;  %v4573_v13 = vadd.f32 %v4502_v47, %v629_v58  ;;  %v4263_v58 = vld [vmem:[%s5120_s6 + $0x1d0] sm:$0xff]   ;;  %v4634_v2 = vadd.f32 %v4502_v47, %v634_v44 }
  0x3e   : > { %704 = vperm.xlu1 %4232, %v584_v41   ;;  %699 = vperm.xlu0 %4231, %v583_v42  }
  0x42   : > { %819 = vperm.xlu0 %4231, %v607_v43   ;;  %v628_v43 = vmul.f32 %v4497_v45, %v571_v26  ;;  %v4269_v26 = vld [vmem:[%s4489_s9] sm:$0xff]  }
  0x44   : > { %v4558_v0 = vadd.f32 %v4502_v47, %v628_v43  ;;  %v4610_v43 = vadd.f32 %v4502_v47, %v632_v18 }
  0x46   : > { %v685_v29 = vmax.f32 %v4558_v0, 0.0  ;;  %v4268_v0 = vld [vmem:[%s5120_s6 + $0x20] sm:$0xff]  }
  0x91   : > { %v720_v16 = vpop.permute.xlu1 %719  ;;  %v710_v17 = vpop.permute.xlu0 %709 }
  0x92   : > { %v826_v39 = vmul.f32 %v720_v16, %v676_v21  ;;  %v824_v40 = vmul.f32 %v710_v17, %v674_v22  ;;  %v576_v21 = vunpack.c.l.bf16 %v4266_v3  ;;  %v580_v3 = vunpack.c.l.bf16 %v4599_v36 }
  0x95   : > { %v725_v32 = vpop.permute.xlu1 %724  ;;  %v715_v33 = vpop.permute.xlu0 %714 }
  0x96   : > { %v827_v41 = vmul.f32 %v725_v32, %v677_v23  ;;  %v825_v42 = vmul.f32 %v715_v33, %v675_v24  ;;  %v4260_v32 = vld [vmem:[%s5120_s6 + $0x1c8] sm:$0xff]   ;;  %v687_v33 = vmax.f32 %v4570_v12, 0.0 }
  0x98   : > { %v4541_v46 = vpack.c.bf16 %v827_v41, %v826_v39  ;;  %v4543_v48 = vpack.c.bf16 %v825_v42, %v824_v40  ;;  %v686_v40 = vmax.f32 %v4573_v13, 0.0  ;;  %v689_v13 = vmax.f32 %v4610_v43, 0.0 }
  0x99   : > { %v735_v52 = vpop.permute.xlu1 %734  ;;  %v730_v53 = vpop.permute.xlu0 %729 }
  0x9a   : > { %v829_v59 = vmul.f32 %v735_v52, %v679_v25  ;;  %v828_v60 = vmul.f32 %v730_v53, %v678_v27  ;;  %3737 = vmatprep.mubr.bf16.mxu1 %v4543_v48  ;;  %v1439_v62 = vshll.u32 %v4543_v48, 16  ;;  %v1447_v63 = vshll.u32 %v4541_v46, 16 }
  0x9b   : > { %3738 = vmatmul.mubr.bf16.vlgmr.msra.gmra.mrb[0].mxu1 %v4541_v46  ;;  %v1443_v6 = vshrl.u32 %v4543_v48, 16  ;;  %v1451_v11 = vshrl.u32 %v4541_v46, 16  ;;  %v633_v52 = vmul.f32 %v4497_v45, %v576_v21  ;;  %v579_v53 = vunpack.c.h.bf16 %v4269_v26 }
  0x9c   : > { %v4561_v4 = vpack.c.bf16 %v829_v59, %v828_v60  ;;  %v4563_v5 = vrot.slane %v1439_v62, 1  ;;  %3758 = vmatpush3.bf16.msra.mxu1 %v4470_v31  ;;  %v1449_v10 = vrot.slane %v1447_v63, 1  ;;  %v578_v59 = vunpack.c.l.bf16 %v4269_v26 }
  0x9d   : > { %v745_v8 = vpop.permute.xlu1 %744  ;;  %v740_v9 = vpop.permute.xlu0 %739  ;;  %3759 = vmatprep.subr.bf16.mxu1 %v4259_v56  ;;  %v691_v26 = vmax.f32 %v4634_v2, 0.0 }
  0x9e   : > { %v831_v31 = vmul.f32 %v745_v8, %v681_v50  ;;  %v830_v15 = vmul.f32 %v740_v9, %v680_v54  ;;  %3741 = vmatprep.mubr.bf16.mxu1 %v4561_v4  ;;  %v1445_v16 = vor.u32 %v1443_v6, %v4563_v5  ;;  %v1455_v17 = vshll.u32 %v4561_v4, 16 }
  0x9f   : > { %v1453_v24 = vor.u32 %v1451_v11, %v1449_v10  ;;  %v1459_v41 = vshrl.u32 %v4561_v4, 16  ;;  %v665_v9 = vadd.f32 %v4502_v47, %v633_v52  ;;  %v4273_v52 = vld [vmem:[%s5120_s6 + $0x30] sm:$0xff]  }
  0xa0   : > { %v4583_v22 = vpack.c.bf16 %v831_v31, %v830_v15  ;;  %v4586_v23 = vsel %vm1430_vm0, %v1445_v16, %v1449_v10  ;;  %v1457_v25 = vrot.slane %v1455_v17, 1  ;;  %3760 = vmatpush3.bf16.msra.mxu1 %v4259_v56  ;;  %v4275_v10 = vld [vmem:[%s4440_s18] sm:$0xff]   ;;  %v4267_v31 = vld [vmem:[%s5120_s6 + $0x1d8] sm:$0xff]   ;;  %v636_v15 = vmul.f32 %v4497_v45, %v579_v53 }
  0xa1   : > { %v755_v27 = vpop.permute.xlu1 %754  ;;  %v750_v28 = vpop.permute.xlu0 %749  ;;  %3881 = vmatprep.mubr.bf16.mxu0 %v4586_v23  ;;  %3761 = vmatprep.subr.bf16.mxu1 %v4262_v14  ;;  %v635_v16 = vmul.f32 %v4497_v45, %v578_v59 }
  0xa2   : > { %v833_v37 = vmul.f32 %v755_v27, %v683_v55  ;;  %v832_v38 = vmul.f32 %v750_v28, %v682_v61  ;;  %v4602_v39 = vsel %vm1430_vm0, %v1453_v24, %v1457_v25  ;;  %v1463_v42 = vshll.u32 %v4583_v22, 16 }
  0xa3   : > { %3742 = vmatmul.mubr.bf16.gmra.mrb[4].mxu1 %v4583_v22  ;;  %3882 = vmatmul.mubr.bf16.vlgmr.msra.gmra.mrb[0].mxu0 %v4602_v39  ;;  %v1461_v56 = vor.u32 %v1459_v41, %v1457_v25  ;;  %v1467_v62 = vshrl.u32 %v4583_v22, 16  ;;  %v637_v27 = vmul.f32 %v4497_v45, %v580_v3  ;;  %v4270_v41 = vld [vmem:[%s5120_s6 + $0x1e0] sm:$0xff]  }
  0xa4   : > { %v4613_v50 = vpack.c.bf16 %v833_v37, %v832_v38  ;;  %3902 = vmatpush3.bf16.msra.mxu0 %v4477_v34  ;;  %3762 = vmatpush3.bf16.msra.mxu1 %v4262_v14  ;;  %v1465_v57 = vrot.slane %v1463_v42, 1  ;;  %v581_v34 = vunpack.c.h.bf16 %v4599_v36  ;;  %v688_v14 = vmax.f32 %v4617_v51, 0.0 }
  0xa5   : > { %v765_v54 = vpop.permute.xlu1 %764  ;;  %v760_v55 = vpop.permute.xlu0 %759  ;;  %3903 = vmatprep.subr.bf16.mxu0 %v4260_v32  ;;  %3763 = vmatprep.subr.bf16.mxu1 %v4265_v35  ;;  %v668_v38 = vadd.f32 %v4502_v47, %v636_v15 }
  0xa6   : > { %v835_v60 = vmul.f32 %v765_v54, %v685_v29  ;;  %v834_v61 = vmul.f32 %v760_v55, %v684_v30  ;;  %3745 = vmatprep.mubr.bf16.mxu1 %v4613_v50  ;;  %v1471_v63 = vshll.u32 %v4613_v50, 16  ;;  %v4631_v1 = vsel %vm1430_vm0, %v1461_v56, %v1465_v57 }
  0xa7   : > { %3885 = vmatprep.mubr.bf16.mxu0 %v4631_v1  ;;  %v1469_v7 = vor.u32 %v1467_v62, %v1465_v57  ;;  %v638_v21 = vmul.f32 %v4497_v45, %v581_v34  ;;  %v1475_v24 = vshrl.u32 %v4613_v50, 16  ;;  %v690_v29 = vmax.f32 %v665_v9, 0.0 }
  0xa8   : > { %v4637_v6 = vpack.c.bf16 %v835_v60, %v834_v61  ;;  %3904 = vmatpush3.bf16.msra.mxu0 %v4260_v32  ;;  %v1473_v8 = vrot.slane %v1471_v63, 1  ;;  %3764 = vmatpush3.bf16.msra.mxu1 %v4265_v35  ;;  %v559_v30 = vunpack.c.h.bf16 %v4275_v10  ;;  %v558_v32 = vunpack.c.l.bf16 %v4275_v10  ;;  %v4274_v61 = vld [vmem:[%s5120_s6 + $0x1e8] sm:$0xff]  }
  0xa9   : > { %v775_v11 = vpop.permute.xlu1 %774  ;;  %v770_v12 = vpop.permute.xlu0 %769  ;;  %3905 = vmatprep.subr.bf16.mxu0 %v4263_v58  ;;  %3765 = vmatprep.subr.bf16.mxu1 %v4268_v0  ;;  %v670_v54 = vadd.f32 %v4502_v47, %v638_v21  ;;  %v693_v60 = vmax.f32 %v668_v38, 0.0 }
  0xaa   : > { %v837_v17 = vmul.f32 %v775_v11, %v687_v33  ;;  %v836_v18 = vmul.f32 %v770_v12, %v686_v40  ;;  %v4650_v19 = vsel %vm1430_vm0, %v1469_v7, %v1473_v8  ;;  %v1479_v25 = vshll.u32 %v4637_v6, 16 }
  0xab   : > { %3746 = vmatmul.mubr.bf16.gmra.mrb[8].mxu1 %v4637_v6  ;;  %3886 = vmatmul.mubr.bf16.gmra.mrb[4].mxu0 %v4650_v19  ;;  %v1477_v36 = vor.u32 %v1475_v24, %v1473_v8  ;;  %v667_v40 = vadd.f32 %v4502_v47, %v635_v16  ;;  %v1483_v44 = vshrl.u32 %v4637_v6, 16  ;;  %v616_v62 = vmul.f32 %v4497_v45, %v559_v30  ;;  %v4276_v8 = vld [vmem:[%s5120_s6 + $0x38] sm:$0xff]  }
  0xac   : > { %v4662_v28 = vpack.c.bf16 %v837_v17, %v836_v18  ;;  %3906 = vmatpush3.bf16.msra.mxu0 %v4263_v58  ;;  %v1481_v37 = vrot.slane %v1479_v25, 1  ;;  %3766 = vmatpush3.bf16.msra.mxu1 %v4268_v0  ;;  %v669_v58 = vadd.f32 %v4502_v47, %v637_v27  ;;  %v615_v63 = vmul.f32 %v4497_v45, %v558_v32  ;;  %v4277_v18 = vld [vmem:[%s5120_s6 + $0x1f0] sm:$0xff]  }
  0xad   : > { %v785_v33 = vpop.permute.xlu1 %784  ;;  %v780_v35 = vpop.permute.xlu0 %779  ;;  %3907 = vmatprep.subr.bf16.mxu0 %v4267_v31  ;;  %3767 = vmatprep.subr.bf16.mxu1 %v4271_v20  ;;  %v692_v7 = vmax.f32 %v667_v40, 0.0  ;;  %v695_v11 = vmax.f32 %v670_v54, 0.0  ;;  %v648_v16 = vadd.f32 %v4502_v47, %v616_v62 }
  0xae   : > { %v839_v42 = vmul.f32 %v785_v33, %v689_v13  ;;  %v838_v43 = vmul.f32 %v780_v35, %v688_v14  ;;  %3749 = vmatprep.mubr.bf16.mxu1 %v4662_v28  ;;  %v1487_v51 = vshll.u32 %v4662_v28, 16  ;;  %v4676_v53 = vsel %vm1430_vm0, %v1477_v36, %v1481_v37  ;;  %v4279_v36 = vld [vmem:[%s5120_s6 + $0x1f8] sm:$0xff]  }
  0xaf   : > { %3889 = vmatprep.mubr.bf16.mxu0 %v4676_v53  ;;  %v1485_v56 = vor.u32 %v1483_v44, %v1481_v37  ;;  %v1491_v9 = vshrl.u32 %v4662_v28, 16  ;;  %v694_v12 = vmax.f32 %v669_v58, 0.0  ;;  %v647_v17 = vadd.f32 %v4502_v47, %v615_v63  ;;  %v4280_v58 = vld [vmem:[%s5120_s6 + $0x80] sm:$0xff]  }
  0xb0   : > { %v4679_v55 = vpack.c.bf16 %v839_v42, %v838_v43  ;;  %3908 = vmatpush3.bf16.msra.mxu0 %v4267_v31  ;;  %v1489_v57 = vrot.slane %v1487_v51, 1  ;;  %3768 = vmatpush3.bf16.msra.mxu1 %v4271_v20  ;;  %v673_v35 = vmax.f32 %v648_v16, 0.0 }
  0xb1   : > { %v795_v59 = vpop.permute.xlu1 %794  ;;  %v790_v34 = vpop.permute.xlu0 %789  ;;  %3909 = vmatprep.subr.bf16.mxu0 %v4270_v41  ;;  %3769 = vmatprep.subr.bf16.mxu1 %v4273_v52 }
  0xb2   : > { %v841_v0 = vmul.f32 %v795_v59, %v691_v26  ;;  %v840_v2 = vmul.f32 %v790_v34, %v690_v29  ;;  %v4689_v3 = vsel %vm1430_vm0, %v1485_v56, %v1489_v57  ;;  %v1495_v10 = vshll.u32 %v4679_v55, 16  ;;  %v4281_v26 = vld [vmem:[%s5120_s6 + $0x180] sm:$0xff]  }
  0xb3   : > { %3750 = vmatmul.mubr.bf16.gmra.mrb[12].mxu1 %v4679_v55  ;;  %3890 = vmatmul.mubr.bf16.gmra.mrb[8].mxu0 %v4689_v3  ;;  %v1493_v31 = vor.u32 %v1491_v9, %v1489_v57  ;;  %v1499_v24 = vshrl.u32 %v4679_v55, 16  ;;  %v696_v57 = vmax.f32 %v4506_v49, 0.0  ;;  %v4282_v9 = vld [vmem:[%s5120_s6 + $0x188] sm:$0xff]  }
  0xb4   : > { %v4698_v45 = vpack.c.bf16 %v841_v0, %v840_v2  ;;  %3910 = vmatpush3.bf16.msra.mxu0 %v4270_v41  ;;  %v1497_v15 = vrot.slane %v1495_v10, 1  ;;  %3770 = vmatpush3.bf16.msra.mxu1 %v4273_v52  ;;  %v672_v41 = vmax.f32 %v647_v17, 0.0 }
  0xb5   : > { %v805_v13 = vpop.permute.xlu1 %804  ;;  %v800_v14 = vpop.permute.xlu0 %799  ;;  %3911 = vmatprep.subr.bf16.mxu0 %v4274_v61  ;;  %3771 = vmatprep.subr.bf16.mxu1 %v4276_v8 }
  0xb6   : > { %v843_v20 = vmul.f32 %v805_v13, %v693_v60  ;;  %v842_v21 = vmul.f32 %v800_v14, %v692_v7  ;;  %3753 = vmatprep.mubr.bf16.mxu1 %v4698_v45  ;;  %v1503_v25 = vshll.u32 %v4698_v45, 16  ;;  %v4712_v27 = vsel %vm1430_vm0, %v1493_v31, %v1497_v15 }
  0xb7   : > { %3893 = vmatprep.mubr.bf16.mxu0 %v4712_v27  ;;  %v1501_v29 = vor.u32 %v1499_v24, %v1497_v15  ;;  %v1507_v42 = vshrl.u32 %v4698_v45, 16 }
  0xb8   : > { %v4714_v47 = vpack.c.bf16 %v843_v20, %v842_v21  ;;  %v1505_v30 = vrot.slane %v1503_v25, 1  ;;  %3912 = vmatpush3.bf16.msra.mxu0 %v4274_v61  ;;  %3772 = vmatpush3.bf16.msra.mxu1 %v4276_v8 }
  0xb9   : > { %v815_v32 = vpop.permute.xlu1 %814  ;;  %v810_v33 = vpop.permute.xlu0 %809  ;;  %3913 = vmatprep.subr.bf16.mxu0 %v4277_v18  ;;  %3793 = vmatprep.subr.bf16.mxu1 %v4281_v26 }
  0xba   : > { %v845_v37 = vmul.f32 %v815_v32, %v695_v11  ;;  %v844_v38 = vmul.f32 %v810_v33, %v694_v12  ;;  %v4721_v40 = vsel %vm1430_vm0, %v1501_v29, %v1505_v30  ;;  %v1511_v43 = vshll.u32 %v4714_v47, 16 }
  0xbb   : > { %3754 = vmatmul.mubr.bf16.gmra.mrb[16].mxu1 %v4714_v47  ;;  %3894 = vmatmul.mubr.bf16.gmra.mrb[12].mxu0 %v4721_v40  ;;  %v1509_v54 = vor.u32 %v1507_v42, %v1505_v30  ;;  %v1723_v60 = vshrl.u32 %v4714_v47, 16  ;;  %v2150_v11 = vrot.slane %v4543_v48, 1  ;;  %v4283_v30 = vld [vmem:[%s5120_s6 + $0x88] sm:$0xff]   ;;  %v4289_v42 = vld [vmem:[%s5120_s6 + $0xa0] sm:$0xff]  }
  0xbc   : > { %v4727_v44 = vpack.c.bf16 %v845_v37, %v844_v38  ;;  %3914 = vmatpush3.bf16.msra.mxu0 %v4277_v18  ;;  %v1513_v56 = vrot.slane %v1511_v43, 1  ;;  %v4284_v18 = vld [vmem:[%s5120_s6 + $0x190] sm:$0xff]   ;;  %v4287_v37 = vld [vmem:[%s5120_s6 + $0x98] sm:$0xff]   ;;  %v4290_v38 = vld [vmem:[%s5120_s6 + $0x1a8] sm:$0xff]  }
  0xbd   : > { %v705_v51 = vpop.permute.xlu1 %704  ;;  %v700_v52 = vpop.permute.xlu0 %699  ;;  %3915 = vmatprep.subr.bf16.mxu0 %v4279_v36  ;;  %v2866_v43 = vld [vmem:[%s4411_s22 + $0x8] sm:$0xff] }
  0xbe   : > { %v823_v59 = vmul.f32 %v705_v51, %v673_v35  ;;  %v822_v34 = vmul.f32 %v700_v52, %v672_v41  ;;  %v1727_v61 = vshll.u32 %v4727_v44, 16  ;;  %v4736_v62 = vsel %vm1430_vm0, %v1509_v54, %v1513_v56  ;;  %v4286_v35 = vld [vmem:[%s5120_s6 + $0x198] sm:$0xff]   ;;  %v2865_v41 = vld [vmem:[%s4411_s22] sm:$0xff]  ;;  %v4291_v52 = vld [vmem:[%s5120_s6 + $0x1b0] sm:$0xff]  }
  0xbf   : > { %3897 = vmatprep.mubr.bf16.mxu0 %v4736_v62  ;;  %v1725_v0 = vor.u32 %v1723_v60, %v1513_v56  ;;  %v1930_v20 = vshrl.u32 %v4727_v44, 16  ;;  %v2379_v21 = vrot.slane %v4727_v44, 1  ;;  %v4329_v51 = vmov 1   ;;  %v4292_v54 = vld [vmem:[%s5120_s6 + $0xa8] sm:$0xff]   ;;  %v4293_v56 = vld [vmem:[%s5120_s6 + $0x1b8] sm:$0xff]  }
  0xc0   : > { %v847_v63 = vpack.c.bf16 %v823_v59, %v822_v34  ;;  %v1729_v2 = vrot.slane %v1727_v61, 1  ;;  %3916 = vmatpush3.bf16.msra.mxu0 %v4279_v36  ;;  %v4288_v36 = vld [vmem:[%s5120_s6 + $0x1a0] sm:$0xff]   ;;  %4233 = vset.pattern.permute.xlu1 %v4329_v51  ;;  %v4294_v59 = vld [vmem:[%s5120_s6 + $0xb0] sm:$0xff]   ;;  %v4295_v60 = vld [vmem:[%s5120_s6 + $0xb8] sm:$0xff]  }
  0xc1   : > { %v820_v49 = vpop.permute.xlu0 %819  ;;  %3937 = vmatprep.subr.bf16.mxu0 %v4280_v58  ;;  %2887 = vperm.xlu1 %4233, %v2865_v41   ;;  %v4297_v34 = vld [vmem:[%s5120_s6 + $0x40] sm:$0xff]   ;;  %v2868_v61 = vld [vmem:[%s4411_s22 + $0x18] sm:$0xff] }
  0xc2   : > { %v846_v7 = vmul.f32 %v820_v49, %v696_v57  ;;  %3773 = vmatprep.mubr.bf16.mxu1 %v847_v63  ;;  %v4740_v8 = vsel %vm1430_vm0, %v1725_v0, %v1729_v2  ;;  %v2149_v10 = vrot.slane %v847_v63, 1  ;;  %v1434_v12 = vshll.u32 %v847_v63, 16  ;;  %4234 = vset.pattern.permute.xlu0 %v4329_v51  ;;  %v2867_v57 = vld [vmem:[%s4411_s22 + $0x10] sm:$0xff]  ;;  %v4296_v0 = vld [vmem:[%s5120_s6 + $0x140] sm:$0xff]   ;;  %v4298_v49 = vld [vmem:[%s5120_s6 + $0x48] sm:$0xff]  }
  0xc3   : > { %3774 = vmatmul.mubr.bf16.vlgmr.msra.gmra.mrb[0].mxu1 %v4543_v48  ;;  %3898 = vmatmul.mubr.bf16.gmra.mrb[16].mxu0 %v4740_v8  ;;  %v1432_v31 = vshrl.u32 %v847_v63, 16  ;;  %v1932_v29 = vor.u32 %v1930_v20, %v1729_v2  ;;  %v2871_v63 = vld [vmem:[%s4411_s22 + $0x30] sm:$0xff]  ;;  %v2870_v2 = vld [vmem:[%s4411_s22 + $0x28] sm:$0xff]  ;;  %v4309_v41 = vld [vmem:[%s5120_s6 + $0x78] sm:$0xff]   ;;  %v2164_v51 = vrot.slane %v4679_v55, 1 }
  0xc4   : > { %v859_v13 = vpack.c.bf16 %v846_v7, %v846_v7  ;;  %3777 = vmatprep.mubr.bf16.mxu1 %v4541_v46  ;;  %3917 = vmatprep.mubr.bf16.mxu0 %v4602_v39  ;;  %v4753_v14 = vsel %vm2148_vm1, %v2149_v10, %v2150_v11  ;;  %v1436_v15 = vrot.slane %v1434_v12, 1  ;;  %v2873_v7 = vld [vmem:[%s4411_s22 + $0x40] sm:$0xff]  ;;  %v4300_v10 = vld [vmem:[%s5120_s6 + $0x50] sm:$0xff]   ;;  %v2878_v20 = vld [vmem:[%s4411_s22 + $0x68] sm:$0xff] }
  0xc5   : > { %3794 = vmatpush3.bf16.msra.mxu1 %v4281_v26  ;;  %2892 = vperm.xlu0 %4234, %v2866_v43   ;;  %v2875_v12 = vld [vmem:[%s4411_s22 + $0x50] sm:$0xff]  ;;  %v2881_v43 = vld [vmem:[%s4411_s22 + $0x80] sm:$0xff] }
  0xc6   : > { %v1934_v16 = vshll.u32 %v859_v13, 16  ;;  %v2581_v17 = vrot.slane %v859_v13, 1  ;;  %3795 = vmatprep.subr.bf16.mxu1 %v4282_v9  ;;  %v1437_v24 = vor.u32 %v1436_v15, %v1432_v31  ;;  %2897 = vperm.xlu1 %4233, %v2867_v57   ;;  %v2874_v13 = vld [vmem:[%s4411_s22 + $0x48] sm:$0xff]  ;;  %v2154_v31 = vrot.slane %v4561_v4, 1  ;;  %v2876_v15 = vld [vmem:[%s4411_s22 + $0x58] sm:$0xff] }
  0xc7   : > { %v4311_v57 = vld [vmem:[%s5120_s6 + $0x178] sm:$0xff]  }
  0xc8   : > { %v1936_v25 = vrot.slane %v1934_v16, 1  ;;  %v4763_v26 = vsel %vm2148_vm1, %v2379_v21, %v2581_v17  ;;  %v4770_v32 = vsel %vm1430_vm0, %v1437_v24, %v4563_v5  ;;  %v4285_v5 = vld [vmem:[%s5120_s6 + $0x90] sm:$0xff]   ;;  %v2156_v17 = vrot.slane %v4583_v22, 1  ;;  %v4304_v24 = vld [vmem:[%s5120_s6 + $0x60] sm:$0xff]  }
  0xc9   : > { %3796 = vmatpush3.bf16.msra.mxu1 %v4282_v9  ;;  %v2152_v9 = vrot.slane %v4541_v46, 1  ;;  %v4301_v16 = vld [vmem:[%s5120_s6 + $0x150] sm:$0xff]  }
  0xca   : > { %3797 = vmatprep.subr.bf16.mxu1 %v4284_v18  ;;  %v4773_v33 = vsel %vm1430_vm0, %v1932_v29, %v1936_v25  ;;  %2902 = vperm.xlu1 %4233, %v2868_v61   ;;  %v4883_v25 = vsel %vm2148_vm1, %v2154_v31, %v2156_v17  ;;  %v4306_v29 = vld [vmem:[%s5120_s6 + $0x68] sm:$0xff]   ;;  %v4314_v61 = vld [vmem:[%s5120_s6 + $0x210] sm:$0xff]  }
  0xcb   : > { %3778 = vmatmul.mubr.bf16.gmra.mrb[4].mxu1 %v4561_v4  ;;  %3918 = vmatmul.mubr.bf16.vlgmr.msra.gmra.mrb[0].mxu0 %v4631_v1  ;;  %v4869_v48 = vsel %vm2148_vm1, %v2152_v9, %v2154_v31 }
  0xcc   : > { %3938 = vmatpush3.bf16.msra.mxu0 %v4280_v58  ;;  %3781 = vmatprep.mubr.bf16.mxu1 %v4583_v22  ;;  %v2869_v58 = vld [vmem:[%s4411_s22 + $0x20] sm:$0xff] }
  0xcd   : > { %3921 = vmatprep.mubr.bf16.mxu0 %v4650_v19  ;;  %3939 = vmatprep.subr.bf16.mxu0 %v4283_v30 }
  0xce   : > { %3798 = vmatpush3.bf16.msra.mxu1 %v4284_v18  ;;  %2907 = vperm.xlu0 %4234, %v2869_v58   ;;  %v2158_v18 = vrot.slane %v4613_v50, 1  ;;  %v2884_v58 = vld [vmem:[%s4411_s22 + $0x98] sm:$0xff] }
  0xcf   : > { %3799 = vmatprep.subr.bf16.mxu1 %v4286_v35  ;;  %2912 = vperm.xlu1 %4233, %v2870_v2  }
  0xd0   : > { %3940 = vmatpush3.bf16.msra.mxu0 %v4283_v30  ;;  %v2880_v30 = vld [vmem:[%s4411_s22 + $0x78] sm:$0xff] }
  0xd1   : > { %3941 = vmatprep.subr.bf16.mxu0 %v4285_v5 }
  0xd2   : > { %3800 = vmatpush3.bf16.msra.mxu1 %v4286_v35  ;;  %2917 = vperm.xlu0 %4234, %v2871_v63   ;;  %v2160_v35 = vrot.slane %v4637_v6, 1 }
  0xd3   : > { %3782 = vmatmul.mubr.bf16.gmra.mrb[8].mxu1 %v4613_v50  ;;  %3922 = vmatmul.mubr.bf16.gmra.mrb[4].mxu0 %v4676_v53 }
  0xd4   : > { %3785 = vmatprep.mubr.bf16.mxu1 %v4637_v6  ;;  %3925 = vmatprep.mubr.bf16.mxu0 %v4689_v3 }
  0xd5   : > { %3942 = vmatpush3.bf16.msra.mxu0 %v4285_v5  ;;  %3801 = vmatprep.subr.bf16.mxu1 %v4288_v36  ;;  %v4305_v5 = vld [vmem:[%s5120_s6 + $0x160] sm:$0xff]  }
  0xd6   : > { %3943 = vmatprep.subr.bf16.mxu0 %v4287_v37  ;;  %3802 = vmatpush3.bf16.msra.mxu1 %v4288_v36  ;;  %v2162_v36 = vrot.slane %v4662_v28, 1 }
  0xd7   : > { %3803 = vmatprep.subr.bf16.mxu1 %v4290_v38  ;;  %2927 = vperm.xlu0 %4234, %v2873_v7  }
  0xd9   : > { %3944 = vmatpush3.bf16.msra.mxu0 %v4287_v37  ;;  %v4307_v37 = vld [vmem:[%s5120_s6 + $0x70] sm:$0xff]  }
  0xda   : > { %3945 = vmatprep.subr.bf16.mxu0 %v4289_v42  ;;  %3804 = vmatpush3.bf16.msra.mxu1 %v4290_v38  ;;  %v4909_v38 = vsel %vm2148_vm1, %v2158_v18, %v2160_v35 }
  0xdb   : > { %3786 = vmatmul.mubr.bf16.gmra.mrb[12].mxu1 %v4662_v28  ;;  %3926 = vmatmul.mubr.bf16.gmra.mrb[8].mxu0 %v4712_v27 }
  0xdc   : > { %3789 = vmatprep.mubr.bf16.mxu1 %v4679_v55  ;;  %3929 = vmatprep.mubr.bf16.mxu0 %v4721_v40 }
  0xdd   : > { %3946 = vmatpush3.bf16.msra.mxu0 %v4289_v42  ;;  %3805 = vmatprep.subr.bf16.mxu1 %v4291_v52  ;;  %v2882_v42 = vld [vmem:[%s4411_s22 + $0x88] sm:$0xff] }
  0xde   : > { %3947 = vmatprep.subr.bf16.mxu0 %v4292_v54  ;;  %3806 = vmatpush3.bf16.msra.mxu1 %v4291_v52  ;;  %v4310_v52 = vld [vmem:[%s5120_s6 + $0x170] sm:$0xff]  }
  0xdf   : > { %3807 = vmatprep.subr.bf16.mxu1 %v4293_v56  ;;  %2937 = vperm.xlu0 %4234, %v2875_v12  }
  0xe1   : > { %3948 = vmatpush3.bf16.msra.mxu0 %v4292_v54  ;;  %v2166_v54 = vrot.slane %v4698_v45, 1 }
  0xe2   : > { %3808 = vmatpush3.bf16.msra.mxu1 %v4293_v56  ;;  %3949 = vmatprep.subr.bf16.mxu0 %v4294_v59  ;;  %v4312_v56 = vld [vmem:[%s5120_s6 + $0x200] sm:$0xff]  }
  0xe3   : > { %3790 = vmatmul.mubr.bf16.gmra.mrb[16].mxu1 %v4698_v45  ;;  %3930 = vmatmul.mubr.bf16.gmra.mrb[12].mxu0 %v4736_v62 }
  0xe4   : > { %3809 = vmatprep.mubr.bf16.mxu1 %v4541_v46  ;;  %3933 = vmatprep.mubr.bf16.mxu0 %v4740_v8  ;;  %v2872_v8 = vld [vmem:[%s4411_s22 + $0x38] sm:$0xff]  ;;  %v4859_v46 = vsel %vm2148_vm1, %v2150_v11, %v2152_v9  ;;  %v2877_v11 = vld [vmem:[%s4411_s22 + $0x60] sm:$0xff] }
  0xe5   : > { %3950 = vmatpush3.bf16.msra.mxu0 %v4294_v59  ;;  %3829 = vmatprep.subr.bf16.mxu1 %v4297_v34  ;;  %v2883_v59 = vld [vmem:[%s4411_s22 + $0x90] sm:$0xff] }
  0xe6   : > { %3951 = vmatprep.subr.bf16.mxu0 %v4295_v60  ;;  %2922 = vperm.xlu1 %4233, %v2872_v8  }
  0xe7   : > { %2947 = vperm.xlu0 %4234, %v2877_v11  }
  0xe9   : > { %3952 = vmatpush3.bf16.msra.mxu0 %v4295_v60 }
  0xea   : > { %3973 = vmatprep.subr.bf16.mxu0 %v4296_v0  ;;  %2932 = vperm.xlu1 %4233, %v2874_v13  }
  0xeb   : > { %3810 = vmatmul.mubr.bf16.vlgmr.msra.gmra.mrb[0].mxu1 %v4561_v4  ;;  %3934 = vmatmul.mubr.bf16.gmra.mrb[16].mxu0 %v4773_v33  ;;  %v4302_v4 = vld [vmem:[%s5120_s6 + $0x58] sm:$0xff]   ;;  %v2879_v33 = vld [vmem:[%s4411_s22 + $0x70] sm:$0xff] }
  0xec   : > { %3813 = vmatprep.mubr.bf16.mxu1 %v4583_v22  ;;  %3953 = vmatprep.mubr.bf16.mxu0 %v4753_v14  ;;  %v4299_v14 = vld [vmem:[%s5120_s6 + $0x148] sm:$0xff]   ;;  %v4303_v22 = vld [vmem:[%s5120_s6 + $0x158] sm:$0xff]  }
  0xed   : > { %3830 = vmatpush3.bf16.msra.mxu1 %v4297_v34  ;;  %2957 = vperm.xlu0 %4234, %v2879_v33   ;;  %v2168_v34 = vrot.slane %v4714_v47, 1 }
  0xee   : > { %3831 = vmatprep.subr.bf16.mxu1 %v4298_v49  ;;  %2942 = vperm.xlu1 %4233, %v2876_v15  }
  0xef   : > { %v2169_v60 = vsel %vm2148_vm1, %v2166_v54, %v2168_v34 }
  0xf1   : > { %3832 = vmatpush3.bf16.msra.mxu1 %v4298_v49  ;;  %2967 = vperm.xlu0 %4234, %v2881_v43  }
  0xf2   : > { %3833 = vmatprep.subr.bf16.mxu1 %v4300_v10  ;;  %2952 = vperm.xlu1 %4233, %v2878_v20  }
  0xf3   : > { %3814 = vmatmul.mubr.bf16.gmra.mrb[4].mxu1 %v4613_v50  ;;  %3954 = vmatmul.mubr.bf16.vlgmr.msra.gmra.mrb[0].mxu0 %v4859_v46  ;;  %v4891_v50 = vsel %vm2148_vm1, %v2156_v17, %v2158_v18 }
  0xf4   : > { %3974 = vmatpush3.bf16.msra.mxu0 %v4296_v0  ;;  %3817 = vmatprep.mubr.bf16.mxu1 %v4637_v6  ;;  %v4308_v6 = vld [vmem:[%s5120_s6 + $0x168] sm:$0xff]  }
  0xf5   : > { %3957 = vmatprep.mubr.bf16.mxu0 %v4869_v48  ;;  %3975 = vmatprep.subr.bf16.mxu0 %v4299_v14 }
  0xf6   : > { %3834 = vmatpush3.bf16.msra.mxu1 %v4300_v10  ;;  %2962 = vperm.xlu1 %4233, %v2880_v30  }
  0xf7   : > { %3835 = vmatprep.subr.bf16.mxu1 %v4302_v4  ;;  %2977 = vperm.xlu0 %4234, %v2883_v59  }
  0xf8   : > { %3976 = vmatpush3.bf16.msra.mxu0 %v4299_v14 }
  0xf9   : > { %3977 = vmatprep.subr.bf16.mxu0 %v4301_v16 }
  0xfa   : > { %3836 = vmatpush3.bf16.msra.mxu1 %v4302_v4  ;;  %2972 = vperm.xlu1 %4233, %v2882_v42  }
  0xfb   : > { %3818 = vmatmul.mubr.bf16.gmra.mrb[8].mxu1 %v4662_v28  ;;  %3958 = vmatmul.mubr.bf16.gmra.mrb[4].mxu0 %v4883_v25  ;;  %v4917_v28 = vsel %vm2148_vm1, %v2160_v35, %v2162_v36 }
  0xfc   : > { %3821 = vmatprep.mubr.bf16.mxu1 %v4679_v55  ;;  %3961 = vmatprep.mubr.bf16.mxu0 %v4891_v50  ;;  %v4935_v55 = vsel %vm2148_vm1, %v2162_v36, %v2164_v51 }
  0xfd   : > { %3978 = vmatpush3.bf16.msra.mxu0 %v4301_v16  ;;  %3837 = vmatprep.subr.bf16.mxu1 %v4304_v24 }
  0xfe   : > { %3979 = vmatprep.subr.bf16.mxu0 %v4303_v22  ;;  %3838 = vmatpush3.bf16.msra.mxu1 %v4304_v24 }
  0xff   : > { %3839 = vmatprep.subr.bf16.mxu1 %v4306_v29  ;;  %2982 = vperm.xlu1 %4233, %v2884_v58  }
 0x101   : > { %3980 = vmatpush3.bf16.msra.mxu0 %v4303_v22 }
 0x102   : > { %3981 = vmatprep.subr.bf16.mxu0 %v4305_v5  ;;  %3840 = vmatpush3.bf16.msra.mxu1 %v4306_v29 }
 0x103   : > { %3822 = vmatmul.mubr.bf16.gmra.mrb[12].mxu1 %v4698_v45  ;;  %3962 = vmatmul.mubr.bf16.gmra.mrb[8].mxu0 %v4909_v38  ;;  %v4943_v45 = vsel %vm2148_vm1, %v2164_v51, %v2166_v54 }
 0x104   : > { %3825 = vmatprep.mubr.bf16.mxu1 %v4714_v47  ;;  %3965 = vmatprep.mubr.bf16.mxu0 %v4917_v28 }
 0x105   : > { %3982 = vmatpush3.bf16.msra.mxu0 %v4305_v5  ;;  %3841 = vmatprep.subr.bf16.mxu1 %v4307_v37 }
 0x106   : > { %3983 = vmatprep.subr.bf16.mxu0 %v4308_v6  ;;  %3842 = vmatpush3.bf16.msra.mxu1 %v4307_v37 }
 0x107   : > { %3843 = vmatprep.subr.bf16.mxu1 %v4309_v41 }
 0x109   : > { %3984 = vmatpush3.bf16.msra.mxu0 %v4308_v6 }
 0x10a   : > { %3844 = vmatpush3.bf16.msra.mxu1 %v4309_v41  ;;  %3985 = vmatprep.subr.bf16.mxu0 %v4310_v52 }
 0x10b   : > { %3826 = vmatmul.mubr.bf16.gmra.mrb[16].mxu1 %v4727_v44  ;;  %3966 = vmatmul.mubr.bf16.gmra.mrb[12].mxu0 %v4935_v55 }
 0x10c   : > { %3845 = vmatprep.mubr.bf16.mxu1 %v4770_v32  ;;  %3969 = vmatprep.mubr.bf16.mxu0 %v4943_v45  ;;  %v4313_v32 = vld [vmem:[%s5120_s6 + $0x208] sm:$0xff]  }
 0x10d   : > { %3986 = vmatpush3.bf16.msra.mxu0 %v4310_v52  ;;  %4045 = vmatprep.subr.bf16.mxu1 %v4312_v56 }
 0x10e   : > { %3987 = vmatprep.subr.bf16.mxu0 %v4311_v57 }
 0x111   : > { %3988 = vmatpush3.bf16.msra.mxu0 %v4311_v57 }
 0x112   : > { %4009 = vmatprep.subr.bf16.mxu0 %v4312_v56 }
 0x113   : > { %3846 = vmatmul.mubr.bf16.vlgmr.msra.gmra.mrb[0].mxu1 %v4586_v23  ;;  %3970 = vmatmul.mubr.bf16.gmra.mrb[16].mxu0 %v2169_v60  ;;  %v4315_v23 = vld [vmem:[%s5120_s6 + $0x218] sm:$0xff]  }
 0x114   : > { %3849 = vmatprep.mubr.bf16.mxu1 %v4602_v39  ;;  %3989 = vmatprep.mubr.bf16.mxu0 %v4859_v46  ;;  %v4316_v39 = vld [vmem:[%s5120_s6 + $0x220] sm:$0xff]  }
 0x115   : > { %4053 = vmatpush3.bf16.msra.mxu1 %v4312_v56 }
 0x116   : > { %4046 = vmatprep.subr.bf16.mxu1 %v4313_v32 }
 0x119   : > { %4054 = vmatpush3.bf16.msra.mxu1 %v4313_v32 }
 0x11a   : > { %4047 = vmatprep.subr.bf16.mxu1 %v4314_v61 }
 0x11b   : > { %3850 = vmatmul.mubr.bf16.gmra.mrb[4].mxu1 %v4631_v1  ;;  %3990 = vmatmul.mubr.bf16.vlgmr.msra.gmra.mrb[0].mxu0 %v4869_v48  ;;  %v4317_v1 = vld [vmem:[%s5120_s6 + $0x228] sm:$0xff]  }
 0x11c   : > { %4010 = vmatpush3.bf16.msra.mxu0 %v4312_v56  ;;  %3853 = vmatprep.mubr.bf16.mxu1 %v4650_v19  ;;  %v4318_v19 = vld [vmem:[%s5120_s6 + $0x230] sm:$0xff]  }
 0x11d   : > { %3993 = vmatprep.mubr.bf16.mxu0 %v4883_v25  ;;  %4011 = vmatprep.subr.bf16.mxu0 %v4313_v32 }
 0x11e   : > { %4055 = vmatpush3.bf16.msra.mxu1 %v4314_v61 }
 0x11f   : > { %4048 = vmatprep.subr.bf16.mxu1 %v4315_v23 }
 0x120   : > { %4012 = vmatpush3.bf16.msra.mxu0 %v4313_v32 }
 0x121   : > { %4013 = vmatprep.subr.bf16.mxu0 %v4314_v61 }
 0x122   : > { %4056 = vmatpush3.bf16.msra.mxu1 %v4315_v23 }
 0x123   : > { %3854 = vmatmul.mubr.bf16.gmra.mrb[8].mxu1 %v4676_v53  ;;  %3994 = vmatmul.mubr.bf16.gmra.mrb[4].mxu0 %v4891_v50  ;;  %v4319_v53 = vld [vmem:[%s5120_s6 + $0x238] sm:$0xff]  }
 0x124   : > { %3857 = vmatprep.mubr.bf16.mxu1 %v4689_v3  ;;  %3997 = vmatprep.mubr.bf16.mxu0 %v4909_v38  ;;  %v2380_v3 = vsel %vm2148_vm1, %v2168_v34, %v2379_v21 }
 0x125   : > { %4014 = vmatpush3.bf16.msra.mxu0 %v4314_v61  ;;  %4049 = vmatprep.subr.bf16.mxu1 %v4316_v39 }
 0x126   : > { %4015 = vmatprep.subr.bf16.mxu0 %v4315_v23  ;;  %4057 = vmatpush3.bf16.msra.mxu1 %v4316_v39 }
 0x127   : > { %4050 = vmatprep.subr.bf16.mxu1 %v4317_v1 }
 0x129   : > { %4016 = vmatpush3.bf16.msra.mxu0 %v4315_v23 }
 0x12a   : > { %4017 = vmatprep.subr.bf16.mxu0 %v4316_v39  ;;  %4058 = vmatpush3.bf16.msra.mxu1 %v4317_v1 }
 0x12b   : > { %3858 = vmatmul.mubr.bf16.gmra.mrb[12].mxu1 %v4712_v27  ;;  %3998 = vmatmul.mubr.bf16.gmra.mrb[8].mxu0 %v4917_v28 }
 0x12c   : > { %3861 = vmatprep.mubr.bf16.mxu1 %v4721_v40  ;;  %4001 = vmatprep.mubr.bf16.mxu0 %v4935_v55 }
 0x12d   : > { %4018 = vmatpush3.bf16.msra.mxu0 %v4316_v39  ;;  %4051 = vmatprep.subr.bf16.mxu1 %v4318_v19 }
 0x12e   : > { %4019 = vmatprep.subr.bf16.mxu0 %v4317_v1  ;;  %4059 = vmatpush3.bf16.msra.mxu1 %v4318_v19 }
 0x12f   : > { %4052 = vmatprep.subr.bf16.mxu1 %v4319_v53 }
 0x131   : > { %4020 = vmatpush3.bf16.msra.mxu0 %v4317_v1 }
 0x132   : > { %4021 = vmatprep.subr.bf16.mxu0 %v4318_v19  ;;  %4060 = vmatpush3.bf16.msra.mxu1 %v4319_v53 }
 0x133   : > { %3862 = vmatmul.mubr.bf16.gmra.mrb[16].mxu1 %v4736_v62  ;;  %4002 = vmatmul.mubr.bf16.gmra.mrb[12].mxu0 %v4943_v45 }
 0x134   : > { %4005 = vmatprep.mubr.bf16.mxu0 %v2169_v60  ;;  %4037 = vmatprep.mubr.bf16.mxu1 %v4943_v45 }
 0x135   : > { %4022 = vmatpush3.bf16.msra.mxu0 %v4318_v19 }
 0x136   : > { %4023 = vmatprep.subr.bf16.mxu0 %v4319_v53 }
 0x139   : > { %4024 = vmatpush3.bf16.msra.mxu0 %v4319_v53 }
 0x13b   : > { %4006 = vmatmul.mubr.bf16.gmra.mrb[16].mxu0 %v2380_v3  ;;  %4038 = vmatmul.mubr.bf16.vlgmr.msra.gmra.mrb[20].mxu1 %v2169_v60 }
 0x13c   : > { %4025 = vmatprep.mubr.bf16.mxu0 %v4869_v48  ;;  %4041 = vmatprep.mubr.bf16.mxu1 %v2380_v3 }
 0x140   : > { %v5026_v9 = vpop.permute.xlu1 %2887 }
 0x143   : > { %4026 = vmatmul.mubr.bf16.vlgmr.msra.gmra.mrb[0].mxu0 %v4883_v25  ;;  %4042 = vmatmul.mubr.bf16.gmra.mrb[24].mxu1 %v4763_v26 }
 0x144   : > { %4029 = vmatprep.mubr.bf16.mxu0 %v4891_v50  ;;  %v5030_v14 = vpop.permute.xlu0 %2892 }
 0x145   : > { %v5028_v31 = vpop.permute.xlu1 %2897 }
 0x149   : > { %v2903_v50 = vpop.permute.xlu1 %2902 }
 0x14b   : > { %4030 = vmatmul.mubr.bf16.gmra.mrb[4].mxu0 %v4909_v38 }
 0x14c   : > { %4033 = vmatprep.mubr.bf16.mxu0 %v4917_v28 }
 0x14d   : > { %v5034_v29 = vpop.permute.xlu0 %2907 }
 0x14e   : > { %v2913_v57 = vpop.permute.xlu1 %2912 }
 0x151   : > { %v2918_v58 = vpop.permute.xlu0 %2917 }
 0x153   : > { %4034 = vmatmul.mubr.bf16.gmra.mrb[8].mxu0 %v4935_v55 }
 0x1e6   : > { %v3847_v27 = vpop.f32.mrb[0].mxu1 }
 0x1e7   : > { %v5004_v47 = vpop.f32.mrb[1].mxu1 }
 0x1e8   : > { %v5006_v40 = vpop.f32.mrb[2].mxu1 }
 0x1e9   : > { %v5008_v44 = vpop.f32.mrb[3].mxu1 }
 0x1ee   : > { %v5010_v62 = vpop.f32.mrb[4].mxu1 }
 0x1ef   : > { %v5012_v21 = vpop.f32.mrb[5].mxu1 }
 0x1f0   : > { %v5014_v26 = vpop.f32.mrb[6].mxu1 }
 0x1f1   : > { %v5016_v63 = vpop.f32.mrb[7].mxu1 }
 0x1f6   : > { %v5018_v0 = vpop.f32.mrb[8].mxu1 }
 0x1f7   : > { %v5020_v2 = vpop.f32.mrb[9].mxu1 }
 0x1f8   : > { %v5022_v49 = vpop.f32.mrb[10].mxu1 }
 0x1f9   : > { %v5024_v7 = vpop.f32.mrb[11].mxu1 }
 0x1fe   : > { %v3859_v8 = vpop.f32.mrb[12].mxu1 }
 0x1ff   : > { %v1655_v10 = vpop.f32.mrb[13].mxu1 }
 0x200   : > { %v3860_v12 = vpop.f32.mrb[14].mxu1 }
 0x201   : > { %v1658_v13 = vpop.f32.mrb[15].mxu1 }
 0x206   : > { %v3863_v46 = vpop.f32.mrb[16].mxu1  ;;  %v4003_v4 = vpop.f32.mrb[12].mxu0 }
 0x207   : > { %v4073_v15 = vadd.f32 %v4003_v4, %v3859_v8  ;;  %v1671_v48 = vpop.f32.mrb[17].mxu1  ;;  %v2512_v11 = vpop.f32.mrb[13].mxu0 }
 0x208   : > { %v4075_v16 = vadd.f32 %v2512_v11, %v1655_v10  ;;  %v3864_v17 = vpop.f32.mrb[18].mxu1  ;;  %v4004_v18 = vpop.f32.mrb[14].mxu0 }
 0x209   : > { %v4077_v20 = vadd.f32 %v4004_v18, %v3860_v12  ;;  %v1674_v24 = vpop.f32.mrb[19].mxu1  ;;  %v2515_v25 = vpop.f32.mrb[15].mxu0 }
 0x20a   : > { %v4079_v22 = vadd.f32 %v2515_v25, %v1658_v13  ;;  %v2923_v13 = vpop.permute.xlu1 %2922 }
 0x20e   : > { %v4007_v30 = vpop.f32.mrb[16].mxu0  ;;  %v4039_v33 = vpop.f32.mrb[20].mxu1 }
 0x20f   : > { %v4081_v35 = vadd.f32 %v4007_v30, %v3863_v46  ;;  %v5036_v5 = vadd.f32 %v4073_v15, %v4039_v33  ;;  %v2528_v36 = vpop.f32.mrb[17].mxu0  ;;  %v2714_v37 = vpop.f32.mrb[21].mxu1 }
 0x210   : > { %v4083_v38 = vadd.f32 %v2528_v36, %v1671_v48  ;;  %v5038_v6 = vadd.f32 %v4075_v16, %v2714_v37  ;;  %v4008_v28 = vpop.f32.mrb[18].mxu0  ;;  %v4040_v41 = vpop.f32.mrb[22].mxu1 }
 0x211   : > { %v4085_v42 = vadd.f32 %v4008_v28, %v3864_v17  ;;  %v5040_v43 = vadd.f32 %v4077_v20, %v4040_v41  ;;  %v2531_v51 = vpop.f32.mrb[19].mxu0  ;;  %v2717_v52 = vpop.f32.mrb[23].mxu1 }
 0x212   : > { %v4087_v54 = vadd.f32 %v2531_v51, %v1674_v24  ;;  %v5047_v56 = vadd.f32 %v4079_v22, %v2717_v52  ;;  %v2928_v15 = vpop.permute.xlu0 %2927  ;;  %v2933_v30 = vpop.permute.xlu1 %2932 }
 0x213   : > { %v3538_v55 = vpack.c.bf16 %v5040_v43, %v5036_v5 }
 0x214   : > { %v3533_v45 = vpack.c.bf16 %v5047_v56, %v5038_v6 }
 0x215   : > { %3556 = vst [vmem:[%s5045_s15 + $0x38] sm:$0xff] %v3538_v55  }
 0x216   : > { %3555 = vst [vmem:[%s5045_s15 + $0x30] sm:$0xff] %v3533_v45   ;;  %v4027_v59 = vpop.f32.mrb[0].mxu0  ;;  %v4043_v34 = vpop.f32.mrb[24].mxu1 }
 0x217   : > { %v4061_v60 = vadd.f32 %v4027_v59, %v3847_v27  ;;  %v5055_v32 = vadd.f32 %v4081_v35, %v4043_v34  ;;  %v2666_v61 = vpop.f32.mrb[1].mxu0  ;;  %v2730_v23 = vpop.f32.mrb[25].mxu1 }
 0x218   : > { %v4062_v39 = vadd.f32 %v2666_v61, %v5004_v47  ;;  %v5058_v1 = vadd.f32 %v4083_v38, %v2730_v23  ;;  %v4028_v19 = vpop.f32.mrb[2].mxu0  ;;  %v4044_v53 = vpop.f32.mrb[26].mxu1 }
 0x219   : > { %v4063_v3 = vadd.f32 %v4028_v19, %v5006_v40  ;;  %v5061_v8 = vadd.f32 %v4085_v42, %v4044_v53  ;;  %v2669_v10 = vpop.f32.mrb[3].mxu0  ;;  %v2733_v12 = vpop.f32.mrb[27].mxu1  ;;  %v2987_v40 = vmul.f32 %v4061_v60, %v5028_v31 }
 0x21a   : > { %v4064_v27 = vadd.f32 %v2669_v10, %v5008_v44  ;;  %v5064_v46 = vadd.f32 %v4087_v54, %v2733_v12  ;;  %v2985_v47 = vmul.f32 %v4062_v39, %v5026_v9  ;;  %v2938_v38 = vpop.permute.xlu0 %2937 }
 0x21b   : > { %v3508_v4 = vpack.c.bf16 %v4063_v3, %v4061_v60  ;;  %v3548_v48 = vpack.c.bf16 %v5061_v8, %v5055_v32  ;;  %v2988_v44 = vmul.f32 %v4063_v3, %v2903_v50  ;;  %v3032_v35 = vmul.f32 %v4061_v60, %v2987_v40  ;;  %v2943_v60 = vpop.permute.xlu1 %2942 }
 0x21c   : > { %v3503_v11 = vpack.c.bf16 %v4064_v27, %v4062_v39  ;;  %v2986_v16 = vmul.f32 %v4064_v27, %v5030_v14  ;;  %v3543_v17 = vpack.c.bf16 %v5064_v46, %v5058_v1  ;;  %v3030_v20 = vmul.f32 %v4062_v39, %v2985_v47 }
 0x21d   : > { %3550 = vst [vmem:[%s5045_s15 + $0x8] sm:$0xff] %v3508_v4   ;;  %3558 = vst [vmem:[%s5045_s15 + $0x48] sm:$0xff] %v3548_v48   ;;  %v3033_v42 = vmul.f32 %v4063_v3, %v2988_v44 }
 0x21e   : > { %v4031_v18 = vpop.f32.mrb[4].mxu0  ;;  %3504 = vst [vmem:[%s5045_s15] sm:$0xff] %v3503_v11   ;;  %v3005_v9 = vadd.f32 %v2986_v16, %v2985_v47  ;;  %v3031_v24 = vmul.f32 %v4064_v27, %v2986_v16  ;;  %3557 = vst [vmem:[%s5045_s15 + $0x40] sm:$0xff] %v3543_v17   ;;  %v2948_v53 = vpop.permute.xlu0 %2947 }
 0x21f   : > { %v4065_v25 = vadd.f32 %v4031_v18, %v5010_v62  ;;  %v2682_v22 = vpop.f32.mrb[5].mxu0  ;;  %v2953_v16 = vpop.permute.xlu1 %2952 }
 0x220   : > { %v4066_v31 = vadd.f32 %v2682_v22, %v5012_v21  ;;  %v4032_v33 = vpop.f32.mrb[6].mxu0  ;;  %v3006_v14 = vadd.f32 %v3005_v9, %v2987_v40  ;;  %v3050_v36 = vadd.f32 %v3031_v24, %v3030_v20 }
 0x221   : > { %v4067_v50 = vadd.f32 %v4032_v33, %v5014_v26  ;;  %v2685_v37 = vpop.f32.mrb[7].mxu0  ;;  %v2991_v45 = vmul.f32 %v4065_v25, %v2918_v58 }
 0x222   : > { %v2989_v28 = vmul.f32 %v4066_v31, %v5034_v29  ;;  %v4068_v41 = vadd.f32 %v2685_v37, %v5016_v63  ;;  %v3051_v62 = vadd.f32 %v3050_v36, %v3032_v35  ;;  %v3007_v51 = vadd.f32 %v3006_v14, %v2988_v44  ;;  %v2958_v24 = vpop.permute.xlu0 %2957 }
 0x223   : > { %v3518_v52 = vpack.c.bf16 %v4067_v50, %v4065_v25  ;;  %v2992_v39 = vmul.f32 %v4067_v50, %v2923_v13  ;;  %v3036_v12 = vmul.f32 %v4065_v25, %v2991_v45  ;;  %v2963_v14 = vpop.permute.xlu1 %2962  ;;  %v2998_v36 = vmul.f32 %v5047_v56, %v2953_v16 }
 0x224   : > { %v3034_v54 = vmul.f32 %v4066_v31, %v2989_v28  ;;  %v3513_v21 = vpack.c.bf16 %v4068_v41, %v4066_v31  ;;  %v2990_v55 = vmul.f32 %v4068_v41, %v2913_v57  ;;  %v3008_v59 = vadd.f32 %v3007_v51, %v2989_v28 }
 0x225   : > { %v3052_v34 = vadd.f32 %v3051_v62, %v3033_v42  ;;  %3552 = vst [vmem:[%s5045_s15 + $0x18] sm:$0xff] %v3518_v52   ;;  %v3037_v13 = vmul.f32 %v4067_v50, %v2992_v39  ;;  %v3000_v51 = vmul.f32 %v5040_v43, %v2963_v14  ;;  %v3043_v52 = vmul.f32 %v5047_v56, %v2998_v36 }
 0x226   : > { %3551 = vst [vmem:[%s5045_s15 + $0x10] sm:$0xff] %v3513_v21   ;;  %v3035_v26 = vmul.f32 %v4068_v41, %v2990_v55  ;;  %v4035_v61 = vpop.f32.mrb[8].mxu0  ;;  %v3009_v29 = vadd.f32 %v3008_v59, %v2990_v55  ;;  %v2999_v41 = vmul.f32 %v5036_v5, %v2958_v24 }
 0x227   : > { %v3053_v23 = vadd.f32 %v3052_v34, %v3034_v54  ;;  %v4069_v63 = vadd.f32 %v4035_v61, %v5018_v0  ;;  %v2698_v19 = vpop.f32.mrb[9].mxu0  ;;  %v2973_v55 = vpop.permute.xlu1 %2972 }
 0x228   : > { %v4070_v3 = vadd.f32 %v2698_v19, %v5020_v2  ;;  %v4036_v10 = vpop.f32.mrb[10].mxu0  ;;  %v3010_v57 = vadd.f32 %v3009_v29, %v2991_v45  ;;  %v3044_v45 = vmul.f32 %v5036_v5, %v2999_v41  ;;  %v3002_v61 = vmul.f32 %v5064_v46, %v2973_v55 }
 0x229   : > { %v3054_v58 = vadd.f32 %v3053_v23, %v3035_v26  ;;  %v4071_v27 = vadd.f32 %v4036_v10, %v5022_v49  ;;  %v2701_v47 = vpop.f32.mrb[11].mxu0  ;;  %v2995_v18 = vmul.f32 %v4069_v63, %v2938_v38  ;;  %v2968_v38 = vpop.permute.xlu0 %2967 }
 0x22a   : > { %v2993_v4 = vmul.f32 %v4070_v3, %v2928_v15  ;;  %v4072_v48 = vadd.f32 %v2701_v47, %v5024_v7  ;;  %v3011_v11 = vadd.f32 %v3010_v57, %v2992_v39  ;;  %v2997_v7 = vmul.f32 %v5038_v6, %v2948_v53 }
 0x22b   : > { %v3055_v40 = vadd.f32 %v3054_v58, %v3036_v12  ;;  %v3528_v0 = vpack.c.bf16 %v4071_v27, %v4069_v63  ;;  %v2996_v22 = vmul.f32 %v4071_v27, %v2943_v60  ;;  %v3040_v31 = vmul.f32 %v4069_v63, %v2995_v18  ;;  %v2983_v53 = vpop.permute.xlu1 %2982 }
 0x22c   : > { %v3038_v17 = vmul.f32 %v4070_v3, %v2993_v4  ;;  %v3523_v44 = vpack.c.bf16 %v4072_v48, %v4070_v3  ;;  %v2994_v2 = vmul.f32 %v4072_v48, %v2933_v30  ;;  %v3012_v20 = vadd.f32 %v3011_v11, %v2993_v4 }
 0x22d   : > { %v3056_v9 = vadd.f32 %v3055_v40, %v3037_v13  ;;  %3554 = vst [vmem:[%s5045_s15 + $0x28] sm:$0xff] %v3528_v0   ;;  %v3041_v50 = vmul.f32 %v4071_v27, %v2996_v22  ;;  %v3042_v28 = vmul.f32 %v5038_v6, %v2997_v7  ;;  %v3001_v59 = vmul.f32 %v5058_v1, %v2968_v38  ;;  %v2978_v26 = vpop.permute.xlu0 %2977 }
 0x22e   : > { %3553 = vst [vmem:[%s5045_s15 + $0x20] sm:$0xff] %v3523_v44   ;;  %v3039_v49 = vmul.f32 %v4072_v48, %v2994_v2  ;;  %v3013_v15 = vadd.f32 %v3012_v20, %v2994_v2  ;;  %v3045_v6 = vmul.f32 %v5040_v43, %v3000_v51  ;;  %v3003_v56 = vmul.f32 %v5055_v32, %v2978_v26 }
 0x22f   : > { %v3057_v25 = vadd.f32 %v3056_v9, %v3038_v17  ;;  %v3046_v29 = vmul.f32 %v5058_v1, %v3001_v59  ;;  %v3004_v5 = vmul.f32 %v5061_v8, %v2983_v53  ;;  %v3047_v3 = vmul.f32 %v5064_v46, %v3002_v61 }
 0x230   : > { %v3014_v33 = vadd.f32 %v3013_v15, %v2995_v18  ;;  %v3048_v43 = vmul.f32 %v5055_v32, %v3003_v56  ;;  %v3075_v13 = vlaneseq }
 0x231   : > { %v3058_v35 = vadd.f32 %v3057_v25, %v3039_v49  ;;  %v3049_v27 = vmul.f32 %v5061_v8, %v3004_v5 }
 0x232   : > { %v3015_v30 = vadd.f32 %v3014_v33, %v2996_v22  ;;  %v3076_v46 = vshrl.u32 %v3075_v13, 7 }
 0x233   : > { %v3059_v37 = vadd.f32 %v3058_v35, %v3040_v31 }
 0x234   : > { %v3016_v42 = vadd.f32 %v3015_v30, %v2997_v7  ;;  %v3077_v18 = vsub.s32 0, %v3076_v46 }
 0x235   : > { %v3060_v62 = vadd.f32 %v3059_v37, %v3041_v50 }
 0x236   : > { %v3017_v54 = vadd.f32 %v3016_v42, %v2998_v36 }
 0x237   : > { %v3061_v21 = vadd.f32 %v3060_v62, %v3042_v28 }
 0x238   : > { %v3018_v34 = vadd.f32 %v3017_v54, %v2999_v41 }
 0x239   : > { %v3062_v60 = vadd.f32 %v3061_v21, %v3043_v52 }
 0x23a   : > { %v3019_v23 = vadd.f32 %v3018_v34, %v3000_v51 }
 0x23b   : > { %v3063_v39 = vadd.f32 %v3062_v60, %v3044_v45 }
 0x23c   : > { %v3020_v63 = vadd.f32 %v3019_v23, %v3001_v59 }
 0x23d   : > { %v3064_v19 = vadd.f32 %v3063_v39, %v3045_v6 }
 0x23e   : > { %v3021_v10 = vadd.f32 %v3020_v63, %v3002_v61 }
 0x23f   : > { %v3065_v12 = vadd.f32 %v3064_v19, %v3046_v29 }
 0x240   : > { %v3022_v57 = vadd.f32 %v3021_v10, %v3003_v56 }
 0x241   : > { %v3066_v58 = vadd.f32 %v3065_v12, %v3047_v3 }
 0x242   : > { %v3023_v47 = vadd.f32 %v3022_v57, %v3004_v5 }
 0x243   : > { %v3067_v1 = vadd.f32 %v3066_v58, %v3048_v43 }
 0x244   : > { %v3024_v4 = vrot.slane %v3023_v47, 4 }
 0x245   : > { %v3068_v48 = vadd.f32 %v3067_v1, %v3049_v27 }
 0x246   : > { %v3025_v40 = vadd.f32 %v3024_v4, %v3023_v47 }
 0x247   : > { %v3069_v11 = vrot.slane %v3068_v48, 4 }
 0x248   : > { %v3026_v0 = vrot.slane %v3025_v40, 2 }
 0x249   : > { %v3070_v16 = vadd.f32 %v3069_v11, %v3068_v48 }
 0x24a   : > { %v3027_v17 = vadd.f32 %v3026_v0, %v3025_v40 }
 0x24b   : > { %v3071_v44 = vrot.slane %v3070_v16, 2 }
 0x24c   : > { %v3028_v32 = vrot.slane %v3027_v17, 1 }
 0x24d   : > { %v3072_v2 = vadd.f32 %v3071_v44, %v3070_v16 }
 0x24e   : > { %v3029_v20 = vadd.f32 %v3028_v32, %v3027_v17 }
 0x24f   : > { %v3073_v8 = vrot.slane %v3072_v2, 1 }
 0x250   : > { %v3078_v24 = vrot.slane %v3029_v20, %v3077_v18 }
 0x251   : > { %v3074_v9 = vadd.f32 %v3073_v8, %v3072_v2 }
 0x252   : > { %3083 = vst [vmem:[%s455_s20] sm:$0xff] %v3078_v24 }
 0x253   : > { %v3082_v49 = vrot.slane %v3074_v9, %v3077_v18 }
 0x255   : > { %3084 = vst [vmem:[%s455_s20 + $0x8] sm:$0xff] %v3082_v49 }
 0x256 PF: > { %s19_s27 = sadd.s32 1, %s4326_s27  }
 0x257   : > { %p16_p7 = scmp.ge.s32.totalorder %s19_s27, 4  }
 0x259   :  { %18 = sbr.rel (!%p16_p7) target bundleno = 1 (0x1), region = 107 }

// kernel: _lambda_.26
= control target key start
LH: loop header
LB: loop body
LE: loop exit
PB: predicated region body
PF: predicated region fallthrough
CT: control target
= control target key end

     0   :  { %s488_s21 = smov 0   ;;  %s520_s0 = inlined_call_operand.vmem [shape: bf16[32,128], index: 0, kind: input, shape index: {}]   ;;  %s521_s1 = inlined_call_operand.vmem [shape: f32[1,128], index: 1, kind: input, shape index: {}]   ;;  %s522_s2 = inlined_call_operand.vmem [shape: f32[1,128], index: 2, kind: input, shape index: {}]   ;;  %s523_s3 = inlined_call_operand.vmem [shape: bf16[32,128], index: 3, kind: input, shape index: {}]   ;;  %s524_s4 = inlined_call_operand.vmem [shape: f32[1,128], index: 4, kind: input, shape index: {}]   ;;  %s525_s5 = inlined_call_operand.vmem [shape: f32[1,128], index: 5, kind: input, shape index: {}]   ;;  %s526_s6 = inlined_call_operand.vmem [shape: bf16[32,128], index: 6, kind: output, shape index: {}]  }
   0x1 LB: > { %s403_s22 = sadd.s32 4294967295, %s451_s21   ;;  %p407_p0 = scmp.ge.s32.totalorder %s451_s21, 1  ;;  %s451_s21 = sphi %s488_s21, %s16_s21  }
   0x2   : > { %p224_p1 = scmp.lt.s32.totalorder %s451_s21, 3 }
   0x4   : > { %p225_p2 = pnand %p407_p0, %p224_p1 }
   0x5   : > { %s408_s23 = sshll.u32 (!%p225_p2), %s403_s22, 1  ;;  %v414_v0 = vld [vmem:[%s521_s1] ss:$0 sm:$0xff] (!%p225_p2) }
   0x6   : > { %228 = sbr.rel (%p225_p2) target bundleno = 31 (0x1f), region = 44  ;;  %p260_p3 = scmp.lt.s32.totalorder (!%p225_p2), %s408_s23, 3  ;;  %v416_v3 = vld [vmem:[%s524_s4] ss:$0 sm:$0xff] (!%p225_p2) }
   0x7   : > { %v415_v8 = vld [vmem:[%s522_s2] ss:$0 sm:$0xff] (!%p225_p2) }
   0x8   : > { %v417_v9 = vld [vmem:[%s525_s5] ss:$0 sm:$0xff] (!%p225_p2) }
   0xd   : > { %s528_s23 = smov (!%p260_p3, %s408_s23), 3 }
   0xe   : > { %s409_s24 = sshll.u32 %s528_s23, 2 }
   0xf   : > { %s263_s27 = scalar_lea.vmem %s520_s0, %s409_s24  ;;  %s269_s30 = scalar_lea.vmem %s523_s3, %s409_s24 }
  0x10   : > { %v425_v1 = vld [vmem:[%s263_s27] sm:$0xff]   ;;  %s275_s17 = scalar_lea.vmem %s526_s6, %s409_s24 }
  0x11   : > { %v429_v2 = vld [vmem:[%s269_s30] sm:$0xff]   ;;  %v426_v4 = vunpack.c.l.bf16 %v425_v1  ;;  %v427_v5 = vunpack.c.h.bf16 %v425_v1 }
  0x12   : > { %v430_v6 = vunpack.c.l.bf16 %v429_v2  ;;  %v431_v7 = vunpack.c.h.bf16 %v429_v2 }
  0x13   : > { %v288_v10 = vmul.f32 %v426_v4, %v414_v0  ;;  %v289_v11 = vmul.f32 %v427_v5, %v414_v0 }
  0x14   : > { %v310_v12 = vmul.f32 %v430_v6, %v416_v3  ;;  %v311_v13 = vmul.f32 %v431_v7, %v416_v3 }
  0x15   : > { %v297_v14 = vadd.f32 %v415_v8, %v288_v10  ;;  %v298_v15 = vadd.f32 %v415_v8, %v289_v11 }
  0x16   : > { %v319_v16 = vadd.f32 %v417_v9, %v310_v12  ;;  %v320_v17 = vadd.f32 %v417_v9, %v311_v13 }
  0x18   : > { %v321_v18 = vadd.f32 %v319_v16, %v297_v14  ;;  %v322_v19 = vadd.f32 %v320_v17, %v298_v15 }
  0x1a   : > { %v323_v20 = vmax.f32 %v321_v18, 0.0  ;;  %v324_v21 = vmax.f32 %v322_v19, 0.0 }
  0x1c   : > { %v435_v22 = vpack.c.bf16 %v324_v21, %v323_v20 }
  0x1e   : > { %436 = vst [vmem:[%s275_s17] sm:$0xff] %v435_v22  }
  0x1f PF: > { %s16_s21 = sadd.s32 1, %s451_s21  }
  0x20   : > { %p13_p4 = scmp.ge.s32.totalorder %s16_s21, 4  }
  0x22   :  { %15 = sbr.rel (!%p13_p4) target bundleno = 1 (0x1), region = 77 }

// kernel: _lambda_.24
= control target key start
LH: loop header
LB: loop body
LE: loop exit
PB: predicated region body
PF: predicated region fallthrough
CT: control target
= control target key end

     0   :  { %s2961_s27 = smov 0   ;;  %s3503_s0 = inlined_call_operand.vmem [shape: bf16[120,128], index: 0, kind: input, shape index: {}, may-alias: {0,1}]   ;;  %s3504_s1 = inlined_call_operand.vmem [shape: bf16[120,128], index: 1, kind: input, shape index: {}, may-alias: {0,1}]   ;;  %s3505_s2 = inlined_call_operand.vmem [shape: f32[120,2], index: 2, kind: input, shape index: {}, may-alias: {2,3}]   ;;  %s3506_s3 = inlined_call_operand.vmem [shape: f32[120,2], index: 3, kind: input, shape index: {}, may-alias: {2,3}]   ;;  %s3507_s4 = inlined_call_operand.vmem [shape: f32[1,128], index: 4, kind: input, shape index: {}]   ;;  %s3508_s5 = inlined_call_operand.vmem [shape: f32[1,128], index: 5, kind: input, shape index: {}]   ;;  %s3509_s6 = inlined_call_operand.vmem [shape: bf16[9,128,128], index: 6, kind: input, shape index: {}]   ;;  %s3510_s7 = inlined_call_operand.vmem [shape: bf16[96,128], index: 7, kind: output, shape index: {0}]   ;;  %s3511_s8 = inlined_call_operand.vmem [shape: f32[2,8,256], index: 8, kind: output, shape index: {1}]  }
   0x1 LB: > { %s2967_s28 = sadd.s32 4294967295, %s2910_s27   ;;  %p2095_p0 = scmp.ge.s32.totalorder %s2910_s27, 1  ;;  %s2910_s27 = sphi %s2961_s27, %s19_s27  }
   0x2   : > { %p331_p1 = scmp.lt.s32.totalorder %s2910_s27, 3 }
   0x4   : > { %p332_p2 = pnand %p2095_p0, %p331_p1 }
   0x5   : > { %s2972_s29 = smul.u32 (!%p332_p2), 6, %s2967_s28  ;;  %s411_s30 = sadd.s32 (!%p332_p2), 1, %s2967_s28  ;;  %v2912_v0 = vmov (!%p332_p2), 0   ;;  %v2827_v1 = vld [vmem:[%s3509_s6 + $0xc0] sm:$0xff] (!%p332_p2)   ;;  %v2913_v2 = vmov (!%p332_p2), 0.0   ;;  %v2828_v3 = vld [vmem:[%s3509_s6 + $0xc8] sm:$0xff] (!%p332_p2)  }
   0x6   : > { %335 = sbr.rel (%p332_p2) target bundleno = 535 (0x217), region = 48  ;;  %2824 = vset.pattern.permute.xlu1 (!%p332_p2), %v2912_v0  ;;  %2823 = vset.pattern.permute.xlu0 (!%p332_p2), %v2912_v0  ;;  %v2829_v4 = vld [vmem:[%s3509_s6 + $0x100] sm:$0xff] (!%p332_p2)   ;;  %v2831_v5 = vld [vmem:[%s3509_s6 + $0x108] sm:$0xff] (!%p332_p2)   ;;  %v2830_v6 = vld [vmem:[%s3509_s6 + $0xd0] sm:$0xff] (!%p332_p2)   ;;  %vm2914_vm0 = vmmov (!%p332_p2), 0   ;;  %vm649_vm1 = vcmask (!%p332_p2), 1043456  }
   0x7   : > { %s2098_s9 = smul.u32 (!%p332_p2), 6, %s411_s30  ;;  %p402_p3 = scmp.lt.s32.totalorder (!%p332_p2), %s2972_s29, 14  ;;  %2457 = vmatprep.subr.bf16.mxu1 (!%p332_p2), %v2913_v2  ;;  %2569 = vmatprep.subr.bf16.mxu0 (!%p332_p2), %v2913_v2  ;;  %v2833_v11 = vld [vmem:[%s3509_s6 + $0x110] sm:$0xff] (!%p332_p2)   ;;  %v2832_v12 = vld [vmem:[%s3509_s6 + $0xd8] sm:$0xff] (!%p332_p2)   ;;  %v2834_v16 = vld [vmem:[%s3509_s6 + $0xe0] sm:$0xff] (!%p332_p2)   ;;  %vm1459_vm3 = vcmask (!%p332_p2), 1046528  }
   0x8   : > { %2458 = vmatpush3.bf16.msra.mxu1 (!%p332_p2), %v2827_v1  ;;  %2570 = vmatpush3.bf16.msra.mxu0 (!%p332_p2), %v2829_v4  ;;  %v2835_v15 = vld [vmem:[%s3509_s6 + $0x118] sm:$0xff] (!%p332_p2)   ;;  %v2837_v19 = vld [vmem:[%s3509_s6 + $0x120] sm:$0xff] (!%p332_p2)   ;;  %v2836_v20 = vld [vmem:[%s3509_s6 + $0xe8] sm:$0xff] (!%p332_p2)   ;;  %vm1175_vm2 = vsmask.f32 (!%p332_p2), 3328  ;;  %vm1598_vm5 = vcmask (!%p332_p2), 1042432  }
   0x9   : > { %p414_p4 = scmp.lt.s32.totalorder (!%p332_p2), %s2098_s9, 14  ;;  %2459 = vmatprep.subr.bf16.mxu1 (!%p332_p2), %v2913_v2  ;;  %2571 = vmatprep.subr.bf16.mxu0 (!%p332_p2), %v2913_v2  ;;  %v2841_v22 = vld [vmem:[%s3509_s6 + $0x128] sm:$0xff] (!%p332_p2)   ;;  %v2840_v23 = vld [vmem:[%s3509_s6 + $0xf0] sm:$0xff] (!%p332_p2)   ;;  %v2842_v25 = vld [vmem:[%s3509_s6 + $0xf8] sm:$0xff] (!%p332_p2)   ;;  %vm1015_vm4 = vsmask.f32 (!%p332_p2), 7424 }
   0xa   : > { %2473 = vmatprep.mubr.msk.bf16.mxu1 (!%p332_p2), %vm2914_vm0, %v2913_v2  ;;  %2585 = vmatprep.mubr.msk.bf16.mxu0 (!%p332_p2), %vm2914_vm0, %v2913_v2  ;;  %v2843_v24 = vld [vmem:[%s3509_s6 + $0x130] sm:$0xff] (!%p332_p2)   ;;  %v2845_v26 = vld [vmem:[%s3509_s6 + $0x138] sm:$0xff] (!%p332_p2)   ;;  %v2112_v34 = vld [vmem:[%s3507_s4] ss:$0 sm:$0xff] (!%p332_p2)  ;;  %p446_p5 = scmp.lt.s32.totalorder (!%p332_p2), %s2972_s29, 11  ;;  %p451_p6 = scmp.lt.s32.totalorder (!%p332_p2), %s2967_s28, 1 }
   0xb   : > { %v2113_v42 = vld [vmem:[%s3508_s5] ss:$0 sm:$0xff] (!%p332_p2) }
   0xc   : > { %2460 = vmatpush3.bf16.msra.mxu1 (!%p332_p2), %v2828_v3  ;;  %2572 = vmatpush3.bf16.msra.mxu0 (!%p332_p2), %v2831_v5 }
   0xd   : > { %s2988_s16 = scalar_select %p402_p3, %s2972_s29, 14  ;;  %2461 = vmatprep.subr.bf16.mxu1 %v2913_v2  ;;  %2573 = vmatprep.subr.bf16.mxu0 %v2913_v2 }
   0xe   : > { %s3513_s9 = smov (!%p414_p4, %s2098_s9), 14  ;;  %s3515_s29 = smov (!%p446_p5, %s2972_s29), 11 }
   0xf   : > { %s2100_s17 = sshll.u32 %s2988_s16, 3  ;;  %s2103_s25 = sshll.u32 %s3513_s9, 3 }
  0x10   : > { %s3001_s22 = scalar_lea.vmem %s3505_s2, %s2100_s17  ;;  %2462 = vmatpush3.bf16.msra.mxu1 %v2830_v6  ;;  %s2096_s12 = sshll.u32 %s2988_s16, 2  ;;  %2574 = vmatpush3.bf16.msra.mxu0 %v2833_v11 }
  0x11   : > { %v505_v7 = vld [vmem:[%s3001_s22 + $0x10] sm:$0xff]  ;;  %v503_v8 = vld [vmem:[%s3001_s22] sm:$0xff]  ;;  %v506_v9 = vld [vmem:[%s3001_s22 + $0x18] sm:$0xff]  ;;  %2463 = vmatprep.subr.bf16.mxu1 %v2913_v2  ;;  %s441_s15 = scalar_lea.vmem %s3506_s3, %s2103_s25  ;;  %s3032_s16 = scalar_lea.vmem %s3503_s0, %s2096_s12  ;;  %2575 = vmatprep.subr.bf16.mxu0 %v2913_v2 }
  0x12   : > { %565 = vperm.xlu1 %2824, %v505_v7   ;;  %555 = vperm.xlu0 %2823, %v503_v8   ;;  %v504_v10 = vld [vmem:[%s3001_s22 + $0x8] sm:$0xff]  ;;  %v507_v14 = vld [vmem:[%s3001_s22 + $0x20] sm:$0xff]  ;;  %s2099_s26 = sshll.u32 %s3513_s9, 2  ;;  %v511_v21 = vld [vmem:[%s441_s15 + $0x10] sm:$0xff]  ;;  %s2104_s10 = sshll.u32 %s3515_s29, 2 }
  0x13   : > { %v508_v13 = vld [vmem:[%s3001_s22 + $0x28] sm:$0xff]  ;;  %v509_v18 = vld [vmem:[%s441_s15] sm:$0xff]  ;;  %s3053_s9 = scalar_lea.vmem %s3504_s1, %s2099_s26  ;;  %v2844_v29 = vld [vmem:[%s3032_s16 + $0x10] sm:$0xff]   ;;  %s3490_s12 = scalar_lea.vmem %s3510_s7, %s2104_s10 }
  0x14   : > { %2464 = vmatpush3.bf16.msra.mxu1 %v2832_v12  ;;  %v510_v17 = vld [vmem:[%s441_s15 + $0x8] sm:$0xff]  ;;  %2576 = vmatpush3.bf16.msra.mxu0 %v2835_v15  ;;  %v2839_v28 = vld [vmem:[%s3032_s16] sm:$0xff]   ;;  %v499_v35 = vunpack.c.h.bf16 %v2844_v29  ;;  %v498_v36 = vunpack.c.l.bf16 %v2844_v29  ;;  %s3517_s28 = smov (!%p451_p6, %s2967_s28), 1 }
  0x15   : > { %2465 = vmatprep.subr.bf16.mxu1 %v2913_v2  ;;  %2577 = vmatprep.subr.bf16.mxu0 %v2913_v2  ;;  %v2838_v27 = vld [vmem:[%s3032_s16 + $0x8] sm:$0xff]   ;;  %v494_v31 = vunpack.c.l.bf16 %v2839_v28  ;;  %v495_v33 = vunpack.c.h.bf16 %v2839_v28  ;;  %v2846_v37 = vld [vmem:[%s3053_s9] sm:$0xff]   ;;  %s2334_s29 = sshll.u32 %s3517_s28, 4 }
  0x16   : > { %570 = vperm.xlu1 %2824, %v506_v9   ;;  %560 = vperm.xlu0 %2823, %v504_v10   ;;  %v496_v30 = vunpack.c.l.bf16 %v2838_v27  ;;  %v497_v32 = vunpack.c.h.bf16 %v2838_v27  ;;  %v524_v43 = vmul.f32 %v2112_v34, %v499_v35  ;;  %v523_v44 = vmul.f32 %v2112_v34, %v498_v36  ;;  %v2848_v47 = vld [vmem:[%s3053_s9 + $0x8] ss:$0 sps:$4 sm:$0xff]   ;;  %s455_s14 = scalar_lea.vmem %s3511_s8, %s2334_s29 }
  0x17   : > { %v519_v39 = vmul.f32 %v2112_v34, %v494_v31  ;;  %v520_v41 = vmul.f32 %v2112_v34, %v495_v33  ;;  %v501_v45 = vunpack.c.h.bf16 %v2846_v37  ;;  %v500_v46 = vunpack.c.l.bf16 %v2846_v37 }
  0x18   : > { %2466 = vmatpush3.bf16.msra.mxu1 %v2834_v16  ;;  %2578 = vmatpush3.bf16.msra.mxu0 %v2837_v19  ;;  %v521_v38 = vmul.f32 %v2112_v34, %v496_v30  ;;  %v522_v40 = vmul.f32 %v2112_v34, %v497_v32  ;;  %v540_v52 = vadd.f32 %v2113_v42, %v524_v43  ;;  %v502_v58 = vunpack.c.l.bf16 %v2848_v47 }
  0x19   : > { %2467 = vmatprep.subr.bf16.mxu1 %v2913_v2  ;;  %2579 = vmatprep.subr.bf16.mxu0 %v2913_v2  ;;  %v535_v49 = vadd.f32 %v2113_v42, %v519_v39  ;;  %v536_v51 = vadd.f32 %v2113_v42, %v520_v41  ;;  %v539_v55 = vadd.f32 %v2113_v42, %v523_v44 }
  0x1a   : > { %580 = vperm.xlu1 %2824, %v508_v13   ;;  %575 = vperm.xlu0 %2823, %v507_v14   ;;  %v537_v48 = vadd.f32 %v2113_v42, %v521_v38  ;;  %v538_v50 = vadd.f32 %v2113_v42, %v522_v40  ;;  %v526_v56 = vmul.f32 %v2112_v34, %v501_v45  ;;  %v549_v63 = vmax.f32 %v540_v52, 0.0  ;;  %v2849_v38 = vld [vmem:[%s3509_s6 + $0x8] sm:$0xff]  }
  0x1b   : > { %v525_v57 = vmul.f32 %v2112_v34, %v500_v46  ;;  %v544_v60 = vmax.f32 %v535_v49, 0.0  ;;  %v545_v62 = vmax.f32 %v536_v51, 0.0  ;;  %v548_v3 = vmax.f32 %v539_v55, 0.0  ;;  %v2851_v51 = vld [vmem:[%s3509_s6 + $0x10] sm:$0xff]   ;;  %v2852_v52 = vld [vmem:[%s3509_s6 + $0x1c8] sm:$0xff]  }
  0x1c   : > { %2468 = vmatpush3.bf16.msra.mxu1 %v2836_v20  ;;  %2580 = vmatpush3.bf16.msra.mxu0 %v2841_v22  ;;  %v546_v59 = vmax.f32 %v537_v48, 0.0  ;;  %v547_v61 = vmax.f32 %v538_v50, 0.0  ;;  %v542_v4 = vadd.f32 %v2113_v42, %v526_v56  ;;  %v527_v6 = vmul.f32 %v2112_v34, %v502_v58  ;;  %v2847_v22 = vld [vmem:[%s3509_s6] sm:$0xff]  }
  0x1d   : > { %2469 = vmatprep.subr.bf16.mxu1 %v2913_v2  ;;  %2581 = vmatprep.subr.bf16.mxu0 %v2913_v2  ;;  %v541_v5 = vadd.f32 %v2113_v42, %v525_v57 }
  0x1e   : > { %590 = vperm.xlu1 %2824, %v510_v17   ;;  %585 = vperm.xlu0 %2823, %v509_v18   ;;  %v551_v15 = vmax.f32 %v542_v4, 0.0  ;;  %v543_v17 = vadd.f32 %v2113_v42, %v527_v6  ;;  %v2850_v42 = vld [vmem:[%s3509_s6 + $0x1c0] sm:$0xff]  }
  0x1f   : > { %v550_v16 = vmax.f32 %v541_v5, 0.0  ;;  %v2855_v6 = vld [vmem:[%s3509_s6 + $0x20] sm:$0xff]  }
  0x20   : > { %2470 = vmatpush3.bf16.msra.mxu1 %v2840_v23  ;;  %2582 = vmatpush3.bf16.msra.mxu0 %v2843_v24  ;;  %v552_v37 = vmax.f32 %v543_v17, 0.0  ;;  %v2859_v17 = vld [vmem:[%s3509_s6 + $0x30] sm:$0xff]  }
  0x21   : > { %2471 = vmatprep.subr.bf16.mxu1 %v2913_v2  ;;  %2583 = vmatprep.subr.bf16.mxu0 %v2913_v2 }
  0x22   : > { %595 = vperm.xlu0 %2823, %v511_v21  }
  0x24   : > { %2472 = vmatpush3.bf16.msra.mxu1 %v2842_v25  ;;  %2584 = vmatpush3.bf16.msra.mxu0 %v2845_v26 }
  0x25   : > { %2485 = vmatprep.subr.bf16.mxu1 %v2913_v2  ;;  %2597 = vmatprep.subr.bf16.mxu0 %v2913_v2 }
  0x91   : > { %v566_v53 = vpop.permute.xlu1 %565  ;;  %v556_v54 = vpop.permute.xlu0 %555 }
  0x92   : > { %v600_v7 = vmul.f32 %v566_v53, %v546_v59  ;;  %v598_v8 = vmul.f32 %v556_v54, %v544_v60  ;;  %v2853_v59 = vld [vmem:[%s3509_s6 + $0x18] sm:$0xff]  }
  0x95   : > { %v571_v0 = vpop.permute.xlu1 %570  ;;  %v561_v1 = vpop.permute.xlu0 %560 }
  0x96   : > { %v601_v9 = vmul.f32 %v571_v0, %v547_v61  ;;  %v599_v10 = vmul.f32 %v561_v1, %v545_v62  ;;  %v2854_v61 = vld [vmem:[%s3509_s6 + $0x1d0] sm:$0xff]  }
  0x98   : > { %v3090_v11 = vpack.c.bf16 %v601_v9, %v600_v7  ;;  %v3092_v12 = vpack.c.bf16 %v599_v10, %v598_v8  ;;  %v2856_v7 = vld [vmem:[%s3509_s6 + $0x1d8] sm:$0xff]   ;;  %v2915_v10 = vmov 1  }
  0x99   : > { %v581_v13 = vpop.permute.xlu1 %580  ;;  %v576_v14 = vpop.permute.xlu0 %575  ;;  %2825 = vset.pattern.permute.xlu1 %v2915_v10  ;;  %2826 = vset.pattern.permute.xlu0 %v2915_v10  ;;  %v2889_v10 = vld [vmem:[%s3509_s6 + $0x68] sm:$0xff]  }
  0x9a   : > { %v603_v18 = vmul.f32 %v581_v13, %v549_v63  ;;  %v602_v19 = vmul.f32 %v576_v14, %v548_v3  ;;  %v650_v20 = vrot.slane %v3092_v12, 4  ;;  %v651_v21 = vrot.slane %v3090_v11, 4  ;;  %v1882_v13 = vld [vmem:[%s3001_s22] sm:$0xff]  ;;  %v2857_v14 = vld [vmem:[%s3509_s6 + $0x28] sm:$0xff]  }
  0x9b   : > { %v1017_v23 = vshrl.u32 %v3092_v12, 16  ;;  %v1019_v24 = vshll.u32 %v3092_v12, 16  ;;  %v1024_v25 = vshll.u32 %v3090_v11, 16  ;;  %v1028_v26 = vshrl.u32 %v3090_v11, 16  ;;  %1890 = vperm.xlu1 %2825, %v1882_v13   ;;  %v2890_v13 = vld [vmem:[%s3509_s6 + $0x160] sm:$0xff]  }
  0x9c   : > { %v3103_v27 = vpack.c.bf16 %v603_v18, %v602_v19  ;;  %v652_v28 = vsel %vm649_vm1, %v650_v20, %v651_v21  ;;  %v1884_v18 = vld [vmem:[%s3001_s22 + $0x10] sm:$0xff]  ;;  %v1883_v19 = vld [vmem:[%s3001_s22 + $0x8] sm:$0xff] }
  0x9d   : > { %v591_v29 = vpop.permute.xlu1 %590  ;;  %v586_v30 = vpop.permute.xlu0 %585  ;;  %2474 = vmatmul.mubr.bf16.vlgmr.msra.gmra.mrb[0].mxu1 %v652_v28  ;;  %v1176_v31 = vrot.slane %v1017_v23, 4  ;;  %v1177_v32 = vrot.slane %v1019_v24, 5  ;;  %v1179_v33 = vrot.slane %v1028_v26, 4  ;;  %v1180_v34 = vrot.slane %v1024_v25, 5  ;;  %v2860_v20 = vld [vmem:[%s3509_s6 + $0x1e8] sm:$0xff]   ;;  %1895 = vperm.xlu0 %2826, %v1883_v19   ;;  %v2863_v28 = vld [vmem:[%s3509_s6 + $0x180] sm:$0xff]  }
  0x9e   : > { %v605_v35 = vmul.f32 %v591_v29, %v551_v15  ;;  %v604_v36 = vmul.f32 %v586_v30, %v550_v16  ;;  %2486 = vmatpush3.bf16.msra.mxu1 %v2847_v22  ;;  %2477 = vmatprep.mubr.msk.bf16.mxu1 %vm2914_vm0, %v2913_v2  ;;  %v1032_v39 = vshll.u32 %v3103_v27, 16  ;;  %v1036_v43 = vshrl.u32 %v3103_v27, 16  ;;  %v2858_v15 = vld [vmem:[%s3509_s6 + $0x1e0] sm:$0xff]   ;;  %v1885_v22 = vld [vmem:[%s3001_s22 + $0x18] sm:$0xff]  ;;  %v1887_v29 = vld [vmem:[%s3001_s22 + $0x28] sm:$0xff] }
  0x9f   : > { %2487 = vmatprep.subr.bf16.mxu1 %v2913_v2  ;;  %v1178_v40 = vor.u32 %v1177_v32, %v1176_v31  ;;  %v1181_v41 = vor.u32 %v1180_v34, %v1179_v33  ;;  %v653_v44 = vrot.slane %v3103_v27, 4  ;;  %v1021_v60 = vrot.slane %v1019_v24, 1  ;;  %1900 = vperm.xlu1 %2825, %v1884_v18   ;;  %v2862_v24 = vld [vmem:[%s3509_s6 + $0x1f0] sm:$0xff]   ;;  %v2864_v30 = vld [vmem:[%s3509_s6 + $0x1f8] sm:$0xff]   ;;  %v2865_v33 = vld [vmem:[%s3509_s6 + $0x188] sm:$0xff]  }
  0xa0   : > { %v3122_v45 = vpack.c.bf16 %v605_v35, %v604_v36  ;;  %v1183_v48 = vrot.slane %v1036_v43, 4  ;;  %v1184_v49 = vrot.slane %v1032_v39, 5  ;;  %v3224_v31 = vrot.slane %v1024_v25, 1  ;;  %v2866_v34 = vld [vmem:[%s3509_s6 + $0x80] sm:$0xff]   ;;  %v2867_v36 = vld [vmem:[%s3509_s6 + $0x190] sm:$0xff]   ;;  %v2895_v19 = vld [vmem:[%s3509_s6 + $0x178] sm:$0xff]  }
  0xa1   : > { %v596_v46 = vpop.permute.xlu0 %595  ;;  %v1182_v47 = vsel %vm1175_vm2, %v1178_v40, %v1181_v41  ;;  %v654_v54 = vsel %vm649_vm1, %v651_v21, %v653_v44  ;;  %v3157_v0 = vor.u32 %v1021_v60, %v1017_v23  ;;  %v2861_v21 = vld [vmem:[%s3509_s6 + $0x38] sm:$0xff]   ;;  %v1886_v23 = vld [vmem:[%s3001_s22 + $0x20] sm:$0xff]  ;;  %v1034_v32 = vrot.slane %v1032_v39, 1  ;;  %v2870_v40 = vld [vmem:[%s3509_s6 + $0x90] sm:$0xff]  }
  0xa2   : > { %v606_v50 = vmul.f32 %v596_v46, %v552_v37  ;;  %2488 = vmatpush3.bf16.msra.mxu1 %v2849_v38  ;;  %2586 = vmatmul.mubr.bf16.vlgmr.msra.gmra.mrb[0].mxu0 %v1182_v47  ;;  %v1185_v55 = vor.u32 %v1184_v49, %v1183_v48  ;;  %v1040_v56 = vshll.u32 %v3122_v45, 16  ;;  %v1187_v57 = vshrl.u32 %v3122_v45, 16  ;;  %v2869_v38 = vld [vmem:[%s3509_s6 + $0x198] sm:$0xff]   ;;  %v2873_v47 = vld [vmem:[%s3509_s6 + $0x1a8] sm:$0xff]   ;;  %v2874_v49 = vld [vmem:[%s3509_s6 + $0xa0] sm:$0xff]  }
  0xa3   : > { %2598 = vmatpush3.bf16.msra.mxu0 %v2850_v42  ;;  %2489 = vmatprep.subr.bf16.mxu1 %v2913_v2  ;;  %v1465_v62 = vrot.slane %v3122_v45, 1  ;;  %v655_v63 = vrot.slane %v3122_v45, 4  ;;  %v1030_v25 = vor.u32 %v1028_v26, %v3224_v31  ;;  %v2868_v26 = vld [vmem:[%s3509_s6 + $0x88] sm:$0xff]   ;;  %v1038_v39 = vor.u32 %v1036_v43, %v1034_v32  ;;  %v2872_v43 = vld [vmem:[%s3509_s6 + $0x98] sm:$0xff]   ;;  %v2882_v60 = vld [vmem:[%s3509_s6 + $0x140] sm:$0xff]  }
  0xa4   : > { %v3136_v53 = vpack.c.bf16 %v606_v50, %v606_v50  ;;  %2599 = vmatprep.subr.bf16.mxu0 %v2913_v2  ;;  %2589 = vmatprep.mubr.msk.bf16.mxu0 %vm2914_vm0, %v2913_v2  ;;  %v1186_v1 = vsel %vm1175_vm2, %v1181_v41, %v1185_v55  ;;  %v1189_v3 = vrot.slane %v1187_v57, 4  ;;  %v1190_v4 = vrot.slane %v1040_v56, 5  ;;  %v2896_v18 = vld [vmem:[%s3509_s6 + $0x200] sm:$0xff]  }
  0xa5   : > { %2478 = vmatmul.mubr.bf16.gmra.mrb[4].mxu1 %v654_v54  ;;  %v656_v8 = vsel %vm649_vm1, %v653_v44, %v655_v63  ;;  %1905 = vperm.xlu1 %2825, %v1885_v22   ;;  %v3244_v35 = vsel %vm1015_vm4, %v1030_v25, %v1034_v32  ;;  %v1042_v37 = vrot.slane %v1040_v56, 1  ;;  %v2871_v44 = vld [vmem:[%s3509_s6 + $0x1a0] sm:$0xff]   ;;  %v2878_v54 = vld [vmem:[%s3509_s6 + $0xb0] sm:$0xff]   ;;  %v2880_v56 = vld [vmem:[%s3509_s6 + $0xb8] sm:$0xff]   ;;  %v1600_v22 = vrot.slane %v3090_v11, 5 }
  0xa6   : > { %v1738_v58 = vrot.slane %v3136_v53, 1  ;;  %2490 = vmatpush3.bf16.msra.mxu1 %v2851_v51  ;;  %2481 = vmatprep.mubr.msk.bf16.mxu1 %vm2914_vm0, %v2913_v2  ;;  %v1191_v9 = vor.u32 %v1190_v4, %v1189_v3  ;;  %v1326_v41 = vshll.u32 %v3136_v53, 16  ;;  %v2875_v51 = vld [vmem:[%s3509_s6 + $0x1b0] sm:$0xff]   ;;  %v2877_v53 = vld [vmem:[%s3509_s6 + $0x1b8] sm:$0xff]   ;;  %v1463_v3 = vrot.slane %v3103_v27, 1 }
  0xa7   : > { %2600 = vmatpush3.bf16.msra.mxu0 %v2852_v52  ;;  %2491 = vmatprep.subr.bf16.mxu1 %v2913_v2  ;;  %v3274_v42 = vsel %vm1015_vm4, %v1038_v39, %v1042_v37  ;;  %v1324_v48 = vor.u32 %v1187_v57, %v1042_v37  ;;  %v2876_v52 = vld [vmem:[%s3509_s6 + $0xa8] sm:$0xff]   ;;  %v1460_v57 = vrot.slane %v3092_v12, 1  ;;  %v2883_v63 = vld [vmem:[%s3509_s6 + $0x50] sm:$0xff]   ;;  %v2885_v4 = vld [vmem:[%s3509_s6 + $0x58] sm:$0xff]  }
  0xa8   : > { %2601 = vmatprep.subr.bf16.mxu0 %v2913_v2  ;;  %v3167_v5 = vsel %vm1459_vm3, %v1465_v62, %v1738_v58  ;;  %v1192_v16 = vsel %vm1175_vm2, %v1185_v55, %v1191_v9  ;;  %1910 = vperm.xlu0 %2826, %v1886_v23   ;;  %v1328_v46 = vrot.slane %v1326_v41, 1  ;;  %v2879_v55 = vld [vmem:[%s3509_s6 + $0x40] sm:$0xff]   ;;  %v1461_v58 = vrot.slane %v3090_v11, 1  ;;  %v2888_v9 = vld [vmem:[%s3509_s6 + $0x158] sm:$0xff]   ;;  %v2897_v23 = vld [vmem:[%s3509_s6 + $0x208] sm:$0xff]  }
  0xa9   : > { %1915 = vperm.xlu1 %2825, %v1887_v29   ;;  %v1604_v29 = vrot.slane %v3122_v45, 5  ;;  %v2903_v32 = vld [vmem:[%s3509_s6 + $0x238] sm:$0xff]  }
  0xaa   : > { %2492 = vmatpush3.bf16.msra.mxu1 %v2853_v59  ;;  %2590 = vmatmul.mubr.bf16.gmra.mrb[4].mxu0 %v1186_v1  ;;  %v1329_v50 = vsel %vm1015_vm4, %v1324_v48, %v1328_v46  ;;  %v2881_v59 = vld [vmem:[%s3509_s6 + $0x48] sm:$0xff]  }
  0xab   : > { %2602 = vmatpush3.bf16.msra.mxu0 %v2854_v61  ;;  %2493 = vmatprep.subr.bf16.mxu1 %v2913_v2  ;;  %v1462_v61 = vsel %vm1459_vm3, %v1460_v57, %v1461_v58  ;;  %v2884_v1 = vld [vmem:[%s3509_s6 + $0x148] sm:$0xff]  }
  0xac   : > { %2603 = vmatprep.subr.bf16.mxu0 %v2913_v2  ;;  %2593 = vmatprep.mubr.msk.bf16.mxu0 %vm2914_vm0, %v2913_v2 }
  0xad   : > { %2482 = vmatmul.mubr.bf16.gmra.mrb[8].mxu1 %v656_v8  ;;  %v2887_v8 = vld [vmem:[%s3509_s6 + $0x60] sm:$0xff]  }
  0xae   : > { %2494 = vmatpush3.bf16.msra.mxu1 %v2855_v6  ;;  %2501 = vmatprep.mubr.msk.bf16.mxu1 %vm2914_vm0, %v2913_v2  ;;  %v2886_v6 = vld [vmem:[%s3509_s6 + $0x150] sm:$0xff]  }
  0xaf   : > { %2604 = vmatpush3.bf16.msra.mxu0 %v2856_v7  ;;  %2495 = vmatprep.subr.bf16.mxu1 %v2913_v2  ;;  %v3364_v7 = vsel %vm1459_vm3, %v1461_v58, %v1463_v3 }
  0xb0   : > { %2605 = vmatprep.subr.bf16.mxu0 %v2913_v2 }
  0xb2   : > { %2496 = vmatpush3.bf16.msra.mxu1 %v2857_v14  ;;  %2594 = vmatmul.mubr.bf16.gmra.mrb[8].mxu0 %v1192_v16  ;;  %v3391_v14 = vsel %vm1459_vm3, %v1463_v3, %v1465_v62  ;;  %v2892_v16 = vld [vmem:[%s3509_s6 + $0x168] sm:$0xff]   ;;  %v2893_v62 = vld [vmem:[%s3509_s6 + $0x78] sm:$0xff]  }
  0xb3   : > { %2606 = vmatpush3.bf16.msra.mxu0 %v2858_v15  ;;  %2497 = vmatprep.subr.bf16.mxu1 %v2913_v2  ;;  %v2891_v15 = vld [vmem:[%s3509_s6 + $0x70] sm:$0xff]  }
  0xb4   : > { %2607 = vmatprep.subr.bf16.mxu0 %v2913_v2  ;;  %2613 = vmatprep.mubr.msk.bf16.mxu0 %vm2914_vm0, %v2913_v2 }
  0xb6   : > { %2498 = vmatpush3.bf16.msra.mxu1 %v2859_v17  ;;  %v2894_v17 = vld [vmem:[%s3509_s6 + $0x170] sm:$0xff]  }
  0xb7   : > { %2608 = vmatpush3.bf16.msra.mxu0 %v2860_v20  ;;  %2499 = vmatprep.subr.bf16.mxu1 %v2913_v2  ;;  %v1027_v20 = vsel %vm1015_vm4, %v3157_v0, %v3224_v31 }
  0xb8   : > { %2609 = vmatprep.subr.bf16.mxu0 %v2913_v2 }
  0xba   : > { %2500 = vmatpush3.bf16.msra.mxu1 %v2861_v21  ;;  %v1599_v21 = vrot.slane %v3092_v12, 5 }
  0xbb   : > { %2610 = vmatpush3.bf16.msra.mxu0 %v2862_v24  ;;  %2513 = vmatprep.subr.bf16.mxu1 %v2913_v2  ;;  %v2899_v24 = vld [vmem:[%s3509_s6 + $0x218] sm:$0xff]  }
  0xbc   : > { %2611 = vmatprep.subr.bf16.mxu0 %v2913_v2  ;;  %v1601_v0 = vsel %vm1598_vm5, %v1599_v21, %v1600_v22 }
  0xbd   : > { %2502 = vmatmul.mubr.bf16.vlgmr.msra.gmra.mrb[0].mxu1 %v3092_v12  ;;  %v1602_v12 = vrot.slane %v3103_v27, 5 }
  0xbe   : > { %2514 = vmatpush3.bf16.msra.mxu1 %v2863_v28  ;;  %2505 = vmatprep.mubr.msk.bf16.mxu1 %vm2914_vm0, %v2913_v2 }
  0xbf   : > { %2612 = vmatpush3.bf16.msra.mxu0 %v2864_v30  ;;  %2515 = vmatprep.subr.bf16.mxu1 %v2913_v2  ;;  %v1603_v28 = vsel %vm1598_vm5, %v1600_v22, %v1602_v12  ;;  %v2901_v30 = vld [vmem:[%s3509_s6 + $0x228] sm:$0xff]   ;;  %v1605_v31 = vsel %vm1598_vm5, %v1602_v12, %v1604_v29 }
  0xc0   : > { %2625 = vmatprep.subr.bf16.mxu0 %v2913_v2 }
  0xc2   : > { %2614 = vmatmul.mubr.bf16.vlgmr.msra.gmra.mrb[0].mxu0 %v3244_v35  ;;  %2516 = vmatpush3.bf16.msra.mxu1 %v2865_v33 }
  0xc3   : > { %2626 = vmatpush3.bf16.msra.mxu0 %v2866_v34  ;;  %2517 = vmatprep.subr.bf16.mxu1 %v2913_v2 }
  0xc4   : > { %2627 = vmatprep.subr.bf16.mxu0 %v2913_v2  ;;  %2617 = vmatprep.mubr.msk.bf16.mxu0 %vm2914_vm0, %v2913_v2 }
  0xc5   : > { %2506 = vmatmul.mubr.bf16.gmra.mrb[4].mxu1 %v3090_v11 }
  0xc6   : > { %2518 = vmatpush3.bf16.msra.mxu1 %v2867_v36  ;;  %2509 = vmatprep.mubr.msk.bf16.mxu1 %vm2914_vm0, %v2913_v2 }
  0xc7   : > { %2628 = vmatpush3.bf16.msra.mxu0 %v2868_v26  ;;  %2519 = vmatprep.subr.bf16.mxu1 %v2913_v2 }
  0xc8   : > { %2629 = vmatprep.subr.bf16.mxu0 %v2913_v2 }
  0xca   : > { %2618 = vmatmul.mubr.bf16.gmra.mrb[4].mxu0 %v3274_v42  ;;  %2520 = vmatpush3.bf16.msra.mxu1 %v2869_v38 }
  0xcb   : > { %2630 = vmatpush3.bf16.msra.mxu0 %v2870_v40  ;;  %2521 = vmatprep.subr.bf16.mxu1 %v2913_v2 }
  0xcc   : > { %2631 = vmatprep.subr.bf16.mxu0 %v2913_v2  ;;  %2621 = vmatprep.mubr.msk.bf16.mxu0 %vm2914_vm0, %v2913_v2 }
  0xcd   : > { %2510 = vmatmul.mubr.bf16.gmra.mrb[8].mxu1 %v3103_v27 }
  0xce   : > { %2522 = vmatpush3.bf16.msra.mxu1 %v2871_v44  ;;  %2529 = vmatprep.mubr.msk.bf16.mxu1 %vm2914_vm0, %v2913_v2 }
  0xcf   : > { %2632 = vmatpush3.bf16.msra.mxu0 %v2872_v43  ;;  %2523 = vmatprep.subr.bf16.mxu1 %v2913_v2 }
  0xd0   : > { %2633 = vmatprep.subr.bf16.mxu0 %v2913_v2 }
  0xd2   : > { %2622 = vmatmul.mubr.bf16.gmra.mrb[8].mxu0 %v1329_v50  ;;  %2524 = vmatpush3.bf16.msra.mxu1 %v2873_v47 }
  0xd3   : > { %2634 = vmatpush3.bf16.msra.mxu0 %v2874_v49  ;;  %2525 = vmatprep.subr.bf16.mxu1 %v2913_v2 }
  0xd4   : > { %2635 = vmatprep.subr.bf16.mxu0 %v2913_v2  ;;  %2641 = vmatprep.mubr.msk.bf16.mxu0 %vm2914_vm0, %v2913_v2 }
  0xd6   : > { %2526 = vmatpush3.bf16.msra.mxu1 %v2875_v51 }
  0xd7   : > { %2636 = vmatpush3.bf16.msra.mxu0 %v2876_v52  ;;  %2527 = vmatprep.subr.bf16.mxu1 %v2913_v2 }
  0xd8   : > { %2637 = vmatprep.subr.bf16.mxu0 %v2913_v2 }
  0xda   : > { %2528 = vmatpush3.bf16.msra.mxu1 %v2877_v53 }
  0xdb   : > { %2638 = vmatpush3.bf16.msra.mxu0 %v2878_v54  ;;  %2541 = vmatprep.subr.bf16.mxu1 %v2913_v2 }
  0xdc   : > { %2639 = vmatprep.subr.bf16.mxu0 %v2913_v2 }
  0xdd   : > { %2530 = vmatmul.mubr.bf16.vlgmr.msra.gmra.mrb[0].mxu1 %v3090_v11  ;;  %v2898_v11 = vld [vmem:[%s3509_s6 + $0x210] sm:$0xff]  }
  0xde   : > { %2542 = vmatpush3.bf16.msra.mxu1 %v2879_v55  ;;  %2533 = vmatprep.mubr.msk.bf16.mxu1 %vm2914_vm0, %v2913_v2 }
  0xdf   : > { %2640 = vmatpush3.bf16.msra.mxu0 %v2880_v56  ;;  %2543 = vmatprep.subr.bf16.mxu1 %v2913_v2 }
  0xe0   : > { %2653 = vmatprep.subr.bf16.mxu0 %v2913_v2 }
  0xe2   : > { %2642 = vmatmul.mubr.bf16.vlgmr.msra.gmra.mrb[0].mxu0 %v1462_v61  ;;  %2544 = vmatpush3.bf16.msra.mxu1 %v2881_v59 }
  0xe3   : > { %2654 = vmatpush3.bf16.msra.mxu0 %v2882_v60  ;;  %2545 = vmatprep.subr.bf16.mxu1 %v2913_v2 }
  0xe4   : > { %2655 = vmatprep.subr.bf16.mxu0 %v2913_v2  ;;  %2645 = vmatprep.mubr.msk.bf16.mxu0 %vm2914_vm0, %v2913_v2 }
  0xe5   : > { %2534 = vmatmul.mubr.bf16.gmra.mrb[4].mxu1 %v3103_v27  ;;  %v2900_v27 = vld [vmem:[%s3509_s6 + $0x220] sm:$0xff]  }
  0xe6   : > { %2546 = vmatpush3.bf16.msra.mxu1 %v2883_v63  ;;  %2537 = vmatprep.mubr.msk.bf16.mxu1 %vm2914_vm0, %v2913_v2 }
  0xe7   : > { %2656 = vmatpush3.bf16.msra.mxu0 %v2884_v1  ;;  %2547 = vmatprep.subr.bf16.mxu1 %v2913_v2 }
  0xe8   : > { %2657 = vmatprep.subr.bf16.mxu0 %v2913_v2 }
  0xea   : > { %2646 = vmatmul.mubr.bf16.gmra.mrb[4].mxu0 %v3364_v7  ;;  %2548 = vmatpush3.bf16.msra.mxu1 %v2885_v4 }
  0xeb   : > { %2658 = vmatpush3.bf16.msra.mxu0 %v2886_v6  ;;  %2549 = vmatprep.subr.bf16.mxu1 %v2913_v2 }
  0xec   : > { %2659 = vmatprep.subr.bf16.mxu0 %v2913_v2  ;;  %2649 = vmatprep.mubr.msk.bf16.mxu0 %vm2914_vm0, %v2913_v2 }
  0xed   : > { %2538 = vmatmul.mubr.bf16.gmra.mrb[8].mxu1 %v3122_v45  ;;  %v2902_v45 = vld [vmem:[%s3509_s6 + $0x230] sm:$0xff]  }
  0xee   : > { %2550 = vmatpush3.bf16.msra.mxu1 %v2887_v8  ;;  %2557 = vmatprep.mubr.msk.bf16.mxu1 %vm2914_vm0, %v2913_v2 }
  0xef   : > { %2660 = vmatpush3.bf16.msra.mxu0 %v2888_v9  ;;  %2551 = vmatprep.subr.bf16.mxu1 %v2913_v2 }
  0xf0   : > { %2661 = vmatprep.subr.bf16.mxu0 %v2913_v2 }
  0xf2   : > { %2650 = vmatmul.mubr.bf16.gmra.mrb[8].mxu0 %v3391_v14  ;;  %2552 = vmatpush3.bf16.msra.mxu1 %v2889_v10 }
  0xf3   : > { %2662 = vmatpush3.bf16.msra.mxu0 %v2890_v13  ;;  %2553 = vmatprep.subr.bf16.mxu1 %v2913_v2 }
  0xf4   : > { %2663 = vmatprep.subr.bf16.mxu0 %v2913_v2  ;;  %2669 = vmatprep.mubr.msk.bf16.mxu0 %vm2914_vm0, %v2913_v2 }
  0xf6   : > { %2554 = vmatpush3.bf16.msra.mxu1 %v2891_v15 }
  0xf7   : > { %2664 = vmatpush3.bf16.msra.mxu0 %v2892_v16  ;;  %2555 = vmatprep.subr.bf16.mxu1 %v2913_v2 }
  0xf8   : > { %2665 = vmatprep.subr.bf16.mxu0 %v2913_v2 }
  0xfa   : > { %2556 = vmatpush3.bf16.msra.mxu1 %v2893_v62 }
  0xfb   : > { %2666 = vmatpush3.bf16.msra.mxu0 %v2894_v17  ;;  %2709 = vmatprep.subr.bf16.mxu1 %v2913_v2 }
  0xfc   : > { %2667 = vmatprep.subr.bf16.mxu0 %v2913_v2 }
  0xfd   : > { %2558 = vmatmul.mubr.bf16.vlgmr.msra.gmra.mrb[0].mxu1 %v1027_v20 }
  0xfe   : > { %2717 = vmatpush3.bf16.msra.mxu1 %v2896_v18  ;;  %2561 = vmatprep.mubr.msk.bf16.mxu1 %vm2914_vm0, %v2913_v2 }
  0xff   : > { %2668 = vmatpush3.bf16.msra.mxu0 %v2895_v19  ;;  %2710 = vmatprep.subr.bf16.mxu1 %v2913_v2 }
 0x100   : > { %2681 = vmatprep.subr.bf16.mxu0 %v2913_v2 }
 0x102   : > { %2670 = vmatmul.mubr.bf16.vlgmr.msra.gmra.mrb[0].mxu0 %v1601_v0  ;;  %2718 = vmatpush3.bf16.msra.mxu1 %v2897_v23 }
 0x103   : > { %2682 = vmatpush3.bf16.msra.mxu0 %v2896_v18  ;;  %2711 = vmatprep.subr.bf16.mxu1 %v2913_v2 }
 0x104   : > { %2683 = vmatprep.subr.bf16.mxu0 %v2913_v2  ;;  %2673 = vmatprep.mubr.msk.bf16.mxu0 %vm2914_vm0, %v2913_v2 }
 0x105   : > { %2562 = vmatmul.mubr.bf16.gmra.mrb[4].mxu1 %v3244_v35 }
 0x106   : > { %2719 = vmatpush3.bf16.msra.mxu1 %v2898_v11  ;;  %2565 = vmatprep.mubr.msk.bf16.mxu1 %vm2914_vm0, %v2913_v2 }
 0x107   : > { %2684 = vmatpush3.bf16.msra.mxu0 %v2897_v23  ;;  %2712 = vmatprep.subr.bf16.mxu1 %v2913_v2 }
 0x108   : > { %2685 = vmatprep.subr.bf16.mxu0 %v2913_v2 }
 0x10a   : > { %2674 = vmatmul.mubr.bf16.gmra.mrb[4].mxu0 %v1603_v28  ;;  %2720 = vmatpush3.bf16.msra.mxu1 %v2899_v24 }
 0x10b   : > { %2686 = vmatpush3.bf16.msra.mxu0 %v2898_v11  ;;  %2713 = vmatprep.subr.bf16.mxu1 %v2913_v2 }
 0x10c   : > { %2687 = vmatprep.subr.bf16.mxu0 %v2913_v2  ;;  %2677 = vmatprep.mubr.msk.bf16.mxu0 %vm2914_vm0, %v2913_v2 }
 0x10d   : > { %2566 = vmatmul.mubr.bf16.gmra.mrb[8].mxu1 %v3274_v42 }
 0x10e   : > { %2721 = vmatpush3.bf16.msra.mxu1 %v2900_v27  ;;  %2701 = vmatprep.mubr.msk.bf16.mxu1 %vm2914_vm0, %v2913_v2 }
 0x10f   : > { %2688 = vmatpush3.bf16.msra.mxu0 %v2899_v24  ;;  %2714 = vmatprep.subr.bf16.mxu1 %v2913_v2 }
 0x110   : > { %2689 = vmatprep.subr.bf16.mxu0 %v2913_v2 }
 0x112   : > { %2678 = vmatmul.mubr.bf16.gmra.mrb[8].mxu0 %v1605_v31  ;;  %2722 = vmatpush3.bf16.msra.mxu1 %v2901_v30 }
 0x113   : > { %2690 = vmatpush3.bf16.msra.mxu0 %v2900_v27  ;;  %2715 = vmatprep.subr.bf16.mxu1 %v2913_v2 }
 0x114   : > { %2691 = vmatprep.subr.bf16.mxu0 %v2913_v2  ;;  %2697 = vmatprep.mubr.msk.bf16.mxu0 %vm2914_vm0, %v2913_v2 }
 0x116   : > { %2723 = vmatpush3.bf16.msra.mxu1 %v2902_v45 }
 0x117   : > { %2692 = vmatpush3.bf16.msra.mxu0 %v2901_v30  ;;  %2716 = vmatprep.subr.bf16.mxu1 %v2913_v2 }
 0x118   : > { %2693 = vmatprep.subr.bf16.mxu0 %v2913_v2 }
 0x11a   : > { %2724 = vmatpush3.bf16.msra.mxu1 %v2903_v32  ;;  %v1891_v54 = vpop.permute.xlu1 %1890 }
 0x11b   : > { %2694 = vmatpush3.bf16.msra.mxu0 %v2902_v45 }
 0x11c   : > { %2695 = vmatprep.subr.bf16.mxu0 %v2913_v2  ;;  %v1896_v6 = vpop.permute.xlu0 %1895 }
 0x11d   : > { %2702 = vmatmul.mubr.bf16.vlgmr.msra.gmra.mrb[12].mxu1 %v3391_v14 }
 0x11e   : > { %2705 = vmatprep.mubr.msk.bf16.mxu1 %vm2914_vm0, %v2913_v2  ;;  %v1901_v59 = vpop.permute.xlu1 %1900 }
 0x11f   : > { %2696 = vmatpush3.bf16.msra.mxu0 %v2903_v32 }
 0x122   : > { %2698 = vmatmul.mubr.bf16.vlgmr.msra.gmra.mrb[0].mxu0 %v3364_v7 }
 0x124   : > { %v1906_v14 = vpop.permute.xlu1 %1905 }
 0x125   : > { %2706 = vmatmul.mubr.bf16.gmra.mrb[16].mxu1 %v3167_v5 }
 0x127   : > { %v1911_v12 = vpop.permute.xlu0 %1910 }
 0x128   : > { %v1916_v31 = vpop.permute.xlu1 %1915 }
 0x1d0   : > { %v1129_v33 = vpop.f32.mrb[0].mxu1 }
 0x1d1   : > { %v2559_v25 = vpop.f32.mrb[1].mxu1 }
 0x1d2   : > { %v1132_v34 = vpop.f32.mrb[2].mxu1 }
 0x1d3   : > { %v2560_v35 = vpop.f32.mrb[3].mxu1 }
 0x1d8   : > { %v1137_v36 = vpop.f32.mrb[4].mxu1 }
 0x1d9   : > { %v2563_v26 = vpop.f32.mrb[5].mxu1 }
 0x1da   : > { %v1140_v37 = vpop.f32.mrb[6].mxu1 }
 0x1db   : > { %v2564_v38 = vpop.f32.mrb[7].mxu1 }
 0x1dd   : > { %v1699_v39 = vpop.f32.mrb[4].mxu0 }
 0x1de   : > { %v2727_v40 = vadd.f32 %v1699_v39, %v1137_v36  ;;  %v2675_v41 = vpop.f32.mrb[5].mxu0 }
 0x1df   : > { %v1702_v42 = vpop.f32.mrb[6].mxu0  ;;  %v1952_v41 = vlaneseq }
 0x1e0   : > { %v2729_v2 = vadd.f32 %v1702_v42, %v1140_v37  ;;  %v2676_v44 = vpop.f32.mrb[7].mxu0  ;;  %v1145_v43 = vpop.f32.mrb[8].mxu1 }
 0x1e1   : > { %v2567_v46 = vpop.f32.mrb[9].mxu1 }
 0x1e2   : > { %v1148_v47 = vpop.f32.mrb[10].mxu1  ;;  %v1953_v46 = vshrl.u32 %v1952_v41, 7 }
 0x1e3   : > { %v2568_v5 = vpop.f32.mrb[11].mxu1 }
 0x1e5   : > { %v1707_v48 = vpop.f32.mrb[8].mxu0 }
 0x1e6   : > { %v2731_v49 = vadd.f32 %v1707_v48, %v1145_v43  ;;  %v2679_v50 = vpop.f32.mrb[9].mxu0 }
 0x1e7   : > { %v1710_v51 = vpop.f32.mrb[10].mxu0  ;;  %v1954_v50 = vsub.s32 0, %v1953_v46 }
 0x1e8   : > { %v2733_v52 = vadd.f32 %v1710_v51, %v1148_v47  ;;  %v2680_v53 = vpop.f32.mrb[11].mxu0 }
 0x1f0   : > { %v1831_v55 = vpop.f32.mrb[12].mxu1 }
 0x1f1   : > { %v2728_v56 = vadd.f32 %v2727_v40, %v1831_v55  ;;  %v2703_v57 = vpop.f32.mrb[13].mxu1 }
 0x1f2   : > { %v1834_v58 = vpop.f32.mrb[14].mxu1 }
 0x1f3   : > { %v2730_v60 = vadd.f32 %v2729_v2, %v1834_v58  ;;  %v2704_v61 = vpop.f32.mrb[15].mxu1  ;;  %v1920_v62 = vmul.f32 %v2728_v56, %v1901_v59 }
 0x1f5   : > { %v2349_v63 = vpack.c.bf16 %v2730_v60, %v2728_v56  ;;  %v1823_v1 = vpop.f32.mrb[0].mxu0  ;;  %v1921_v22 = vmul.f32 %v2730_v60, %v1906_v14  ;;  %v1937_v28 = vmul.f32 %v2728_v56, %v1920_v62 }
 0x1f6   : > { %v2725_v3 = vadd.f32 %v1823_v1, %v1129_v33  ;;  %v2699_v4 = vpop.f32.mrb[1].mxu0 }
 0x1f7   : > { %2356 = vst [vmem:[%s3490_s12 + $0x8] sm:$0xff] %v2349_v63   ;;  %v1826_v7 = vpop.f32.mrb[2].mxu0  ;;  %v1938_v45 = vmul.f32 %v2730_v60, %v1921_v22 }
 0x1f8   : > { %v1918_v8 = vmul.f32 %v2725_v3, %v1891_v54  ;;  %v2726_v9 = vadd.f32 %v1826_v7, %v1132_v34  ;;  %v2700_v10 = vpop.f32.mrb[3].mxu0  ;;  %v1839_v13 = vpop.f32.mrb[16].mxu1 }
 0x1f9   : > { %v2732_v15 = vadd.f32 %v2731_v49, %v1839_v13  ;;  %v2707_v16 = vpop.f32.mrb[17].mxu1 }
 0x1fa   : > { %v2344_v17 = vpack.c.bf16 %v2726_v9, %v2725_v3  ;;  %v1919_v18 = vmul.f32 %v2726_v9, %v1896_v6  ;;  %v1842_v19 = vpop.f32.mrb[18].mxu1  ;;  %v1935_v23 = vmul.f32 %v2725_v3, %v1918_v8 }
 0x1fb   : > { %v2734_v20 = vadd.f32 %v2733_v52, %v1842_v19  ;;  %v2708_v21 = vpop.f32.mrb[19].mxu1  ;;  %v1922_v30 = vmul.f32 %v2732_v15, %v1911_v12 }
 0x1fc   : > { %2345 = vst [vmem:[%s3490_s12] sm:$0xff] %v2344_v17   ;;  %v1924_v0 = vadd.f32 %v1919_v18, %v1918_v8  ;;  %v1936_v11 = vmul.f32 %v2726_v9, %v1919_v18 }
 0x1fd   : > { %v2354_v24 = vpack.c.bf16 %v2734_v20, %v2732_v15  ;;  %v1923_v25 = vmul.f32 %v2734_v20, %v1916_v31  ;;  %v1939_v35 = vmul.f32 %v2732_v15, %v1922_v30 }
 0x1fe   : > { %v1925_v27 = vadd.f32 %v1924_v0, %v1920_v62  ;;  %v1941_v29 = vadd.f32 %v1936_v11, %v1935_v23 }
 0x1ff   : > { %2357 = vst [vmem:[%s3490_s12 + $0x10] sm:$0xff] %v2354_v24   ;;  %v1940_v38 = vmul.f32 %v2734_v20, %v1923_v25 }
 0x200   : > { %v1942_v32 = vadd.f32 %v1941_v29, %v1937_v28  ;;  %v1926_v33 = vadd.f32 %v1925_v27, %v1921_v22 }
 0x202   : > { %v1927_v34 = vadd.f32 %v1926_v33, %v1922_v30  ;;  %v1943_v36 = vadd.f32 %v1942_v32, %v1938_v45 }
 0x204   : > { %v1944_v26 = vadd.f32 %v1943_v36, %v1939_v35  ;;  %v1928_v37 = vadd.f32 %v1927_v34, %v1923_v25 }
 0x206   : > { %v1929_v39 = vrot.slane %v1928_v37, 4  ;;  %v1945_v40 = vadd.f32 %v1944_v26, %v1940_v38 }
 0x208   : > { %v1930_v42 = vadd.f32 %v1929_v39, %v1928_v37  ;;  %v1946_v2 = vrot.slane %v1945_v40, 4 }
 0x20a   : > { %v1931_v44 = vrot.slane %v1930_v42, 2  ;;  %v1947_v43 = vadd.f32 %v1946_v2, %v1945_v40 }
 0x20c   : > { %v1932_v47 = vadd.f32 %v1931_v44, %v1930_v42  ;;  %v1948_v5 = vrot.slane %v1947_v43, 2 }
 0x20e   : > { %v1933_v48 = vrot.slane %v1932_v47, 1  ;;  %v1949_v49 = vadd.f32 %v1948_v5, %v1947_v43 }
 0x210   : > { %v1934_v51 = vadd.f32 %v1933_v48, %v1932_v47  ;;  %v1950_v52 = vrot.slane %v1949_v49, 1 }
 0x212   : > { %v1951_v53 = vadd.f32 %v1950_v52, %v1949_v49  ;;  %v1955_v54 = vrot.slane %v1934_v51, %v1954_v50 }
 0x214   : > { %v1959_v55 = vrot.slane %v1951_v53, %v1954_v50  ;;  %1960 = vst [vmem:[%s455_s14] sm:$0xff] %v1955_v54 }
 0x216   : > { %1961 = vst [vmem:[%s455_s14 + $0x8] sm:$0xff] %v1959_v55 }
 0x217 PF: > { %s19_s27 = sadd.s32 1, %s2910_s27  }
 0x218   : > { %p16_p7 = scmp.ge.s32.totalorder %s19_s27, 4  }
 0x21a   :  { %18 = sbr.rel (!%p16_p7) target bundleno = 1 (0x1), region = 107 }

// kernel: _lambda_.27
= control target key start
LH: loop header
LB: loop body
LE: loop exit
PB: predicated region body
PF: predicated region fallthrough
CT: control target
= control target key end

     0   :  { %vm1142_vm0 = vmmov 0   ;;  %s1403_s1 = inlined_call_operand.vmem [shape: bf16[1152,128], index: 1, kind: input, shape index: {}]   ;;  %s1404_s0 = inlined_call_operand.vmem [shape: bf16[8,1152], index: 0, kind: input, shape index: {}]   ;;  %s1405_s2 = inlined_call_operand.vmem [shape: bf16[8,128], index: 2, kind: output, shape index: {0}]   ;;  %s1406_s3 = inlined_call_operand.vmem [shape: f32[1,8,256], index: 3, kind: output, shape index: {1}]  }
   0x1   :  { %v1060_v0 = vld [vmem:[%s1403_s1 + $0x40] sm:$0xff]   ;;  %v1064_v4 = vld [vmem:[%s1403_s1 + $0x48] sm:$0xff]   ;;  %v1068_v8 = vld [vmem:[%s1403_s1 + $0x50] sm:$0xff]  }
   0x2   :  { %v1061_v1 = vld [vmem:[%s1403_s1 + $0xc0] sm:$0xff]   ;;  %941 = vmatprep.subr.bf16.mxu0 %v1060_v0  ;;  %v1065_v5 = vld [vmem:[%s1403_s1 + $0xc8] sm:$0xff]   ;;  %v1069_v9 = vld [vmem:[%s1403_s1 + $0xd0] sm:$0xff]  }
   0x3   :  { %v1062_v2 = vld [vmem:[%s1403_s1] sm:$0xff]   ;;  %963 = vmatprep.subr.bf16.mxu1 %v1061_v1  ;;  %v1066_v6 = vld [vmem:[%s1403_s1 + $0x8] sm:$0xff]   ;;  %v1070_v10 = vld [vmem:[%s1403_s1 + $0x10] sm:$0xff]  }
   0x4   :  { %v1063_v3 = vld [vmem:[%s1403_s1 + $0x80] sm:$0xff]   ;;  %942 = vmatpush3.bf16.msra.mxu0 %v1062_v2  ;;  %v1067_v7 = vld [vmem:[%s1403_s1 + $0x88] sm:$0xff]   ;;  %v1071_v11 = vld [vmem:[%s1403_s1 + $0x90] sm:$0xff]  }
   0x5   :  { %964 = vmatpush3.bf16.msra.mxu1 %v1063_v3  ;;  %943 = vmatprep.subr.bf16.mxu0 %v1064_v4  ;;  %v1072_v12 = vld [vmem:[%s1403_s1 + $0x58] sm:$0xff]   ;;  %v1076_v16 = vld [vmem:[%s1403_s1 + $0x60] sm:$0xff]   ;;  %v1080_v20 = vld [vmem:[%s1403_s1 + $0x68] sm:$0xff]  }
   0x6   :  { %965 = vmatprep.subr.bf16.mxu1 %v1065_v5  ;;  %v1073_v13 = vld [vmem:[%s1403_s1 + $0xd8] sm:$0xff]   ;;  %v1077_v17 = vld [vmem:[%s1403_s1 + $0xe0] sm:$0xff]   ;;  %v1081_v21 = vld [vmem:[%s1403_s1 + $0xe8] sm:$0xff]  }
   0x7   :  { %v1074_v14 = vld [vmem:[%s1403_s1 + $0x18] sm:$0xff]   ;;  %v1078_v18 = vld [vmem:[%s1403_s1 + $0x20] sm:$0xff]   ;;  %v1082_v22 = vld [vmem:[%s1403_s1 + $0x28] sm:$0xff]  }
   0x8   :  { %944 = vmatpush3.bf16.msra.mxu0 %v1066_v6  ;;  %v1075_v15 = vld [vmem:[%s1403_s1 + $0x98] sm:$0xff]   ;;  %v1079_v19 = vld [vmem:[%s1403_s1 + $0xa0] sm:$0xff]   ;;  %v1083_v23 = vld [vmem:[%s1403_s1 + $0xa8] sm:$0xff]  }
   0x9   :  { %966 = vmatpush3.bf16.msra.mxu1 %v1067_v7  ;;  %945 = vmatprep.subr.bf16.mxu0 %v1068_v8  ;;  %v1084_v24 = vld [vmem:[%s1403_s1 + $0x70] sm:$0xff]   ;;  %v1088_v28 = vld [vmem:[%s1403_s1 + $0x78] sm:$0xff]   ;;  %v14_v32 = vld [vmem:[%s1404_s0] sm:$0xff] }
   0xa   :  { %967 = vmatprep.subr.bf16.mxu1 %v1069_v9  ;;  %v1085_v25 = vld [vmem:[%s1403_s1 + $0xf0] sm:$0xff]   ;;  %v1089_v29 = vld [vmem:[%s1403_s1 + $0xf8] sm:$0xff]   ;;  %v15_v33 = vld [vmem:[%s1404_s0 + $0x8] sm:$0xff]  ;;  %v860_v34 = vcombine.low %v14_v32, %v14_v32  ;;  %v861_v35 = vcombine.high %v14_v32, %v14_v32 }
   0xb   :  { %v1086_v26 = vld [vmem:[%s1403_s1 + $0x30] sm:$0xff]   ;;  %v1090_v30 = vld [vmem:[%s1403_s1 + $0x38] sm:$0xff]   ;;  %v862_v36 = vcombine.low %v15_v33, %v15_v33  ;;  %v863_v37 = vcombine.high %v15_v33, %v15_v33  ;;  %v1096_v38 = vld [vmem:[%s1403_s1 + $0x140] sm:$0xff]  }
   0xc   :  { %946 = vmatpush3.bf16.msra.mxu0 %v1070_v10  ;;  %v1087_v27 = vld [vmem:[%s1403_s1 + $0xb0] sm:$0xff]   ;;  %v1091_v31 = vld [vmem:[%s1403_s1 + $0xb8] sm:$0xff]   ;;  %v1097_v39 = vld [vmem:[%s1403_s1 + $0x100] sm:$0xff]   ;;  %659 = vmatprep.mubr.bf16.mxu0 %v861_v35 }
   0xd   :  { %968 = vmatpush3.bf16.msra.mxu1 %v1071_v11  ;;  %947 = vmatprep.subr.bf16.mxu0 %v1072_v12  ;;  %v1098_v40 = vld [vmem:[%s1403_s1 + $0x1c0] sm:$0xff]   ;;  %v1100_v42 = vld [vmem:[%s1403_s1 + $0x148] sm:$0xff]   ;;  %v1104_v46 = vld [vmem:[%s1403_s1 + $0x150] sm:$0xff]  }
   0xe   :  { %969 = vmatprep.subr.bf16.mxu1 %v1073_v13  ;;  %699 = vmatprep.mubr.bf16.mxu1 %v863_v37  ;;  %v1099_v41 = vld [vmem:[%s1403_s1 + $0x180] sm:$0xff]   ;;  %v1101_v43 = vld [vmem:[%s1403_s1 + $0x108] sm:$0xff]   ;;  %v1105_v47 = vld [vmem:[%s1403_s1 + $0x110] sm:$0xff]   ;;  %v1141_v13 = vmov 0.0  }
   0xf   :  { %v1102_v44 = vld [vmem:[%s1403_s1 + $0x1c8] sm:$0xff]   ;;  %v1106_v48 = vld [vmem:[%s1403_s1 + $0x1d0] sm:$0xff]   ;;  %v1108_v50 = vld [vmem:[%s1403_s1 + $0x158] sm:$0xff]  }
  0x10   :  { %948 = vmatpush3.bf16.msra.mxu0 %v1074_v14  ;;  %v1103_v45 = vld [vmem:[%s1403_s1 + $0x188] sm:$0xff]   ;;  %v1107_v49 = vld [vmem:[%s1403_s1 + $0x190] sm:$0xff]   ;;  %v1109_v51 = vld [vmem:[%s1403_s1 + $0x118] sm:$0xff]  }
  0x11   :  { %970 = vmatpush3.bf16.msra.mxu1 %v1075_v15  ;;  %949 = vmatprep.subr.bf16.mxu0 %v1076_v16  ;;  %v1110_v52 = vld [vmem:[%s1403_s1 + $0x1d8] sm:$0xff]   ;;  %v1112_v54 = vld [vmem:[%s1403_s1 + $0x160] sm:$0xff]   ;;  %v1116_v58 = vld [vmem:[%s1403_s1 + $0x168] sm:$0xff]  }
  0x12   :  { %971 = vmatprep.subr.bf16.mxu1 %v1077_v17  ;;  %v1111_v53 = vld [vmem:[%s1403_s1 + $0x198] sm:$0xff]   ;;  %v1113_v55 = vld [vmem:[%s1403_s1 + $0x120] sm:$0xff]   ;;  %v1117_v59 = vld [vmem:[%s1403_s1 + $0x128] sm:$0xff]  }
  0x13   :  { %v1114_v56 = vld [vmem:[%s1403_s1 + $0x1e0] sm:$0xff]   ;;  %v1118_v60 = vld [vmem:[%s1403_s1 + $0x1e8] sm:$0xff]   ;;  %v1120_v62 = vld [vmem:[%s1403_s1 + $0x170] sm:$0xff]  }
  0x14   :  { %950 = vmatpush3.bf16.msra.mxu0 %v1078_v18  ;;  %v1115_v57 = vld [vmem:[%s1403_s1 + $0x1a0] sm:$0xff]   ;;  %v1119_v61 = vld [vmem:[%s1403_s1 + $0x1a8] sm:$0xff]   ;;  %v1121_v63 = vld [vmem:[%s1403_s1 + $0x130] sm:$0xff]  }
  0x15   :  { %972 = vmatpush3.bf16.msra.mxu1 %v1079_v19  ;;  %951 = vmatprep.subr.bf16.mxu0 %v1080_v20  ;;  %v1122_v0 = vld [vmem:[%s1403_s1 + $0x1f0] sm:$0xff]   ;;  %v1124_v2 = vld [vmem:[%s1403_s1 + $0x178] sm:$0xff]   ;;  %v1132_v12 = vld [vmem:[%s1403_s1 + $0x200] sm:$0xff]  }
  0x16   :  { %973 = vmatprep.subr.bf16.mxu1 %v1081_v21  ;;  %v1123_v1 = vld [vmem:[%s1403_s1 + $0x1b0] sm:$0xff]   ;;  %v1125_v3 = vld [vmem:[%s1403_s1 + $0x138] sm:$0xff]   ;;  %v1133_v14 = vld [vmem:[%s1403_s1 + $0x208] sm:$0xff]  }
  0x17   :  { %v1126_v4 = vld [vmem:[%s1403_s1 + $0x1f8] sm:$0xff]   ;;  %v16_v5 = vld [vmem:[%s1404_s0 + $0x10] sm:$0xff]  ;;  %v1136_v17 = vld [vmem:[%s1403_s1 + $0x220] sm:$0xff]  }
  0x18   :  { %952 = vmatpush3.bf16.msra.mxu0 %v1082_v22  ;;  %v865_v6 = vcombine.high %v16_v5, %v16_v5  ;;  %v1129_v7 = vld [vmem:[%s1403_s1 + $0x1b8] sm:$0xff]   ;;  %v864_v8 = vcombine.low %v16_v5, %v16_v5  ;;  %v1134_v15 = vld [vmem:[%s1403_s1 + $0x210] sm:$0xff]   ;;  %v1137_v18 = vld [vmem:[%s1403_s1 + $0x228] sm:$0xff]  }
  0x19   :  { %974 = vmatpush3.bf16.msra.mxu1 %v1083_v23  ;;  %953 = vmatprep.subr.bf16.mxu0 %v1084_v24  ;;  %v17_v9 = vld [vmem:[%s1404_s0 + $0x18] sm:$0xff]  ;;  %v1138_v19 = vld [vmem:[%s1403_s1 + $0x230] sm:$0xff]   ;;  %v1140_v21 = vld [vmem:[%s1404_s0 + $0x20] ss:$0 sps:$4 sm:$0xff]  }
  0x1a   :  { %975 = vmatprep.subr.bf16.mxu1 %v1085_v25  ;;  %v866_v10 = vcombine.low %v17_v9, %v17_v9  ;;  %v867_v11 = vcombine.high %v17_v9, %v17_v9  ;;  %v1135_v16 = vld [vmem:[%s1403_s1 + $0x218] sm:$0xff]  }
  0x1b   :  { %v1139_v20 = vld [vmem:[%s1403_s1 + $0x238] sm:$0xff]  }
  0x1c   :  { %954 = vmatpush3.bf16.msra.mxu0 %v1086_v26 }
  0x1d   :  { %976 = vmatpush3.bf16.msra.mxu1 %v1087_v27  ;;  %955 = vmatprep.subr.bf16.mxu0 %v1088_v28 }
  0x1e   :  { %977 = vmatprep.subr.bf16.mxu1 %v1089_v29 }
  0x20   :  { %956 = vmatpush3.bf16.msra.mxu0 %v1090_v30 }
  0x21   :  { %978 = vmatpush3.bf16.msra.mxu1 %v1091_v31  ;;  %985 = vmatprep.subr.bf16.mxu0 %v1096_v38 }
  0x22   :  { %1007 = vmatprep.subr.bf16.mxu1 %v1098_v40 }
  0x23   :  { %660 = vmatmul.mubr.bf16.vlgmr.msra.gmra.mrb[0].mxu0 %v860_v34 }
  0x24   :  { %700 = vmatmul.mubr.bf16.vlgmr.msra.gmra.mrb[0].mxu1 %v862_v36  ;;  %986 = vmatpush3.bf16.msra.mxu0 %v1097_v39 }
  0x25   :  { %1008 = vmatpush3.bf16.msra.mxu1 %v1099_v41  ;;  %987 = vmatprep.subr.bf16.mxu0 %v1100_v42 }
  0x26   :  { %1009 = vmatprep.subr.bf16.mxu1 %v1102_v44  ;;  %739 = vmatprep.mubr.bf16.mxu0 %v865_v6 }
  0x27   :  { %779 = vmatprep.mubr.bf16.mxu1 %v867_v11 }
  0x28   :  { %988 = vmatpush3.bf16.msra.mxu0 %v1101_v43 }
  0x29   :  { %1010 = vmatpush3.bf16.msra.mxu1 %v1103_v45  ;;  %989 = vmatprep.subr.bf16.mxu0 %v1104_v46 }
  0x2a   :  { %1011 = vmatprep.subr.bf16.mxu1 %v1106_v48 }
  0x2c   :  { %990 = vmatpush3.bf16.msra.mxu0 %v1105_v47 }
  0x2d   :  { %1012 = vmatpush3.bf16.msra.mxu1 %v1107_v49  ;;  %991 = vmatprep.subr.bf16.mxu0 %v1108_v50 }
  0x2e   :  { %1013 = vmatprep.subr.bf16.mxu1 %v1110_v52  ;;  %v842_v52 = vlaneseq }
  0x30   :  { %992 = vmatpush3.bf16.msra.mxu0 %v1109_v51 }
  0x31   :  { %1014 = vmatpush3.bf16.msra.mxu1 %v1111_v53  ;;  %993 = vmatprep.subr.bf16.mxu0 %v1112_v54 }
  0x32   :  { %1015 = vmatprep.subr.bf16.mxu1 %v1114_v56 }
  0x34   :  { %994 = vmatpush3.bf16.msra.mxu0 %v1113_v55 }
  0x35   :  { %1016 = vmatpush3.bf16.msra.mxu1 %v1115_v57  ;;  %995 = vmatprep.subr.bf16.mxu0 %v1116_v58  ;;  %v843_v58 = vshrl.u32 %v842_v52, 7 }
  0x36   :  { %1017 = vmatprep.subr.bf16.mxu1 %v1118_v60 }
  0x38   :  { %996 = vmatpush3.bf16.msra.mxu0 %v1117_v59 }
  0x39   :  { %1018 = vmatpush3.bf16.msra.mxu1 %v1119_v61  ;;  %997 = vmatprep.subr.bf16.mxu0 %v1120_v62 }
  0x3a   :  { %1019 = vmatprep.subr.bf16.mxu1 %v1122_v0 }
  0x3c   :  { %998 = vmatpush3.bf16.msra.mxu0 %v1121_v63  ;;  %v844_v63 = vsub.s32 0, %v843_v58 }
  0x3d   :  { %1020 = vmatpush3.bf16.msra.mxu1 %v1123_v1  ;;  %999 = vmatprep.subr.bf16.mxu0 %v1124_v2 }
  0x3e   :  { %1021 = vmatprep.subr.bf16.mxu1 %v1126_v4 }
  0x40   :  { %1000 = vmatpush3.bf16.msra.mxu0 %v1125_v3 }
  0x41   :  { %1022 = vmatpush3.bf16.msra.mxu1 %v1129_v7  ;;  %1038 = vmatprep.subr.bf16.mxu0 %v1141_v13 }
  0x43   :  { %740 = vmatmul.mubr.bf16.vlgmr.msra.gmra.mrb[4].mxu0 %v864_v8 }
  0x44   :  { %1039 = vmatpush3.bf16.msra.mxu0 %v1132_v12  ;;  %780 = vmatmul.mubr.bf16.vlgmr.msra.gmra.mrb[4].mxu1 %v866_v10 }
  0x45   :  { %1040 = vmatprep.subr.bf16.mxu0 %v1141_v13  ;;  %1054 = vmatprep.mubr.msk.bf16.mxu0 %vm1142_vm0, %v1141_v13 }
  0x48   :  { %1041 = vmatpush3.bf16.msra.mxu0 %v1133_v14 }
  0x49   :  { %1042 = vmatprep.subr.bf16.mxu0 %v1141_v13 }
  0x4c   :  { %1043 = vmatpush3.bf16.msra.mxu0 %v1134_v15 }
  0x4d   :  { %1044 = vmatprep.subr.bf16.mxu0 %v1141_v13 }
  0x50   :  { %1045 = vmatpush3.bf16.msra.mxu0 %v1135_v16 }
  0x51   :  { %1046 = vmatprep.subr.bf16.mxu0 %v1141_v13 }
  0x54   :  { %1047 = vmatpush3.bf16.msra.mxu0 %v1136_v17 }
  0x55   :  { %1048 = vmatprep.subr.bf16.mxu0 %v1141_v13 }
  0x58   :  { %1049 = vmatpush3.bf16.msra.mxu0 %v1137_v18 }
  0x59   :  { %1050 = vmatprep.subr.bf16.mxu0 %v1141_v13 }
  0x5c   :  { %1051 = vmatpush3.bf16.msra.mxu0 %v1138_v19 }
  0x5d   :  { %1052 = vmatprep.subr.bf16.mxu0 %v1141_v13 }
  0x60   :  { %1053 = vmatpush3.bf16.msra.mxu0 %v1139_v20 }
  0x63   :  { %1055 = vmatmul.mubr.bf16.vlgmr.msra.gmra.mrb[8].mxu0 %v1140_v21 }
  0xf6   :  { %v957_v22 = vpop.f32.mrb[0].mxu0 }
  0xf7   :  { %v979_v23 = vpop.f32.mrb[0].mxu1  ;;  %v958_v24 = vpop.f32.mrb[1].mxu0 }
  0xf8   :  { %v980_v25 = vpop.f32.mrb[1].mxu1  ;;  %v959_v26 = vadd.f32 %v958_v24, %v957_v22  ;;  %v960_v28 = vpop.f32.mrb[2].mxu0 }
  0xf9   :  { %v981_v27 = vadd.f32 %v980_v25, %v979_v23  ;;  %v982_v29 = vpop.f32.mrb[2].mxu1  ;;  %v961_v30 = vpop.f32.mrb[3].mxu0 }
  0xfa   :  { %v983_v31 = vpop.f32.mrb[3].mxu1 }
  0xfb   :  { %v702_v32 = vadd.f32 %v981_v27, %v959_v26 }
 0x116   :  { %v1001_v33 = vpop.f32.mrb[4].mxu0 }
 0x117   :  { %v1002_v34 = vpop.f32.mrb[5].mxu0  ;;  %v1023_v35 = vpop.f32.mrb[4].mxu1 }
 0x118   :  { %v1003_v36 = vadd.f32 %v1002_v34, %v1001_v33  ;;  %v1004_v37 = vpop.f32.mrb[6].mxu0  ;;  %v1024_v38 = vpop.f32.mrb[5].mxu1 }
 0x119   :  { %v1005_v39 = vpop.f32.mrb[7].mxu0  ;;  %v1025_v40 = vadd.f32 %v1024_v38, %v1023_v35  ;;  %v1026_v41 = vpop.f32.mrb[6].mxu1 }
 0x11a   :  { %v742_v42 = vadd.f32 %v1003_v36, %v702_v32  ;;  %v1027_v43 = vpop.f32.mrb[7].mxu1 }
 0x11c   :  { %v782_v44 = vadd.f32 %v1025_v40, %v742_v42 }
 0x136   :  { %v821_v45 = vpop.f32.mrb[8].mxu0 }
 0x137   :  { %v822_v46 = vadd.f32 %v821_v45, %v782_v44  ;;  %v1056_v47 = vpop.f32.mrb[9].mxu0 }
 0x138   :  { %v824_v48 = vpop.f32.mrb[10].mxu0 }
 0x139   :  { %v827_v49 = vpack.c.bf16 %v822_v46, %v822_v46  ;;  %v829_v50 = vrot.slane %v822_v46, 4  ;;  %v835_v51 = vmul.f32 %v822_v46, %v822_v46  ;;  %v1057_v53 = vpop.f32.mrb[11].mxu0 }
 0x13b   :  { %828 = vst [vmem:[%s1405_s2] sm:$0xf] %v827_v49  ;;  %v830_v54 = vadd.f32 %v829_v50, %v822_v46  ;;  %v836_v55 = vrot.slane %v835_v51, 4 }
 0x13d   :  { %v831_v56 = vrot.slane %v830_v54, 2  ;;  %v837_v57 = vadd.f32 %v836_v55, %v835_v51 }
 0x13f   :  { %v832_v59 = vadd.f32 %v831_v56, %v830_v54  ;;  %v838_v60 = vrot.slane %v837_v57, 2 }
 0x141   :  { %v833_v61 = vrot.slane %v832_v59, 1  ;;  %v839_v62 = vadd.f32 %v838_v60, %v837_v57 }
 0x143   :  { %v834_v0 = vadd.f32 %v833_v61, %v832_v59  ;;  %v840_v1 = vrot.slane %v839_v62, 1 }
 0x145   :  { %v841_v2 = vadd.f32 %v840_v1, %v839_v62  ;;  %v845_v3 = vrot.slane %v834_v0, %v844_v63 }
 0x147   :  { %v849_v4 = vrot.slane %v841_v2, %v844_v63  ;;  %850 = vst [vmem:[%s1406_s3] sm:$0xff] %v845_v3 }
 0x149   :  { %851 = vst [vmem:[%s1406_s3 + $0x8] sm:$0xff] %v849_v4 }

// kernel: _lambda_.29
= control target key start
LH: loop header
LB: loop body
LE: loop exit
PB: predicated region body
PF: predicated region fallthrough
CT: control target
= control target key end

     0   :  { %v199_v0 = vmov 0.0   ;;  %vm200_vm0 = vmmov 0   ;;  %v134_v14 = vlaneseq  ;;  %s257_s1 = inlined_call_operand.vmem [shape: bf16[128,128], index: 1, kind: input, shape index: {}]   ;;  %s258_s0 = inlined_call_operand.vmem [shape: bf16[8,128], index: 0, kind: input, shape index: {}]   ;;  %s259_s2 = inlined_call_operand.vmem [shape: bf16[8,128], index: 2, kind: output, shape index: {0}]   ;;  %s260_s3 = inlined_call_operand.vmem [shape: f32[1,8,256], index: 3, kind: output, shape index: {1}]  }
   0x1   :  { %169 = vmatprep.subr.bf16.mxu0 %v199_v0  ;;  %v191_v1 = vld [vmem:[%s257_s1] sm:$0xff]   ;;  %185 = vmatprep.mubr.msk.bf16.mxu0 %vm200_vm0, %v199_v0  ;;  %v192_v2 = vld [vmem:[%s257_s1 + $0x8] sm:$0xff]   ;;  %v193_v3 = vld [vmem:[%s257_s1 + $0x10] sm:$0xff]  }
   0x2   :  { %170 = vmatpush3.bf16.msra.mxu0 %v191_v1  ;;  %v194_v4 = vld [vmem:[%s257_s1 + $0x18] sm:$0xff]   ;;  %v195_v5 = vld [vmem:[%s257_s1 + $0x20] sm:$0xff]   ;;  %v196_v6 = vld [vmem:[%s257_s1 + $0x28] sm:$0xff]   ;;  %v135_v22 = vshrl.u32 %v134_v14, 7 }
   0x3   :  { %171 = vmatprep.subr.bf16.mxu0 %v199_v0  ;;  %v197_v7 = vld [vmem:[%s257_s1 + $0x30] sm:$0xff]   ;;  %v198_v8 = vld [vmem:[%s257_s1 + $0x38] sm:$0xff]   ;;  %v14_v9 = vld [vmem:[%s258_s0] sm:$0xf] }
   0x4   :  { %v136_v27 = vsub.s32 0, %v135_v22 }
   0x6   :  { %172 = vmatpush3.bf16.msra.mxu0 %v192_v2 }
   0x7   :  { %173 = vmatprep.subr.bf16.mxu0 %v199_v0 }
   0xa   :  { %174 = vmatpush3.bf16.msra.mxu0 %v193_v3 }
   0xb   :  { %175 = vmatprep.subr.bf16.mxu0 %v199_v0 }
   0xe   :  { %176 = vmatpush3.bf16.msra.mxu0 %v194_v4 }
   0xf   :  { %177 = vmatprep.subr.bf16.mxu0 %v199_v0 }
  0x12   :  { %178 = vmatpush3.bf16.msra.mxu0 %v195_v5 }
  0x13   :  { %179 = vmatprep.subr.bf16.mxu0 %v199_v0 }
  0x16   :  { %180 = vmatpush3.bf16.msra.mxu0 %v196_v6 }
  0x17   :  { %181 = vmatprep.subr.bf16.mxu0 %v199_v0 }
  0x1a   :  { %182 = vmatpush3.bf16.msra.mxu0 %v197_v7 }
  0x1b   :  { %183 = vmatprep.subr.bf16.mxu0 %v199_v0 }
  0x1e   :  { %184 = vmatpush3.bf16.msra.mxu0 %v198_v8 }
  0x21   :  { %186 = vmatmul.mubr.bf16.vlgmr.msra.gmra.mrb[0].mxu0 %v14_v9 }
  0xf4   :  { %v113_v10 = vpop.f32.mrb[0].mxu0 }
  0xf5   :  { %v119_v11 = vpack.c.bf16 %v113_v10, %v113_v10  ;;  %v121_v12 = vrot.slane %v113_v10, 4  ;;  %v127_v13 = vmul.f32 %v113_v10, %v113_v10  ;;  %v187_v15 = vpop.f32.mrb[1].mxu0 }
  0xf6   :  { %v116_v16 = vpop.f32.mrb[2].mxu0 }
  0xf7   :  { %120 = vst [vmem:[%s259_s2] sm:$0xf] %v119_v11  ;;  %v122_v17 = vadd.f32 %v121_v12, %v113_v10  ;;  %v128_v18 = vrot.slane %v127_v13, 4  ;;  %v188_v19 = vpop.f32.mrb[3].mxu0 }
  0xf9   :  { %v123_v20 = vrot.slane %v122_v17, 2  ;;  %v129_v21 = vadd.f32 %v128_v18, %v127_v13 }
  0xfb   :  { %v124_v23 = vadd.f32 %v123_v20, %v122_v17  ;;  %v130_v24 = vrot.slane %v129_v21, 2 }
  0xfd   :  { %v125_v25 = vrot.slane %v124_v23, 1  ;;  %v131_v26 = vadd.f32 %v130_v24, %v129_v21 }
  0xff   :  { %v126_v28 = vadd.f32 %v125_v25, %v124_v23  ;;  %v132_v29 = vrot.slane %v131_v26, 1 }
 0x101   :  { %v133_v30 = vadd.f32 %v132_v29, %v131_v26  ;;  %v137_v31 = vrot.slane %v126_v28, %v136_v27 }
 0x103   :  { %v141_v32 = vrot.slane %v133_v30, %v136_v27  ;;  %142 = vst [vmem:[%s260_s3] sm:$0xff] %v137_v31 }
 0x105   :  { %143 = vst [vmem:[%s260_s3 + $0x8] sm:$0xff] %v141_v32 }

// kernel: _lambda_.30
= control target key start
LH: loop header
LB: loop body
LE: loop exit
PB: predicated region body
PF: predicated region fallthrough
CT: control target
= control target key end

     0   :  { %s127_s0 = inlined_call_operand.vmem [shape: bf16[8,128], index: 0, kind: input, shape index: {}]   ;;  %s128_s1 = inlined_call_operand.vmem [shape: f32[1,128], index: 1, kind: input, shape index: {}]   ;;  %s129_s2 = inlined_call_operand.vmem [shape: f32[1,128], index: 2, kind: input, shape index: {}]   ;;  %s130_s3 = inlined_call_operand.vmem [shape: bf16[8,128], index: 3, kind: input, shape index: {}]   ;;  %s131_s4 = inlined_call_operand.vmem [shape: f32[1,128], index: 4, kind: input, shape index: {}]   ;;  %s132_s5 = inlined_call_operand.vmem [shape: f32[1,128], index: 5, kind: input, shape index: {}]   ;;  %s133_s6 = inlined_call_operand.vmem [shape: bf16[8,128], index: 6, kind: output, shape index: {}]  }
   0x1   :  { %v23_v0 = vld [vmem:[%s127_s0] sm:$0xf] }
   0x2   :  { %v67_v1 = vld [vmem:[%s128_s1] ss:$0 sm:$0xff]  ;;  %v24_v2 = vunpack.c.l.bf16 %v23_v0 }
   0x3   :  { %v41_v3 = vld [vmem:[%s130_s3] sm:$0xf] }
   0x4   :  { %v69_v4 = vld [vmem:[%s131_s4] ss:$0 sm:$0xff]  ;;  %v42_v6 = vunpack.c.l.bf16 %v41_v3  ;;  %v32_v7 = vmul.f32 %v67_v1, %v24_v2 }
   0x5   :  { %v68_v5 = vld [vmem:[%s129_s2] ss:$0 sm:$0xff] }
   0x6   :  { %v70_v8 = vld [vmem:[%s132_s5] ss:$0 sm:$0xff]  ;;  %v50_v9 = vmul.f32 %v69_v4, %v42_v6  ;;  %v40_v10 = vadd.f32 %v68_v5, %v32_v7 }
   0x8   :  { %v58_v11 = vadd.f32 %v70_v8, %v50_v9 }
   0xa   :  { %v59_v12 = vadd.f32 %v58_v11, %v40_v10 }
   0xc   :  { %v60_v13 = vmax.f32 %v59_v12, 0.0 }
   0xe   :  { %v61_v14 = vpack.c.bf16 %v60_v13, %v60_v13 }
  0x10   :  { %62 = vst [vmem:[%s133_s6] sm:$0xf] %v61_v14 }

// kernel: _lambda_.35
= control target key start
LH: loop header
LB: loop body
LE: loop exit
PB: predicated region body
PF: predicated region fallthrough
CT: control target
= control target key end

     0   :  { %v180_v0 = vmov 0.0   ;;  %vm181_vm0 = vmmov 0   ;;  %s235_s1 = inlined_call_operand.vmem [shape: bf16[128,128], index: 1, kind: input, shape index: {}]   ;;  %s236_s0 = inlined_call_operand.vmem [shape: bf16[8,128], index: 0, kind: input, shape index: {}]   ;;  %s237_s2 = inlined_call_operand.vmem [shape: f32[1,128], index: 2, kind: input, shape index: {}]   ;;  %s238_s3 = inlined_call_operand.vmem [shape: f32[8,128], index: 3, kind: output, shape index: {}]  }
   0x1   :  { %150 = vmatprep.subr.bf16.mxu0 %v180_v0  ;;  %v172_v1 = vld [vmem:[%s235_s1] sm:$0xff]   ;;  %166 = vmatprep.mubr.msk.bf16.mxu0 %vm181_vm0, %v180_v0  ;;  %v173_v2 = vld [vmem:[%s235_s1 + $0x8] sm:$0xff]   ;;  %v174_v3 = vld [vmem:[%s235_s1 + $0x10] sm:$0xff]  }
   0x2   :  { %151 = vmatpush3.bf16.msra.mxu0 %v172_v1  ;;  %v175_v4 = vld [vmem:[%s235_s1 + $0x18] sm:$0xff]   ;;  %v176_v5 = vld [vmem:[%s235_s1 + $0x20] sm:$0xff]   ;;  %v177_v6 = vld [vmem:[%s235_s1 + $0x28] sm:$0xff]  }
   0x3   :  { %152 = vmatprep.subr.bf16.mxu0 %v180_v0  ;;  %v178_v7 = vld [vmem:[%s235_s1 + $0x30] sm:$0xff]   ;;  %v179_v8 = vld [vmem:[%s235_s1 + $0x38] sm:$0xff]   ;;  %v15_v9 = vld [vmem:[%s236_s0] sm:$0xf] }
   0x4   :  { %v132_v10 = vld [vmem:[%s237_s2] ss:$0 sm:$0xff] }
   0x6   :  { %153 = vmatpush3.bf16.msra.mxu0 %v173_v2 }
   0x7   :  { %154 = vmatprep.subr.bf16.mxu0 %v180_v0 }
   0xa   :  { %155 = vmatpush3.bf16.msra.mxu0 %v174_v3 }
   0xb   :  { %156 = vmatprep.subr.bf16.mxu0 %v180_v0 }
   0xe   :  { %157 = vmatpush3.bf16.msra.mxu0 %v175_v4 }
   0xf   :  { %158 = vmatprep.subr.bf16.mxu0 %v180_v0 }
  0x12   :  { %159 = vmatpush3.bf16.msra.mxu0 %v176_v5 }
  0x13   :  { %160 = vmatprep.subr.bf16.mxu0 %v180_v0 }
  0x16   :  { %161 = vmatpush3.bf16.msra.mxu0 %v177_v6 }
  0x17   :  { %162 = vmatprep.subr.bf16.mxu0 %v180_v0 }
  0x1a   :  { %163 = vmatpush3.bf16.msra.mxu0 %v178_v7 }
  0x1b   :  { %164 = vmatprep.subr.bf16.mxu0 %v180_v0 }
  0x1e   :  { %165 = vmatpush3.bf16.msra.mxu0 %v179_v8 }
  0x21   :  { %167 = vmatmul.mubr.bf16.vlgmr.msra.gmra.mrb[0].mxu0 %v15_v9 }
  0xf4   :  { %v121_v11 = vpop.f32.mrb[0].mxu0 }
  0xf5   :  { %v122_v12 = vadd.f32 %v132_v10, %v121_v11  ;;  %v168_v13 = vpop.f32.mrb[1].mxu0 }
  0xf6   :  { %v124_v14 = vpop.f32.mrb[2].mxu0 }
  0xf7   :  { %127 = vst [vmem:[%s238_s3] sm:$0xff] %v122_v12  ;;  %v169_v15 = vpop.f32.mrb[3].mxu0 }

// kernel: _lambda_.32
= control target key start
LH: loop header
LB: loop body
LE: loop exit
PB: predicated region body
PF: predicated region fallthrough
CT: control target
= control target key end

     0   :  { %s2488_s27 = smov 0   ;;  %s2837_s0 = inlined_call_operand.vmem [shape: bf16[72,128], index: 0, kind: input, shape index: {}, may-alias: {0,1}]   ;;  %s2838_s1 = inlined_call_operand.vmem [shape: bf16[72,128], index: 1, kind: input, shape index: {}, may-alias: {0,1}]   ;;  %s2839_s2 = inlined_call_operand.vmem [shape: f32[72,2], index: 2, kind: input, shape index: {}, may-alias: {2,3}]   ;;  %s2840_s3 = inlined_call_operand.vmem [shape: f32[72,2], index: 3, kind: input, shape index: {}, may-alias: {2,3}]   ;;  %s2841_s4 = inlined_call_operand.vmem [shape: f32[1,128], index: 4, kind: input, shape index: {}]   ;;  %s2842_s5 = inlined_call_operand.vmem [shape: f32[1,128], index: 5, kind: input, shape index: {}]   ;;  %s2843_s6 = inlined_call_operand.vmem [shape: bf16[9,128,128], index: 6, kind: input, shape index: {}]   ;;  %s2844_s7 = inlined_call_operand.vmem [shape: bf16[48,128], index: 7, kind: output, shape index: {0}]   ;;  %s2845_s8 = inlined_call_operand.vmem [shape: f32[2,8,256], index: 8, kind: output, shape index: {1}]  }
   0x1 LB: > { %s2494_s28 = sadd.s32 4294967295, %s2439_s27   ;;  %p1814_p0 = scmp.ge.s32.totalorder %s2439_s27, 1  ;;  %s2439_s27 = sphi %s2488_s27, %s19_s27  }
   0x2   : > { %p307_p1 = scmp.lt.s32.totalorder %s2439_s27, 3 }
   0x4   : > { %p308_p2 = pnand %p1814_p0, %p307_p1 }
   0x5   : > { %s2499_s29 = smul.u32 (!%p308_p2), 3, %s2494_s28  ;;  %s369_s30 = sadd.s32 (!%p308_p2), 1, %s2494_s28  ;;  %v2358_v0 = vld [vmem:[%s2843_s6 + $0xc0] sm:$0xff] (!%p308_p2)   ;;  %v2441_v1 = vmov (!%p308_p2), 0   ;;  %v2359_v2 = vld [vmem:[%s2843_s6 + $0xc8] sm:$0xff] (!%p308_p2)   ;;  %v2361_v4 = vld [vmem:[%s2843_s6 + $0xd0] sm:$0xff] (!%p308_p2)  }
   0x6   : > { %311 = sbr.rel (%p308_p2) target bundleno = 531 (0x213), region = 48  ;;  %2354 = vset.pattern.permute.xlu1 (!%p308_p2), %v2441_v1  ;;  %2353 = vset.pattern.permute.xlu0 (!%p308_p2), %v2441_v1  ;;  %v2360_v3 = vld [vmem:[%s2843_s6 + $0x100] sm:$0xff] (!%p308_p2)   ;;  %v2362_v5 = vld [vmem:[%s2843_s6 + $0x108] sm:$0xff] (!%p308_p2)   ;;  %v2364_v6 = vld [vmem:[%s2843_s6 + $0x110] sm:$0xff] (!%p308_p2)   ;;  %vm427_vm0 = vcmask (!%p308_p2), 1043456   ;;  %vm1269_vm2 = vcmask (!%p308_p2), 1046528  }
   0x7   : > { %s370_s11 = smul.u32 (!%p308_p2), 3, %s369_s30  ;;  %p364_p3 = scmp.lt.s32.totalorder (!%p308_p2), %s2499_s29, 8  ;;  %2132 = vmatprep.subr.bf16.mxu1 (!%p308_p2), %v2358_v0  ;;  %2212 = vmatprep.subr.bf16.mxu0 (!%p308_p2), %v2360_v3  ;;  %v2363_v9 = vld [vmem:[%s2843_s6 + $0xd8] sm:$0xff] (!%p308_p2)   ;;  %v2365_v13 = vld [vmem:[%s2843_s6 + $0xe0] sm:$0xff] (!%p308_p2)   ;;  %v2367_v18 = vld [vmem:[%s2843_s6 + $0xe8] sm:$0xff] (!%p308_p2)   ;;  %vm1392_vm3 = vcmask (!%p308_p2), 1042432  }
   0x8   : > { %2133 = vmatpush3.bf16.msra.mxu1 (!%p308_p2), %v2358_v0  ;;  %2213 = vmatpush3.bf16.msra.mxu0 (!%p308_p2), %v2360_v3  ;;  %v2366_v14 = vld [vmem:[%s2843_s6 + $0x118] sm:$0xff] (!%p308_p2)   ;;  %v2370_v20 = vld [vmem:[%s2843_s6 + $0x120] sm:$0xff] (!%p308_p2)   ;;  %v2372_v21 = vld [vmem:[%s2843_s6 + $0x128] sm:$0xff] (!%p308_p2)   ;;  %vm1015_vm1 = vsmask.f32 (!%p308_p2), 3328  ;;  %p392_p5 = scmp.lt.s32.totalorder (!%p308_p2), %s2499_s29, 5 }
   0x9   : > { %p371_p4 = scmp.lt.s32.totalorder (!%p308_p2), %s370_s11, 8  ;;  %2134 = vmatprep.subr.bf16.mxu1 (!%p308_p2), %v2359_v2  ;;  %2214 = vmatprep.subr.bf16.mxu0 (!%p308_p2), %v2362_v5  ;;  %v2371_v22 = vld [vmem:[%s2843_s6 + $0xf0] sm:$0xff] (!%p308_p2)   ;;  %v2373_v24 = vld [vmem:[%s2843_s6 + $0xf8] sm:$0xff] (!%p308_p2)   ;;  %v2583_v26 = vld [vmem:[%s2843_s6] sm:$0xff] (!%p308_p2)   ;;  %vm881_vm4 = vsmask.f32 (!%p308_p2), 7424 }
   0xa   : > { %v2375_v23 = vld [vmem:[%s2843_s6 + $0x130] sm:$0xff] (!%p308_p2)   ;;  %v2377_v25 = vld [vmem:[%s2843_s6 + $0x138] sm:$0xff] (!%p308_p2)   ;;  %v2588_v27 = vld [vmem:[%s2843_s6 + $0x1c0] sm:$0xff] (!%p308_p2)   ;;  %p397_p6 = scmp.lt.s32.totalorder (!%p308_p2), %s2494_s28, 1 }
   0xb   : > { %v1826_v34 = vld [vmem:[%s2841_s4] ss:$0 sm:$0xff] (!%p308_p2) }
   0xc   : > { %2135 = vmatpush3.bf16.msra.mxu1 (!%p308_p2), %v2359_v2  ;;  %2215 = vmatpush3.bf16.msra.mxu0 (!%p308_p2), %v2362_v5  ;;  %v1827_v41 = vld [vmem:[%s2842_s5] ss:$0 sm:$0xff] (!%p308_p2) }
   0xd   : > { %s365_s18 = scalar_select %p364_p3, %s2499_s29, 8  ;;  %2136 = vmatprep.subr.bf16.mxu1 %v2361_v4  ;;  %2216 = vmatprep.subr.bf16.mxu0 %v2364_v6 }
   0xe   : > { %s2847_s11 = smov (!%p371_p4, %s370_s11), 8  ;;  %s2849_s29 = smov (!%p392_p5, %s2499_s29), 5 }
   0xf   : > { %s1817_s21 = sshll.u32 %s365_s18, 3  ;;  %s1815_s25 = sshll.u32 %s365_s18, 2 }
  0x10   : > { %s381_s24 = scalar_lea.vmem %s2839_s2, %s1817_s21  ;;  %s1816_s9 = sshll.u32 %s2847_s11, 2  ;;  %2137 = vmatpush3.bf16.msra.mxu1 %v2361_v4  ;;  %2217 = vmatpush3.bf16.msra.mxu0 %v2364_v6 }
  0x11   : > { %v2525_v7 = vld [vmem:[%s381_s24 + $0x10] sm:$0xff]  ;;  %v2527_v8 = vld [vmem:[%s381_s24] sm:$0xff]  ;;  %s1818_s10 = sshll.u32 %s2847_s11, 3  ;;  %s2537_s16 = scalar_lea.vmem %s2838_s1, %s1816_s9  ;;  %v2542_v11 = vld [vmem:[%s381_s24 + $0x8] sm:$0xff]  ;;  %2138 = vmatprep.subr.bf16.mxu1 %v2363_v9  ;;  %2218 = vmatprep.subr.bf16.mxu0 %v2366_v14 }
  0x12   : > { %488 = vperm.xlu1 %2354, %v2525_v7   ;;  %478 = vperm.xlu0 %2353, %v2527_v8   ;;  %s388_s19 = scalar_lea.vmem %s2840_s3, %s1818_s10  ;;  %s2547_s21 = scalar_lea.vmem %s2837_s0, %s1815_s25  ;;  %v2357_v12 = vld [vmem:[%s2537_s16] ss:$0 sps:$4 sm:$0xff]   ;;  %v2374_v29 = vld [vmem:[%s2537_s16 + $0x4] sm:$0xff]  }
  0x13   : > { %v441_v10 = vld [vmem:[%s388_s19] sm:$0xff]  ;;  %v443_v15 = vld [vmem:[%s388_s19 + $0x10] sm:$0xff]  ;;  %v442_v16 = vld [vmem:[%s388_s19 + $0x8] sm:$0xff]  ;;  %v437_v35 = vunpack.c.h.bf16 %v2374_v29  ;;  %v436_v36 = vunpack.c.l.bf16 %v2374_v29  ;;  %s1819_s30 = sshll.u32 %s2849_s29, 2  ;;  %s2851_s28 = smov (!%p397_p6, %s2494_s28), 1 }
  0x14   : > { %v2368_v17 = vld [vmem:[%s2547_s21 + $0x8] ss:$0 sps:$4 sm:$0xff]   ;;  %2139 = vmatpush3.bf16.msra.mxu1 %v2363_v9  ;;  %2219 = vmatpush3.bf16.msra.mxu0 %v2366_v14  ;;  %v2369_v28 = vld [vmem:[%s2547_s21] sm:$0xff]   ;;  %s395_s9 = scalar_lea.vmem %s2844_s7, %s1819_s30  ;;  %s2033_s29 = sshll.u32 %s2851_s28, 4 }
  0x15   : > { %2140 = vmatprep.subr.bf16.mxu1 %v2365_v13  ;;  %v430_v19 = vsel %vm427_vm0, %v2368_v17, %v2357_v12  ;;  %2220 = vmatprep.subr.bf16.mxu0 %v2370_v20  ;;  %v432_v31 = vunpack.c.l.bf16 %v2369_v28  ;;  %v433_v33 = vunpack.c.h.bf16 %v2369_v28  ;;  %v456_v42 = vmul.f32 %v1826_v34, %v437_v35  ;;  %v2378_v17 = vld [vmem:[%s2843_s6 + $0x8] sm:$0xff]   ;;  %s401_s16 = scalar_lea.vmem %s2845_s8, %s2033_s29 }
  0x16   : > { %493 = vperm.xlu1 %2354, %v441_v10   ;;  %483 = vperm.xlu0 %2353, %v2542_v11   ;;  %v434_v30 = vunpack.c.l.bf16 %v430_v19  ;;  %v435_v32 = vunpack.c.h.bf16 %v430_v19  ;;  %v455_v43 = vmul.f32 %v1826_v34, %v436_v36 }
  0x17   : > { %v451_v38 = vmul.f32 %v1826_v34, %v432_v31  ;;  %v452_v40 = vmul.f32 %v1826_v34, %v433_v33  ;;  %v469_v50 = vadd.f32 %v1827_v41, %v456_v42 }
  0x18   : > { %2141 = vmatpush3.bf16.msra.mxu1 %v2365_v13  ;;  %2221 = vmatpush3.bf16.msra.mxu0 %v2370_v20  ;;  %v453_v37 = vmul.f32 %v1826_v34, %v434_v30  ;;  %v454_v39 = vmul.f32 %v1826_v34, %v435_v32  ;;  %v468_v51 = vadd.f32 %v1827_v41, %v455_v43 }
  0x19   : > { %2142 = vmatprep.subr.bf16.mxu1 %v2367_v18  ;;  %2222 = vmatprep.subr.bf16.mxu0 %v2372_v21  ;;  %v464_v45 = vadd.f32 %v1827_v41, %v451_v38  ;;  %v465_v47 = vadd.f32 %v1827_v41, %v452_v40  ;;  %v475_v58 = vmax.f32 %v469_v50, 0.0  ;;  %v2380_v38 = vld [vmem:[%s2843_s6 + $0x10] sm:$0xff]   ;;  %v2442_v50 = vmov 1  }
  0x1a   : > { %503 = vperm.xlu1 %2354, %v443_v15   ;;  %498 = vperm.xlu0 %2353, %v442_v16   ;;  %v466_v44 = vadd.f32 %v1827_v41, %v453_v37  ;;  %v467_v46 = vadd.f32 %v1827_v41, %v454_v39  ;;  %v474_v59 = vmax.f32 %v468_v51, 0.0  ;;  %v2385_v51 = vld [vmem:[%s2843_s6 + $0x1d8] sm:$0xff]  }
  0x1b   : > { %v470_v53 = vmax.f32 %v464_v45, 0.0  ;;  %v471_v55 = vmax.f32 %v465_v47, 0.0 }
  0x1c   : > { %2143 = vmatpush3.bf16.msra.mxu1 %v2367_v18  ;;  %2223 = vmatpush3.bf16.msra.mxu0 %v2372_v21  ;;  %v472_v52 = vmax.f32 %v466_v44, 0.0  ;;  %v473_v54 = vmax.f32 %v467_v46, 0.0 }
  0x1d   : > { %2144 = vmatprep.subr.bf16.mxu1 %v2371_v22  ;;  %2224 = vmatprep.subr.bf16.mxu0 %v2375_v23 }
  0x1e   : > { %2356 = vset.pattern.permute.xlu1 %v2442_v50  ;;  %2355 = vset.pattern.permute.xlu0 %v2442_v50 }
  0x1f   : > { %1645 = vperm.xlu1 %2356, %v2542_v11   ;;  %1640 = vperm.xlu0 %2355, %v2527_v8   ;;  %v2386_v11 = vld [vmem:[%s2843_s6 + $0x28] sm:$0xff]   ;;  %v2388_v8 = vld [vmem:[%s2843_s6 + $0x30] sm:$0xff]  }
  0x20   : > { %2145 = vmatpush3.bf16.msra.mxu1 %v2371_v22  ;;  %2225 = vmatpush3.bf16.msra.mxu0 %v2375_v23 }
  0x21   : > { %2146 = vmatprep.subr.bf16.mxu1 %v2373_v24  ;;  %2226 = vmatprep.subr.bf16.mxu0 %v2377_v25 }
  0x23   : > { %1650 = vperm.xlu1 %2356, %v2525_v7   ;;  %v2389_v7 = vld [vmem:[%s2843_s6 + $0x1e8] sm:$0xff]  }
  0x24   : > { %2147 = vmatpush3.bf16.msra.mxu1 %v2373_v24  ;;  %2227 = vmatpush3.bf16.msra.mxu0 %v2377_v25 }
  0x25   : > { %2152 = vmatprep.subr.bf16.mxu1 %v2583_v26  ;;  %2232 = vmatprep.subr.bf16.mxu0 %v2588_v27 }
  0x91   : > { %v489_v48 = vpop.permute.xlu1 %488  ;;  %v479_v49 = vpop.permute.xlu0 %478 }
  0x92   : > { %v508_v60 = vmul.f32 %v489_v48, %v472_v52  ;;  %v506_v61 = vmul.f32 %v479_v49, %v470_v53  ;;  %v2382_v48 = vld [vmem:[%s2843_s6 + $0x18] sm:$0xff]   ;;  %v2383_v49 = vld [vmem:[%s2843_s6 + $0x1d0] sm:$0xff]   ;;  %v2387_v52 = vld [vmem:[%s2843_s6 + $0x1e0] sm:$0xff]  }
  0x93   : > { %v2390_v53 = vld [vmem:[%s2843_s6 + $0x38] sm:$0xff]  }
  0x95   : > { %v494_v56 = vpop.permute.xlu1 %493  ;;  %v484_v57 = vpop.permute.xlu0 %483 }
  0x96   : > { %v509_v62 = vmul.f32 %v494_v56, %v473_v54  ;;  %v507_v63 = vmul.f32 %v484_v57, %v471_v55  ;;  %v2391_v54 = vld [vmem:[%s2843_s6 + $0x1f0] sm:$0xff]   ;;  %v2392_v55 = vld [vmem:[%s2843_s6 + $0x180] sm:$0xff]   ;;  %v2393_v56 = vld [vmem:[%s2843_s6 + $0x1f8] sm:$0xff]  }
  0x97   : > { %v2394_v57 = vld [vmem:[%s2843_s6 + $0x188] sm:$0xff]  }
  0x98   : > { %v2600_v0 = vpack.c.bf16 %v509_v62, %v508_v60  ;;  %v512_v1 = vpack.c.bf16 %v507_v63, %v506_v61  ;;  %v2396_v61 = vld [vmem:[%s2843_s6 + $0x190] sm:$0xff]   ;;  %v2397_v62 = vld [vmem:[%s2843_s6 + $0x88] sm:$0xff]   ;;  %v2398_v63 = vld [vmem:[%s2843_s6 + $0x198] sm:$0xff]  }
  0x99   : > { %v504_v2 = vpop.permute.xlu1 %503  ;;  %v499_v3 = vpop.permute.xlu0 %498 }
  0x9a   : > { %v511_v4 = vmul.f32 %v504_v2, %v475_v58  ;;  %v510_v5 = vmul.f32 %v499_v3, %v474_v59  ;;  %v551_v6 = vrot.slane %v512_v1, 4  ;;  %v552_v9 = vrot.slane %v2600_v0, 4  ;;  %v2395_v58 = vld [vmem:[%s2843_s6 + $0x80] sm:$0xff]   ;;  %v2401_v2 = vld [vmem:[%s2843_s6 + $0x98] sm:$0xff]   ;;  %v2402_v3 = vld [vmem:[%s2843_s6 + $0x1a8] sm:$0xff]  }
  0x9b   : > { %v883_v10 = vshrl.u32 %v512_v1, 16  ;;  %v885_v12 = vshll.u32 %v512_v1, 16  ;;  %v890_v13 = vshll.u32 %v2600_v0, 16  ;;  %v894_v14 = vshrl.u32 %v2600_v0, 16 }
  0x9c   : > { %v2605_v15 = vpack.c.bf16 %v511_v4, %v510_v5  ;;  %v553_v16 = vsel %vm427_vm0, %v551_v6, %v552_v9  ;;  %v1270_v18 = vrot.slane %v512_v1, 1  ;;  %v2612_v19 = vrot.slane %v2600_v0, 1  ;;  %v2403_v4 = vld [vmem:[%s2843_s6 + $0xa0] sm:$0xff]   ;;  %v2404_v5 = vld [vmem:[%s2843_s6 + $0x1b0] sm:$0xff]   ;;  %v2405_v6 = vld [vmem:[%s2843_s6 + $0xa8] sm:$0xff]  }
  0x9d   : > { %2148 = vmatprep.mubr.bf16.mxu1 %v553_v16  ;;  %v1016_v20 = vrot.slane %v883_v10, 4  ;;  %v1017_v21 = vrot.slane %v885_v12, 5  ;;  %v1019_v22 = vrot.slane %v894_v14, 4  ;;  %v1020_v23 = vrot.slane %v890_v13, 5  ;;  %v2411_v16 = vld [vmem:[%s2843_s6 + $0x140] sm:$0xff]  }
  0x9e   : > { %2149 = vmatmul.mubr.bf16.vlgmr.msra.gmra.mrb[0].mxu1 %v552_v9  ;;  %v1024_v24 = vshll.u32 %v2605_v15, 16  ;;  %v892_v25 = vrot.slane %v890_v13, 1  ;;  %v2617_v28 = vsel %vm1269_vm2, %v1270_v18, %v2612_v19  ;;  %v887_v31 = vrot.slane %v885_v12, 1  ;;  %v2406_v9 = vld [vmem:[%s2843_s6 + $0x1b8] sm:$0xff]   ;;  %v2408_v12 = vld [vmem:[%s2843_s6 + $0x40] sm:$0xff]   ;;  %v2413_v18 = vld [vmem:[%s2843_s6 + $0x148] sm:$0xff]  }
  0x9f   : > { %2153 = vmatpush3.bf16.msra.mxu1 %v2583_v26  ;;  %2168 = vmatprep.mubr.bf16.mxu1 %v512_v1  ;;  %v1018_v29 = vor.u32 %v1017_v21, %v1016_v20  ;;  %v1021_v30 = vor.u32 %v1020_v23, %v1019_v22  ;;  %v1393_v32 = vrot.slane %v512_v1, 5  ;;  %v1394_v36 = vrot.slane %v2600_v0, 5  ;;  %v2381_v26 = vld [vmem:[%s2843_s6 + $0x1c8] sm:$0xff]   ;;  %v2400_v1 = vld [vmem:[%s2843_s6 + $0x1a0] sm:$0xff]   ;;  %v2409_v13 = vld [vmem:[%s2843_s6 + $0xb8] sm:$0xff]  }
  0xa0   : > { %2154 = vmatprep.subr.bf16.mxu1 %v2378_v17  ;;  %v1026_v33 = vrot.slane %v1024_v24, 5  ;;  %v2620_v34 = vor.u32 %v894_v14, %v892_v25  ;;  %v2622_v35 = vrot.slane %v1024_v24, 1  ;;  %v888_v39 = vor.u32 %v887_v31, %v883_v10  ;;  %v2407_v10 = vld [vmem:[%s2843_s6 + $0xb0] sm:$0xff]   ;;  %v2410_v14 = vld [vmem:[%s2843_s6 + $0x48] sm:$0xff]   ;;  %v2414_v20 = vld [vmem:[%s2843_s6 + $0x58] sm:$0xff]  }
  0xa1   : > { %v1022_v37 = vsel %vm1015_vm1, %v1018_v29, %v1021_v30  ;;  %v1396_v40 = vrot.slane %v2605_v15, 5  ;;  %v1516_v41 = vrot.slane %v2605_v15, 1  ;;  %v2639_v44 = vsel %vm1392_vm3, %v1393_v32, %v1394_v36  ;;  %v2415_v21 = vld [vmem:[%s2843_s6 + $0x150] sm:$0xff]   ;;  %v2417_v22 = vld [vmem:[%s2843_s6 + $0x158] sm:$0xff]   ;;  %v2418_v23 = vld [vmem:[%s2843_s6 + $0x68] sm:$0xff]  }
  0xa2   : > { %2228 = vmatprep.mubr.bf16.mxu0 %v1022_v37  ;;  %v1027_v42 = vsel %vm1015_vm1, %v1021_v30, %v1026_v33  ;;  %v1147_v43 = vsel %vm881_vm4, %v2620_v34, %v2622_v35  ;;  %v2642_v45 = vsel %vm881_vm4, %v888_v39, %v892_v25  ;;  %v1148_v59 = vshrl.u32 %v2605_v15, 16  ;;  %v2419_v24 = vld [vmem:[%s2843_s6 + $0x160] sm:$0xff]   ;;  %v2420_v25 = vld [vmem:[%s2843_s6 + $0x70] sm:$0xff]   ;;  %v2422_v29 = vld [vmem:[%s2843_s6 + $0x78] sm:$0xff]  }
  0xa3   : > { %2155 = vmatpush3.bf16.msra.mxu1 %v2378_v17  ;;  %2229 = vmatmul.mubr.bf16.vlgmr.msra.gmra.mrb[0].mxu0 %v1027_v42  ;;  %v2645_v46 = vsel %vm1392_vm3, %v1394_v36, %v1396_v40  ;;  %v2651_v47 = vsel %vm1269_vm2, %v2612_v19, %v1516_v41  ;;  %v2412_v17 = vld [vmem:[%s2843_s6 + $0x50] sm:$0xff]   ;;  %v2424_v31 = vld [vmem:[%s2843_s6 + $0x178] sm:$0xff]   ;;  %v2425_v32 = vld [vmem:[%s2843_s6 + $0x200] sm:$0xff]  }
  0xa4   : > { %2233 = vmatpush3.bf16.msra.mxu0 %v2588_v27  ;;  %2248 = vmatprep.mubr.bf16.mxu0 %v1147_v43  ;;  %v2384_v27 = vld [vmem:[%s2843_s6 + $0x20] sm:$0xff]   ;;  %v1150_v60 = vor.u32 %v1148_v59, %v2622_v35  ;;  %v2423_v30 = vld [vmem:[%s2843_s6 + $0x170] sm:$0xff]   ;;  %v2426_v33 = vld [vmem:[%s2843_s6 + $0x208] sm:$0xff]  }
  0xa5   : > { %2156 = vmatprep.subr.bf16.mxu1 %v2380_v38  ;;  %2234 = vmatprep.subr.bf16.mxu0 %v2381_v26  ;;  %v2427_v35 = vld [vmem:[%s2843_s6 + $0x210] sm:$0xff]   ;;  %v2429_v36 = vld [vmem:[%s2843_s6 + $0x220] sm:$0xff]   ;;  %v2430_v37 = vld [vmem:[%s2843_s6 + $0x228] sm:$0xff]  }
  0xa7   : > { %2157 = vmatpush3.bf16.msra.mxu1 %v2380_v38  ;;  %v2431_v38 = vld [vmem:[%s2843_s6 + $0x230] sm:$0xff]  }
  0xa8   : > { %2235 = vmatpush3.bf16.msra.mxu0 %v2381_v26  ;;  %2158 = vmatprep.subr.bf16.mxu1 %v2382_v48  ;;  %v2432_v26 = vld [vmem:[%s2843_s6 + $0x238] sm:$0xff]  }
  0xa9   : > { %2236 = vmatprep.subr.bf16.mxu0 %v2383_v49 }
  0xab   : > { %2159 = vmatpush3.bf16.msra.mxu1 %v2382_v48  ;;  %v1641_v48 = vpop.permute.xlu0 %1640 }
  0xac   : > { %2237 = vmatpush3.bf16.msra.mxu0 %v2383_v49  ;;  %2160 = vmatprep.subr.bf16.mxu1 %v2384_v27 }
  0xad   : > { %2238 = vmatprep.subr.bf16.mxu0 %v2385_v51 }
  0xaf   : > { %2161 = vmatpush3.bf16.msra.mxu1 %v2384_v27 }
  0xb0   : > { %2239 = vmatpush3.bf16.msra.mxu0 %v2385_v51  ;;  %2162 = vmatprep.subr.bf16.mxu1 %v2386_v11 }
  0xb1   : > { %2240 = vmatprep.subr.bf16.mxu0 %v2387_v52 }
  0xb3   : > { %2163 = vmatpush3.bf16.msra.mxu1 %v2386_v11 }
  0xb4   : > { %2241 = vmatpush3.bf16.msra.mxu0 %v2387_v52  ;;  %2164 = vmatprep.subr.bf16.mxu1 %v2388_v8 }
  0xb5   : > { %2242 = vmatprep.subr.bf16.mxu0 %v2389_v7 }
  0xb7   : > { %2165 = vmatpush3.bf16.msra.mxu1 %v2388_v8 }
  0xb8   : > { %2243 = vmatpush3.bf16.msra.mxu0 %v2389_v7  ;;  %2166 = vmatprep.subr.bf16.mxu1 %v2390_v53 }
  0xb9   : > { %2244 = vmatprep.subr.bf16.mxu0 %v2391_v54 }
  0xbb   : > { %2167 = vmatpush3.bf16.msra.mxu1 %v2390_v53 }
  0xbc   : > { %2245 = vmatpush3.bf16.msra.mxu0 %v2391_v54  ;;  %2172 = vmatprep.subr.bf16.mxu1 %v2392_v55 }
  0xbd   : > { %2246 = vmatprep.subr.bf16.mxu0 %v2393_v56 }
  0xbe   : > { %2169 = vmatmul.mubr.bf16.vlgmr.msra.gmra.mrb[0].mxu1 %v2600_v0 }
  0xbf   : > { %2173 = vmatpush3.bf16.msra.mxu1 %v2392_v55  ;;  %2188 = vmatprep.mubr.bf16.mxu1 %v2600_v0  ;;  %v2399_v0 = vld [vmem:[%s2843_s6 + $0x90] sm:$0xff]  }
  0xc0   : > { %2247 = vmatpush3.bf16.msra.mxu0 %v2393_v56  ;;  %2174 = vmatprep.subr.bf16.mxu1 %v2394_v57 }
  0xc1   : > { %2252 = vmatprep.subr.bf16.mxu0 %v2395_v58 }
  0xc3   : > { %2175 = vmatpush3.bf16.msra.mxu1 %v2394_v57  ;;  %2249 = vmatmul.mubr.bf16.vlgmr.msra.gmra.mrb[0].mxu0 %v1150_v60 }
  0xc4   : > { %2253 = vmatpush3.bf16.msra.mxu0 %v2395_v58  ;;  %2268 = vmatprep.mubr.bf16.mxu0 %v2617_v28  ;;  %v2421_v28 = vld [vmem:[%s2843_s6 + $0x168] sm:$0xff]  }
  0xc5   : > { %2176 = vmatprep.subr.bf16.mxu1 %v2396_v61  ;;  %2254 = vmatprep.subr.bf16.mxu0 %v2397_v62 }
  0xc7   : > { %2177 = vmatpush3.bf16.msra.mxu1 %v2396_v61  ;;  %v1675_v61 = vlaneseq }
  0xc8   : > { %2255 = vmatpush3.bf16.msra.mxu0 %v2397_v62  ;;  %2178 = vmatprep.subr.bf16.mxu1 %v2398_v63 }
  0xc9   : > { %2256 = vmatprep.subr.bf16.mxu0 %v2399_v0 }
  0xcb   : > { %2179 = vmatpush3.bf16.msra.mxu1 %v2398_v63 }
  0xcc   : > { %2257 = vmatpush3.bf16.msra.mxu0 %v2399_v0  ;;  %2180 = vmatprep.subr.bf16.mxu1 %v2400_v1 }
  0xcd   : > { %2258 = vmatprep.subr.bf16.mxu0 %v2401_v2 }
  0xcf   : > { %2181 = vmatpush3.bf16.msra.mxu1 %v2400_v1 }
  0xd0   : > { %2259 = vmatpush3.bf16.msra.mxu0 %v2401_v2  ;;  %2182 = vmatprep.subr.bf16.mxu1 %v2402_v3  ;;  %v1676_v2 = vshrl.u32 %v1675_v61, 7 }
  0xd1   : > { %2260 = vmatprep.subr.bf16.mxu0 %v2403_v4 }
  0xd3   : > { %2183 = vmatpush3.bf16.msra.mxu1 %v2402_v3 }
  0xd4   : > { %2261 = vmatpush3.bf16.msra.mxu0 %v2403_v4  ;;  %2184 = vmatprep.subr.bf16.mxu1 %v2404_v5 }
  0xd5   : > { %2262 = vmatprep.subr.bf16.mxu0 %v2405_v6 }
  0xd7   : > { %2185 = vmatpush3.bf16.msra.mxu1 %v2404_v5 }
  0xd8   : > { %2263 = vmatpush3.bf16.msra.mxu0 %v2405_v6  ;;  %2186 = vmatprep.subr.bf16.mxu1 %v2406_v9 }
  0xd9   : > { %2264 = vmatprep.subr.bf16.mxu0 %v2407_v10 }
  0xdb   : > { %2187 = vmatpush3.bf16.msra.mxu1 %v2406_v9  ;;  %v1677_v9 = vsub.s32 0, %v1676_v2 }
  0xdc   : > { %2265 = vmatpush3.bf16.msra.mxu0 %v2407_v10  ;;  %2192 = vmatprep.subr.bf16.mxu1 %v2408_v12 }
  0xdd   : > { %2266 = vmatprep.subr.bf16.mxu0 %v2409_v13 }
  0xde   : > { %2189 = vmatmul.mubr.bf16.vlgmr.msra.gmra.mrb[0].mxu1 %v2605_v15 }
  0xdf   : > { %2193 = vmatpush3.bf16.msra.mxu1 %v2408_v12  ;;  %2208 = vmatprep.mubr.bf16.mxu1 %v2642_v45 }
  0xe0   : > { %2267 = vmatpush3.bf16.msra.mxu0 %v2409_v13  ;;  %2194 = vmatprep.subr.bf16.mxu1 %v2410_v14 }
  0xe1   : > { %2272 = vmatprep.subr.bf16.mxu0 %v2411_v16 }
  0xe3   : > { %2195 = vmatpush3.bf16.msra.mxu1 %v2410_v14  ;;  %2269 = vmatmul.mubr.bf16.vlgmr.msra.gmra.mrb[0].mxu0 %v2612_v19  ;;  %v2416_v19 = vld [vmem:[%s2843_s6 + $0x60] sm:$0xff]  }
  0xe4   : > { %2273 = vmatpush3.bf16.msra.mxu0 %v2411_v16  ;;  %2288 = vmatprep.mubr.bf16.mxu0 %v2639_v44  ;;  %v1646_v44 = vpop.permute.xlu1 %1645 }
  0xe5   : > { %2196 = vmatprep.subr.bf16.mxu1 %v2412_v17  ;;  %2274 = vmatprep.subr.bf16.mxu0 %v2413_v18 }
  0xe7   : > { %2197 = vmatpush3.bf16.msra.mxu1 %v2412_v17 }
  0xe8   : > { %2275 = vmatpush3.bf16.msra.mxu0 %v2413_v18  ;;  %2198 = vmatprep.subr.bf16.mxu1 %v2414_v20 }
  0xe9   : > { %2276 = vmatprep.subr.bf16.mxu0 %v2415_v21 }
  0xeb   : > { %2199 = vmatpush3.bf16.msra.mxu1 %v2414_v20 }
  0xec   : > { %2277 = vmatpush3.bf16.msra.mxu0 %v2415_v21  ;;  %2200 = vmatprep.subr.bf16.mxu1 %v2416_v19 }
  0xed   : > { %2278 = vmatprep.subr.bf16.mxu0 %v2417_v22 }
  0xef   : > { %2201 = vmatpush3.bf16.msra.mxu1 %v2416_v19 }
  0xf0   : > { %2279 = vmatpush3.bf16.msra.mxu0 %v2417_v22  ;;  %2202 = vmatprep.subr.bf16.mxu1 %v2418_v23 }
  0xf1   : > { %2280 = vmatprep.subr.bf16.mxu0 %v2419_v24 }
  0xf3   : > { %2203 = vmatpush3.bf16.msra.mxu1 %v2418_v23 }
  0xf4   : > { %2281 = vmatpush3.bf16.msra.mxu0 %v2419_v24  ;;  %2204 = vmatprep.subr.bf16.mxu1 %v2420_v25 }
  0xf5   : > { %2282 = vmatprep.subr.bf16.mxu0 %v2421_v28 }
  0xf7   : > { %2205 = vmatpush3.bf16.msra.mxu1 %v2420_v25 }
  0xf8   : > { %2283 = vmatpush3.bf16.msra.mxu0 %v2421_v28  ;;  %2206 = vmatprep.subr.bf16.mxu1 %v2422_v29 }
  0xf9   : > { %2284 = vmatprep.subr.bf16.mxu0 %v2423_v30 }
  0xfb   : > { %2207 = vmatpush3.bf16.msra.mxu1 %v2422_v29 }
  0xfc   : > { %2285 = vmatpush3.bf16.msra.mxu0 %v2423_v30 }
  0xfd   : > { %2286 = vmatprep.subr.bf16.mxu0 %v2424_v31 }
  0xfe   : > { %2209 = vmatmul.mubr.bf16.vlgmr.msra.gmra.mrb[0].mxu1 %v2620_v34  ;;  %v2428_v34 = vld [vmem:[%s2843_s6 + $0x218] sm:$0xff]  }
 0x100   : > { %2287 = vmatpush3.bf16.msra.mxu0 %v2424_v31 }
 0x101   : > { %2292 = vmatprep.subr.bf16.mxu0 %v2425_v32 }
 0x103   : > { %2289 = vmatmul.mubr.bf16.vlgmr.msra.gmra.mrb[0].mxu0 %v2645_v46 }
 0x104   : > { %2293 = vmatpush3.bf16.msra.mxu0 %v2425_v32  ;;  %2308 = vmatprep.mubr.bf16.mxu0 %v2651_v47 }
 0x105   : > { %2294 = vmatprep.subr.bf16.mxu0 %v2426_v33 }
 0x108   : > { %2295 = vmatpush3.bf16.msra.mxu0 %v2426_v33 }
 0x109   : > { %2296 = vmatprep.subr.bf16.mxu0 %v2427_v35 }
 0x10c   : > { %2297 = vmatpush3.bf16.msra.mxu0 %v2427_v35 }
 0x10d   : > { %2298 = vmatprep.subr.bf16.mxu0 %v2428_v34 }
 0x110   : > { %2299 = vmatpush3.bf16.msra.mxu0 %v2428_v34 }
 0x111   : > { %2300 = vmatprep.subr.bf16.mxu0 %v2429_v36 }
 0x114   : > { %2301 = vmatpush3.bf16.msra.mxu0 %v2429_v36 }
 0x115   : > { %2302 = vmatprep.subr.bf16.mxu0 %v2430_v37 }
 0x118   : > { %2303 = vmatpush3.bf16.msra.mxu0 %v2430_v37 }
 0x119   : > { %2304 = vmatprep.subr.bf16.mxu0 %v2431_v38 }
 0x11c   : > { %2305 = vmatpush3.bf16.msra.mxu0 %v2431_v38 }
 0x11d   : > { %2306 = vmatprep.subr.bf16.mxu0 %v2432_v26 }
 0x120   : > { %2307 = vmatpush3.bf16.msra.mxu0 %v2432_v26 }
 0x123   : > { %2309 = vmatmul.mubr.bf16.vlgmr.msra.gmra.mrb[0].mxu0 %v1516_v41  ;;  %v1651_v41 = vpop.permute.xlu1 %1650 }
 0x1d1   : > { %v2210_v39 = vpop.f32.mrb[0].mxu1 }
 0x1d2   : > { %v981_v40 = vpop.f32.mrb[1].mxu1 }
 0x1d3   : > { %v2211_v42 = vpop.f32.mrb[2].mxu1 }
 0x1d4   : > { %v984_v43 = vpop.f32.mrb[3].mxu1 }
 0x1f6   : > { %v2310_v45 = vpop.f32.mrb[0].mxu0 }
 0x1f7   : > { %v2312_v46 = vadd.f32 %v2310_v45, %v2210_v39  ;;  %v1602_v47 = vpop.f32.mrb[1].mxu0 }
 0x1f8   : > { %v2313_v49 = vadd.f32 %v1602_v47, %v981_v40  ;;  %v2311_v50 = vpop.f32.mrb[2].mxu0 }
 0x1f9   : > { %v2036_v15 = vpack.c.bf16 %v2312_v46, %v2312_v46  ;;  %v1605_v27 = vpop.f32.mrb[3].mxu0  ;;  %v1655_v52 = vmul.f32 %v2312_v46, %v1651_v41 }
 0x1fa   : > { %v1653_v51 = vmul.f32 %v2313_v49, %v1641_v48  ;;  %v2314_v11 = vadd.f32 %v1605_v27, %v984_v43 }
 0x1fb   : > { %1634 = vst [vmem:[%s395_s9 + $0x8] sm:$0xf] %v2036_v15  ;;  %v1666_v56 = vmul.f32 %v2312_v46, %v1655_v52 }
 0x1fc   : > { %v2040_v8 = vpack.c.bf16 %v2314_v11, %v2313_v49  ;;  %v1654_v7 = vmul.f32 %v2314_v11, %v1646_v44  ;;  %v1664_v53 = vmul.f32 %v2313_v49, %v1653_v51 }
 0x1fe   : > { %2041 = vst [vmem:[%s395_s9] sm:$0xff] %v2040_v8   ;;  %v1656_v54 = vadd.f32 %v1654_v7, %v1653_v51  ;;  %v1665_v55 = vmul.f32 %v2314_v11, %v1654_v7 }
 0x200   : > { %v1657_v57 = vadd.f32 %v1656_v54, %v1655_v52  ;;  %v1667_v58 = vadd.f32 %v1665_v55, %v1664_v53 }
 0x202   : > { %v1658_v59 = vrot.slane %v1657_v57, 4  ;;  %v1668_v60 = vadd.f32 %v1667_v58, %v1666_v56 }
 0x204   : > { %v1659_v62 = vadd.f32 %v1658_v59, %v1657_v57  ;;  %v1669_v63 = vrot.slane %v1668_v60, 4 }
 0x206   : > { %v1660_v0 = vrot.slane %v1659_v62, 2  ;;  %v1670_v1 = vadd.f32 %v1669_v63, %v1668_v60 }
 0x208   : > { %v1661_v3 = vadd.f32 %v1660_v0, %v1659_v62  ;;  %v1671_v4 = vrot.slane %v1670_v1, 2 }
 0x20a   : > { %v1662_v5 = vrot.slane %v1661_v3, 1  ;;  %v1672_v6 = vadd.f32 %v1671_v4, %v1670_v1 }
 0x20c   : > { %v1663_v10 = vadd.f32 %v1662_v5, %v1661_v3  ;;  %v1673_v12 = vrot.slane %v1672_v6, 1 }
 0x20e   : > { %v1674_v13 = vadd.f32 %v1673_v12, %v1672_v6  ;;  %v1678_v14 = vrot.slane %v1663_v10, %v1677_v9 }
 0x210   : > { %v1682_v16 = vrot.slane %v1674_v13, %v1677_v9  ;;  %1683 = vst [vmem:[%s401_s16] sm:$0xff] %v1678_v14 }
 0x212   : > { %1684 = vst [vmem:[%s401_s16 + $0x8] sm:$0xff] %v1682_v16 }
 0x213 PF: > { %s19_s27 = sadd.s32 1, %s2439_s27  }
 0x214   : > { %p16_p7 = scmp.ge.s32.totalorder %s19_s27, 4  }
 0x216   :  { %18 = sbr.rel (!%p16_p7) target bundleno = 1 (0x1), region = 107 }

</bundles_post_ra>
